<compile_context>
chip_gen: v7x
topology: tpu7x:2x2x1
jax: 0.10.0
libtpu: 0.0.40
codegen_flags: <defaults>
</compile_context>

<pallas_src>
import jax
import jax.numpy as jnp
from jax.experimental import pallas as pl
from jax.experimental.pallas import tpu as pltpu

_BN_EPS = 1e-5
_GROWTH = 32
_BLOCK_CONFIG = (6, 12, 24, 16)
_NUM_INIT_FEATURES = 64
_BN_SIZE = 4
_MIN_ROWS_FOR_PALLAS = 8      # below this, launch overhead > the matmul itself


def _round_up(x, m):
    return (x + m - 1) // m * m


def _pick_tile(size, candidates):
    for c in candidates:
        if c <= size and size % c == 0:
            return c
    return size


# ----------------------------- Pallas kernels ------------------------------

def _matmul_kernel(x_ref, w_ref, o_ref):
    """Single-K-tile GEMM: bf16 operands, f32 MXU accumulation, bf16 store."""
    o_ref[...] = jnp.dot(x_ref[...], w_ref[...],
                         preferred_element_type=jnp.float32).astype(o_ref.dtype)


def _bn_relu_matmul_kernel(x_ref, s_ref, b_ref, w_ref, o_ref):
    """Fused BN(affine from precomputed batch stats) + ReLU + GEMM.

    x: (tm, K) bf16, s/b: (1, K) f32 per-channel scale/shift, w: (K, tn) bf16.
    Normalization math is done in f32 (v5e has no bf16 VPU), cast to bf16 for the MXU.
    """
    x = x_ref[...].astype(jnp.float32)
    y = jnp.maximum(x * s_ref[...] + b_ref[...], 0.0)
    o_ref[...] = jnp.dot(y.astype(jnp.bfloat16), w_ref[...],
                         preferred_element_type=jnp.float32).astype(o_ref.dtype)


def _affine_relu_kernel(x_ref, s_ref, b_ref, o_ref):
    """Per-channel affine (precomputed BN scale/shift) + ReLU, f32 math, bf16 out."""
    x = x_ref[...].astype(jnp.float32)
    o_ref[...] = jnp.maximum(x * s_ref[...] + b_ref[...], 0.0).astype(o_ref.dtype)


# --------------------------- pallas_call wrappers ---------------------------
# (NOT individually jitted — they are traced inside the whole-model jit.)

def _gemm_tiles(Mp, Np):
    tm = _pick_tile(Mp, (256, 128, 64, 32, 16))
    tn = _pick_tile(Np, (256, 128))
    # v7x: if the grid would otherwise be a single step, split M so both TCs get work.
    if Mp // tm == 1 and Np // tn == 1 and Mp >= 64 and Mp % 32 == 0:
        tm = Mp // 2
    return tm, tn


def pallas_matmul(x_bf16, w_padded):
    """x: (M, K) bf16 with K a multiple of 128; w: (K, Np) bf16. Returns (M, Np) bf16."""
    M, K = x_bf16.shape
    Kp, Np = w_padded.shape
    assert K == Kp, (K, Kp)
    Mp = _round_up(M, 16)
    if Mp != M:
        x_bf16 = jnp.pad(x_bf16, ((0, Mp - M), (0, 0)))
    tm, tn = _gemm_tiles(Mp, Np)
    out = pl.pallas_call(
        _matmul_kernel,
        out_shape=jax.ShapeDtypeStruct((Mp, Np), jnp.bfloat16),
        grid_spec=pltpu.PrefetchScalarGridSpec(
            num_scalar_prefetch=0,
            grid=(Mp // tm, Np // tn),
            in_specs=[pl.BlockSpec((tm, Kp), lambda i, j: (i, 0)),
                      pl.BlockSpec((Kp, tn), lambda i, j: (0, j))],
            out_specs=pl.BlockSpec((tm, tn), lambda i, j: (i, j))),
        compiler_params=pltpu.CompilerParams(
            dimension_semantics=("parallel", "parallel")),
    )(x_bf16, w_padded)
    return out[:M]


def pallas_bn_relu_matmul(x_bf16, scale_row, shift_row, w_padded):
    """relu(x * scale + shift) @ w in one kernel (BN folded into the GEMM operand)."""
    M, K = x_bf16.shape
    Kp, Np = w_padded.shape
    assert K == Kp, (K, Kp)
    Mp = _round_up(M, 16)
    if Mp != M:
        x_bf16 = jnp.pad(x_bf16, ((0, Mp - M), (0, 0)))
    tm, tn = _gemm_tiles(Mp, Np)
    out = pl.pallas_call(
        _bn_relu_matmul_kernel,
        out_shape=jax.ShapeDtypeStruct((Mp, Np), jnp.bfloat16),
        grid_spec=pltpu.PrefetchScalarGridSpec(
            num_scalar_prefetch=0,
            grid=(Mp // tm, Np // tn),
            in_specs=[pl.BlockSpec((tm, Kp), lambda i, j: (i, 0)),
                      pl.BlockSpec((1, Kp), lambda i, j: (0, 0)),
                      pl.BlockSpec((1, Kp), lambda i, j: (0, 0)),
                      pl.BlockSpec((Kp, tn), lambda i, j: (0, j))],
            out_specs=pl.BlockSpec((tm, tn), lambda i, j: (i, j))),
        compiler_params=pltpu.CompilerParams(
            dimension_semantics=("parallel", "parallel")),
    )(x_bf16, scale_row, shift_row, w_padded)
    return out[:M]


def pallas_affine_relu(x, scale_row, shift_row):
    """relu(x * scale + shift); x: (M, C) with C a multiple of 128. M-tiled (safe:
    the batch statistics are precomputed outside), so it fits v7x's smaller VMEM."""
    M, C = x.shape
    Mp = _round_up(M, 16)
    if Mp != M:
        x = jnp.pad(x, ((0, Mp - M), (0, 0)))
    tm = _pick_tile(Mp, (256, 128, 64, 32, 16))
    out = pl.pallas_call(
        _affine_relu_kernel,
        out_shape=jax.ShapeDtypeStruct((Mp, C), jnp.bfloat16),
        grid_spec=pltpu.PrefetchScalarGridSpec(
            num_scalar_prefetch=0,
            grid=(Mp // tm, C // 128),
            in_specs=[pl.BlockSpec((tm, 128), lambda i, c: (i, c)),
                      pl.BlockSpec((1, 128), lambda i, c: (0, c)),
                      pl.BlockSpec((1, 128), lambda i, c: (0, c))],
            out_specs=pl.BlockSpec((tm, 128), lambda i, c: (i, c))),
        compiler_params=pltpu.CompilerParams(
            dimension_semantics=("parallel", "parallel")),
    )(x, scale_row, shift_row)
    return out[:M]


# ----------------------- Pallas / jnp dispatch helpers -----------------------

def matmul_gemm(x_bf16, w):
    if x_bf16.shape[0] >= _MIN_ROWS_FOR_PALLAS:
        return pallas_matmul(x_bf16, w)
    return jnp.dot(x_bf16, w, preferred_element_type=jnp.float32).astype(jnp.bfloat16)


def bn_relu_matmul(x_bf16, s, b, w):
    if x_bf16.shape[0] >= _MIN_ROWS_FOR_PALLAS:
        return pallas_bn_relu_matmul(x_bf16, s, b, w)
    y = jnp.maximum(x_bf16.astype(jnp.float32) * s + b, 0.0)
    return jnp.dot(y.astype(jnp.bfloat16), w,
                   preferred_element_type=jnp.float32).astype(jnp.bfloat16)


def affine_relu(x, s, b):
    if x.shape[0] >= _MIN_ROWS_FOR_PALLAS:
        return pallas_affine_relu(x, s, b)
    return jnp.maximum(x.astype(jnp.float32) * s + b, 0.0).astype(jnp.bfloat16)


# ------------------------------ layer helpers -------------------------------

def bn_scale_shift(x2d, gamma_row, beta_row):
    """Training-mode batch statistics over rows -> per-channel (1, C) scale/shift.

    gamma_row / beta_row are zero-padded beyond the real channel count, so padded /
    not-yet-written channels get scale = shift = 0 and are annihilated downstream.
    """
    x32 = x2d.astype(jnp.float32)
    mean = jnp.mean(x32, axis=0, keepdims=True)
    var = jnp.mean(jnp.square(x32 - mean), axis=0, keepdims=True)
    scale = gamma_row * jax.lax.rsqrt(var + _BN_EPS)
    shift = beta_row - mean * scale
    return scale, shift


def _im2col(x, kh, kw, stride, padding):
    """NHWC -> (N*Ho*Wo, kh*kw*C) patches, tap-major / channel-minor (matches the
    (kh, kw, cin, cout) weight reshape)."""
    N, H, W, C = x.shape
    Ho = (H + 2 * padding - kh) // stride + 1
    Wo = (W + 2 * padding - kw) // stride + 1
    xp = jnp.pad(x, ((0, 0), (padding, padding), (padding, padding), (0, 0)))
    cols = [xp[:, i:i + stride * Ho:stride, j:j + stride * Wo:stride, :]
            for i in range(kh) for j in range(kw)]
    patches = jnp.concatenate(cols, axis=-1).reshape(N * Ho * Wo, kh * kw * C)
    return patches, Ho, Wo


def max_pool_3x3_s2_p1(x):
    # Sub-vreg 9-way max; left to jnp, fused under the whole-model jit.
    N, H, W, C = x.shape
    k, s, p = 3, 2, 1
    Ho = (H + 2 * p - k) // s + 1
    Wo = (W + 2 * p - k) // s + 1
    xp = jnp.pad(x, ((0, 0), (p, p), (p, p), (0, 0)), constant_values=-jnp.inf)
    out = xp[:, 0:s * Ho:s, 0:s * Wo:s, :]
    for i in range(k):
        for j in range(k):
            if i == 0 and j == 0:
                continue
            out = jnp.maximum(out, xp[:, i:i + s * Ho:s, j:j + s * Wo:s, :])
    return out


def avg_pool_2x2_s2(x):
    x32 = x.astype(jnp.float32)
    y = 0.25 * (x32[:, 0::2, 0::2] + x32[:, 0::2, 1::2]
                + x32[:, 1::2, 0::2] + x32[:, 1::2, 1::2])
    return y.astype(x.dtype)


def dense_layer(buf2d, lp, spatial):
    """One DenseNet layer on the full block buffer (zero tail beyond the layer's real
    input channels; masked by zero-padded gamma/beta and zero weight K rows)."""
    Nb, Hb, Wb = spatial
    # BN1 + ReLU fused into the 1x1 bottleneck conv GEMM.
    s1, b1 = bn_scale_shift(buf2d, lp["g1"], lp["b1"])
    y1 = bn_relu_matmul(buf2d, s1, b1, lp["w1"])                       # (M, 128) bf16
    # BN2 + ReLU (standalone: the 3x3 conv's spatial zero padding must be applied to
    # the *normalized* activation, so it cannot be folded into the next GEMM operand).
    s2, b2 = bn_scale_shift(y1, lp["g2"], lp["b2"])
    y1n = affine_relu(y1, s2, b2)                                      # (M, 128) bf16
    # 3x3 growth conv via im2col + GEMM.
    patches, _, _ = _im2col(y1n.reshape(Nb, Hb, Wb, _BN_SIZE * _GROWTH), 3, 3, 1, 1)
    y2 = matmul_gemm(patches, lp["w2"])                                # (M, 128) bf16
    return y2[:, :_GROWTH]                                             # real 32 channels


# ------------------------------- parameters ---------------------------------

def init_densenet121_params(key, num_classes):
    keys = iter(jax.random.split(key, 512))

    def nk():
        return next(keys)

    def conv_gemm(cout, cin, kh, kw, k_pad_to=None):
        """Conv weight stored directly in its padded GEMM layout (bf16).
        Rows beyond kh*kw*cin and columns beyond cout are zero (masking invariant)."""
        fan_in = cin * kh * kw
        w = (jax.random.normal(nk(), (cout, cin, kh, kw), jnp.float32)
             * (1.0 / jnp.sqrt(jnp.float32(fan_in))))
        wmat = jnp.transpose(w, (2, 3, 1, 0)).reshape(kh * kw * cin, cout)
        Kp = k_pad_to if k_pad_to is not None else _round_up(kh * kw * cin, 128)
        Np = _round_up(cout, 128)
        wmat = jnp.pad(wmat, ((0, Kp - kh * kw * cin), (0, Np - cout)))
        return wmat.astype(jnp.bfloat16)

    def bn_rows(c, pad_to):
        gamma = 1.0 + 0.1 * jax.random.normal(nk(), (c,), jnp.float32)
        beta = 0.1 * jax.random.normal(nk(), (c,), jnp.float32)
        return (jnp.pad(gamma, (0, pad_to - c)).reshape(1, pad_to),
                jnp.pad(beta, (0, pad_to - c)).reshape(1, pad_to))

    params = {"conv0": conv_gemm(_NUM_INIT_FEATURES, 3, 7, 7)}
    params["g0"], params["b0"] = bn_rows(_NUM_INIT_FEATURES, 128)
    params["blocks"] = []
    params["transitions"] = []

    num_features = _NUM_INIT_FEATURES
    for bi, num_layers in enumerate(_BLOCK_CONFIG):
        ctot = num_features + num_layers * _GROWTH        # 256 / 512 / 1024 / 1024
        block = []
        for li in range(num_layers):
            cin = num_features + li * _GROWTH
            g1, b1 = bn_rows(cin, ctot)                   # padded to full block width
            g2, b2 = bn_rows(_BN_SIZE * _GROWTH, _BN_SIZE * _GROWTH)
            block.append({
                "g1": g1, "b1": b1,
                "w1": conv_gemm(_BN_SIZE * _GROWTH, cin, 1, 1, k_pad_to=ctot),
                "g2": g2, "b2": b2,
                "w2": conv_gemm(_GROWTH, _BN_SIZE * _GROWTH, 3, 3),
            })
        params["blocks"].append(block)
        num_features = ctot
        if bi != len(_BLOCK_CONFIG) - 1:
            g, b = bn_rows(num_features, num_features)
            params["transitions"].append({
                "g": g, "b": b,
                "w": conv_gemm(num_features // 2, num_features, 1, 1),
            })
            num_features //= 2

    params["g5"], params["b5"] = bn_rows(num_features, num_features)   # 1024
    w_cls = (jax.random.normal(nk(), (num_features, num_classes), jnp.float32)
             * (1.0 / jnp.sqrt(jnp.float32(num_features))))
    params["cls_w"] = w_cls
    params["cls_b"] = 0.01 * jax.random.normal(nk(), (num_classes,), jnp.float32)
    return params


# -------------------------------- forward -----------------------------------

@jax.jit
def densenet121_forward(params, x_nchw):
    # PyTorch input is NCHW; convert once to the kernel layout (NHWC).
    x = jnp.transpose(x_nchw, (0, 2, 3, 1)).astype(jnp.float32)
    N = x.shape[0]

    # ---- Stem: conv 7x7/2 -> BN -> ReLU -> maxpool 3x3/2 ----
    patches, Ho, Wo = _im2col(x.astype(jnp.bfloat16), 7, 7, 2, 3)      # (M, 147)
    K = patches.shape[1]
    patches = jnp.pad(patches, ((0, 0), (0, _round_up(K, 128) - K)))
    y = matmul_gemm(patches, params["conv0"])                          # (M, 128) bf16
    s0, b0 = bn_scale_shift(y, params["g0"], params["b0"])
    y = affine_relu(y, s0, b0)                                         # (M, 128) bf16
    x = max_pool_3x3_s2_p1(y.reshape(N, Ho, Wo, -1))[..., :_NUM_INIT_FEATURES]

    # ---- Dense blocks + transitions ----
    for bi, num_layers in enumerate(_BLOCK_CONFIG):
        Nb, Hb, Wb, C0 = x.shape
        M = Nb * Hb * Wb
        ctot = C0 + num_layers * _GROWTH                  # lane-aligned block width
        buf = jnp.zeros((M, ctot), jnp.bfloat16)
        buf = buf.at[:, :C0].set(x.reshape(M, C0))
        # TODO(synk): write each layer's 32 channels straight into the block buffer via
        # input_output_aliases + offset out BlockSpec instead of .at[...].set copies.
        for li in range(num_layers):
            lp = params["blocks"][bi][li]
            cin = C0 + li * _GROWTH
            ynew = dense_layer(buf, lp, (Nb, Hb, Wb))
            buf = buf.at[:, cin:cin + _GROWTH].set(ynew)
        if bi != len(_BLOCK_CONFIG) - 1:
            tp = params["transitions"][bi]
            s, b = bn_scale_shift(buf, tp["g"], tp["b"])
            y = bn_relu_matmul(buf, s, b, tp["w"])                     # (M, ctot//2)
            x = avg_pool_2x2_s2(y.reshape(Nb, Hb, Wb, ctot // 2))
        else:
            x = buf.reshape(Nb, Hb, Wb, ctot)

    # ---- norm5 + ReLU + adaptive_avg_pool2d((1,1)) + Linear classifier ----
    # Tiny (M = N*H*W <= a few rows at this stage): plain jnp per review.
    Nb, Hb, Wb, C = x.shape
    x2d = x.reshape(Nb * Hb * Wb, C)
    s5, b5 = bn_scale_shift(x2d, params["g5"], params["b5"])
    y = jnp.maximum(x2d.astype(jnp.float32) * s5 + b5, 0.0)
    feat = jnp.mean(y.reshape(Nb, Hb * Wb, C), axis=1)                 # (N, 1024)
    return jnp.dot(feat, params["cls_w"]) + params["cls_b"]


# ---------------------------------- main -------------------------------------

if __name__ == "__main__":
    num_classes = 10
    key = jax.random.PRNGKey(0)
    pkey, xkey = jax.random.split(key)

    params = init_densenet121_params(pkey, num_classes)
    # 32x32 is the smallest spatial size that survives DenseNet-121's 5 downsamplings.
    x = jax.random.normal(xkey, (2, 3, 32, 32), jnp.float32)           # NCHW like PyTorch

    logits = densenet121_forward(params, x)
    logits = jax.block_until_ready(logits)

    assert logits.shape == (2, num_classes), logits.shape
    assert bool(jnp.all(jnp.isfinite(logits)))
    print("KERNEL_OK")
</pallas_src>

<mosaic_0001>
module attributes {stable_mosaic.version = 11 : i64} {
  func.func @_matmul_kernel(%arg0: i32, %arg1: i32, %arg2: memref<256x256xbf16, #tpu.memory_space<vmem>>, %arg3: memref<256x128xbf16, #tpu.memory_space<vmem>>, %arg4: memref<256x128xbf16, #tpu.memory_space<vmem>>) attributes {dimension_semantics = [#tpu.dimension_semantics<parallel>, #tpu.dimension_semantics<parallel>], iteration_bounds = array<i64: 2, 1>, scalar_prefetch = 0 : i64, scratch_operands = 0 : i64, tpu.core_type = #tpu.core_type<tc>, window_params = [{transform_indices = @transform_0, window_bounds = array<i64: 256, 256>}, {transform_indices = @transform_1, window_bounds = array<i64: 256, 128>}, {transform_indices = @transform_2, window_bounds = array<i64: 256, 128>}]} {
    %c0 = arith.constant 0 : index
    %c0_0 = arith.constant 0 : index
    %0 = vector.load %arg2[%c0, %c0_0] : memref<256x256xbf16, #tpu.memory_space<vmem>>, vector<256x256xbf16>
    %c0_1 = arith.constant 0 : index
    %c0_2 = arith.constant 0 : index
    %1 = vector.load %arg3[%c0_1, %c0_2] : memref<256x128xbf16, #tpu.memory_space<vmem>>, vector<256x128xbf16>
    %cst = arith.constant dense<0.000000e+00> : vector<256x128xf32>
    %2 = tpu.matmul %0, %1, %cst {dimension_numbers = #tpu.dot_dimension_numbers<[1], [0], [0], [1], [0, 0, 1, 1], [], []>} : vector<256x256xbf16>, vector<256x128xbf16>, vector<256x128xf32> -> vector<256x128xf32>
    %3 = arith.truncf %2 : vector<256x128xf32> to vector<256x128xbf16>
    %c0_3 = arith.constant 0 : index
    %c0_4 = arith.constant 0 : index
    %4 = vector.load %arg4[%c0_3, %c0_4] : memref<256x128xbf16, #tpu.memory_space<vmem>>, vector<256x128xbf16>
    tpu.vector_store %arg4[%c0_3, %c0_4], %3 {strides = array<i32>} : memref<256x128xbf16, #tpu.memory_space<vmem>>, vector<256x128xbf16>,
    return
  }
  func.func @transform_0(%arg0: i32, %arg1: i32) -> (i32, i32) {
    %c0_i32 = arith.constant 0 : i32
    %c0_i32_0 = arith.constant 0 : i32
    return %arg0, %c0_i32 : i32, i32
  }
  func.func @transform_1(%arg0: i32, %arg1: i32) -> (i32, i32) {
    %c0_i32 = arith.constant 0 : i32
    %c0_i32_0 = arith.constant 0 : i32
    return %c0_i32, %arg1 : i32, i32
  }
  func.func @transform_2(%arg0: i32, %arg1: i32) -> (i32, i32) {
    %c0_i32 = arith.constant 0 : i32
    return %arg0, %arg1 : i32, i32
  }
}

module attributes {stable_mosaic.version = 11 : i64} {
  func.func @_affine_relu_kernel(%arg0: i32, %arg1: i32, %arg2: memref<256x128xbf16, #tpu.memory_space<vmem>>, %arg3: memref<1x128xf32, #tpu.memory_space<vmem>>, %arg4: memref<1x128xf32, #tpu.memory_space<vmem>>, %arg5: memref<256x128xbf16, #tpu.memory_space<vmem>>) attributes {dimension_semantics = [#tpu.dimension_semantics<parallel>, #tpu.dimension_semantics<parallel>], iteration_bounds = array<i64: 2, 1>, scalar_prefetch = 0 : i64, scratch_operands = 0 : i64, tpu.core_type = #tpu.core_type<tc>, window_params = [{transform_indices = @transform_0, window_bounds = array<i64: 256, 128>}, {transform_indices = @transform_1, window_bounds = array<i64: 1, 128>}, {transform_indices = @transform_2, window_bounds = array<i64: 1, 128>}, {transform_indices = @transform_3, window_bounds = array<i64: 256, 128>}]} {
    %c0 = arith.constant 0 : index
    %c0_0 = arith.constant 0 : index
    %0 = vector.load %arg2[%c0, %c0_0] : memref<256x128xbf16, #tpu.memory_space<vmem>>, vector<256x128xbf16>
    %1 = arith.extf %0 : vector<256x128xbf16> to vector<256x128xf32>
    %c0_1 = arith.constant 0 : index
    %c0_2 = arith.constant 0 : index
    %2 = vector.load %arg3[%c0_1, %c0_2] : memref<1x128xf32, #tpu.memory_space<vmem>>, vector<1x128xf32>
    %3 = vector.broadcast %2 : vector<1x128xf32> to vector<256x128xf32>
    %4 = arith.mulf %1, %3 : vector<256x128xf32>
    %c0_3 = arith.constant 0 : index
    %c0_4 = arith.constant 0 : index
    %5 = vector.load %arg4[%c0_3, %c0_4] : memref<1x128xf32, #tpu.memory_space<vmem>>, vector<1x128xf32>
    %6 = vector.broadcast %5 : vector<1x128xf32> to vector<256x128xf32>
    %7 = arith.addf %4, %6 : vector<256x128xf32>
    %cst = arith.constant 0.000000e+00 : f32
    %8 = vector.broadcast %cst : f32 to vector<256x128xf32>
    %9 = arith.maximumf %7, %8 : vector<256x128xf32>
    %10 = arith.truncf %9 : vector<256x128xf32> to vector<256x128xbf16>
    %c0_5 = arith.constant 0 : index
    %c0_6 = arith.constant 0 : index
    %11 = vector.load %arg5[%c0_5, %c0_6] : memref<256x128xbf16, #tpu.memory_space<vmem>>, vector<256x128xbf16>
    tpu.vector_store %arg5[%c0_5, %c0_6], %10 {strides = array<i32>} : memref<256x128xbf16, #tpu.memory_space<vmem>>, vector<256x128xbf16>,
    return
  }
  func.func @transform_0(%arg0: i32, %arg1: i32) -> (i32, i32) {
    %c0_i32 = arith.constant 0 : i32
    return %arg0, %arg1 : i32, i32
  }
  func.func @transform_1(%arg0: i32, %arg1: i32) -> (i32, i32) {
    %c0_i32 = arith.constant 0 : i32
    %c0_i32_0 = arith.constant 0 : i32
    return %c0_i32, %arg1 : i32, i32
  }
  func.func @transform_2(%arg0: i32, %arg1: i32) -> (i32, i32) {
    %c0_i32 = arith.constant 0 : i32
    %c0_i32_0 = arith.constant 0 : i32
    return %c0_i32, %arg1 : i32, i32
  }
  func.func @transform_3(%arg0: i32, %arg1: i32) -> (i32, i32) {
    %c0_i32 = arith.constant 0 : i32
    return %arg0, %arg1 : i32, i32
  }
}

module attributes {stable_mosaic.version = 11 : i64} {
  func.func @_bn_relu_matmul_kernel(%arg0: i32, %arg1: i32, %arg2: memref<64x256xbf16, #tpu.memory_space<vmem>>, %arg3: memref<1x256xf32, #tpu.memory_space<vmem>>, %arg4: memref<1x256xf32, #tpu.memory_space<vmem>>, %arg5: memref<256x128xbf16, #tpu.memory_space<vmem>>, %arg6: memref<64x128xbf16, #tpu.memory_space<vmem>>) attributes {dimension_semantics = [#tpu.dimension_semantics<parallel>, #tpu.dimension_semantics<parallel>], iteration_bounds = array<i64: 2, 1>, scalar_prefetch = 0 : i64, scratch_operands = 0 : i64, tpu.core_type = #tpu.core_type<tc>, window_params = [{transform_indices = @transform_0, window_bounds = array<i64: 64, 256>}, {pipeline_mode = #tpu.pipeline_mode<synchronous>, transform_indices = @transform_1, window_bounds = array<i64: 1, 256>}, {pipeline_mode = #tpu.pipeline_mode<synchronous>, transform_indices = @transform_2, window_bounds = array<i64: 1, 256>}, {transform_indices = @transform_3, window_bounds = array<i64: 256, 128>}, {transform_indices = @transform_4, window_bounds = array<i64: 64, 128>}]} {
    %c0 = arith.constant 0 : index
    %c0_0 = arith.constant 0 : index
    %0 = vector.load %arg2[%c0, %c0_0] : memref<64x256xbf16, #tpu.memory_space<vmem>>, vector<64x256xbf16>
    %1 = arith.extf %0 : vector<64x256xbf16> to vector<64x256xf32>
    %c0_1 = arith.constant 0 : index
    %c0_2 = arith.constant 0 : index
    %2 = vector.load %arg3[%c0_1, %c0_2] : memref<1x256xf32, #tpu.memory_space<vmem>>, vector<1x256xf32>
    %3 = vector.broadcast %2 : vector<1x256xf32> to vector<64x256xf32>
    %4 = arith.mulf %1, %3 : vector<64x256xf32>
    %c0_3 = arith.constant 0 : index
    %c0_4 = arith.constant 0 : index
    %5 = vector.load %arg4[%c0_3, %c0_4] : memref<1x256xf32, #tpu.memory_space<vmem>>, vector<1x256xf32>
    %6 = vector.broadcast %5 : vector<1x256xf32> to vector<64x256xf32>
    %7 = arith.addf %4, %6 : vector<64x256xf32>
    %cst = arith.constant 0.000000e+00 : f32
    %8 = vector.broadcast %cst : f32 to vector<64x256xf32>
    %9 = arith.maximumf %7, %8 : vector<64x256xf32>
    %10 = arith.truncf %9 : vector<64x256xf32> to vector<64x256xbf16>
    %c0_5 = arith.constant 0 : index
    %c0_6 = arith.constant 0 : index
    %11 = vector.load %arg5[%c0_5, %c0_6] : memref<256x128xbf16, #tpu.memory_space<vmem>>, vector<256x128xbf16>
    %cst_7 = arith.constant dense<0.000000e+00> : vector<64x128xf32>
    %12 = tpu.matmul %10, %11, %cst_7 {dimension_numbers = #tpu.dot_dimension_numbers<[1], [0], [0], [1], [0, 0, 1, 1], [], []>} : vector<64x256xbf16>, vector<256x128xbf16>, vector<64x128xf32> -> vector<64x128xf32>
    %13 = arith.truncf %12 : vector<64x128xf32> to vector<64x128xbf16>
    %c0_8 = arith.constant 0 : index
    %c0_9 = arith.constant 0 : index
    %14 = vector.load %arg6[%c0_8, %c0_9] : memref<64x128xbf16, #tpu.memory_space<vmem>>, vector<64x128xbf16>
    tpu.vector_store %arg6[%c0_8, %c0_9], %13 {strides = array<i32>} : memref<64x128xbf16, #tpu.memory_space<vmem>>, vector<64x128xbf16>,
    return
  }
  func.func @transform_0(%arg0: i32, %arg1: i32) -> (i32, i32) {
    %c0_i32 = arith.constant 0 : i32
    %c0_i32_0 = arith.constant 0 : i32
    return %arg0, %c0_i32 : i32, i32
  }
  func.func @transform_1(%arg0: i32, %arg1: i32) -> (i32, i32) {
    %c0_i32 = arith.constant 0 : i32
    %c0_i32_0 = arith.constant 0 : i32
    %c0_i32_1 = arith.constant 0 : i32
    return %c0_i32, %c0_i32_0 : i32, i32
  }
  func.func @transform_2(%arg0: i32, %arg1: i32) -> (i32, i32) {
    %c0_i32 = arith.constant 0 : i32
    %c0_i32_0 = arith.constant 0 : i32
    %c0_i32_1 = arith.constant 0 : i32
    return %c0_i32, %c0_i32_0 : i32, i32
  }
  func.func @transform_3(%arg0: i32, %arg1: i32) -> (i32, i32) {
    %c0_i32 = arith.constant 0 : i32
    %c0_i32_0 = arith.constant 0 : i32
    return %c0_i32, %arg1 : i32, i32
  }
  func.func @transform_4(%arg0: i32, %arg1: i32) -> (i32, i32) {
    %c0_i32 = arith.constant 0 : i32
    return %arg0, %arg1 : i32, i32
  }
}

module attributes {stable_mosaic.version = 11 : i64} {
  func.func @_affine_relu_kernel(%arg0: i32, %arg1: i32, %arg2: memref<128x128xbf16, #tpu.memory_space<vmem>>, %arg3: memref<1x128xf32, #tpu.memory_space<vmem>>, %arg4: memref<1x128xf32, #tpu.memory_space<vmem>>, %arg5: memref<128x128xbf16, #tpu.memory_space<vmem>>) attributes {dimension_semantics = [#tpu.dimension_semantics<parallel>, #tpu.dimension_semantics<parallel>], iteration_bounds = array<i64: 1, 1>, scalar_prefetch = 0 : i64, scratch_operands = 0 : i64, tpu.core_type = #tpu.core_type<tc>, window_params = [{transform_indices = @transform_0, window_bounds = array<i64: 128, 128>}, {transform_indices = @transform_1, window_bounds = array<i64: 1, 128>}, {transform_indices = @transform_2, window_bounds = array<i64: 1, 128>}, {transform_indices = @transform_3, window_bounds = array<i64: 128, 128>}]} {
    %c0 = arith.constant 0 : index
    %c0_0 = arith.constant 0 : index
    %0 = vector.load %arg2[%c0, %c0_0] : memref<128x128xbf16, #tpu.memory_space<vmem>>, vector<128x128xbf16>
    %1 = arith.extf %0 : vector<128x128xbf16> to vector<128x128xf32>
    %c0_1 = arith.constant 0 : index
    %c0_2 = arith.constant 0 : index
    %2 = vector.load %arg3[%c0_1, %c0_2] : memref<1x128xf32, #tpu.memory_space<vmem>>, vector<1x128xf32>
    %3 = vector.broadcast %2 : vector<1x128xf32> to vector<128x128xf32>
    %4 = arith.mulf %1, %3 : vector<128x128xf32>
    %c0_3 = arith.constant 0 : index
    %c0_4 = arith.constant 0 : index
    %5 = vector.load %arg4[%c0_3, %c0_4] : memref<1x128xf32, #tpu.memory_space<vmem>>, vector<1x128xf32>
    %6 = vector.broadcast %5 : vector<1x128xf32> to vector<128x128xf32>
    %7 = arith.addf %4, %6 : vector<128x128xf32>
    %cst = arith.constant 0.000000e+00 : f32
    %8 = vector.broadcast %cst : f32 to vector<128x128xf32>
    %9 = arith.maximumf %7, %8 : vector<128x128xf32>
    %10 = arith.truncf %9 : vector<128x128xf32> to vector<128x128xbf16>
    %c0_5 = arith.constant 0 : index
    %c0_6 = arith.constant 0 : index
    %11 = vector.load %arg5[%c0_5, %c0_6] : memref<128x128xbf16, #tpu.memory_space<vmem>>, vector<128x128xbf16>
    tpu.vector_store %arg5[%c0_5, %c0_6], %10 {strides = array<i32>} : memref<128x128xbf16, #tpu.memory_space<vmem>>, vector<128x128xbf16>,
    return
  }
  func.func @transform_0(%arg0: i32, %arg1: i32) -> (i32, i32) {
    %c0_i32 = arith.constant 0 : i32
    return %arg0, %arg1 : i32, i32
  }
  func.func @transform_1(%arg0: i32, %arg1: i32) -> (i32, i32) {
    %c0_i32 = arith.constant 0 : i32
    %c0_i32_0 = arith.constant 0 : i32
    return %c0_i32, %arg1 : i32, i32
  }
  func.func @transform_2(%arg0: i32, %arg1: i32) -> (i32, i32) {
    %c0_i32 = arith.constant 0 : i32
    %c0_i32_0 = arith.constant 0 : i32
    return %c0_i32, %arg1 : i32, i32
  }
  func.func @transform_3(%arg0: i32, %arg1: i32) -> (i32, i32) {
    %c0_i32 = arith.constant 0 : i32
    return %arg0, %arg1 : i32, i32
  }
}

module attributes {stable_mosaic.version = 11 : i64} {
  func.func @_matmul_kernel(%arg0: i32, %arg1: i32, %arg2: memref<64x1152xbf16, #tpu.memory_space<vmem>>, %arg3: memref<1152x128xbf16, #tpu.memory_space<vmem>>, %arg4: memref<64x128xbf16, #tpu.memory_space<vmem>>) attributes {dimension_semantics = [#tpu.dimension_semantics<parallel>, #tpu.dimension_semantics<parallel>], iteration_bounds = array<i64: 2, 1>, scalar_prefetch = 0 : i64, scratch_operands = 0 : i64, tpu.core_type = #tpu.core_type<tc>, window_params = [{transform_indices = @transform_0, window_bounds = array<i64: 64, 1152>}, {transform_indices = @transform_1, window_bounds = array<i64: 1152, 128>}, {transform_indices = @transform_2, window_bounds = array<i64: 64, 128>}]} {
    %c0 = arith.constant 0 : index
    %c0_0 = arith.constant 0 : index
    %0 = vector.load %arg2[%c0, %c0_0] : memref<64x1152xbf16, #tpu.memory_space<vmem>>, vector<64x1152xbf16>
    %c0_1 = arith.constant 0 : index
    %c0_2 = arith.constant 0 : index
    %1 = vector.load %arg3[%c0_1, %c0_2] : memref<1152x128xbf16, #tpu.memory_space<vmem>>, vector<1152x128xbf16>
    %cst = arith.constant dense<0.000000e+00> : vector<64x128xf32>
    %2 = tpu.matmul %0, %1, %cst {dimension_numbers = #tpu.dot_dimension_numbers<[1], [0], [0], [1], [0, 0, 1, 1], [], []>} : vector<64x1152xbf16>, vector<1152x128xbf16>, vector<64x128xf32> -> vector<64x128xf32>
    %3 = arith.truncf %2 : vector<64x128xf32> to vector<64x128xbf16>
    %c0_3 = arith.constant 0 : index
    %c0_4 = arith.constant 0 : index
    %4 = vector.load %arg4[%c0_3, %c0_4] : memref<64x128xbf16, #tpu.memory_space<vmem>>, vector<64x128xbf16>
    tpu.vector_store %arg4[%c0_3, %c0_4], %3 {strides = array<i32>} : memref<64x128xbf16, #tpu.memory_space<vmem>>, vector<64x128xbf16>,
    return
  }
  func.func @transform_0(%arg0: i32, %arg1: i32) -> (i32, i32) {
    %c0_i32 = arith.constant 0 : i32
    %c0_i32_0 = arith.constant 0 : i32
    return %arg0, %c0_i32 : i32, i32
  }
  func.func @transform_1(%arg0: i32, %arg1: i32) -> (i32, i32) {
    %c0_i32 = arith.constant 0 : i32
    %c0_i32_0 = arith.constant 0 : i32
    return %c0_i32, %arg1 : i32, i32
  }
  func.func @transform_2(%arg0: i32, %arg1: i32) -> (i32, i32) {
    %c0_i32 = arith.constant 0 : i32
    return %arg0, %arg1 : i32, i32
  }
}

module attributes {stable_mosaic.version = 11 : i64} {
  func.func @_affine_relu_kernel(%arg0: i32, %arg1: i32, %arg2: memref<32x128xbf16, #tpu.memory_space<vmem>>, %arg3: memref<1x128xf32, #tpu.memory_space<vmem>>, %arg4: memref<1x128xf32, #tpu.memory_space<vmem>>, %arg5: memref<32x128xbf16, #tpu.memory_space<vmem>>) attributes {dimension_semantics = [#tpu.dimension_semantics<parallel>, #tpu.dimension_semantics<parallel>], iteration_bounds = array<i64: 1, 1>, scalar_prefetch = 0 : i64, scratch_operands = 0 : i64, tpu.core_type = #tpu.core_type<tc>, window_params = [{transform_indices = @transform_0, window_bounds = array<i64: 32, 128>}, {transform_indices = @transform_1, window_bounds = array<i64: 1, 128>}, {transform_indices = @transform_2, window_bounds = array<i64: 1, 128>}, {transform_indices = @transform_3, window_bounds = array<i64: 32, 128>}]} {
    %c0 = arith.constant 0 : index
    %c0_0 = arith.constant 0 : index
    %0 = vector.load %arg2[%c0, %c0_0] : memref<32x128xbf16, #tpu.memory_space<vmem>>, vector<32x128xbf16>
    %1 = arith.extf %0 : vector<32x128xbf16> to vector<32x128xf32>
    %c0_1 = arith.constant 0 : index
    %c0_2 = arith.constant 0 : index
    %2 = vector.load %arg3[%c0_1, %c0_2] : memref<1x128xf32, #tpu.memory_space<vmem>>, vector<1x128xf32>
    %3 = vector.broadcast %2 : vector<1x128xf32> to vector<32x128xf32>
    %4 = arith.mulf %1, %3 : vector<32x128xf32>
    %c0_3 = arith.constant 0 : index
    %c0_4 = arith.constant 0 : index
    %5 = vector.load %arg4[%c0_3, %c0_4] : memref<1x128xf32, #tpu.memory_space<vmem>>, vector<1x128xf32>
    %6 = vector.broadcast %5 : vector<1x128xf32> to vector<32x128xf32>
    %7 = arith.addf %4, %6 : vector<32x128xf32>
    %cst = arith.constant 0.000000e+00 : f32
    %8 = vector.broadcast %cst : f32 to vector<32x128xf32>
    %9 = arith.maximumf %7, %8 : vector<32x128xf32>
    %10 = arith.truncf %9 : vector<32x128xf32> to vector<32x128xbf16>
    %c0_5 = arith.constant 0 : index
    %c0_6 = arith.constant 0 : index
    %11 = vector.load %arg5[%c0_5, %c0_6] : memref<32x128xbf16, #tpu.memory_space<vmem>>, vector<32x128xbf16>
    tpu.vector_store %arg5[%c0_5, %c0_6], %10 {strides = array<i32>} : memref<32x128xbf16, #tpu.memory_space<vmem>>, vector<32x128xbf16>,
    return
  }
  func.func @transform_0(%arg0: i32, %arg1: i32) -> (i32, i32) {
    %c0_i32 = arith.constant 0 : i32
    return %arg0, %arg1 : i32, i32
  }
  func.func @transform_1(%arg0: i32, %arg1: i32) -> (i32, i32) {
    %c0_i32 = arith.constant 0 : i32
    %c0_i32_0 = arith.constant 0 : i32
    return %c0_i32, %arg1 : i32, i32
  }
  func.func @transform_2(%arg0: i32, %arg1: i32) -> (i32, i32) {
    %c0_i32 = arith.constant 0 : i32
    %c0_i32_0 = arith.constant 0 : i32
    return %c0_i32, %arg1 : i32, i32
  }
  func.func @transform_3(%arg0: i32, %arg1: i32) -> (i32, i32) {
    %c0_i32 = arith.constant 0 : i32
    return %arg0, %arg1 : i32, i32
  }
}

module attributes {stable_mosaic.version = 11 : i64} {
  func.func @_bn_relu_matmul_kernel(%arg0: i32, %arg1: i32, %arg2: memref<32x512xbf16, #tpu.memory_space<vmem>>, %arg3: memref<1x512xf32, #tpu.memory_space<vmem>>, %arg4: memref<1x512xf32, #tpu.memory_space<vmem>>, %arg5: memref<512x128xbf16, #tpu.memory_space<vmem>>, %arg6: memref<32x128xbf16, #tpu.memory_space<vmem>>) attributes {dimension_semantics = [#tpu.dimension_semantics<parallel>, #tpu.dimension_semantics<parallel>], iteration_bounds = array<i64: 1, 1>, scalar_prefetch = 0 : i64, scratch_operands = 0 : i64, tpu.core_type = #tpu.core_type<tc>, window_params = [{transform_indices = @transform_0, window_bounds = array<i64: 32, 512>}, {pipeline_mode = #tpu.pipeline_mode<synchronous>, transform_indices = @transform_1, window_bounds = array<i64: 1, 512>}, {pipeline_mode = #tpu.pipeline_mode<synchronous>, transform_indices = @transform_2, window_bounds = array<i64: 1, 512>}, {transform_indices = @transform_3, window_bounds = array<i64: 512, 128>}, {transform_indices = @transform_4, window_bounds = array<i64: 32, 128>}]} {
    %c0 = arith.constant 0 : index
    %c0_0 = arith.constant 0 : index
    %0 = vector.load %arg2[%c0, %c0_0] : memref<32x512xbf16, #tpu.memory_space<vmem>>, vector<32x512xbf16>
    %1 = arith.extf %0 : vector<32x512xbf16> to vector<32x512xf32>
    %c0_1 = arith.constant 0 : index
    %c0_2 = arith.constant 0 : index
    %2 = vector.load %arg3[%c0_1, %c0_2] : memref<1x512xf32, #tpu.memory_space<vmem>>, vector<1x512xf32>
    %3 = vector.broadcast %2 : vector<1x512xf32> to vector<32x512xf32>
    %4 = arith.mulf %1, %3 : vector<32x512xf32>
    %c0_3 = arith.constant 0 : index
    %c0_4 = arith.constant 0 : index
    %5 = vector.load %arg4[%c0_3, %c0_4] : memref<1x512xf32, #tpu.memory_space<vmem>>, vector<1x512xf32>
    %6 = vector.broadcast %5 : vector<1x512xf32> to vector<32x512xf32>
    %7 = arith.addf %4, %6 : vector<32x512xf32>
    %cst = arith.constant 0.000000e+00 : f32
    %8 = vector.broadcast %cst : f32 to vector<32x512xf32>
    %9 = arith.maximumf %7, %8 : vector<32x512xf32>
    %10 = arith.truncf %9 : vector<32x512xf32> to vector<32x512xbf16>
    %c0_5 = arith.constant 0 : index
    %c0_6 = arith.constant 0 : index
    %11 = vector.load %arg5[%c0_5, %c0_6] : memref<512x128xbf16, #tpu.memory_space<vmem>>, vector<512x128xbf16>
    %cst_7 = arith.constant dense<0.000000e+00> : vector<32x128xf32>
    %12 = tpu.matmul %10, %11, %cst_7 {dimension_numbers = #tpu.dot_dimension_numbers<[1], [0], [0], [1], [0, 0, 1, 1], [], []>} : vector<32x512xbf16>, vector<512x128xbf16>, vector<32x128xf32> -> vector<32x128xf32>
    %13 = arith.truncf %12 : vector<32x128xf32> to vector<32x128xbf16>
    %c0_8 = arith.constant 0 : index
    %c0_9 = arith.constant 0 : index
    %14 = vector.load %arg6[%c0_8, %c0_9] : memref<32x128xbf16, #tpu.memory_space<vmem>>, vector<32x128xbf16>
    tpu.vector_store %arg6[%c0_8, %c0_9], %13 {strides = array<i32>} : memref<32x128xbf16, #tpu.memory_space<vmem>>, vector<32x128xbf16>,
    return
  }
  func.func @transform_0(%arg0: i32, %arg1: i32) -> (i32, i32) {
    %c0_i32 = arith.constant 0 : i32
    %c0_i32_0 = arith.constant 0 : i32
    return %arg0, %c0_i32 : i32, i32
  }
  func.func @transform_1(%arg0: i32, %arg1: i32) -> (i32, i32) {
    %c0_i32 = arith.constant 0 : i32
    %c0_i32_0 = arith.constant 0 : i32
    %c0_i32_1 = arith.constant 0 : i32
    return %c0_i32, %c0_i32_0 : i32, i32
  }
  func.func @transform_2(%arg0: i32, %arg1: i32) -> (i32, i32) {
    %c0_i32 = arith.constant 0 : i32
    %c0_i32_0 = arith.constant 0 : i32
    %c0_i32_1 = arith.constant 0 : i32
    return %c0_i32, %c0_i32_0 : i32, i32
  }
  func.func @transform_3(%arg0: i32, %arg1: i32) -> (i32, i32) {
    %c0_i32 = arith.constant 0 : i32
    %c0_i32_0 = arith.constant 0 : i32
    return %c0_i32, %arg1 : i32, i32
  }
  func.func @transform_4(%arg0: i32, %arg1: i32) -> (i32, i32) {
    %c0_i32 = arith.constant 0 : i32
    return %arg0, %arg1 : i32, i32
  }
}

module attributes {stable_mosaic.version = 11 : i64} {
  func.func @_matmul_kernel(%arg0: i32, %arg1: i32, %arg2: memref<32x1152xbf16, #tpu.memory_space<vmem>>, %arg3: memref<1152x128xbf16, #tpu.memory_space<vmem>>, %arg4: memref<32x128xbf16, #tpu.memory_space<vmem>>) attributes {dimension_semantics = [#tpu.dimension_semantics<parallel>, #tpu.dimension_semantics<parallel>], iteration_bounds = array<i64: 1, 1>, scalar_prefetch = 0 : i64, scratch_operands = 0 : i64, tpu.core_type = #tpu.core_type<tc>, window_params = [{transform_indices = @transform_0, window_bounds = array<i64: 32, 1152>}, {transform_indices = @transform_1, window_bounds = array<i64: 1152, 128>}, {transform_indices = @transform_2, window_bounds = array<i64: 32, 128>}]} {
    %c0 = arith.constant 0 : index
    %c0_0 = arith.constant 0 : index
    %0 = vector.load %arg2[%c0, %c0_0] : memref<32x1152xbf16, #tpu.memory_space<vmem>>, vector<32x1152xbf16>
    %c0_1 = arith.constant 0 : index
    %c0_2 = arith.constant 0 : index
    %1 = vector.load %arg3[%c0_1, %c0_2] : memref<1152x128xbf16, #tpu.memory_space<vmem>>, vector<1152x128xbf16>
    %cst = arith.constant dense<0.000000e+00> : vector<32x128xf32>
    %2 = tpu.matmul %0, %1, %cst {dimension_numbers = #tpu.dot_dimension_numbers<[1], [0], [0], [1], [0, 0, 1, 1], [], []>} : vector<32x1152xbf16>, vector<1152x128xbf16>, vector<32x128xf32> -> vector<32x128xf32>
    %3 = arith.truncf %2 : vector<32x128xf32> to vector<32x128xbf16>
    %c0_3 = arith.constant 0 : index
    %c0_4 = arith.constant 0 : index
    %4 = vector.load %arg4[%c0_3, %c0_4] : memref<32x128xbf16, #tpu.memory_space<vmem>>, vector<32x128xbf16>
    tpu.vector_store %arg4[%c0_3, %c0_4], %3 {strides = array<i32>} : memref<32x128xbf16, #tpu.memory_space<vmem>>, vector<32x128xbf16>,
    return
  }
  func.func @transform_0(%arg0: i32, %arg1: i32) -> (i32, i32) {
    %c0_i32 = arith.constant 0 : i32
    %c0_i32_0 = arith.constant 0 : i32
    return %arg0, %c0_i32 : i32, i32
  }
  func.func @transform_1(%arg0: i32, %arg1: i32) -> (i32, i32) {
    %c0_i32 = arith.constant 0 : i32
    %c0_i32_0 = arith.constant 0 : i32
    return %c0_i32, %arg1 : i32, i32
  }
  func.func @transform_2(%arg0: i32, %arg1: i32) -> (i32, i32) {
    %c0_i32 = arith.constant 0 : i32
    return %arg0, %arg1 : i32, i32
  }
}

module attributes {stable_mosaic.version = 11 : i64} {
  func.func @_matmul_kernel(%arg0: i32, %arg1: i32, %arg2: memref<32x1152xbf16, #tpu.memory_space<vmem>>, %arg3: memref<1152x128xbf16, #tpu.memory_space<vmem>>, %arg4: memref<32x128xbf16, #tpu.memory_space<vmem>>) attributes {dimension_semantics = [#tpu.dimension_semantics<parallel>, #tpu.dimension_semantics<parallel>], iteration_bounds = array<i64: 1, 1>, scalar_prefetch = 0 : i64, scratch_operands = 0 : i64, tpu.core_type = #tpu.core_type<tc>, window_params = [{transform_indices = @transform_0, window_bounds = array<i64: 32, 1152>}, {transform_indices = @transform_1, window_bounds = array<i64: 1152, 128>}, {transform_indices = @transform_2, window_bounds = array<i64: 32, 128>}]} {
    %c0 = arith.constant 0 : index
    %c0_0 = arith.constant 0 : index
    %0 = vector.load %arg2[%c0, %c0_0] : memref<32x1152xbf16, #tpu.memory_space<vmem>>, vector<32x1152xbf16>
    %c0_1 = arith.constant 0 : index
    %c0_2 = arith.constant 0 : index
    %1 = vector.load %arg3[%c0_1, %c0_2] : memref<1152x128xbf16, #tpu.memory_space<vmem>>, vector<1152x128xbf16>
    %cst = arith.constant dense<0.000000e+00> : vector<32x128xf32>
    %2 = tpu.matmul %0, %1, %cst {dimension_numbers = #tpu.dot_dimension_numbers<[1], [0], [0], [1], [0, 0, 1, 1], [], []>} : vector<32x1152xbf16>, vector<1152x128xbf16>, vector<32x128xf32> -> vector<32x128xf32>
    %3 = arith.truncf %2 : vector<32x128xf32> to vector<32x128xbf16>
    %c0_3 = arith.constant 0 : index
    %c0_4 = arith.constant 0 : index
    %4 = vector.load %arg4[%c0_3, %c0_4] : memref<32x128xbf16, #tpu.memory_space<vmem>>, vector<32x128xbf16>
    tpu.vector_store %arg4[%c0_3, %c0_4], %3 {strides = array<i32>} : memref<32x128xbf16, #tpu.memory_space<vmem>>, vector<32x128xbf16>,
    return
  }
  func.func @transform_0(%arg0: i32, %arg1: i32) -> (i32, i32) {
    %c0_i32 = arith.constant 0 : i32
    %c0_i32_0 = arith.constant 0 : i32
    return %arg0, %c0_i32 : i32, i32
  }
  func.func @transform_1(%arg0: i32, %arg1: i32) -> (i32, i32) {
    %c0_i32 = arith.constant 0 : i32
    %c0_i32_0 = arith.constant 0 : i32
    return %c0_i32, %arg1 : i32, i32
  }
  func.func @transform_2(%arg0: i32, %arg1: i32) -> (i32, i32) {
    %c0_i32 = arith.constant 0 : i32
    return %arg0, %arg1 : i32, i32
  }
}

module attributes {stable_mosaic.version = 11 : i64} {
  func.func @_bn_relu_matmul_kernel(%arg0: i32, %arg1: i32, %arg2: memref<32x512xbf16, #tpu.memory_space<vmem>>, %arg3: memref<1x512xf32, #tpu.memory_space<vmem>>, %arg4: memref<1x512xf32, #tpu.memory_space<vmem>>, %arg5: memref<512x256xbf16, #tpu.memory_space<vmem>>, %arg6: memref<32x256xbf16, #tpu.memory_space<vmem>>) attributes {dimension_semantics = [#tpu.dimension_semantics<parallel>, #tpu.dimension_semantics<parallel>], iteration_bounds = array<i64: 1, 1>, scalar_prefetch = 0 : i64, scratch_operands = 0 : i64, tpu.core_type = #tpu.core_type<tc>, window_params = [{transform_indices = @transform_0, window_bounds = array<i64: 32, 512>}, {pipeline_mode = #tpu.pipeline_mode<synchronous>, transform_indices = @transform_1, window_bounds = array<i64: 1, 512>}, {pipeline_mode = #tpu.pipeline_mode<synchronous>, transform_indices = @transform_2, window_bounds = array<i64: 1, 512>}, {transform_indices = @transform_3, window_bounds = array<i64: 512, 256>}, {transform_indices = @transform_4, window_bounds = array<i64: 32, 256>}]} {
    %c0 = arith.constant 0 : index
    %c0_0 = arith.constant 0 : index
    %0 = vector.load %arg2[%c0, %c0_0] : memref<32x512xbf16, #tpu.memory_space<vmem>>, vector<32x512xbf16>
    %1 = arith.extf %0 : vector<32x512xbf16> to vector<32x512xf32>
    %c0_1 = arith.constant 0 : index
    %c0_2 = arith.constant 0 : index
    %2 = vector.load %arg3[%c0_1, %c0_2] : memref<1x512xf32, #tpu.memory_space<vmem>>, vector<1x512xf32>
    %3 = vector.broadcast %2 : vector<1x512xf32> to vector<32x512xf32>
    %4 = arith.mulf %1, %3 : vector<32x512xf32>
    %c0_3 = arith.constant 0 : index
    %c0_4 = arith.constant 0 : index
    %5 = vector.load %arg4[%c0_3, %c0_4] : memref<1x512xf32, #tpu.memory_space<vmem>>, vector<1x512xf32>
    %6 = vector.broadcast %5 : vector<1x512xf32> to vector<32x512xf32>
    %7 = arith.addf %4, %6 : vector<32x512xf32>
    %cst = arith.constant 0.000000e+00 : f32
    %8 = vector.broadcast %cst : f32 to vector<32x512xf32>
    %9 = arith.maximumf %7, %8 : vector<32x512xf32>
    %10 = arith.truncf %9 : vector<32x512xf32> to vector<32x512xbf16>
    %c0_5 = arith.constant 0 : index
    %c0_6 = arith.constant 0 : index
    %11 = vector.load %arg5[%c0_5, %c0_6] : memref<512x256xbf16, #tpu.memory_space<vmem>>, vector<512x256xbf16>
    %cst_7 = arith.constant dense<0.000000e+00> : vector<32x256xf32>
    %12 = tpu.matmul %10, %11, %cst_7 {dimension_numbers = #tpu.dot_dimension_numbers<[1], [0], [0], [1], [0, 0, 1, 1], [], []>} : vector<32x512xbf16>, vector<512x256xbf16>, vector<32x256xf32> -> vector<32x256xf32>
    %13 = arith.truncf %12 : vector<32x256xf32> to vector<32x256xbf16>
    %c0_8 = arith.constant 0 : index
    %c0_9 = arith.constant 0 : index
    %14 = vector.load %arg6[%c0_8, %c0_9] : memref<32x256xbf16, #tpu.memory_space<vmem>>, vector<32x256xbf16>
    tpu.vector_store %arg6[%c0_8, %c0_9], %13 {strides = array<i32>} : memref<32x256xbf16, #tpu.memory_space<vmem>>, vector<32x256xbf16>,
    return
  }
  func.func @transform_0(%arg0: i32, %arg1: i32) -> (i32, i32) {
    %c0_i32 = arith.constant 0 : i32
    %c0_i32_0 = arith.constant 0 : i32
    return %arg0, %c0_i32 : i32, i32
  }
  func.func @transform_1(%arg0: i32, %arg1: i32) -> (i32, i32) {
    %c0_i32 = arith.constant 0 : i32
    %c0_i32_0 = arith.constant 0 : i32
    %c0_i32_1 = arith.constant 0 : i32
    return %c0_i32, %c0_i32_0 : i32, i32
  }
  func.func @transform_2(%arg0: i32, %arg1: i32) -> (i32, i32) {
    %c0_i32 = arith.constant 0 : i32
    %c0_i32_0 = arith.constant 0 : i32
    %c0_i32_1 = arith.constant 0 : i32
    return %c0_i32, %c0_i32_0 : i32, i32
  }
  func.func @transform_3(%arg0: i32, %arg1: i32) -> (i32, i32) {
    %c0_i32 = arith.constant 0 : i32
    %c0_i32_0 = arith.constant 0 : i32
    return %c0_i32, %arg1 : i32, i32
  }
  func.func @transform_4(%arg0: i32, %arg1: i32) -> (i32, i32) {
    %c0_i32 = arith.constant 0 : i32
    return %arg0, %arg1 : i32, i32
  }
}

module attributes {stable_mosaic.version = 11 : i64} {
  func.func @_affine_relu_kernel(%arg0: i32, %arg1: i32, %arg2: memref<16x128xbf16, #tpu.memory_space<vmem>>, %arg3: memref<1x128xf32, #tpu.memory_space<vmem>>, %arg4: memref<1x128xf32, #tpu.memory_space<vmem>>, %arg5: memref<16x128xbf16, #tpu.memory_space<vmem>>) attributes {dimension_semantics = [#tpu.dimension_semantics<parallel>, #tpu.dimension_semantics<parallel>], iteration_bounds = array<i64: 1, 1>, scalar_prefetch = 0 : i64, scratch_operands = 0 : i64, tpu.core_type = #tpu.core_type<tc>, window_params = [{transform_indices = @transform_0, window_bounds = array<i64: 16, 128>}, {transform_indices = @transform_1, window_bounds = array<i64: 1, 128>}, {transform_indices = @transform_2, window_bounds = array<i64: 1, 128>}, {transform_indices = @transform_3, window_bounds = array<i64: 16, 128>}]} {
    %c0 = arith.constant 0 : index
    %c0_0 = arith.constant 0 : index
    %0 = vector.load %arg2[%c0, %c0_0] : memref<16x128xbf16, #tpu.memory_space<vmem>>, vector<16x128xbf16>
    %1 = arith.extf %0 : vector<16x128xbf16> to vector<16x128xf32>
    %c0_1 = arith.constant 0 : index
    %c0_2 = arith.constant 0 : index
    %2 = vector.load %arg3[%c0_1, %c0_2] : memref<1x128xf32, #tpu.memory_space<vmem>>, vector<1x128xf32>
    %3 = vector.broadcast %2 : vector<1x128xf32> to vector<16x128xf32>
    %4 = arith.mulf %1, %3 : vector<16x128xf32>
    %c0_3 = arith.constant 0 : index
    %c0_4 = arith.constant 0 : index
    %5 = vector.load %arg4[%c0_3, %c0_4] : memref<1x128xf32, #tpu.memory_space<vmem>>, vector<1x128xf32>
    %6 = vector.broadcast %5 : vector<1x128xf32> to vector<16x128xf32>
    %7 = arith.addf %4, %6 : vector<16x128xf32>
    %cst = arith.constant 0.000000e+00 : f32
    %8 = vector.broadcast %cst : f32 to vector<16x128xf32>
    %9 = arith.maximumf %7, %8 : vector<16x128xf32>
    %10 = arith.truncf %9 : vector<16x128xf32> to vector<16x128xbf16>
    %c0_5 = arith.constant 0 : index
    %c0_6 = arith.constant 0 : index
    %11 = vector.load %arg5[%c0_5, %c0_6] : memref<16x128xbf16, #tpu.memory_space<vmem>>, vector<16x128xbf16>
    tpu.vector_store %arg5[%c0_5, %c0_6], %10 {strides = array<i32>} : memref<16x128xbf16, #tpu.memory_space<vmem>>, vector<16x128xbf16>,
    return
  }
  func.func @transform_0(%arg0: i32, %arg1: i32) -> (i32, i32) {
    %c0_i32 = arith.constant 0 : i32
    return %arg0, %arg1 : i32, i32
  }
  func.func @transform_1(%arg0: i32, %arg1: i32) -> (i32, i32) {
    %c0_i32 = arith.constant 0 : i32
    %c0_i32_0 = arith.constant 0 : i32
    return %c0_i32, %arg1 : i32, i32
  }
  func.func @transform_2(%arg0: i32, %arg1: i32) -> (i32, i32) {
    %c0_i32 = arith.constant 0 : i32
    %c0_i32_0 = arith.constant 0 : i32
    return %c0_i32, %arg1 : i32, i32
  }
  func.func @transform_3(%arg0: i32, %arg1: i32) -> (i32, i32) {
    %c0_i32 = arith.constant 0 : i32
    return %arg0, %arg1 : i32, i32
  }
}

module attributes {stable_mosaic.version = 11 : i64} {
  func.func @_bn_relu_matmul_kernel(%arg0: i32, %arg1: i32, %arg2: memref<16x1024xbf16, #tpu.memory_space<vmem>>, %arg3: memref<1x1024xf32, #tpu.memory_space<vmem>>, %arg4: memref<1x1024xf32, #tpu.memory_space<vmem>>, %arg5: memref<1024x128xbf16, #tpu.memory_space<vmem>>, %arg6: memref<16x128xbf16, #tpu.memory_space<vmem>>) attributes {dimension_semantics = [#tpu.dimension_semantics<parallel>, #tpu.dimension_semantics<parallel>], iteration_bounds = array<i64: 1, 1>, scalar_prefetch = 0 : i64, scratch_operands = 0 : i64, tpu.core_type = #tpu.core_type<tc>, window_params = [{transform_indices = @transform_0, window_bounds = array<i64: 16, 1024>}, {pipeline_mode = #tpu.pipeline_mode<synchronous>, transform_indices = @transform_1, window_bounds = array<i64: 1, 1024>}, {pipeline_mode = #tpu.pipeline_mode<synchronous>, transform_indices = @transform_2, window_bounds = array<i64: 1, 1024>}, {transform_indices = @transform_3, window_bounds = array<i64: 1024, 128>}, {transform_indices = @transform_4, window_bounds = array<i64: 16, 128>}]} {
    %c0 = arith.constant 0 : index
    %c0_0 = arith.constant 0 : index
    %0 = vector.load %arg2[%c0, %c0_0] : memref<16x1024xbf16, #tpu.memory_space<vmem>>, vector<16x1024xbf16>
    %1 = arith.extf %0 : vector<16x1024xbf16> to vector<16x1024xf32>
    %c0_1 = arith.constant 0 : index
    %c0_2 = arith.constant 0 : index
    %2 = vector.load %arg3[%c0_1, %c0_2] : memref<1x1024xf32, #tpu.memory_space<vmem>>, vector<1x1024xf32>
    %3 = vector.broadcast %2 : vector<1x1024xf32> to vector<16x1024xf32>
    %4 = arith.mulf %1, %3 : vector<16x1024xf32>
    %c0_3 = arith.constant 0 : index
    %c0_4 = arith.constant 0 : index
    %5 = vector.load %arg4[%c0_3, %c0_4] : memref<1x1024xf32, #tpu.memory_space<vmem>>, vector<1x1024xf32>
    %6 = vector.broadcast %5 : vector<1x1024xf32> to vector<16x1024xf32>
    %7 = arith.addf %4, %6 : vector<16x1024xf32>
    %cst = arith.constant 0.000000e+00 : f32
    %8 = vector.broadcast %cst : f32 to vector<16x1024xf32>
    %9 = arith.maximumf %7, %8 : vector<16x1024xf32>
    %10 = arith.truncf %9 : vector<16x1024xf32> to vector<16x1024xbf16>
    %c0_5 = arith.constant 0 : index
    %c0_6 = arith.constant 0 : index
    %11 = vector.load %arg5[%c0_5, %c0_6] : memref<1024x128xbf16, #tpu.memory_space<vmem>>, vector<1024x128xbf16>
    %cst_7 = arith.constant dense<0.000000e+00> : vector<16x128xf32>
    %12 = tpu.matmul %10, %11, %cst_7 {dimension_numbers = #tpu.dot_dimension_numbers<[1], [0], [0], [1], [0, 0, 1, 1], [], []>} : vector<16x1024xbf16>, vector<1024x128xbf16>, vector<16x128xf32> -> vector<16x128xf32>
    %13 = arith.truncf %12 : vector<16x128xf32> to vector<16x128xbf16>
    %c0_8 = arith.constant 0 : index
    %c0_9 = arith.constant 0 : index
    %14 = vector.load %arg6[%c0_8, %c0_9] : memref<16x128xbf16, #tpu.memory_space<vmem>>, vector<16x128xbf16>
    tpu.vector_store %arg6[%c0_8, %c0_9], %13 {strides = array<i32>} : memref<16x128xbf16, #tpu.memory_space<vmem>>, vector<16x128xbf16>,
    return
  }
  func.func @transform_0(%arg0: i32, %arg1: i32) -> (i32, i32) {
    %c0_i32 = arith.constant 0 : i32
    %c0_i32_0 = arith.constant 0 : i32
    return %arg0, %c0_i32 : i32, i32
  }
  func.func @transform_1(%arg0: i32, %arg1: i32) -> (i32, i32) {
    %c0_i32 = arith.constant 0 : i32
    %c0_i32_0 = arith.constant 0 : i32
    %c0_i32_1 = arith.constant 0 : i32
    return %c0_i32, %c0_i32_0 : i32, i32
  }
  func.func @transform_2(%arg0: i32, %arg1: i32) -> (i32, i32) {
    %c0_i32 = arith.constant 0 : i32
    %c0_i32_0 = arith.constant 0 : i32
    %c0_i32_1 = arith.constant 0 : i32
    return %c0_i32, %c0_i32_0 : i32, i32
  }
  func.func @transform_3(%arg0: i32, %arg1: i32) -> (i32, i32) {
    %c0_i32 = arith.constant 0 : i32
    %c0_i32_0 = arith.constant 0 : i32
    return %c0_i32, %arg1 : i32, i32
  }
  func.func @transform_4(%arg0: i32, %arg1: i32) -> (i32, i32) {
    %c0_i32 = arith.constant 0 : i32
    return %arg0, %arg1 : i32, i32
  }
}

module attributes {stable_mosaic.version = 11 : i64} {
  func.func @_matmul_kernel(%arg0: i32, %arg1: i32, %arg2: memref<16x1152xbf16, #tpu.memory_space<vmem>>, %arg3: memref<1152x128xbf16, #tpu.memory_space<vmem>>, %arg4: memref<16x128xbf16, #tpu.memory_space<vmem>>) attributes {dimension_semantics = [#tpu.dimension_semantics<parallel>, #tpu.dimension_semantics<parallel>], iteration_bounds = array<i64: 1, 1>, scalar_prefetch = 0 : i64, scratch_operands = 0 : i64, tpu.core_type = #tpu.core_type<tc>, window_params = [{transform_indices = @transform_0, window_bounds = array<i64: 16, 1152>}, {transform_indices = @transform_1, window_bounds = array<i64: 1152, 128>}, {transform_indices = @transform_2, window_bounds = array<i64: 16, 128>}]} {
    %c0 = arith.constant 0 : index
    %c0_0 = arith.constant 0 : index
    %0 = vector.load %arg2[%c0, %c0_0] : memref<16x1152xbf16, #tpu.memory_space<vmem>>, vector<16x1152xbf16>
    %c0_1 = arith.constant 0 : index
    %c0_2 = arith.constant 0 : index
    %1 = vector.load %arg3[%c0_1, %c0_2] : memref<1152x128xbf16, #tpu.memory_space<vmem>>, vector<1152x128xbf16>
    %cst = arith.constant dense<0.000000e+00> : vector<16x128xf32>
    %2 = tpu.matmul %0, %1, %cst {dimension_numbers = #tpu.dot_dimension_numbers<[1], [0], [0], [1], [0, 0, 1, 1], [], []>} : vector<16x1152xbf16>, vector<1152x128xbf16>, vector<16x128xf32> -> vector<16x128xf32>
    %3 = arith.truncf %2 : vector<16x128xf32> to vector<16x128xbf16>
    %c0_3 = arith.constant 0 : index
    %c0_4 = arith.constant 0 : index
    %4 = vector.load %arg4[%c0_3, %c0_4] : memref<16x128xbf16, #tpu.memory_space<vmem>>, vector<16x128xbf16>
    tpu.vector_store %arg4[%c0_3, %c0_4], %3 {strides = array<i32>} : memref<16x128xbf16, #tpu.memory_space<vmem>>, vector<16x128xbf16>,
    return
  }
  func.func @transform_0(%arg0: i32, %arg1: i32) -> (i32, i32) {
    %c0_i32 = arith.constant 0 : i32
    %c0_i32_0 = arith.constant 0 : i32
    return %arg0, %c0_i32 : i32, i32
  }
  func.func @transform_1(%arg0: i32, %arg1: i32) -> (i32, i32) {
    %c0_i32 = arith.constant 0 : i32
    %c0_i32_0 = arith.constant 0 : i32
    return %c0_i32, %arg1 : i32, i32
  }
  func.func @transform_2(%arg0: i32, %arg1: i32) -> (i32, i32) {
    %c0_i32 = arith.constant 0 : i32
    return %arg0, %arg1 : i32, i32
  }
}

module attributes {stable_mosaic.version = 11 : i64} {
  func.func @_bn_relu_matmul_kernel(%arg0: i32, %arg1: i32, %arg2: memref<16x1024xbf16, #tpu.memory_space<vmem>>, %arg3: memref<1x1024xf32, #tpu.memory_space<vmem>>, %arg4: memref<1x1024xf32, #tpu.memory_space<vmem>>, %arg5: memref<1024x256xbf16, #tpu.memory_space<vmem>>, %arg6: memref<16x256xbf16, #tpu.memory_space<vmem>>) attributes {dimension_semantics = [#tpu.dimension_semantics<parallel>, #tpu.dimension_semantics<parallel>], iteration_bounds = array<i64: 1, 2>, scalar_prefetch = 0 : i64, scratch_operands = 0 : i64, tpu.core_type = #tpu.core_type<tc>, window_params = [{transform_indices = @transform_0, window_bounds = array<i64: 16, 1024>}, {pipeline_mode = #tpu.pipeline_mode<synchronous>, transform_indices = @transform_1, window_bounds = array<i64: 1, 1024>}, {pipeline_mode = #tpu.pipeline_mode<synchronous>, transform_indices = @transform_2, window_bounds = array<i64: 1, 1024>}, {transform_indices = @transform_3, window_bounds = array<i64: 1024, 256>}, {transform_indices = @transform_4, window_bounds = array<i64: 16, 256>}]} {
    %c0 = arith.constant 0 : index
    %c0_0 = arith.constant 0 : index
    %0 = vector.load %arg2[%c0, %c0_0] : memref<16x1024xbf16, #tpu.memory_space<vmem>>, vector<16x1024xbf16>
    %1 = arith.extf %0 : vector<16x1024xbf16> to vector<16x1024xf32>
    %c0_1 = arith.constant 0 : index
    %c0_2 = arith.constant 0 : index
    %2 = vector.load %arg3[%c0_1, %c0_2] : memref<1x1024xf32, #tpu.memory_space<vmem>>, vector<1x1024xf32>
    %3 = vector.broadcast %2 : vector<1x1024xf32> to vector<16x1024xf32>
    %4 = arith.mulf %1, %3 : vector<16x1024xf32>
    %c0_3 = arith.constant 0 : index
    %c0_4 = arith.constant 0 : index
    %5 = vector.load %arg4[%c0_3, %c0_4] : memref<1x1024xf32, #tpu.memory_space<vmem>>, vector<1x1024xf32>
    %6 = vector.broadcast %5 : vector<1x1024xf32> to vector<16x1024xf32>
    %7 = arith.addf %4, %6 : vector<16x1024xf32>
    %cst = arith.constant 0.000000e+00 : f32
    %8 = vector.broadcast %cst : f32 to vector<16x1024xf32>
    %9 = arith.maximumf %7, %8 : vector<16x1024xf32>
    %10 = arith.truncf %9 : vector<16x1024xf32> to vector<16x1024xbf16>
    %c0_5 = arith.constant 0 : index
    %c0_6 = arith.constant 0 : index
    %11 = vector.load %arg5[%c0_5, %c0_6] : memref<1024x256xbf16, #tpu.memory_space<vmem>>, vector<1024x256xbf16>
    %cst_7 = arith.constant dense<0.000000e+00> : vector<16x256xf32>
    %12 = tpu.matmul %10, %11, %cst_7 {dimension_numbers = #tpu.dot_dimension_numbers<[1], [0], [0], [1], [0, 0, 1, 1], [], []>} : vector<16x1024xbf16>, vector<1024x256xbf16>, vector<16x256xf32> -> vector<16x256xf32>
    %13 = arith.truncf %12 : vector<16x256xf32> to vector<16x256xbf16>
    %c0_8 = arith.constant 0 : index
    %c0_9 = arith.constant 0 : index
    %14 = vector.load %arg6[%c0_8, %c0_9] : memref<16x256xbf16, #tpu.memory_space<vmem>>, vector<16x256xbf16>
    tpu.vector_store %arg6[%c0_8, %c0_9], %13 {strides = array<i32>} : memref<16x256xbf16, #tpu.memory_space<vmem>>, vector<16x256xbf16>,
    return
  }
  func.func @transform_0(%arg0: i32, %arg1: i32) -> (i32, i32) {
    %c0_i32 = arith.constant 0 : i32
    %c0_i32_0 = arith.constant 0 : i32
    return %arg0, %c0_i32 : i32, i32
  }
  func.func @transform_1(%arg0: i32, %arg1: i32) -> (i32, i32) {
    %c0_i32 = arith.constant 0 : i32
    %c0_i32_0 = arith.constant 0 : i32
    %c0_i32_1 = arith.constant 0 : i32
    return %c0_i32, %c0_i32_0 : i32, i32
  }
  func.func @transform_2(%arg0: i32, %arg1: i32) -> (i32, i32) {
    %c0_i32 = arith.constant 0 : i32
    %c0_i32_0 = arith.constant 0 : i32
    %c0_i32_1 = arith.constant 0 : i32
    return %c0_i32, %c0_i32_0 : i32, i32
  }
  func.func @transform_3(%arg0: i32, %arg1: i32) -> (i32, i32) {
    %c0_i32 = arith.constant 0 : i32
    %c0_i32_0 = arith.constant 0 : i32
    return %c0_i32, %arg1 : i32, i32
  }
  func.func @transform_4(%arg0: i32, %arg1: i32) -> (i32, i32) {
    %c0_i32 = arith.constant 0 : i32
    return %arg0, %arg1 : i32, i32
  }
}

</mosaic_0001>

<bundles_post_ra>
// kernel: densenet121_forward.132
= control target key start
LH: loop header
LB: loop body
LE: loop exit
PB: predicated region body
PF: predicated region fallthrough
CT: control target
= control target key end

     0   :  { %s990_s12 = smov 0   ;;  %s992_s13 = smov 0   ;;  %s1140_s0 = inlined_call_operand.vmem [shape: bf16[512,128], index: 0, kind: input, shape index: {}]   ;;  %s1141_s1 = inlined_call_operand.vmem [shape: f32[1,128], index: 1, kind: input, shape index: {}]   ;;  %s1142_s2 = inlined_call_operand.vmem [shape: f32[1,128], index: 2, kind: input, shape index: {}]   ;;  %s1143_s3 = inlined_call_operand.vmem [shape: bf16[512,128], index: 3, kind: output, shape index: {}]  }
   0x1   :  { %s994_s14 = smov 0  }
   0x2 LB: > { %s25_s15 = sadd.s32 1, %s964_s13  ;;  %p675_p0 = scmp.ge.s32.totalorder %s968_s14, 1  ;;  %s968_s14 = sphi %s994_s14, %s13_s14   ;;  %s964_s13 = sphi %s992_s13, %s1145_s13   ;;  %s960_s12 = sphi %s990_s12, %s1144_s12  }
   0x3   : > { %p27_p1 = scmp.ge.s32.totalorder %s25_s15, 2  ;;  %p173_p2 = scmp.lt.s32.totalorder %s968_s14, 3 }
   0x5   : > { %s1147_s15 = smov (%p27_p1, %s25_s15), 0  ;;  %p174_p3 = pnand %p675_p0, %p173_p2 }
   0x6   : > { %s676_s16 = sshll.u32 (!%p174_p3), %s960_s12, 5  ;;  %v1021_v0 = vld [vmem:[%s1141_s1] ss:$0 sm:$0xff] (!%p174_p3) }
   0x7   : > { %177 = sbr.rel (%p174_p3) target bundleno = 60 (0x3c), region = 32  ;;  %p210_p4 = scmp.lt.s32.totalorder (!%p174_p3), %s676_s16, 63  ;;  %v1030_v9 = vld [vmem:[%s1142_s2] ss:$0 sm:$0xff] (!%p174_p3) }
   0xe   : > { %s1149_s16 = smov (!%p210_p4, %s676_s16), 63 }
   0xf   : > { %s677_s17 = sshll.u32 %s1149_s16, 2 }
  0x10   : > { %s1016_s20 = scalar_lea.vmem %s1140_s0, %s677_s17  ;;  %s1055_s27 = scalar_lea.vmem %s1143_s3, %s677_s17 }
  0x11   : > { %v749_v1 = vld [vmem:[%s1016_s20] sm:$0xff]   ;;  %v892_v2 = vld [vmem:[%s1016_s20 + $0x8] sm:$0xff]   ;;  %v893_v3 = vld [vmem:[%s1016_s20 + $0x10] sm:$0xff]  }
  0x12   : > { %v750_v4 = vunpack.c.l.bf16 %v749_v1  ;;  %v751_v5 = vunpack.c.h.bf16 %v749_v1  ;;  %v754_v6 = vunpack.c.l.bf16 %v892_v2  ;;  %v755_v7 = vunpack.c.h.bf16 %v892_v2  ;;  %v894_v8 = vld [vmem:[%s1016_s20 + $0x18] sm:$0xff]   ;;  %v895_v30 = vld [vmem:[%s1016_s20 + $0x20] sm:$0xff]   ;;  %v896_v35 = vld [vmem:[%s1016_s20 + $0x28] sm:$0xff]  }
  0x13   : > { %v758_v10 = vunpack.c.l.bf16 %v893_v3  ;;  %v759_v11 = vunpack.c.h.bf16 %v893_v3  ;;  %v762_v12 = vunpack.c.l.bf16 %v894_v8  ;;  %v763_v13 = vunpack.c.h.bf16 %v894_v8  ;;  %v897_v40 = vld [vmem:[%s1016_s20 + $0x30] sm:$0xff]   ;;  %v898_v45 = vld [vmem:[%s1016_s20 + $0x38] sm:$0xff]   ;;  %v899_v3 = vld [vmem:[%s1016_s20 + $0x40] sm:$0xff]  }
  0x14   : > { %v304_v14 = vmul.f32 %v750_v4, %v1021_v0  ;;  %v305_v15 = vmul.f32 %v751_v5, %v1021_v0  ;;  %v306_v16 = vmul.f32 %v754_v6, %v1021_v0  ;;  %v307_v17 = vmul.f32 %v755_v7, %v1021_v0 }
  0x15   : > { %v308_v18 = vmul.f32 %v758_v10, %v1021_v0  ;;  %v309_v19 = vmul.f32 %v759_v11, %v1021_v0  ;;  %v310_v20 = vmul.f32 %v762_v12, %v1021_v0  ;;  %v311_v21 = vmul.f32 %v763_v13, %v1021_v0  ;;  %v900_v13 = vld [vmem:[%s1016_s20 + $0x48] sm:$0xff]  }
  0x16   : > { %v343_v22 = vadd.f32 %v1030_v9, %v304_v14  ;;  %v344_v23 = vadd.f32 %v1030_v9, %v305_v15  ;;  %v345_v24 = vadd.f32 %v1030_v9, %v306_v16  ;;  %v346_v25 = vadd.f32 %v1030_v9, %v307_v17 }
  0x17   : > { %v347_v26 = vadd.f32 %v1030_v9, %v308_v18  ;;  %v348_v27 = vadd.f32 %v1030_v9, %v309_v19  ;;  %v349_v28 = vadd.f32 %v1030_v9, %v310_v20  ;;  %v350_v29 = vadd.f32 %v1030_v9, %v311_v21  ;;  %v901_v18 = vld [vmem:[%s1016_s20 + $0x50] sm:$0xff]  }
  0x18   : > { %v375_v31 = vmax.f32 %v343_v22, 0.0  ;;  %v376_v32 = vmax.f32 %v344_v23, 0.0  ;;  %v377_v33 = vmax.f32 %v345_v24, 0.0  ;;  %v378_v34 = vmax.f32 %v346_v25, 0.0  ;;  %v902_v23 = vld [vmem:[%s1016_s20 + $0x58] sm:$0xff]  }
  0x19   : > { %v379_v36 = vmax.f32 %v347_v26, 0.0  ;;  %v380_v37 = vmax.f32 %v348_v27, 0.0  ;;  %v381_v38 = vmax.f32 %v349_v28, 0.0  ;;  %v382_v39 = vmax.f32 %v350_v29, 0.0 }
  0x1a   : > { %v815_v41 = vpack.c.bf16 %v376_v32, %v375_v31  ;;  %v820_v42 = vpack.c.bf16 %v378_v34, %v377_v33  ;;  %v766_v43 = vunpack.c.l.bf16 %v895_v30  ;;  %v767_v44 = vunpack.c.h.bf16 %v895_v30 }
  0x1b   : > { %v825_v46 = vpack.c.bf16 %v380_v37, %v379_v36  ;;  %v830_v47 = vpack.c.bf16 %v382_v39, %v381_v38  ;;  %v770_v48 = vunpack.c.l.bf16 %v896_v35  ;;  %v771_v49 = vunpack.c.h.bf16 %v896_v35 }
  0x1c   : > { %816 = vst [vmem:[%s1055_s27] sm:$0xff] %v815_v41   ;;  %907 = vst [vmem:[%s1055_s27 + $0x8] sm:$0xff] %v820_v42   ;;  %v312_v50 = vmul.f32 %v766_v43, %v1021_v0  ;;  %v313_v51 = vmul.f32 %v767_v44, %v1021_v0  ;;  %v774_v52 = vunpack.c.l.bf16 %v897_v40  ;;  %v775_v53 = vunpack.c.h.bf16 %v897_v40  ;;  %v903_v40 = vld [vmem:[%s1016_s20 + $0x60] sm:$0xff]  }
  0x1d   : > { %908 = vst [vmem:[%s1055_s27 + $0x10] sm:$0xff] %v825_v46   ;;  %909 = vst [vmem:[%s1055_s27 + $0x18] sm:$0xff] %v830_v47   ;;  %v314_v54 = vmul.f32 %v770_v48, %v1021_v0  ;;  %v315_v55 = vmul.f32 %v771_v49, %v1021_v0  ;;  %v778_v56 = vunpack.c.l.bf16 %v898_v45  ;;  %v779_v57 = vunpack.c.h.bf16 %v898_v45 }
  0x1e   : > { %v351_v58 = vadd.f32 %v1030_v9, %v312_v50  ;;  %v352_v59 = vadd.f32 %v1030_v9, %v313_v51  ;;  %v316_v60 = vmul.f32 %v774_v52, %v1021_v0  ;;  %v317_v61 = vmul.f32 %v775_v53, %v1021_v0  ;;  %v904_v53 = vld [vmem:[%s1016_s20 + $0x68] sm:$0xff]  }
  0x1f   : > { %v353_v62 = vadd.f32 %v1030_v9, %v314_v54  ;;  %v354_v63 = vadd.f32 %v1030_v9, %v315_v55  ;;  %v318_v1 = vmul.f32 %v778_v56, %v1021_v0  ;;  %v319_v2 = vmul.f32 %v779_v57, %v1021_v0 }
  0x20   : > { %v383_v4 = vmax.f32 %v351_v58, 0.0  ;;  %v384_v5 = vmax.f32 %v352_v59, 0.0  ;;  %v355_v6 = vadd.f32 %v1030_v9, %v316_v60  ;;  %v356_v7 = vadd.f32 %v1030_v9, %v317_v61  ;;  %v905_v58 = vld [vmem:[%s1016_s20 + $0x70] sm:$0xff]  }
  0x21   : > { %v385_v8 = vmax.f32 %v353_v62, 0.0  ;;  %v386_v10 = vmax.f32 %v354_v63, 0.0  ;;  %v357_v11 = vadd.f32 %v1030_v9, %v318_v1  ;;  %v358_v12 = vadd.f32 %v1030_v9, %v319_v2  ;;  %v906_v63 = vld [vmem:[%s1016_s20 + $0x78] sm:$0xff]  }
  0x22   : > { %v835_v14 = vpack.c.bf16 %v384_v5, %v383_v4  ;;  %v387_v15 = vmax.f32 %v355_v6, 0.0  ;;  %v388_v16 = vmax.f32 %v356_v7, 0.0  ;;  %v782_v17 = vunpack.c.l.bf16 %v899_v3 }
  0x23   : > { %v840_v19 = vpack.c.bf16 %v386_v10, %v385_v8  ;;  %v389_v20 = vmax.f32 %v357_v11, 0.0  ;;  %v390_v21 = vmax.f32 %v358_v12, 0.0  ;;  %v783_v22 = vunpack.c.h.bf16 %v899_v3 }
  0x24   : > { %910 = vst [vmem:[%s1055_s27 + $0x20] sm:$0xff] %v835_v14   ;;  %v845_v24 = vpack.c.bf16 %v388_v16, %v387_v15  ;;  %v320_v25 = vmul.f32 %v782_v17, %v1021_v0  ;;  %v786_v26 = vunpack.c.l.bf16 %v900_v13  ;;  %v787_v27 = vunpack.c.h.bf16 %v900_v13 }
  0x25   : > { %911 = vst [vmem:[%s1055_s27 + $0x28] sm:$0xff] %v840_v19   ;;  %v850_v28 = vpack.c.bf16 %v390_v21, %v389_v20  ;;  %v321_v29 = vmul.f32 %v783_v22, %v1021_v0  ;;  %v790_v30 = vunpack.c.l.bf16 %v901_v18  ;;  %v791_v31 = vunpack.c.h.bf16 %v901_v18 }
  0x26   : > { %912 = vst [vmem:[%s1055_s27 + $0x30] sm:$0xff] %v845_v24   ;;  %v359_v32 = vadd.f32 %v1030_v9, %v320_v25  ;;  %v322_v33 = vmul.f32 %v786_v26, %v1021_v0  ;;  %v323_v34 = vmul.f32 %v787_v27, %v1021_v0  ;;  %v794_v35 = vunpack.c.l.bf16 %v902_v23 }
  0x27   : > { %913 = vst [vmem:[%s1055_s27 + $0x38] sm:$0xff] %v850_v28   ;;  %v360_v36 = vadd.f32 %v1030_v9, %v321_v29  ;;  %v324_v37 = vmul.f32 %v790_v30, %v1021_v0  ;;  %v325_v38 = vmul.f32 %v791_v31, %v1021_v0  ;;  %v795_v39 = vunpack.c.h.bf16 %v902_v23 }
  0x28   : > { %v391_v41 = vmax.f32 %v359_v32, 0.0  ;;  %v361_v42 = vadd.f32 %v1030_v9, %v322_v33  ;;  %v362_v43 = vadd.f32 %v1030_v9, %v323_v34  ;;  %v326_v44 = vmul.f32 %v794_v35, %v1021_v0 }
  0x29   : > { %v392_v45 = vmax.f32 %v360_v36, 0.0  ;;  %v363_v46 = vadd.f32 %v1030_v9, %v324_v37  ;;  %v364_v47 = vadd.f32 %v1030_v9, %v325_v38  ;;  %v327_v48 = vmul.f32 %v795_v39, %v1021_v0 }
  0x2a   : > { %v393_v49 = vmax.f32 %v361_v42, 0.0  ;;  %v394_v50 = vmax.f32 %v362_v43, 0.0  ;;  %v365_v51 = vadd.f32 %v1030_v9, %v326_v44  ;;  %v798_v52 = vunpack.c.l.bf16 %v903_v40 }
  0x2b   : > { %v855_v54 = vpack.c.bf16 %v392_v45, %v391_v41  ;;  %v395_v55 = vmax.f32 %v363_v46, 0.0  ;;  %v396_v56 = vmax.f32 %v364_v47, 0.0  ;;  %v366_v57 = vadd.f32 %v1030_v9, %v327_v48 }
  0x2c   : > { %v860_v59 = vpack.c.bf16 %v394_v50, %v393_v49  ;;  %v397_v60 = vmax.f32 %v365_v51, 0.0  ;;  %v799_v61 = vunpack.c.h.bf16 %v903_v40  ;;  %v328_v62 = vmul.f32 %v798_v52, %v1021_v0 }
  0x2d   : > { %914 = vst [vmem:[%s1055_s27 + $0x40] sm:$0xff] %v855_v54   ;;  %v865_v1 = vpack.c.bf16 %v396_v56, %v395_v55  ;;  %v398_v2 = vmax.f32 %v366_v57, 0.0  ;;  %v802_v3 = vunpack.c.l.bf16 %v904_v53  ;;  %v803_v4 = vunpack.c.h.bf16 %v904_v53 }
  0x2e   : > { %915 = vst [vmem:[%s1055_s27 + $0x48] sm:$0xff] %v860_v59   ;;  %v329_v5 = vmul.f32 %v799_v61, %v1021_v0  ;;  %v367_v6 = vadd.f32 %v1030_v9, %v328_v62  ;;  %v806_v7 = vunpack.c.l.bf16 %v905_v58  ;;  %v807_v8 = vunpack.c.h.bf16 %v905_v58 }
  0x2f   : > { %916 = vst [vmem:[%s1055_s27 + $0x50] sm:$0xff] %v865_v1   ;;  %v870_v10 = vpack.c.bf16 %v398_v2, %v397_v60  ;;  %v330_v11 = vmul.f32 %v802_v3, %v1021_v0  ;;  %v331_v12 = vmul.f32 %v803_v4, %v1021_v0  ;;  %v810_v13 = vunpack.c.l.bf16 %v906_v63 }
  0x30   : > { %v368_v14 = vadd.f32 %v1030_v9, %v329_v5  ;;  %v399_v15 = vmax.f32 %v367_v6, 0.0  ;;  %v332_v16 = vmul.f32 %v806_v7, %v1021_v0  ;;  %v333_v17 = vmul.f32 %v807_v8, %v1021_v0 }
  0x31   : > { %917 = vst [vmem:[%s1055_s27 + $0x58] sm:$0xff] %v870_v10   ;;  %v369_v18 = vadd.f32 %v1030_v9, %v330_v11  ;;  %v370_v19 = vadd.f32 %v1030_v9, %v331_v12  ;;  %v811_v20 = vunpack.c.h.bf16 %v906_v63  ;;  %v334_v21 = vmul.f32 %v810_v13, %v1021_v0 }
  0x32   : > { %v400_v22 = vmax.f32 %v368_v14, 0.0  ;;  %v371_v23 = vadd.f32 %v1030_v9, %v332_v16  ;;  %v372_v24 = vadd.f32 %v1030_v9, %v333_v17 }
  0x33   : > { %v401_v25 = vmax.f32 %v369_v18, 0.0  ;;  %v402_v26 = vmax.f32 %v370_v19, 0.0  ;;  %v335_v27 = vmul.f32 %v811_v20, %v1021_v0  ;;  %v373_v28 = vadd.f32 %v1030_v9, %v334_v21 }
  0x34   : > { %v875_v29 = vpack.c.bf16 %v400_v22, %v399_v15  ;;  %v403_v30 = vmax.f32 %v371_v23, 0.0  ;;  %v404_v31 = vmax.f32 %v372_v24, 0.0 }
  0x35   : > { %v880_v32 = vpack.c.bf16 %v402_v26, %v401_v25  ;;  %v374_v33 = vadd.f32 %v1030_v9, %v335_v27  ;;  %v405_v34 = vmax.f32 %v373_v28, 0.0 }
  0x36   : > { %918 = vst [vmem:[%s1055_s27 + $0x60] sm:$0xff] %v875_v29   ;;  %v885_v35 = vpack.c.bf16 %v404_v31, %v403_v30 }
  0x37   : > { %919 = vst [vmem:[%s1055_s27 + $0x68] sm:$0xff] %v880_v32   ;;  %v406_v36 = vmax.f32 %v374_v33, 0.0 }
  0x38   : > { %920 = vst [vmem:[%s1055_s27 + $0x70] sm:$0xff] %v885_v35  }
  0x39   : > { %v890_v37 = vpack.c.bf16 %v406_v36, %v405_v34 }
  0x3b   : > { %921 = vst [vmem:[%s1055_s27 + $0x78] sm:$0xff] %v890_v37  }
  0x3c PF: > { %s13_s14 = sadd.s32 1, %s968_s14   ;;  %s1144_s12 = smov %s964_s13 }
  0x3d   : > { %p10_p5 = scmp.ge.s32.totalorder %s13_s14, 4   ;;  %s1145_s13 = smov %s1147_s15 }
  0x3f   :  { %12 = sbr.rel (!%p10_p5) target bundleno = 2 (0x2), region = 68 }

// kernel: densenet121_forward.131
= control target key start
LH: loop header
LB: loop body
LE: loop exit
PB: predicated region body
PF: predicated region fallthrough
CT: control target
= control target key end

     0   :  { %s1395_s9 = smov 0   ;;  %s1397_s10 = smov 0   ;;  %s1532_s0 = inlined_call_operand.vmem [shape: bf16[512,256], index: 0, kind: input, shape index: {}]   ;;  %s1533_s1 = inlined_call_operand.vmem [shape: bf16[256,128], index: 1, kind: input, shape index: {}]   ;;  %s1534_s2 = inlined_call_operand.vmem [shape: bf16[512,128], index: 2, kind: output, shape index: {}]  }
   0x1   :  { %s1399_s11 = smov 0  }
   0x2 LB: > { %s24_s12 = sadd.s32 1, %s1374_s10  ;;  %p924_p0 = scmp.ge.s32.totalorder %s1378_s11, 1  ;;  %s1378_s11 = sphi %s1399_s11, %s12_s11   ;;  %s1374_s10 = sphi %s1397_s10, %s1536_s10   ;;  %s1370_s9 = sphi %s1395_s9, %s1535_s9  }
   0x3   : > { %p26_p1 = scmp.ge.s32.totalorder %s24_s12, 2  ;;  %p137_p2 = scmp.lt.s32.totalorder %s1378_s11, 3 }
   0x5   : > { %s1538_s12 = smov (%p26_p1, %s24_s12), 0  ;;  %p138_p3 = pnand %p924_p0, %p137_p2 }
   0x6   : > { %v1292_v0 = vld [vmem:[%s1533_s1 + $0x40] sm:$0xff] (!%p138_p3)   ;;  %s925_s15 = sshll.u32 (!%p138_p3), %s1370_s9, 5  ;;  %v1294_v2 = vld [vmem:[%s1533_s1 + $0x48] sm:$0xff] (!%p138_p3)   ;;  %v1296_v4 = vld [vmem:[%s1533_s1 + $0x50] sm:$0xff] (!%p138_p3)  }
   0x7   : > { %141 = sbr.rel (%p138_p3) target bundleno = 315 (0x13b), region = 28  ;;  %v1293_v1 = vld [vmem:[%s1533_s1] sm:$0xff] (!%p138_p3)   ;;  %1140 = vmatprep.subr.bf16.mxu0 (!%p138_p3), %v1292_v0  ;;  %1252 = vmatprep.subr.bf16.mxu1 (!%p138_p3), %v1292_v0  ;;  %v1295_v3 = vld [vmem:[%s1533_s1 + $0x8] sm:$0xff] (!%p138_p3)   ;;  %p168_p4 = scmp.lt.s32.totalorder (!%p138_p3), %s925_s15, 63  ;;  %v1297_v5 = vld [vmem:[%s1533_s1 + $0x10] sm:$0xff] (!%p138_p3)  }
   0x8   : > { %1141 = vmatpush3.bf16.msra.mxu0 (!%p138_p3), %v1293_v1  ;;  %1260 = vmatpush3.bf16.msra.mxu1 (!%p138_p3), %v1293_v1  ;;  %v1298_v6 = vld [vmem:[%s1533_s1 + $0x58] sm:$0xff] (!%p138_p3)   ;;  %v1300_v8 = vld [vmem:[%s1533_s1 + $0x60] sm:$0xff] (!%p138_p3)   ;;  %v1302_v10 = vld [vmem:[%s1533_s1 + $0x68] sm:$0xff] (!%p138_p3)  }
   0x9   : > { %1142 = vmatprep.subr.bf16.mxu0 (!%p138_p3), %v1294_v2  ;;  %1253 = vmatprep.subr.bf16.mxu1 (!%p138_p3), %v1294_v2  ;;  %v1299_v7 = vld [vmem:[%s1533_s1 + $0x18] sm:$0xff] (!%p138_p3)   ;;  %v1301_v9 = vld [vmem:[%s1533_s1 + $0x20] sm:$0xff] (!%p138_p3)   ;;  %v1303_v13 = vld [vmem:[%s1533_s1 + $0x28] sm:$0xff] (!%p138_p3)  }
   0xa   : > { %v1304_v14 = vld [vmem:[%s1533_s1 + $0x70] sm:$0xff] (!%p138_p3)   ;;  %v1306_v16 = vld [vmem:[%s1533_s1 + $0x78] sm:$0xff] (!%p138_p3)  }
   0xb   : > { %v1305_v15 = vld [vmem:[%s1533_s1 + $0x30] sm:$0xff] (!%p138_p3)   ;;  %v1307_v17 = vld [vmem:[%s1533_s1 + $0x38] sm:$0xff] (!%p138_p3)  }
   0xc   : > { %1143 = vmatpush3.bf16.msra.mxu0 (!%p138_p3), %v1295_v3  ;;  %1261 = vmatpush3.bf16.msra.mxu1 (!%p138_p3), %v1295_v3 }
   0xd   : > { %1144 = vmatprep.subr.bf16.mxu0 (!%p138_p3), %v1296_v4  ;;  %1254 = vmatprep.subr.bf16.mxu1 (!%p138_p3), %v1296_v4 }
   0xe   : > { %s1540_s15 = smov (!%p168_p4, %s925_s15), 63 }
   0xf   : > { %s1012_s30 = sshll.u32 %s1540_s15, 3  ;;  %s929_s26 = sshll.u32 %s1540_s15, 2 }
  0x10   : > { %1145 = vmatpush3.bf16.msra.mxu0 %v1297_v5  ;;  %1262 = vmatpush3.bf16.msra.mxu1 %v1297_v5  ;;  %s1446_s7 = scalar_lea.vmem %s1532_s0, %s1012_s30  ;;  %s1505_s29 = scalar_lea.vmem %s1534_s2, %s929_s26 }
  0x11   : > { %1146 = vmatprep.subr.bf16.mxu0 %v1298_v6  ;;  %1255 = vmatprep.subr.bf16.mxu1 %v1298_v6  ;;  %v1310_v11 = vld [vmem:[%s1446_s7 + $0x4] ss:$8 sps:$4 sm:$0xff]   ;;  %v1308_v18 = vld [vmem:[%s1446_s7] ss:$8 sps:$4 sm:$0xff]   ;;  %v1314_v20 = vld [vmem:[%s1446_s7 + $0x14] ss:$8 sps:$4 sm:$0xff]  }
  0x12   : > { %v1313_v12 = vld [vmem:[%s1446_s7 + $0x84] ss:$8 sps:$4 sm:$0xff]   ;;  %540 = vmatprep.mubr.bf16.mxu0 %v1310_v11  ;;  %v1311_v19 = vld [vmem:[%s1446_s7 + $0x80] ss:$8 sps:$4 sm:$0xff]   ;;  %v1316_v21 = vld [vmem:[%s1446_s7 + $0x94] ss:$8 sps:$4 sm:$0xff]  }
  0x13   : > { %604 = vmatprep.mubr.bf16.mxu1 %v1313_v12  ;;  %v1318_v22 = vld [vmem:[%s1446_s7 + $0x10] ss:$8 sps:$4 sm:$0xff]   ;;  %v1320_v24 = vld [vmem:[%s1446_s7 + $0x24] ss:$8 sps:$4 sm:$0xff]   ;;  %v1324_v26 = vld [vmem:[%s1446_s7 + $0x20] ss:$8 sps:$4 sm:$0xff]  }
  0x14   : > { %1147 = vmatpush3.bf16.msra.mxu0 %v1299_v7  ;;  %1263 = vmatpush3.bf16.msra.mxu1 %v1299_v7  ;;  %v1319_v23 = vld [vmem:[%s1446_s7 + $0x90] ss:$8 sps:$4 sm:$0xff]   ;;  %v1322_v25 = vld [vmem:[%s1446_s7 + $0xa4] ss:$8 sps:$4 sm:$0xff]   ;;  %v1325_v27 = vld [vmem:[%s1446_s7 + $0xa0] ss:$8 sps:$4 sm:$0xff]  }
  0x15   : > { %1148 = vmatprep.subr.bf16.mxu0 %v1300_v8  ;;  %1256 = vmatprep.subr.bf16.mxu1 %v1300_v8  ;;  %v1326_v28 = vld [vmem:[%s1446_s7 + $0x34] ss:$8 sps:$4 sm:$0xff]   ;;  %v1330_v30 = vld [vmem:[%s1446_s7 + $0x30] ss:$8 sps:$4 sm:$0xff]   ;;  %v1332_v32 = vld [vmem:[%s1446_s7 + $0x44] ss:$8 sps:$4 sm:$0xff]  }
  0x16   : > { %v1328_v29 = vld [vmem:[%s1446_s7 + $0xb4] ss:$8 sps:$4 sm:$0xff]   ;;  %v1331_v31 = vld [vmem:[%s1446_s7 + $0xb0] ss:$8 sps:$4 sm:$0xff]   ;;  %v1334_v33 = vld [vmem:[%s1446_s7 + $0xc4] ss:$8 sps:$4 sm:$0xff]  }
  0x17   : > { %v1336_v34 = vld [vmem:[%s1446_s7 + $0x40] ss:$8 sps:$4 sm:$0xff]   ;;  %v1338_v36 = vld [vmem:[%s1446_s7 + $0x54] ss:$8 sps:$4 sm:$0xff]   ;;  %v1342_v38 = vld [vmem:[%s1446_s7 + $0x50] ss:$8 sps:$4 sm:$0xff]  }
  0x18   : > { %1149 = vmatpush3.bf16.msra.mxu0 %v1301_v9  ;;  %1264 = vmatpush3.bf16.msra.mxu1 %v1301_v9  ;;  %v1337_v35 = vld [vmem:[%s1446_s7 + $0xc0] ss:$8 sps:$4 sm:$0xff]   ;;  %v1340_v37 = vld [vmem:[%s1446_s7 + $0xd4] ss:$8 sps:$4 sm:$0xff]   ;;  %v1343_v39 = vld [vmem:[%s1446_s7 + $0xd0] ss:$8 sps:$4 sm:$0xff]  }
  0x19   : > { %1150 = vmatprep.subr.bf16.mxu0 %v1302_v10  ;;  %1257 = vmatprep.subr.bf16.mxu1 %v1302_v10  ;;  %v1344_v40 = vld [vmem:[%s1446_s7 + $0x64] ss:$8 sps:$4 sm:$0xff]   ;;  %v1348_v42 = vld [vmem:[%s1446_s7 + $0x60] ss:$8 sps:$4 sm:$0xff]   ;;  %v1350_v44 = vld [vmem:[%s1446_s7 + $0x74] ss:$8 sps:$4 sm:$0xff]  }
  0x1a   : > { %v1346_v41 = vld [vmem:[%s1446_s7 + $0xe4] ss:$8 sps:$4 sm:$0xff]   ;;  %v1349_v43 = vld [vmem:[%s1446_s7 + $0xe0] ss:$8 sps:$4 sm:$0xff]   ;;  %v1352_v45 = vld [vmem:[%s1446_s7 + $0xf4] ss:$8 sps:$4 sm:$0xff]  }
  0x1b   : > { %v1354_v46 = vld [vmem:[%s1446_s7 + $0x70] ss:$8 sps:$4 sm:$0xff]  }
  0x1c   : > { %1151 = vmatpush3.bf16.msra.mxu0 %v1303_v13  ;;  %1265 = vmatpush3.bf16.msra.mxu1 %v1303_v13  ;;  %v1355_v47 = vld [vmem:[%s1446_s7 + $0xf0] ss:$8 sps:$4 sm:$0xff]  }
  0x1d   : > { %1152 = vmatprep.subr.bf16.mxu0 %v1304_v14  ;;  %1258 = vmatprep.subr.bf16.mxu1 %v1304_v14 }
  0x20   : > { %1153 = vmatpush3.bf16.msra.mxu0 %v1305_v15  ;;  %1266 = vmatpush3.bf16.msra.mxu1 %v1305_v15 }
  0x21   : > { %1154 = vmatprep.subr.bf16.mxu0 %v1306_v16  ;;  %1259 = vmatprep.subr.bf16.mxu1 %v1306_v16 }
  0x24   : > { %1155 = vmatpush3.bf16.msra.mxu0 %v1307_v17  ;;  %1267 = vmatpush3.bf16.msra.mxu1 %v1307_v17 }
  0x27   : > { %541 = vmatmul.mubr.bf16.vlgmr.msra.gmra.mrb[0].mxu0 %v1308_v18  ;;  %605 = vmatmul.mubr.bf16.vlgmr.msra.gmra.mrb[0].mxu1 %v1311_v19 }
  0x28   : > { %548 = vmatprep.mubr.bf16.mxu0 %v1314_v20  ;;  %612 = vmatprep.mubr.bf16.mxu1 %v1316_v21 }
  0x2f   : > { %549 = vmatmul.mubr.bf16.gmra.mrb[4].mxu0 %v1318_v22  ;;  %613 = vmatmul.mubr.bf16.gmra.mrb[4].mxu1 %v1319_v23 }
  0x30   : > { %556 = vmatprep.mubr.bf16.mxu0 %v1320_v24  ;;  %620 = vmatprep.mubr.bf16.mxu1 %v1322_v25 }
  0x37   : > { %557 = vmatmul.mubr.bf16.gmra.mrb[8].mxu0 %v1324_v26  ;;  %621 = vmatmul.mubr.bf16.gmra.mrb[8].mxu1 %v1325_v27 }
  0x38   : > { %564 = vmatprep.mubr.bf16.mxu0 %v1326_v28  ;;  %628 = vmatprep.mubr.bf16.mxu1 %v1328_v29 }
  0x3f   : > { %565 = vmatmul.mubr.bf16.gmra.mrb[12].mxu0 %v1330_v30  ;;  %629 = vmatmul.mubr.bf16.gmra.mrb[12].mxu1 %v1331_v31 }
  0x40   : > { %572 = vmatprep.mubr.bf16.mxu0 %v1332_v32  ;;  %636 = vmatprep.mubr.bf16.mxu1 %v1334_v33 }
  0x47   : > { %573 = vmatmul.mubr.bf16.gmra.mrb[16].mxu0 %v1336_v34  ;;  %637 = vmatmul.mubr.bf16.gmra.mrb[16].mxu1 %v1337_v35 }
  0x48   : > { %580 = vmatprep.mubr.bf16.mxu0 %v1338_v36  ;;  %644 = vmatprep.mubr.bf16.mxu1 %v1340_v37 }
  0x4f   : > { %581 = vmatmul.mubr.bf16.gmra.mrb[20].mxu0 %v1342_v38  ;;  %645 = vmatmul.mubr.bf16.gmra.mrb[20].mxu1 %v1343_v39 }
  0x50   : > { %588 = vmatprep.mubr.bf16.mxu0 %v1344_v40  ;;  %652 = vmatprep.mubr.bf16.mxu1 %v1346_v41 }
  0x57   : > { %589 = vmatmul.mubr.bf16.gmra.mrb[24].mxu0 %v1348_v42  ;;  %653 = vmatmul.mubr.bf16.gmra.mrb[24].mxu1 %v1349_v43 }
  0x58   : > { %596 = vmatprep.mubr.bf16.mxu0 %v1350_v44  ;;  %660 = vmatprep.mubr.bf16.mxu1 %v1352_v45 }
  0x5f   : > { %597 = vmatmul.mubr.bf16.gmra.mrb[28].mxu0 %v1354_v46  ;;  %661 = vmatmul.mubr.bf16.gmra.mrb[28].mxu1 %v1355_v47 }
  0xfa   : > { %v1156_v48 = vpop.f32.mrb[0].mxu0  ;;  %v1204_v49 = vpop.f32.mrb[0].mxu1 }
  0xfb   : > { %v1157_v50 = vpop.f32.mrb[1].mxu0  ;;  %v1205_v51 = vpop.f32.mrb[1].mxu1 }
  0xfc   : > { %v1158_v52 = vadd.f32 %v1157_v50, %v1156_v48  ;;  %v1206_v53 = vadd.f32 %v1205_v51, %v1204_v49  ;;  %v1159_v54 = vpop.f32.mrb[2].mxu0  ;;  %v1207_v55 = vpop.f32.mrb[2].mxu1 }
  0xfd   : > { %v1160_v56 = vpop.f32.mrb[3].mxu0  ;;  %v1208_v57 = vpop.f32.mrb[3].mxu1 }
  0xfe   : > { %v1161_v58 = vadd.f32 %v1160_v56, %v1159_v54  ;;  %v1209_v59 = vadd.f32 %v1208_v57, %v1207_v55 }
 0x100   : > { %v1048_v60 = vpack.c.bf16 %v1161_v58, %v1158_v52  ;;  %v1088_v61 = vpack.c.bf16 %v1209_v59, %v1206_v53 }
 0x102   : > { %1049 = vst [vmem:[%s1505_s29] sm:$0xff] %v1048_v60   ;;  %1132 = vst [vmem:[%s1505_s29 + $0x40] sm:$0xff] %v1088_v61   ;;  %v1162_v62 = vpop.f32.mrb[4].mxu0  ;;  %v1210_v63 = vpop.f32.mrb[4].mxu1 }
 0x103   : > { %v1163_v0 = vpop.f32.mrb[5].mxu0  ;;  %v1211_v1 = vpop.f32.mrb[5].mxu1 }
 0x104   : > { %v1164_v2 = vadd.f32 %v1163_v0, %v1162_v62  ;;  %v1212_v3 = vadd.f32 %v1211_v1, %v1210_v63  ;;  %v1165_v4 = vpop.f32.mrb[6].mxu0  ;;  %v1213_v5 = vpop.f32.mrb[6].mxu1 }
 0x105   : > { %v1166_v6 = vpop.f32.mrb[7].mxu0  ;;  %v1214_v7 = vpop.f32.mrb[7].mxu1 }
 0x106   : > { %v1167_v8 = vadd.f32 %v1166_v6, %v1165_v4  ;;  %v1215_v9 = vadd.f32 %v1214_v7, %v1213_v5 }
 0x108   : > { %v1053_v10 = vpack.c.bf16 %v1167_v8, %v1164_v2  ;;  %v1093_v11 = vpack.c.bf16 %v1215_v9, %v1212_v3 }
 0x10a   : > { %1125 = vst [vmem:[%s1505_s29 + $0x8] sm:$0xff] %v1053_v10   ;;  %1133 = vst [vmem:[%s1505_s29 + $0x48] sm:$0xff] %v1093_v11   ;;  %v1168_v12 = vpop.f32.mrb[8].mxu0  ;;  %v1216_v13 = vpop.f32.mrb[8].mxu1 }
 0x10b   : > { %v1169_v14 = vpop.f32.mrb[9].mxu0  ;;  %v1217_v15 = vpop.f32.mrb[9].mxu1 }
 0x10c   : > { %v1170_v16 = vadd.f32 %v1169_v14, %v1168_v12  ;;  %v1218_v17 = vadd.f32 %v1217_v15, %v1216_v13  ;;  %v1171_v18 = vpop.f32.mrb[10].mxu0  ;;  %v1219_v19 = vpop.f32.mrb[10].mxu1 }
 0x10d   : > { %v1172_v20 = vpop.f32.mrb[11].mxu0  ;;  %v1220_v21 = vpop.f32.mrb[11].mxu1 }
 0x10e   : > { %v1173_v22 = vadd.f32 %v1172_v20, %v1171_v18  ;;  %v1221_v23 = vadd.f32 %v1220_v21, %v1219_v19 }
 0x110   : > { %v1058_v24 = vpack.c.bf16 %v1173_v22, %v1170_v16  ;;  %v1098_v25 = vpack.c.bf16 %v1221_v23, %v1218_v17 }
 0x112   : > { %1126 = vst [vmem:[%s1505_s29 + $0x10] sm:$0xff] %v1058_v24   ;;  %1134 = vst [vmem:[%s1505_s29 + $0x50] sm:$0xff] %v1098_v25   ;;  %v1174_v26 = vpop.f32.mrb[12].mxu0  ;;  %v1222_v27 = vpop.f32.mrb[12].mxu1 }
 0x113   : > { %v1175_v28 = vpop.f32.mrb[13].mxu0  ;;  %v1223_v29 = vpop.f32.mrb[13].mxu1 }
 0x114   : > { %v1176_v30 = vadd.f32 %v1175_v28, %v1174_v26  ;;  %v1224_v31 = vadd.f32 %v1223_v29, %v1222_v27  ;;  %v1177_v32 = vpop.f32.mrb[14].mxu0  ;;  %v1225_v33 = vpop.f32.mrb[14].mxu1 }
 0x115   : > { %v1178_v34 = vpop.f32.mrb[15].mxu0  ;;  %v1226_v35 = vpop.f32.mrb[15].mxu1 }
 0x116   : > { %v1179_v36 = vadd.f32 %v1178_v34, %v1177_v32  ;;  %v1227_v37 = vadd.f32 %v1226_v35, %v1225_v33 }
 0x118   : > { %v1063_v38 = vpack.c.bf16 %v1179_v36, %v1176_v30  ;;  %v1103_v39 = vpack.c.bf16 %v1227_v37, %v1224_v31 }
 0x11a   : > { %1127 = vst [vmem:[%s1505_s29 + $0x18] sm:$0xff] %v1063_v38   ;;  %1135 = vst [vmem:[%s1505_s29 + $0x58] sm:$0xff] %v1103_v39   ;;  %v1180_v40 = vpop.f32.mrb[16].mxu0  ;;  %v1228_v41 = vpop.f32.mrb[16].mxu1 }
 0x11b   : > { %v1181_v42 = vpop.f32.mrb[17].mxu0  ;;  %v1229_v43 = vpop.f32.mrb[17].mxu1 }
 0x11c   : > { %v1182_v44 = vadd.f32 %v1181_v42, %v1180_v40  ;;  %v1230_v45 = vadd.f32 %v1229_v43, %v1228_v41  ;;  %v1183_v46 = vpop.f32.mrb[18].mxu0  ;;  %v1231_v47 = vpop.f32.mrb[18].mxu1 }
 0x11d   : > { %v1184_v48 = vpop.f32.mrb[19].mxu0  ;;  %v1232_v49 = vpop.f32.mrb[19].mxu1 }
 0x11e   : > { %v1185_v50 = vadd.f32 %v1184_v48, %v1183_v46  ;;  %v1233_v51 = vadd.f32 %v1232_v49, %v1231_v47 }
 0x120   : > { %v1068_v52 = vpack.c.bf16 %v1185_v50, %v1182_v44  ;;  %v1108_v53 = vpack.c.bf16 %v1233_v51, %v1230_v45 }
 0x122   : > { %1128 = vst [vmem:[%s1505_s29 + $0x20] sm:$0xff] %v1068_v52   ;;  %1136 = vst [vmem:[%s1505_s29 + $0x60] sm:$0xff] %v1108_v53   ;;  %v1186_v54 = vpop.f32.mrb[20].mxu0  ;;  %v1234_v55 = vpop.f32.mrb[20].mxu1 }
 0x123   : > { %v1187_v56 = vpop.f32.mrb[21].mxu0  ;;  %v1235_v57 = vpop.f32.mrb[21].mxu1 }
 0x124   : > { %v1188_v58 = vadd.f32 %v1187_v56, %v1186_v54  ;;  %v1236_v59 = vadd.f32 %v1235_v57, %v1234_v55  ;;  %v1189_v60 = vpop.f32.mrb[22].mxu0  ;;  %v1237_v61 = vpop.f32.mrb[22].mxu1 }
 0x125   : > { %v1190_v62 = vpop.f32.mrb[23].mxu0  ;;  %v1238_v63 = vpop.f32.mrb[23].mxu1 }
 0x126   : > { %v1191_v0 = vadd.f32 %v1190_v62, %v1189_v60  ;;  %v1239_v1 = vadd.f32 %v1238_v63, %v1237_v61 }
 0x128   : > { %v1073_v2 = vpack.c.bf16 %v1191_v0, %v1188_v58  ;;  %v1113_v3 = vpack.c.bf16 %v1239_v1, %v1236_v59 }
 0x12a   : > { %1129 = vst [vmem:[%s1505_s29 + $0x28] sm:$0xff] %v1073_v2   ;;  %1137 = vst [vmem:[%s1505_s29 + $0x68] sm:$0xff] %v1113_v3   ;;  %v1192_v4 = vpop.f32.mrb[24].mxu0  ;;  %v1240_v5 = vpop.f32.mrb[24].mxu1 }
 0x12b   : > { %v1193_v6 = vpop.f32.mrb[25].mxu0  ;;  %v1241_v7 = vpop.f32.mrb[25].mxu1 }
 0x12c   : > { %v1194_v8 = vadd.f32 %v1193_v6, %v1192_v4  ;;  %v1242_v9 = vadd.f32 %v1241_v7, %v1240_v5  ;;  %v1195_v10 = vpop.f32.mrb[26].mxu0  ;;  %v1243_v11 = vpop.f32.mrb[26].mxu1 }
 0x12d   : > { %v1196_v12 = vpop.f32.mrb[27].mxu0  ;;  %v1244_v13 = vpop.f32.mrb[27].mxu1 }
 0x12e   : > { %v1197_v14 = vadd.f32 %v1196_v12, %v1195_v10  ;;  %v1245_v15 = vadd.f32 %v1244_v13, %v1243_v11 }
 0x130   : > { %v1078_v16 = vpack.c.bf16 %v1197_v14, %v1194_v8  ;;  %v1118_v17 = vpack.c.bf16 %v1245_v15, %v1242_v9 }
 0x132   : > { %1130 = vst [vmem:[%s1505_s29 + $0x30] sm:$0xff] %v1078_v16   ;;  %1138 = vst [vmem:[%s1505_s29 + $0x70] sm:$0xff] %v1118_v17   ;;  %v1198_v18 = vpop.f32.mrb[28].mxu0  ;;  %v1246_v19 = vpop.f32.mrb[28].mxu1 }
 0x133   : > { %v1199_v20 = vpop.f32.mrb[29].mxu0  ;;  %v1247_v21 = vpop.f32.mrb[29].mxu1 }
 0x134   : > { %v1200_v22 = vadd.f32 %v1199_v20, %v1198_v18  ;;  %v1248_v23 = vadd.f32 %v1247_v21, %v1246_v19  ;;  %v1201_v24 = vpop.f32.mrb[30].mxu0  ;;  %v1249_v25 = vpop.f32.mrb[30].mxu1 }
 0x135   : > { %v1202_v26 = vpop.f32.mrb[31].mxu0  ;;  %v1250_v27 = vpop.f32.mrb[31].mxu1 }
 0x136   : > { %v1203_v28 = vadd.f32 %v1202_v26, %v1201_v24  ;;  %v1251_v29 = vadd.f32 %v1250_v27, %v1249_v25 }
 0x138   : > { %v1083_v30 = vpack.c.bf16 %v1203_v28, %v1200_v22  ;;  %v1123_v31 = vpack.c.bf16 %v1251_v29, %v1248_v23 }
 0x13a   : > { %1131 = vst [vmem:[%s1505_s29 + $0x38] sm:$0xff] %v1083_v30   ;;  %1139 = vst [vmem:[%s1505_s29 + $0x78] sm:$0xff] %v1123_v31  }
 0x13b PF: > { %s12_s11 = sadd.s32 1, %s1378_s11   ;;  %s1535_s9 = smov %s1374_s10 }
 0x13c   : > { %p9_p5 = scmp.ge.s32.totalorder %s12_s11, 4   ;;  %s1536_s10 = smov %s1538_s12 }
 0x13e   :  { %11 = sbr.rel (!%p9_p5) target bundleno = 2 (0x2), region = 61 }

// kernel: densenet121_forward.133
= control target key start
LH: loop header
LB: loop body
LE: loop exit
PB: predicated region body
PF: predicated region fallthrough
CT: control target
= control target key end

     0   :  { %s883_s15 = smov 0   ;;  %s885_s16 = smov 0   ;;  %s1028_s0 = inlined_call_operand.vmem [shape: bf16[128,256], index: 0, kind: input, shape index: {}]   ;;  %s1029_s1 = inlined_call_operand.vmem [shape: f32[1,256], index: 1, kind: input, shape index: {}]   ;;  %s1030_s2 = inlined_call_operand.vmem [shape: f32[1,256], index: 2, kind: input, shape index: {}]   ;;  %s1031_s3 = inlined_call_operand.vmem [shape: bf16[256,128], index: 3, kind: input, shape index: {}]   ;;  %s1032_s4 = inlined_call_operand.vmem [shape: bf16[128,128], index: 4, kind: output, shape index: {}]  }
   0x1   :  { %s887_s17 = smov 0  }
   0x2 LB: > { %s26_s18 = sadd.s32 1, %s852_s16  ;;  %p674_p0 = scmp.ge.s32.totalorder %s856_s17, 1  ;;  %s856_s17 = sphi %s887_s17, %s14_s17   ;;  %s852_s16 = sphi %s885_s16, %s1034_s16   ;;  %s848_s15 = sphi %s883_s15, %s1033_s15  }
   0x3   : > { %p28_p1 = scmp.ge.s32.totalorder %s26_s18, 2  ;;  %p187_p2 = scmp.lt.s32.totalorder %s856_s17, 3 }
   0x5   : > { %s1036_s18 = smov (%p28_p1, %s26_s18), 0  ;;  %p188_p3 = pnand %p674_p0, %p187_p2 }
   0x6   : > { %v818_v0 = vld [vmem:[%s1031_s3 + $0x40] sm:$0xff] (!%p188_p3)   ;;  %s675_s21 = sshll.u32 (!%p188_p3), %s848_s15, 3  ;;  %v820_v2 = vld [vmem:[%s1031_s3 + $0x48] sm:$0xff] (!%p188_p3)   ;;  %v822_v4 = vld [vmem:[%s1031_s3 + $0x50] sm:$0xff] (!%p188_p3)   ;;  %v268_v5 = vlaneseq (!%p188_p3) }
   0x7   : > { %191 = sbr.rel (%p188_p3) target bundleno = 267 (0x10b), region = 36  ;;  %v819_v1 = vld [vmem:[%s1031_s3] sm:$0xff] (!%p188_p3)   ;;  %738 = vmatprep.subr.bf16.mxu0 (!%p188_p3), %v818_v0  ;;  %778 = vmatprep.subr.bf16.mxu1 (!%p188_p3), %v818_v0  ;;  %p222_p4 = scmp.lt.s32.totalorder (!%p188_p3), %s675_s21, 15  ;;  %v821_v3 = vld [vmem:[%s1031_s3 + $0x8] sm:$0xff] (!%p188_p3)   ;;  %v823_v6 = vld [vmem:[%s1031_s3 + $0x10] sm:$0xff] (!%p188_p3)  }
   0x8   : > { %739 = vmatpush3.bf16.msra.mxu0 (!%p188_p3), %v819_v1  ;;  %786 = vmatpush3.bf16.msra.mxu1 (!%p188_p3), %v819_v1  ;;  %v824_v7 = vld [vmem:[%s1031_s3 + $0x58] sm:$0xff] (!%p188_p3)   ;;  %v269_v8 = vshrl.u32 (!%p188_p3), %v268_v5, 7  ;;  %v826_v10 = vld [vmem:[%s1031_s3 + $0x60] sm:$0xff] (!%p188_p3)   ;;  %v828_v14 = vld [vmem:[%s1031_s3 + $0x68] sm:$0xff] (!%p188_p3)  }
   0x9   : > { %740 = vmatprep.subr.bf16.mxu0 (!%p188_p3), %v820_v2  ;;  %779 = vmatprep.subr.bf16.mxu1 (!%p188_p3), %v820_v2  ;;  %v825_v9 = vld [vmem:[%s1031_s3 + $0x18] sm:$0xff] (!%p188_p3)   ;;  %v827_v12 = vld [vmem:[%s1031_s3 + $0x20] sm:$0xff] (!%p188_p3)   ;;  %v829_v30 = vld [vmem:[%s1031_s3 + $0x28] sm:$0xff] (!%p188_p3)  }
   0xa   : > { %v270_v11 = vsub.s32 (!%p188_p3), 0, %v269_v8  ;;  %v274_v13 = vsub.s32 (!%p188_p3), 1, %v269_v8  ;;  %v266_v17 = vld [vmem:[%s1029_s1] sm:$0x3] (!%p188_p3)  ;;  %v830_v35 = vld [vmem:[%s1031_s3 + $0x70] sm:$0xff] (!%p188_p3)   ;;  %v832_v54 = vld [vmem:[%s1031_s3 + $0x78] sm:$0xff] (!%p188_p3)  }
   0xb   : > { %v294_v22 = vld [vmem:[%s1030_s2] sm:$0x3] (!%p188_p3)  ;;  %v831_v49 = vld [vmem:[%s1031_s3 + $0x30] sm:$0xff] (!%p188_p3)   ;;  %v833_v5 = vld [vmem:[%s1031_s3 + $0x38] sm:$0xff] (!%p188_p3)  }
   0xc   : > { %741 = vmatpush3.bf16.msra.mxu0 (!%p188_p3), %v821_v3  ;;  %787 = vmatpush3.bf16.msra.mxu1 (!%p188_p3), %v821_v3  ;;  %v952_v25 = vrot.slane (!%p188_p3), %v266_v17, %v270_v11  ;;  %v954_v26 = vrot.slane (!%p188_p3), %v266_v17, %v274_v13  ;;  %v956_v27 = vrot.slane (!%p188_p3), %v294_v22, %v270_v11 }
   0xd   : > { %742 = vmatprep.subr.bf16.mxu0 (!%p188_p3), %v822_v4  ;;  %780 = vmatprep.subr.bf16.mxu1 (!%p188_p3), %v822_v4  ;;  %v958_v28 = vrot.slane (!%p188_p3), %v294_v22, %v274_v13 }
   0xe   : > { %s1038_s21 = smov (!%p222_p4, %s675_s21), 15 }
   0xf   : > { %s706_s8 = sshll.u32 %s1038_s21, 3  ;;  %s679_s12 = sshll.u32 %s1038_s21, 2 }
  0x10   : > { %743 = vmatpush3.bf16.msra.mxu0 %v823_v6  ;;  %788 = vmatpush3.bf16.msra.mxu1 %v823_v6  ;;  %s934_s15 = scalar_lea.vmem %s1028_s0, %s706_s8 }
  0x11   : > { %744 = vmatprep.subr.bf16.mxu0 %v824_v7  ;;  %781 = vmatprep.subr.bf16.mxu1 %v824_v7  ;;  %v242_v15 = vld [vmem:[%s934_s15] sm:$0xff]  ;;  %v243_v16 = vld [vmem:[%s934_s15 + $0x8] sm:$0xff]  ;;  %v961_v29 = vld [vmem:[%s934_s15 + $0x10] sm:$0xff] }
  0x12   : > { %v250_v18 = vunpack.c.l.bf16 %v242_v15  ;;  %v251_v19 = vunpack.c.h.bf16 %v242_v15  ;;  %v252_v20 = vunpack.c.l.bf16 %v243_v16  ;;  %v253_v21 = vunpack.c.h.bf16 %v243_v16  ;;  %v246_v23 = vld [vmem:[%s934_s15 + $0x20] sm:$0xff]  ;;  %v247_v24 = vld [vmem:[%s934_s15 + $0x28] sm:$0xff]  ;;  %v245_v39 = vld [vmem:[%s934_s15 + $0x18] sm:$0xff] }
  0x13   : > { %v258_v31 = vunpack.c.l.bf16 %v246_v23  ;;  %v259_v32 = vunpack.c.h.bf16 %v246_v23  ;;  %v260_v33 = vunpack.c.l.bf16 %v247_v24  ;;  %v261_v34 = vunpack.c.h.bf16 %v247_v24  ;;  %v248_v59 = vld [vmem:[%s934_s15 + $0x30] sm:$0xff]  ;;  %v249_v0 = vld [vmem:[%s934_s15 + $0x38] sm:$0xff]  ;;  %s239_s15 = scalar_lea.vmem %s1032_s4, %s679_s12 }
  0x14   : > { %745 = vmatpush3.bf16.msra.mxu0 %v825_v9  ;;  %789 = vmatpush3.bf16.msra.mxu1 %v825_v9  ;;  %v279_v36 = vmul.f32 %v954_v26, %v251_v19  ;;  %v281_v37 = vmul.f32 %v954_v26, %v253_v21  ;;  %v278_v38 = vmul.f32 %v952_v25, %v250_v18  ;;  %v255_v40 = vunpack.c.h.bf16 %v961_v29 }
  0x15   : > { %746 = vmatprep.subr.bf16.mxu0 %v826_v10  ;;  %782 = vmatprep.subr.bf16.mxu1 %v826_v10  ;;  %v287_v41 = vmul.f32 %v954_v26, %v259_v32  ;;  %v289_v42 = vmul.f32 %v954_v26, %v261_v34  ;;  %v280_v43 = vmul.f32 %v952_v25, %v252_v20  ;;  %v257_v53 = vunpack.c.h.bf16 %v245_v39 }
  0x16   : > { %v286_v44 = vmul.f32 %v952_v25, %v258_v31  ;;  %v307_v45 = vadd.f32 %v958_v28, %v279_v36  ;;  %v309_v46 = vadd.f32 %v958_v28, %v281_v37  ;;  %v306_v47 = vadd.f32 %v956_v27, %v278_v38 }
  0x17   : > { %v288_v48 = vmul.f32 %v952_v25, %v260_v33  ;;  %v315_v50 = vadd.f32 %v958_v28, %v287_v41  ;;  %v317_v51 = vadd.f32 %v958_v28, %v289_v42  ;;  %v308_v52 = vadd.f32 %v956_v27, %v280_v43 }
  0x18   : > { %747 = vmatpush3.bf16.msra.mxu0 %v827_v12  ;;  %790 = vmatpush3.bf16.msra.mxu1 %v827_v12  ;;  %v323_v55 = vmax.f32 %v307_v45, 0.0  ;;  %v325_v56 = vmax.f32 %v309_v46, 0.0  ;;  %v322_v57 = vmax.f32 %v306_v47, 0.0  ;;  %v314_v58 = vadd.f32 %v956_v27, %v286_v44 }
  0x19   : > { %748 = vmatprep.subr.bf16.mxu0 %v828_v14  ;;  %783 = vmatprep.subr.bf16.mxu1 %v828_v14  ;;  %v331_v60 = vmax.f32 %v315_v50, 0.0  ;;  %v333_v61 = vmax.f32 %v317_v51, 0.0  ;;  %v324_v62 = vmax.f32 %v308_v52, 0.0  ;;  %v316_v63 = vadd.f32 %v956_v27, %v288_v48 }
  0x1a   : > { %v339_v1 = vpack.c.bf16 %v325_v56, %v323_v55  ;;  %v330_v2 = vmax.f32 %v314_v58, 0.0  ;;  %v283_v3 = vmul.f32 %v954_v26, %v255_v40  ;;  %v285_v4 = vmul.f32 %v954_v26, %v257_v53 }
  0x1b   : > { %v343_v6 = vpack.c.bf16 %v333_v61, %v331_v60  ;;  %v338_v7 = vpack.c.bf16 %v324_v62, %v322_v57  ;;  %v332_v8 = vmax.f32 %v316_v63, 0.0  ;;  %v263_v9 = vunpack.c.h.bf16 %v248_v59 }
  0x1c   : > { %749 = vmatpush3.bf16.msra.mxu0 %v829_v30  ;;  %791 = vmatpush3.bf16.msra.mxu1 %v829_v30  ;;  %v311_v10 = vadd.f32 %v958_v28, %v283_v3  ;;  %v313_v11 = vadd.f32 %v958_v28, %v285_v4  ;;  %v265_v12 = vunpack.c.h.bf16 %v249_v0  ;;  %v254_v13 = vunpack.c.l.bf16 %v961_v29 }
  0x1d   : > { %750 = vmatprep.subr.bf16.mxu0 %v830_v35  ;;  %784 = vmatprep.subr.bf16.mxu1 %v830_v35  ;;  %v342_v14 = vpack.c.bf16 %v332_v8, %v330_v2  ;;  %v291_v15 = vmul.f32 %v954_v26, %v263_v9  ;;  %v256_v16 = vunpack.c.l.bf16 %v245_v39  ;;  %v262_v17 = vunpack.c.l.bf16 %v248_v59 }
  0x1e   : > { %506 = vmatprep.mubr.bf16.mxu0 %v339_v1  ;;  %522 = vmatprep.mubr.bf16.mxu1 %v343_v6  ;;  %v327_v18 = vmax.f32 %v311_v10, 0.0  ;;  %v329_v19 = vmax.f32 %v313_v11, 0.0  ;;  %v293_v20 = vmul.f32 %v954_v26, %v265_v12  ;;  %v282_v21 = vmul.f32 %v952_v25, %v254_v13 }
  0x1f   : > { %v319_v22 = vadd.f32 %v958_v28, %v291_v15  ;;  %v284_v23 = vmul.f32 %v952_v25, %v256_v16  ;;  %v264_v24 = vunpack.c.l.bf16 %v249_v0  ;;  %v290_v29 = vmul.f32 %v952_v25, %v262_v17 }
  0x20   : > { %751 = vmatpush3.bf16.msra.mxu0 %v831_v49  ;;  %792 = vmatpush3.bf16.msra.mxu1 %v831_v49  ;;  %v341_v30 = vpack.c.bf16 %v329_v19, %v327_v18  ;;  %v321_v31 = vadd.f32 %v958_v28, %v293_v20  ;;  %v310_v32 = vadd.f32 %v956_v27, %v282_v21 }
  0x21   : > { %752 = vmatprep.subr.bf16.mxu0 %v832_v54  ;;  %785 = vmatprep.subr.bf16.mxu1 %v832_v54  ;;  %v335_v33 = vmax.f32 %v319_v22, 0.0  ;;  %v312_v34 = vadd.f32 %v956_v27, %v284_v23  ;;  %v292_v26 = vmul.f32 %v952_v25, %v264_v24  ;;  %v318_v35 = vadd.f32 %v956_v27, %v290_v29 }
  0x22   : > { %v337_v36 = vmax.f32 %v321_v31, 0.0  ;;  %v326_v37 = vmax.f32 %v310_v32, 0.0 }
  0x23   : > { %v328_v38 = vmax.f32 %v312_v34, 0.0  ;;  %v320_v39 = vadd.f32 %v956_v27, %v292_v26  ;;  %v334_v40 = vmax.f32 %v318_v35, 0.0 }
  0x24   : > { %753 = vmatpush3.bf16.msra.mxu0 %v833_v5  ;;  %793 = vmatpush3.bf16.msra.mxu1 %v833_v5  ;;  %v345_v28 = vpack.c.bf16 %v337_v36, %v335_v33 }
  0x25   : > { %v336_v41 = vmax.f32 %v320_v39, 0.0  ;;  %v340_v42 = vpack.c.bf16 %v328_v38, %v326_v37 }
  0x27   : > { %507 = vmatmul.mubr.bf16.vlgmr.msra.gmra.mrb[0].mxu0 %v338_v7  ;;  %523 = vmatmul.mubr.bf16.vlgmr.msra.gmra.mrb[0].mxu1 %v342_v14  ;;  %v344_v43 = vpack.c.bf16 %v336_v41, %v334_v40 }
  0x28   : > { %514 = vmatprep.mubr.bf16.mxu0 %v341_v30  ;;  %530 = vmatprep.mubr.bf16.mxu1 %v345_v28 }
  0x2f   : > { %515 = vmatmul.mubr.bf16.gmra.mrb[4].mxu0 %v340_v42  ;;  %531 = vmatmul.mubr.bf16.gmra.mrb[4].mxu1 %v344_v43 }
  0xfa   : > { %v754_v25 = vpop.f32.mrb[0].mxu0  ;;  %v766_v44 = vpop.f32.mrb[0].mxu1 }
  0xfb   : > { %v755_v45 = vpop.f32.mrb[1].mxu0  ;;  %v767_v46 = vpop.f32.mrb[1].mxu1 }
  0xfc   : > { %v756_v47 = vadd.f32 %v755_v45, %v754_v25  ;;  %v768_v48 = vadd.f32 %v767_v46, %v766_v44  ;;  %v757_v49 = vpop.f32.mrb[2].mxu0  ;;  %v769_v50 = vpop.f32.mrb[2].mxu1 }
  0xfd   : > { %v758_v51 = vpop.f32.mrb[3].mxu0  ;;  %v770_v27 = vpop.f32.mrb[3].mxu1 }
  0xfe   : > { %v759_v52 = vadd.f32 %v758_v51, %v757_v49  ;;  %v771_v53 = vadd.f32 %v770_v27, %v769_v50 }
 0x100   : > { %v718_v54 = vpack.c.bf16 %v759_v52, %v756_v47  ;;  %v728_v55 = vpack.c.bf16 %v771_v53, %v768_v48 }
 0x102   : > { %719 = vst [vmem:[%s239_s15] sm:$0xff] %v718_v54   ;;  %736 = vst [vmem:[%s239_s15 + $0x10] sm:$0xff] %v728_v55   ;;  %v760_v56 = vpop.f32.mrb[4].mxu0  ;;  %v772_v57 = vpop.f32.mrb[4].mxu1 }
 0x103   : > { %v761_v58 = vpop.f32.mrb[5].mxu0  ;;  %v773_v59 = vpop.f32.mrb[5].mxu1 }
 0x104   : > { %v762_v60 = vadd.f32 %v761_v58, %v760_v56  ;;  %v774_v61 = vadd.f32 %v773_v59, %v772_v57  ;;  %v763_v62 = vpop.f32.mrb[6].mxu0  ;;  %v775_v63 = vpop.f32.mrb[6].mxu1 }
 0x105   : > { %v764_v0 = vpop.f32.mrb[7].mxu0  ;;  %v776_v1 = vpop.f32.mrb[7].mxu1 }
 0x106   : > { %v765_v2 = vadd.f32 %v764_v0, %v763_v62  ;;  %v777_v3 = vadd.f32 %v776_v1, %v775_v63 }
 0x108   : > { %v723_v4 = vpack.c.bf16 %v765_v2, %v762_v60  ;;  %v733_v5 = vpack.c.bf16 %v777_v3, %v774_v61 }
 0x10a   : > { %735 = vst [vmem:[%s239_s15 + $0x8] sm:$0xff] %v723_v4   ;;  %737 = vst [vmem:[%s239_s15 + $0x18] sm:$0xff] %v733_v5  }
 0x10b PF: > { %s14_s17 = sadd.s32 1, %s856_s17   ;;  %s1033_s15 = smov %s852_s16 }
 0x10c   : > { %p11_p5 = scmp.ge.s32.totalorder %s14_s17, 4   ;;  %s1034_s16 = smov %s1036_s18 }
 0x10e   :  { %13 = sbr.rel (!%p11_p5) target bundleno = 2 (0x2), region = 69 }

// kernel: densenet121_forward.134
= control target key start
LH: loop header
LB: loop body
LE: loop exit
PB: predicated region body
PF: predicated region fallthrough
CT: control target
= control target key end

     0   :  { %s422_s0 = inlined_call_operand.vmem [shape: bf16[128,128], index: 0, kind: input, shape index: {}]   ;;  %s423_s1 = inlined_call_operand.vmem [shape: f32[1,128], index: 1, kind: input, shape index: {}]   ;;  %s424_s2 = inlined_call_operand.vmem [shape: f32[1,128], index: 2, kind: input, shape index: {}]   ;;  %s425_s3 = inlined_call_operand.vmem [shape: bf16[128,128], index: 3, kind: output, shape index: {}]  }
   0x1   :  { %v227_v0 = vld [vmem:[%s422_s0] sm:$0xff]   ;;  %v298_v4 = vld [vmem:[%s422_s0 + $0x8] sm:$0xff]   ;;  %v299_v5 = vld [vmem:[%s422_s0 + $0x10] sm:$0xff]  }
   0x2   :  { %v338_v1 = vld [vmem:[%s423_s1] ss:$0 sm:$0xff]  ;;  %v228_v2 = vunpack.c.l.bf16 %v227_v0  ;;  %v229_v3 = vunpack.c.h.bf16 %v227_v0  ;;  %v300_v6 = vld [vmem:[%s422_s0 + $0x18] sm:$0xff]   ;;  %v232_v8 = vunpack.c.l.bf16 %v298_v4  ;;  %v233_v9 = vunpack.c.h.bf16 %v298_v4  ;;  %v302_v33 = vld [vmem:[%s422_s0 + $0x28] sm:$0xff]  }
   0x3   :  { %v352_v7 = vld [vmem:[%s424_s2] ss:$0 sm:$0xff]  ;;  %v236_v10 = vunpack.c.l.bf16 %v299_v5  ;;  %v237_v11 = vunpack.c.h.bf16 %v299_v5  ;;  %v240_v14 = vunpack.c.l.bf16 %v300_v6  ;;  %v241_v15 = vunpack.c.h.bf16 %v300_v6  ;;  %v303_v38 = vld [vmem:[%s422_s0 + $0x30] sm:$0xff]   ;;  %v304_v43 = vld [vmem:[%s422_s0 + $0x38] sm:$0xff]  }
   0x4   :  { %v53_v12 = vmul.f32 %v228_v2, %v338_v1  ;;  %v54_v13 = vmul.f32 %v229_v3, %v338_v1  ;;  %v55_v16 = vmul.f32 %v232_v8, %v338_v1  ;;  %v56_v17 = vmul.f32 %v233_v9, %v338_v1  ;;  %v301_v28 = vld [vmem:[%s422_s0 + $0x20] sm:$0xff]  }
   0x5   :  { %v57_v18 = vmul.f32 %v236_v10, %v338_v1  ;;  %v58_v19 = vmul.f32 %v237_v11, %v338_v1  ;;  %v59_v22 = vmul.f32 %v240_v14, %v338_v1  ;;  %v60_v23 = vmul.f32 %v241_v15, %v338_v1 }
   0x6   :  { %v76_v20 = vadd.f32 %v352_v7, %v53_v12  ;;  %v77_v21 = vadd.f32 %v352_v7, %v54_v13  ;;  %v78_v24 = vadd.f32 %v352_v7, %v55_v16  ;;  %v79_v25 = vadd.f32 %v352_v7, %v56_v17 }
   0x7   :  { %v80_v26 = vadd.f32 %v352_v7, %v57_v18  ;;  %v81_v27 = vadd.f32 %v352_v7, %v58_v19  ;;  %v82_v31 = vadd.f32 %v352_v7, %v59_v22  ;;  %v83_v32 = vadd.f32 %v352_v7, %v60_v23 }
   0x8   :  { %v92_v29 = vmax.f32 %v76_v20, 0.0  ;;  %v93_v30 = vmax.f32 %v77_v21, 0.0  ;;  %v94_v34 = vmax.f32 %v78_v24, 0.0  ;;  %v95_v35 = vmax.f32 %v79_v25, 0.0 }
   0x9   :  { %v96_v36 = vmax.f32 %v80_v26, 0.0  ;;  %v97_v37 = vmax.f32 %v81_v27, 0.0  ;;  %v98_v40 = vmax.f32 %v82_v31, 0.0  ;;  %v99_v41 = vmax.f32 %v83_v32, 0.0 }
   0xa   :  { %v261_v39 = vpack.c.bf16 %v93_v30, %v92_v29  ;;  %v244_v42 = vunpack.c.l.bf16 %v301_v28  ;;  %v266_v44 = vpack.c.bf16 %v95_v35, %v94_v34  ;;  %v245_v46 = vunpack.c.h.bf16 %v301_v28 }
   0xb   :  { %v271_v45 = vpack.c.bf16 %v97_v37, %v96_v36  ;;  %v248_v47 = vunpack.c.l.bf16 %v302_v33  ;;  %v276_v48 = vpack.c.bf16 %v99_v41, %v98_v40  ;;  %v249_v50 = vunpack.c.h.bf16 %v302_v33 }
   0xc   :  { %262 = vst [vmem:[%s425_s3] sm:$0xff] %v261_v39   ;;  %v61_v49 = vmul.f32 %v244_v42, %v338_v1  ;;  %v252_v51 = vunpack.c.l.bf16 %v303_v38  ;;  %305 = vst [vmem:[%s425_s3 + $0x8] sm:$0xff] %v266_v44   ;;  %v62_v52 = vmul.f32 %v245_v46, %v338_v1  ;;  %v253_v54 = vunpack.c.h.bf16 %v303_v38 }
   0xd   :  { %306 = vst [vmem:[%s425_s3 + $0x10] sm:$0xff] %v271_v45   ;;  %v63_v53 = vmul.f32 %v248_v47, %v338_v1  ;;  %v256_v55 = vunpack.c.l.bf16 %v304_v43  ;;  %307 = vst [vmem:[%s425_s3 + $0x18] sm:$0xff] %v276_v48   ;;  %v64_v57 = vmul.f32 %v249_v50, %v338_v1  ;;  %v257_v59 = vunpack.c.h.bf16 %v304_v43 }
   0xe   :  { %v84_v56 = vadd.f32 %v352_v7, %v61_v49  ;;  %v65_v58 = vmul.f32 %v252_v51, %v338_v1  ;;  %v85_v60 = vadd.f32 %v352_v7, %v62_v52  ;;  %v66_v62 = vmul.f32 %v253_v54, %v338_v1 }
   0xf   :  { %v86_v61 = vadd.f32 %v352_v7, %v63_v53  ;;  %v67_v63 = vmul.f32 %v256_v55, %v338_v1  ;;  %v87_v2 = vadd.f32 %v352_v7, %v64_v57  ;;  %v68_v4 = vmul.f32 %v257_v59, %v338_v1 }
  0x10   :  { %v100_v0 = vmax.f32 %v84_v56, 0.0  ;;  %v88_v3 = vadd.f32 %v352_v7, %v65_v58  ;;  %v101_v5 = vmax.f32 %v85_v60, 0.0  ;;  %v89_v8 = vadd.f32 %v352_v7, %v66_v62 }
  0x11   :  { %v102_v6 = vmax.f32 %v86_v61, 0.0  ;;  %v90_v9 = vadd.f32 %v352_v7, %v67_v63  ;;  %v103_v10 = vmax.f32 %v87_v2, 0.0  ;;  %v91_v12 = vadd.f32 %v352_v7, %v68_v4 }
  0x12   :  { %v104_v11 = vmax.f32 %v88_v3, 0.0  ;;  %v281_v13 = vpack.c.bf16 %v101_v5, %v100_v0  ;;  %v105_v14 = vmax.f32 %v89_v8, 0.0 }
  0x13   :  { %v106_v15 = vmax.f32 %v90_v9, 0.0  ;;  %v286_v16 = vpack.c.bf16 %v103_v10, %v102_v6  ;;  %v107_v17 = vmax.f32 %v91_v12, 0.0 }
  0x14   :  { %308 = vst [vmem:[%s425_s3 + $0x20] sm:$0xff] %v281_v13   ;;  %v291_v1 = vpack.c.bf16 %v105_v14, %v104_v11 }
  0x15   :  { %309 = vst [vmem:[%s425_s3 + $0x28] sm:$0xff] %v286_v16   ;;  %v296_v18 = vpack.c.bf16 %v107_v17, %v106_v15 }
  0x16   :  { %310 = vst [vmem:[%s425_s3 + $0x30] sm:$0xff] %v291_v1  }
  0x17   :  { %311 = vst [vmem:[%s425_s3 + $0x38] sm:$0xff] %v296_v18  }

// kernel: densenet121_forward.135
= control target key start
LH: loop header
LB: loop body
LE: loop exit
PB: predicated region body
PF: predicated region fallthrough
CT: control target
= control target key end

     0   :  { %s2002_s9 = smov 0   ;;  %s2004_s10 = smov 0   ;;  %s2299_s0 = inlined_call_operand.vmem [shape: bf16[128,1152], index: 0, kind: input, shape index: {}]   ;;  %s2300_s1 = inlined_call_operand.vmem [shape: bf16[1152,128], index: 1, kind: input, shape index: {}]   ;;  %s2301_s2 = inlined_call_operand.vmem [shape: bf16[128,128], index: 2, kind: output, shape index: {}]  }
   0x1   :  { %s2006_s11 = smov 0  }
   0x2 LB: > { %s24_s12 = sadd.s32 1, %s1981_s10  ;;  %p1448_p0 = scmp.ge.s32.totalorder %s1985_s11, 1  ;;  %s1985_s11 = sphi %s2006_s11, %s12_s11   ;;  %s1981_s10 = sphi %s2004_s10, %s2303_s10   ;;  %s1977_s9 = sphi %s2002_s9, %s2302_s9  }
   0x3   : > { %p26_p1 = scmp.ge.s32.totalorder %s24_s12, 2  ;;  %p137_p2 = scmp.lt.s32.totalorder %s1985_s11, 3 }
   0x5   : > { %s2305_s12 = smov (%p26_p1, %s24_s12), 0  ;;  %p138_p3 = pnand %p1448_p0, %p137_p2 }
   0x6   : > { %v1839_v0 = vld [vmem:[%s2300_s1 + $0x40] sm:$0xff] (!%p138_p3)   ;;  %v1843_v4 = vld [vmem:[%s2300_s1 + $0x48] sm:$0xff] (!%p138_p3)   ;;  %v1847_v8 = vld [vmem:[%s2300_s1 + $0x50] sm:$0xff] (!%p138_p3)   ;;  %s1449_s19 = sshll.u32 (!%p138_p3), %s1977_s9, 3 }
   0x7   : > { %141 = sbr.rel (%p138_p3) target bundleno = 326 (0x146), region = 28  ;;  %v1840_v1 = vld [vmem:[%s2300_s1 + $0xc0] sm:$0xff] (!%p138_p3)   ;;  %1602 = vmatprep.subr.bf16.mxu0 (!%p138_p3), %v1839_v0  ;;  %v1844_v5 = vld [vmem:[%s2300_s1 + $0xc8] sm:$0xff] (!%p138_p3)   ;;  %v1848_v9 = vld [vmem:[%s2300_s1 + $0xd0] sm:$0xff] (!%p138_p3)   ;;  %p168_p4 = scmp.lt.s32.totalorder (!%p138_p3), %s1449_s19, 15 }
   0x8   : > { %v1841_v2 = vld [vmem:[%s2300_s1] sm:$0xff] (!%p138_p3)   ;;  %1642 = vmatprep.subr.bf16.mxu1 (!%p138_p3), %v1840_v1  ;;  %v1845_v6 = vld [vmem:[%s2300_s1 + $0x8] sm:$0xff] (!%p138_p3)   ;;  %v1849_v10 = vld [vmem:[%s2300_s1 + $0x10] sm:$0xff] (!%p138_p3)  }
   0x9   : > { %v1842_v3 = vld [vmem:[%s2300_s1 + $0x80] sm:$0xff] (!%p138_p3)   ;;  %1603 = vmatpush3.bf16.msra.mxu0 (!%p138_p3), %v1841_v2  ;;  %v1846_v7 = vld [vmem:[%s2300_s1 + $0x88] sm:$0xff] (!%p138_p3)   ;;  %v1850_v11 = vld [vmem:[%s2300_s1 + $0x90] sm:$0xff] (!%p138_p3)  }
   0xa   : > { %1643 = vmatpush3.bf16.msra.mxu1 (!%p138_p3), %v1842_v3  ;;  %1604 = vmatprep.subr.bf16.mxu0 (!%p138_p3), %v1843_v4  ;;  %v1851_v12 = vld [vmem:[%s2300_s1 + $0x58] sm:$0xff] (!%p138_p3)   ;;  %v1855_v16 = vld [vmem:[%s2300_s1 + $0x60] sm:$0xff] (!%p138_p3)   ;;  %v1859_v20 = vld [vmem:[%s2300_s1 + $0x68] sm:$0xff] (!%p138_p3)  }
   0xb   : > { %1644 = vmatprep.subr.bf16.mxu1 (!%p138_p3), %v1844_v5  ;;  %v1852_v13 = vld [vmem:[%s2300_s1 + $0xd8] sm:$0xff] (!%p138_p3)   ;;  %v1856_v17 = vld [vmem:[%s2300_s1 + $0xe0] sm:$0xff] (!%p138_p3)   ;;  %v1860_v21 = vld [vmem:[%s2300_s1 + $0xe8] sm:$0xff] (!%p138_p3)  }
   0xc   : > { %v1853_v14 = vld [vmem:[%s2300_s1 + $0x18] sm:$0xff] (!%p138_p3)   ;;  %v1857_v18 = vld [vmem:[%s2300_s1 + $0x20] sm:$0xff] (!%p138_p3)   ;;  %v1861_v22 = vld [vmem:[%s2300_s1 + $0x28] sm:$0xff] (!%p138_p3)  }
   0xd   : > { %1605 = vmatpush3.bf16.msra.mxu0 (!%p138_p3), %v1845_v6  ;;  %v1854_v15 = vld [vmem:[%s2300_s1 + $0x98] sm:$0xff] (!%p138_p3)   ;;  %v1858_v19 = vld [vmem:[%s2300_s1 + $0xa0] sm:$0xff] (!%p138_p3)   ;;  %v1862_v23 = vld [vmem:[%s2300_s1 + $0xa8] sm:$0xff] (!%p138_p3)  }
   0xe   : > { %1645 = vmatpush3.bf16.msra.mxu1 %v1846_v7  ;;  %1606 = vmatprep.subr.bf16.mxu0 %v1847_v8  ;;  %s2307_s19 = smov (!%p168_p4, %s1449_s19), 15  ;;  %v1863_v24 = vld [vmem:[%s2300_s1 + $0x70] sm:$0xff]   ;;  %v1867_v28 = vld [vmem:[%s2300_s1 + $0x78] sm:$0xff]   ;;  %v1877_v36 = vld [vmem:[%s2300_s1 + $0x140] sm:$0xff]  }
   0xf   : > { %1646 = vmatprep.subr.bf16.mxu1 %v1848_v9  ;;  %v1864_v25 = vld [vmem:[%s2300_s1 + $0xf0] sm:$0xff]   ;;  %s1814_s17 = smul.u32 36, %s2307_s19  ;;  %v1868_v29 = vld [vmem:[%s2300_s1 + $0xf8] sm:$0xff]   ;;  %v1878_v37 = vld [vmem:[%s2300_s1 + $0x1c0] sm:$0xff]  }
  0x10   : > { %v1865_v26 = vld [vmem:[%s2300_s1 + $0x30] sm:$0xff]   ;;  %v1869_v30 = vld [vmem:[%s2300_s1 + $0x38] sm:$0xff]   ;;  %v1879_v38 = vld [vmem:[%s2300_s1 + $0x100] sm:$0xff]  }
  0x11   : > { %1607 = vmatpush3.bf16.msra.mxu0 %v1849_v10  ;;  %v1866_v27 = vld [vmem:[%s2300_s1 + $0xb0] sm:$0xff]   ;;  %s2119_s28 = scalar_lea.vmem %s2299_s0, %s1814_s17  ;;  %v1870_v31 = vld [vmem:[%s2300_s1 + $0xb8] sm:$0xff]   ;;  %v1880_v39 = vld [vmem:[%s2300_s1 + $0x180] sm:$0xff]  }
  0x12   : > { %1647 = vmatpush3.bf16.msra.mxu1 %v1850_v11  ;;  %1608 = vmatprep.subr.bf16.mxu0 %v1851_v12  ;;  %v1871_v32 = vld [vmem:[%s2119_s28] ss:$36 sps:$4 sm:$0xff]   ;;  %v1874_v34 = vld [vmem:[%s2119_s28 + $0x8] ss:$36 sps:$4 sm:$0xff]   ;;  %v1887_v45 = vld [vmem:[%s2119_s28 + $0x54] ss:$36 sps:$4 sm:$0xff]  }
  0x13   : > { %1648 = vmatprep.subr.bf16.mxu1 %v1852_v13  ;;  %v1873_v33 = vld [vmem:[%s2119_s28 + $0x4] ss:$36 sps:$4 sm:$0xff]   ;;  %v1876_v35 = vld [vmem:[%s2119_s28 + $0xc] ss:$36 sps:$4 sm:$0xff]   ;;  %v1895_v52 = vld [vmem:[%s2300_s1 + $0x158] sm:$0xff]  }
  0x14   : > { %1020 = vmatprep.mubr.bf16.mxu0 %v1873_v33  ;;  %1085 = vmatprep.mubr.bf16.mxu1 %v1876_v35  ;;  %v1881_v40 = vld [vmem:[%s2300_s1 + $0x148] sm:$0xff]   ;;  %v1890_v47 = vld [vmem:[%s2119_s28 + $0x50] ss:$36 sps:$4 sm:$0xff]   ;;  %v1896_v53 = vld [vmem:[%s2300_s1 + $0x1d8] sm:$0xff]  }
  0x15   : > { %1609 = vmatpush3.bf16.msra.mxu0 %v1853_v14  ;;  %v1882_v41 = vld [vmem:[%s2300_s1 + $0x1c8] sm:$0xff]   ;;  %v1891_v48 = vld [vmem:[%s2300_s1 + $0x150] sm:$0xff]   ;;  %v1897_v54 = vld [vmem:[%s2300_s1 + $0x118] sm:$0xff]  }
  0x16   : > { %1649 = vmatpush3.bf16.msra.mxu1 %v1854_v15  ;;  %1610 = vmatprep.subr.bf16.mxu0 %v1855_v16  ;;  %v1883_v42 = vld [vmem:[%s2300_s1 + $0x108] sm:$0xff]   ;;  %v1892_v49 = vld [vmem:[%s2300_s1 + $0x1d0] sm:$0xff]   ;;  %v1898_v55 = vld [vmem:[%s2300_s1 + $0x198] sm:$0xff]  }
  0x17   : > { %1650 = vmatprep.subr.bf16.mxu1 %v1856_v17  ;;  %v1884_v43 = vld [vmem:[%s2300_s1 + $0x188] sm:$0xff]   ;;  %v1893_v50 = vld [vmem:[%s2300_s1 + $0x110] sm:$0xff]   ;;  %v1901_v57 = vld [vmem:[%s2119_s28 + $0x9c] ss:$36 sps:$4 sm:$0xff]  }
  0x18   : > { %v1885_v44 = vld [vmem:[%s2119_s28 + $0x4c] ss:$36 sps:$4 sm:$0xff]   ;;  %v1899_v56 = vld [vmem:[%s2119_s28 + $0x94] ss:$36 sps:$4 sm:$0xff]   ;;  %v1905_v60 = vld [vmem:[%s2300_s1 + $0x160] sm:$0xff]  }
  0x19   : > { %1611 = vmatpush3.bf16.msra.mxu0 %v1857_v18  ;;  %v1889_v46 = vld [vmem:[%s2119_s28 + $0x48] ss:$36 sps:$4 sm:$0xff]   ;;  %v1894_v51 = vld [vmem:[%s2300_s1 + $0x190] sm:$0xff]   ;;  %v1904_v59 = vld [vmem:[%s2119_s28 + $0x98] ss:$36 sps:$4 sm:$0xff]  }
  0x1a   : > { %1651 = vmatpush3.bf16.msra.mxu1 %v1858_v19  ;;  %1612 = vmatprep.subr.bf16.mxu0 %v1859_v20  ;;  %v1903_v58 = vld [vmem:[%s2119_s28 + $0x90] ss:$36 sps:$4 sm:$0xff]   ;;  %v1906_v61 = vld [vmem:[%s2300_s1 + $0x1e0] sm:$0xff]   ;;  %v1909_v0 = vld [vmem:[%s2300_s1 + $0x168] sm:$0xff]  }
  0x1b   : > { %1652 = vmatprep.subr.bf16.mxu1 %v1860_v21  ;;  %v1907_v62 = vld [vmem:[%s2300_s1 + $0x120] sm:$0xff]   ;;  %v1910_v1 = vld [vmem:[%s2300_s1 + $0x1e8] sm:$0xff]   ;;  %v1917_v6 = vld [vmem:[%s2119_s28 + $0xd8] ss:$36 sps:$4 sm:$0xff]  }
  0x1c   : > { %v1908_v63 = vld [vmem:[%s2300_s1 + $0x1a0] sm:$0xff]   ;;  %v1911_v2 = vld [vmem:[%s2300_s1 + $0x128] sm:$0xff]   ;;  %v1919_v8 = vld [vmem:[%s2300_s1 + $0x170] sm:$0xff]  }
  0x1d   : > { %1613 = vmatpush3.bf16.msra.mxu0 %v1861_v22  ;;  %v1912_v3 = vld [vmem:[%s2300_s1 + $0x1a8] sm:$0xff]   ;;  %v1913_v4 = vld [vmem:[%s2119_s28 + $0xdc] ss:$36 sps:$4 sm:$0xff]   ;;  %v1920_v9 = vld [vmem:[%s2300_s1 + $0x1f0] sm:$0xff]  }
  0x1e   : > { %1653 = vmatpush3.bf16.msra.mxu1 %v1862_v23  ;;  %1614 = vmatprep.subr.bf16.mxu0 %v1863_v24  ;;  %v1915_v5 = vld [vmem:[%s2119_s28 + $0xe4] ss:$36 sps:$4 sm:$0xff]   ;;  %v1921_v10 = vld [vmem:[%s2300_s1 + $0x130] sm:$0xff]   ;;  %v1923_v12 = vld [vmem:[%s2300_s1 + $0x178] sm:$0xff]  }
  0x1f   : > { %1654 = vmatprep.subr.bf16.mxu1 %v1864_v25  ;;  %v1918_v7 = vld [vmem:[%s2119_s28 + $0xe0] ss:$36 sps:$4 sm:$0xff]   ;;  %v1922_v11 = vld [vmem:[%s2300_s1 + $0x1b0] sm:$0xff]   ;;  %v1924_v13 = vld [vmem:[%s2300_s1 + $0x1f8] sm:$0xff]  }
  0x20   : > { %v1925_v14 = vld [vmem:[%s2300_s1 + $0x138] sm:$0xff]   ;;  %v1927_v16 = vld [vmem:[%s2119_s28 + $0x10] ss:$36 sps:$4 sm:$0xff]   ;;  %v1933_v20 = vld [vmem:[%s2300_s1 + $0x200] sm:$0xff]  }
  0x21   : > { %1615 = vmatpush3.bf16.msra.mxu0 %v1865_v26  ;;  %v1926_v15 = vld [vmem:[%s2300_s1 + $0x1b8] sm:$0xff]   ;;  %v1934_v21 = vld [vmem:[%s2300_s1 + $0x208] sm:$0xff]   ;;  %v1940_v25 = vld [vmem:[%s2119_s28 + $0x60] ss:$36 sps:$4 sm:$0xff]  }
  0x22   : > { %1655 = vmatpush3.bf16.msra.mxu1 %v1866_v27  ;;  %1616 = vmatprep.subr.bf16.mxu0 %v1867_v28  ;;  %v1929_v17 = vld [vmem:[%s2119_s28 + $0x14] ss:$36 sps:$4 sm:$0xff]   ;;  %v1932_v19 = vld [vmem:[%s2119_s28 + $0x1c] ss:$36 sps:$4 sm:$0xff]   ;;  %v1937_v23 = vld [vmem:[%s2119_s28 + $0x64] ss:$36 sps:$4 sm:$0xff]  }
  0x23   : > { %1656 = vmatprep.subr.bf16.mxu1 %v1868_v29  ;;  %v1930_v18 = vld [vmem:[%s2119_s28 + $0x18] ss:$36 sps:$4 sm:$0xff]   ;;  %v1941_v26 = vld [vmem:[%s2300_s1 + $0x210] sm:$0xff]   ;;  %v1943_v27 = vld [vmem:[%s2119_s28 + $0xa4] ss:$36 sps:$4 sm:$0xff]  }
  0x24   : > { %v1935_v22 = vld [vmem:[%s2119_s28 + $0x5c] ss:$36 sps:$4 sm:$0xff]   ;;  %v1945_v28 = vld [vmem:[%s2119_s28 + $0xac] ss:$36 sps:$4 sm:$0xff]  }
  0x25   : > { %1617 = vmatpush3.bf16.msra.mxu0 %v1869_v30  ;;  %v1939_v24 = vld [vmem:[%s2119_s28 + $0x58] ss:$36 sps:$4 sm:$0xff]   ;;  %v1947_v30 = vld [vmem:[%s2119_s28 + $0xa0] ss:$36 sps:$4 sm:$0xff]   ;;  %v1951_v33 = vld [vmem:[%s2119_s28 + $0xec] ss:$36 sps:$4 sm:$0xff]  }
  0x26   : > { %1657 = vmatpush3.bf16.msra.mxu1 %v1870_v31  ;;  %1682 = vmatprep.subr.bf16.mxu0 %v1877_v36  ;;  %v1942_v29 = vld [vmem:[%s2300_s1 + $0x218] sm:$0xff]   ;;  %v1948_v31 = vld [vmem:[%s2119_s28 + $0xa8] ss:$36 sps:$4 sm:$0xff]  }
  0x27   : > { %1722 = vmatprep.subr.bf16.mxu1 %v1878_v37  ;;  %v1950_v35 = vld [vmem:[%s2300_s1 + $0x228] sm:$0xff]   ;;  %v1957_v37 = vld [vmem:[%s2300_s1 + $0x230] sm:$0xff]  }
  0x28   : > { %1021 = vmatmul.mubr.bf16.vlgmr.msra.gmra.mrb[0].mxu0 %v1871_v32  ;;  %v1949_v32 = vld [vmem:[%s2300_s1 + $0x220] sm:$0xff]   ;;  %v1955_v36 = vld [vmem:[%s2119_s28 + $0xe8] ss:$36 sps:$4 sm:$0xff]  }
  0x29   : > { %1086 = vmatmul.mubr.bf16.vlgmr.msra.gmra.mrb[0].mxu1 %v1874_v34  ;;  %1683 = vmatpush3.bf16.msra.mxu0 %v1879_v38  ;;  %v1953_v34 = vld [vmem:[%s2119_s28 + $0xf4] ss:$36 sps:$4 sm:$0xff]  }
  0x2a   : > { %1723 = vmatpush3.bf16.msra.mxu1 %v1880_v39  ;;  %1684 = vmatprep.subr.bf16.mxu0 %v1881_v40  ;;  %v1956_v38 = vld [vmem:[%s2119_s28 + $0xf0] ss:$36 sps:$4 sm:$0xff]   ;;  %v1959_v39 = vld [vmem:[%s2119_s28 + $0x20] ss:$36 sps:$4 sm:$0xff]  }
  0x2b   : > { %1724 = vmatprep.subr.bf16.mxu1 %v1882_v41  ;;  %1028 = vmatprep.mubr.bf16.mxu0 %v1885_v44  ;;  %v1960_v40 = vld [vmem:[%s2119_s28 + $0xb0] ss:$36 sps:$4 sm:$0xff]   ;;  %v1958_v41 = vld [vmem:[%s2300_s1 + $0x238] sm:$0xff]  }
  0x2c   : > { %1093 = vmatprep.mubr.bf16.mxu1 %v1887_v45 }
  0x2d   : > { %1685 = vmatpush3.bf16.msra.mxu0 %v1883_v42  ;;  %v1961_v42 = vld [vmem:[%s2119_s28 + $0x68] ss:$36 sps:$4 sm:$0xff]  }
  0x2e   : > { %1725 = vmatpush3.bf16.msra.mxu1 %v1884_v43  ;;  %1686 = vmatprep.subr.bf16.mxu0 %v1891_v48  ;;  %v1962_v43 = vld [vmem:[%s2119_s28 + $0xf8] ss:$36 sps:$4 sm:$0xff]   ;;  %s1452_s28 = sshll.u32 %s2307_s19, 2 }
  0x2f   : > { %1726 = vmatprep.subr.bf16.mxu1 %v1892_v49  ;;  %s185_s23 = scalar_lea.vmem %s2301_s2, %s1452_s28 }
  0x30   : > { %1029 = vmatmul.mubr.bf16.gmra.mrb[4].mxu0 %v1889_v46 }
  0x31   : > { %1094 = vmatmul.mubr.bf16.gmra.mrb[4].mxu1 %v1890_v47  ;;  %1687 = vmatpush3.bf16.msra.mxu0 %v1893_v50 }
  0x32   : > { %1727 = vmatpush3.bf16.msra.mxu1 %v1894_v51  ;;  %1688 = vmatprep.subr.bf16.mxu0 %v1895_v52 }
  0x33   : > { %1728 = vmatprep.subr.bf16.mxu1 %v1896_v53  ;;  %1036 = vmatprep.mubr.bf16.mxu0 %v1899_v56 }
  0x34   : > { %1101 = vmatprep.mubr.bf16.mxu1 %v1901_v57 }
  0x35   : > { %1689 = vmatpush3.bf16.msra.mxu0 %v1897_v54 }
  0x36   : > { %1729 = vmatpush3.bf16.msra.mxu1 %v1898_v55  ;;  %1690 = vmatprep.subr.bf16.mxu0 %v1905_v60 }
  0x37   : > { %1730 = vmatprep.subr.bf16.mxu1 %v1906_v61 }
  0x38   : > { %1037 = vmatmul.mubr.bf16.gmra.mrb[8].mxu0 %v1903_v58 }
  0x39   : > { %1102 = vmatmul.mubr.bf16.gmra.mrb[8].mxu1 %v1904_v59  ;;  %1691 = vmatpush3.bf16.msra.mxu0 %v1907_v62 }
  0x3a   : > { %1731 = vmatpush3.bf16.msra.mxu1 %v1908_v63  ;;  %1692 = vmatprep.subr.bf16.mxu0 %v1909_v0 }
  0x3b   : > { %1732 = vmatprep.subr.bf16.mxu1 %v1910_v1  ;;  %1044 = vmatprep.mubr.bf16.mxu0 %v1913_v4 }
  0x3c   : > { %1109 = vmatprep.mubr.bf16.mxu1 %v1915_v5 }
  0x3d   : > { %1693 = vmatpush3.bf16.msra.mxu0 %v1911_v2 }
  0x3e   : > { %1733 = vmatpush3.bf16.msra.mxu1 %v1912_v3  ;;  %1694 = vmatprep.subr.bf16.mxu0 %v1919_v8 }
  0x3f   : > { %1734 = vmatprep.subr.bf16.mxu1 %v1920_v9 }
  0x40   : > { %1045 = vmatmul.mubr.bf16.gmra.mrb[12].mxu0 %v1917_v6 }
  0x41   : > { %1110 = vmatmul.mubr.bf16.gmra.mrb[12].mxu1 %v1918_v7  ;;  %1695 = vmatpush3.bf16.msra.mxu0 %v1921_v10 }
  0x42   : > { %1735 = vmatpush3.bf16.msra.mxu1 %v1922_v11  ;;  %1696 = vmatprep.subr.bf16.mxu0 %v1923_v12 }
  0x43   : > { %1736 = vmatprep.subr.bf16.mxu1 %v1924_v13  ;;  %1150 = vmatprep.mubr.bf16.mxu0 %v1929_v17 }
  0x44   : > { %1215 = vmatprep.mubr.bf16.mxu1 %v1932_v19 }
  0x45   : > { %1697 = vmatpush3.bf16.msra.mxu0 %v1925_v14 }
  0x46   : > { %1737 = vmatpush3.bf16.msra.mxu1 %v1926_v15  ;;  %1774 = vmatprep.subr.bf16.mxu0 %v1933_v20 }
  0x47   : > { %1798 = vmatprep.subr.bf16.mxu1 %v1933_v20 }
  0x48   : > { %1151 = vmatmul.mubr.bf16.vlgmr.msra.gmra.mrb[16].mxu0 %v1927_v16 }
  0x49   : > { %1216 = vmatmul.mubr.bf16.vlgmr.msra.gmra.mrb[16].mxu1 %v1930_v18  ;;  %1775 = vmatpush3.bf16.msra.mxu0 %v1933_v20 }
  0x4a   : > { %1806 = vmatpush3.bf16.msra.mxu1 %v1933_v20  ;;  %1776 = vmatprep.subr.bf16.mxu0 %v1934_v21 }
  0x4b   : > { %1799 = vmatprep.subr.bf16.mxu1 %v1934_v21  ;;  %1158 = vmatprep.mubr.bf16.mxu0 %v1935_v22 }
  0x4c   : > { %1223 = vmatprep.mubr.bf16.mxu1 %v1937_v23 }
  0x4d   : > { %1777 = vmatpush3.bf16.msra.mxu0 %v1934_v21 }
  0x4e   : > { %1807 = vmatpush3.bf16.msra.mxu1 %v1934_v21  ;;  %1778 = vmatprep.subr.bf16.mxu0 %v1941_v26 }
  0x4f   : > { %1800 = vmatprep.subr.bf16.mxu1 %v1941_v26 }
  0x50   : > { %1159 = vmatmul.mubr.bf16.gmra.mrb[20].mxu0 %v1939_v24 }
  0x51   : > { %1224 = vmatmul.mubr.bf16.gmra.mrb[20].mxu1 %v1940_v25  ;;  %1166 = vmatprep.mubr.bf16.mxu0 %v1943_v27 }
  0x52   : > { %1779 = vmatpush3.bf16.msra.mxu0 %v1941_v26  ;;  %1231 = vmatprep.mubr.bf16.mxu1 %v1945_v28 }
  0x53   : > { %1808 = vmatpush3.bf16.msra.mxu1 %v1941_v26  ;;  %1780 = vmatprep.subr.bf16.mxu0 %v1942_v29 }
  0x54   : > { %1801 = vmatprep.subr.bf16.mxu1 %v1942_v29 }
  0x56   : > { %1781 = vmatpush3.bf16.msra.mxu0 %v1942_v29 }
  0x57   : > { %1809 = vmatpush3.bf16.msra.mxu1 %v1942_v29  ;;  %1782 = vmatprep.subr.bf16.mxu0 %v1949_v32 }
  0x58   : > { %1167 = vmatmul.mubr.bf16.gmra.mrb[24].mxu0 %v1947_v30  ;;  %1802 = vmatprep.subr.bf16.mxu1 %v1949_v32 }
  0x59   : > { %1232 = vmatmul.mubr.bf16.gmra.mrb[24].mxu1 %v1948_v31  ;;  %1174 = vmatprep.mubr.bf16.mxu0 %v1951_v33 }
  0x5a   : > { %1783 = vmatpush3.bf16.msra.mxu0 %v1949_v32  ;;  %1239 = vmatprep.mubr.bf16.mxu1 %v1953_v34 }
  0x5b   : > { %1810 = vmatpush3.bf16.msra.mxu1 %v1949_v32  ;;  %1784 = vmatprep.subr.bf16.mxu0 %v1950_v35 }
  0x5c   : > { %1803 = vmatprep.subr.bf16.mxu1 %v1950_v35 }
  0x5e   : > { %1785 = vmatpush3.bf16.msra.mxu0 %v1950_v35 }
  0x5f   : > { %1811 = vmatpush3.bf16.msra.mxu1 %v1950_v35  ;;  %1786 = vmatprep.subr.bf16.mxu0 %v1957_v37 }
  0x60   : > { %1175 = vmatmul.mubr.bf16.gmra.mrb[28].mxu0 %v1955_v36  ;;  %1804 = vmatprep.subr.bf16.mxu1 %v1957_v37 }
  0x61   : > { %1240 = vmatmul.mubr.bf16.gmra.mrb[28].mxu1 %v1956_v38  ;;  %1790 = vmatprep.mubr.bf16.mxu0 %v1959_v39 }
  0x62   : > { %1787 = vmatpush3.bf16.msra.mxu0 %v1957_v37  ;;  %1794 = vmatprep.mubr.bf16.mxu1 %v1960_v40 }
  0x63   : > { %1812 = vmatpush3.bf16.msra.mxu1 %v1957_v37  ;;  %1788 = vmatprep.subr.bf16.mxu0 %v1958_v41 }
  0x64   : > { %1805 = vmatprep.subr.bf16.mxu1 %v1958_v41 }
  0x66   : > { %1789 = vmatpush3.bf16.msra.mxu0 %v1958_v41 }
  0x67   : > { %1813 = vmatpush3.bf16.msra.mxu1 %v1958_v41 }
  0x69   : > { %1791 = vmatmul.mubr.bf16.vlgmr.msra.gmra.mrb[32].mxu0 %v1961_v42 }
  0x6a   : > { %1795 = vmatmul.mubr.bf16.vlgmr.msra.gmra.mrb[32].mxu1 %v1962_v43 }
  0xfb   : > { %v1618_v44 = vpop.f32.mrb[0].mxu0 }
  0xfc   : > { %v1658_v45 = vpop.f32.mrb[0].mxu1  ;;  %v1619_v46 = vpop.f32.mrb[1].mxu0 }
  0xfd   : > { %v1620_v47 = vadd.f32 %v1619_v46, %v1618_v44  ;;  %v1659_v48 = vpop.f32.mrb[1].mxu1  ;;  %v1621_v49 = vpop.f32.mrb[2].mxu0 }
  0xfe   : > { %v1660_v50 = vadd.f32 %v1659_v48, %v1658_v45  ;;  %v1661_v51 = vpop.f32.mrb[2].mxu1  ;;  %v1622_v52 = vpop.f32.mrb[3].mxu0 }
  0xff   : > { %v1623_v53 = vadd.f32 %v1622_v52, %v1621_v49  ;;  %v1662_v54 = vpop.f32.mrb[3].mxu1 }
 0x100   : > { %v1088_v55 = vadd.f32 %v1660_v50, %v1620_v47  ;;  %v1663_v56 = vadd.f32 %v1662_v54, %v1661_v51 }
 0x102   : > { %v1091_v57 = vadd.f32 %v1663_v56, %v1623_v53 }
 0x103   : > { %v1624_v58 = vpop.f32.mrb[4].mxu0 }
 0x104   : > { %v1664_v59 = vpop.f32.mrb[4].mxu1  ;;  %v1625_v60 = vpop.f32.mrb[5].mxu0 }
 0x105   : > { %v1626_v61 = vadd.f32 %v1625_v60, %v1624_v58  ;;  %v1665_v62 = vpop.f32.mrb[5].mxu1  ;;  %v1627_v63 = vpop.f32.mrb[6].mxu0 }
 0x106   : > { %v1666_v0 = vadd.f32 %v1665_v62, %v1664_v59  ;;  %v1667_v1 = vpop.f32.mrb[6].mxu1  ;;  %v1628_v2 = vpop.f32.mrb[7].mxu0 }
 0x107   : > { %v1629_v3 = vadd.f32 %v1628_v2, %v1627_v63  ;;  %v1668_v4 = vpop.f32.mrb[7].mxu1 }
 0x108   : > { %v1096_v5 = vadd.f32 %v1666_v0, %v1626_v61  ;;  %v1669_v6 = vadd.f32 %v1668_v4, %v1667_v1 }
 0x10a   : > { %v1099_v7 = vadd.f32 %v1669_v6, %v1629_v3 }
 0x10b   : > { %v1630_v8 = vpop.f32.mrb[8].mxu0 }
 0x10c   : > { %v1670_v9 = vpop.f32.mrb[8].mxu1  ;;  %v1631_v10 = vpop.f32.mrb[9].mxu0 }
 0x10d   : > { %v1632_v11 = vadd.f32 %v1631_v10, %v1630_v8  ;;  %v1671_v12 = vpop.f32.mrb[9].mxu1  ;;  %v1633_v13 = vpop.f32.mrb[10].mxu0 }
 0x10e   : > { %v1672_v14 = vadd.f32 %v1671_v12, %v1670_v9  ;;  %v1673_v15 = vpop.f32.mrb[10].mxu1  ;;  %v1634_v16 = vpop.f32.mrb[11].mxu0 }
 0x10f   : > { %v1635_v17 = vadd.f32 %v1634_v16, %v1633_v13  ;;  %v1674_v18 = vpop.f32.mrb[11].mxu1 }
 0x110   : > { %v1104_v19 = vadd.f32 %v1672_v14, %v1632_v11  ;;  %v1675_v20 = vadd.f32 %v1674_v18, %v1673_v15 }
 0x112   : > { %v1107_v21 = vadd.f32 %v1675_v20, %v1635_v17 }
 0x113   : > { %v1636_v22 = vpop.f32.mrb[12].mxu0 }
 0x114   : > { %v1676_v23 = vpop.f32.mrb[12].mxu1  ;;  %v1637_v24 = vpop.f32.mrb[13].mxu0 }
 0x115   : > { %v1677_v25 = vpop.f32.mrb[13].mxu1  ;;  %v1638_v26 = vadd.f32 %v1637_v24, %v1636_v22  ;;  %v1639_v28 = vpop.f32.mrb[14].mxu0 }
 0x116   : > { %v1678_v27 = vadd.f32 %v1677_v25, %v1676_v23  ;;  %v1679_v29 = vpop.f32.mrb[14].mxu1  ;;  %v1640_v30 = vpop.f32.mrb[15].mxu0 }
 0x117   : > { %v1680_v31 = vpop.f32.mrb[15].mxu1  ;;  %v1641_v33 = vadd.f32 %v1640_v30, %v1639_v28 }
 0x118   : > { %v1112_v32 = vadd.f32 %v1678_v27, %v1638_v26  ;;  %v1681_v34 = vadd.f32 %v1680_v31, %v1679_v29 }
 0x11a   : > { %v1115_v35 = vadd.f32 %v1681_v34, %v1641_v33 }
 0x11b   : > { %v1698_v36 = vpop.f32.mrb[16].mxu0 }
 0x11c   : > { %v1699_v37 = vpop.f32.mrb[17].mxu0  ;;  %v1738_v38 = vpop.f32.mrb[16].mxu1 }
 0x11d   : > { %v1700_v39 = vadd.f32 %v1699_v37, %v1698_v36  ;;  %v1701_v40 = vpop.f32.mrb[18].mxu0  ;;  %v1739_v41 = vpop.f32.mrb[17].mxu1 }
 0x11e   : > { %v1702_v42 = vpop.f32.mrb[19].mxu0  ;;  %v1740_v44 = vadd.f32 %v1739_v41, %v1738_v38  ;;  %v1741_v45 = vpop.f32.mrb[18].mxu1 }
 0x11f   : > { %v1153_v43 = vadd.f32 %v1700_v39, %v1088_v55  ;;  %v1703_v46 = vadd.f32 %v1702_v42, %v1701_v40  ;;  %v1742_v47 = vpop.f32.mrb[19].mxu1 }
 0x120   : > { %v1743_v49 = vadd.f32 %v1742_v47, %v1741_v45 }
 0x121   : > { %v1156_v48 = vadd.f32 %v1703_v46, %v1091_v57  ;;  %v1218_v50 = vadd.f32 %v1740_v44, %v1153_v43 }
 0x123   : > { %v1704_v51 = vpop.f32.mrb[20].mxu0  ;;  %v2283_v52 = vadd.f32 %v1743_v49, %v1156_v48 }
 0x124   : > { %v1705_v53 = vpop.f32.mrb[21].mxu0  ;;  %v1744_v54 = vpop.f32.mrb[20].mxu1 }
 0x125   : > { %v1706_v56 = vadd.f32 %v1705_v53, %v1704_v51  ;;  %v1707_v58 = vpop.f32.mrb[22].mxu0  ;;  %v1745_v59 = vpop.f32.mrb[21].mxu1 }
 0x126   : > { %v1708_v60 = vpop.f32.mrb[23].mxu0  ;;  %v1746_v62 = vadd.f32 %v1745_v59, %v1744_v54  ;;  %v1747_v63 = vpop.f32.mrb[22].mxu1 }
 0x127   : > { %v1161_v61 = vadd.f32 %v1706_v56, %v1096_v5  ;;  %v1709_v55 = vadd.f32 %v1708_v60, %v1707_v58  ;;  %v1748_v0 = vpop.f32.mrb[23].mxu1 }
 0x128   : > { %v1749_v2 = vadd.f32 %v1748_v0, %v1747_v63 }
 0x129   : > { %v1164_v1 = vadd.f32 %v1709_v55, %v1099_v7  ;;  %v1226_v3 = vadd.f32 %v1746_v62, %v1161_v61 }
 0x12b   : > { %v1710_v57 = vpop.f32.mrb[24].mxu0  ;;  %v1229_v4 = vadd.f32 %v1749_v2, %v1164_v1 }
 0x12c   : > { %v1711_v6 = vpop.f32.mrb[25].mxu0  ;;  %v1750_v8 = vpop.f32.mrb[24].mxu1 }
 0x12d   : > { %v1712_v9 = vadd.f32 %v1711_v6, %v1710_v57  ;;  %v1713_v10 = vpop.f32.mrb[26].mxu0  ;;  %v1751_v11 = vpop.f32.mrb[25].mxu1 }
 0x12e   : > { %v1714_v12 = vpop.f32.mrb[27].mxu0  ;;  %v1752_v14 = vadd.f32 %v1751_v11, %v1750_v8  ;;  %v1753_v15 = vpop.f32.mrb[26].mxu1 }
 0x12f   : > { %v1169_v13 = vadd.f32 %v1712_v9, %v1104_v19  ;;  %v1715_v16 = vadd.f32 %v1714_v12, %v1713_v10  ;;  %v1754_v5 = vpop.f32.mrb[27].mxu1 }
 0x130   : > { %v1755_v18 = vadd.f32 %v1754_v5, %v1753_v15 }
 0x131   : > { %v1172_v17 = vadd.f32 %v1715_v16, %v1107_v21  ;;  %v1234_v20 = vadd.f32 %v1752_v14, %v1169_v13 }
 0x133   : > { %v1716_v22 = vpop.f32.mrb[28].mxu0  ;;  %v1237_v7 = vadd.f32 %v1755_v18, %v1172_v17 }
 0x134   : > { %v1717_v23 = vpop.f32.mrb[29].mxu0  ;;  %v1756_v24 = vpop.f32.mrb[28].mxu1 }
 0x135   : > { %v1718_v25 = vadd.f32 %v1717_v23, %v1716_v22  ;;  %v1719_v26 = vpop.f32.mrb[30].mxu0  ;;  %v1757_v27 = vpop.f32.mrb[29].mxu1 }
 0x136   : > { %v1720_v28 = vpop.f32.mrb[31].mxu0  ;;  %v1758_v30 = vadd.f32 %v1757_v27, %v1756_v24  ;;  %v1759_v31 = vpop.f32.mrb[30].mxu1 }
 0x137   : > { %v1177_v29 = vadd.f32 %v1718_v25, %v1112_v32  ;;  %v1721_v19 = vadd.f32 %v1720_v28, %v1719_v26  ;;  %v1760_v33 = vpop.f32.mrb[31].mxu1 }
 0x138   : > { %v1761_v36 = vadd.f32 %v1760_v33, %v1759_v31 }
 0x139   : > { %v1180_v34 = vadd.f32 %v1721_v19, %v1115_v35  ;;  %v1242_v37 = vadd.f32 %v1758_v30, %v1177_v29 }
 0x13b   : > { %v1245_v21 = vadd.f32 %v1761_v36, %v1180_v34 }
 0x13c   : > { %v1792_v38 = vpop.f32.mrb[32].mxu0 }
 0x13d   : > { %v1291_v39 = vadd.f32 %v1792_v38, %v1226_v3  ;;  %v1796_v40 = vpop.f32.mrb[32].mxu1  ;;  %v1282_v41 = vpop.f32.mrb[33].mxu0 }
 0x13e   : > { %v1307_v42 = vadd.f32 %v1796_v40, %v1242_v37  ;;  %v1283_v43 = vadd.f32 %v1282_v41, %v1218_v50  ;;  %v1298_v44 = vpop.f32.mrb[33].mxu1  ;;  %v1793_v45 = vpop.f32.mrb[34].mxu0 }
 0x13f   : > { %v1299_v46 = vadd.f32 %v1298_v44, %v1234_v20  ;;  %v1294_v47 = vadd.f32 %v1793_v45, %v1229_v4  ;;  %v1797_v32 = vpop.f32.mrb[34].mxu1  ;;  %v1285_v48 = vpop.f32.mrb[35].mxu0 }
 0x140   : > { %v1310_v35 = vadd.f32 %v1797_v32, %v1245_v21  ;;  %v1286_v49 = vadd.f32 %v1285_v48, %v2283_v52  ;;  %v1301_v51 = vpop.f32.mrb[35].mxu1 }
 0x141   : > { %v1587_v53 = vpack.c.bf16 %v1294_v47, %v1291_v39  ;;  %v1302_v54 = vadd.f32 %v1301_v51, %v1237_v7 }
 0x142   : > { %v1597_v56 = vpack.c.bf16 %v1310_v35, %v1307_v42  ;;  %v1582_v58 = vpack.c.bf16 %v1286_v49, %v1283_v43 }
 0x143   : > { %1599 = vst [vmem:[%s185_s23 + $0x8] sm:$0xff] %v1587_v53   ;;  %v1592_v50 = vpack.c.bf16 %v1302_v54, %v1299_v46 }
 0x144   : > { %1601 = vst [vmem:[%s185_s23 + $0x18] sm:$0xff] %v1597_v56   ;;  %1583 = vst [vmem:[%s185_s23] sm:$0xff] %v1582_v58  }
 0x145   : > { %1600 = vst [vmem:[%s185_s23 + $0x10] sm:$0xff] %v1592_v50  }
 0x146 PF: > { %s12_s11 = sadd.s32 1, %s1985_s11   ;;  %s2302_s9 = smov %s1981_s10 }
 0x147   : > { %p9_p5 = scmp.ge.s32.totalorder %s12_s11, 4   ;;  %s2303_s10 = smov %s2305_s12 }
 0x149   :  { %11 = sbr.rel (!%p9_p5) target bundleno = 2 (0x2), region = 61 }

// kernel: densenet121_forward.153
= control target key start
LH: loop header
LB: loop body
LE: loop exit
PB: predicated region body
PF: predicated region fallthrough
CT: control target
= control target key end

     0   :  { %s140_s0 = inlined_call_operand.vmem [shape: bf16[32,128], index: 0, kind: input, shape index: {}]   ;;  %s141_s1 = inlined_call_operand.vmem [shape: f32[1,128], index: 1, kind: input, shape index: {}]   ;;  %s142_s2 = inlined_call_operand.vmem [shape: f32[1,128], index: 2, kind: input, shape index: {}]   ;;  %s143_s3 = inlined_call_operand.vmem [shape: bf16[32,128], index: 3, kind: output, shape index: {}]  }
   0x1   :  { %v83_v0 = vld [vmem:[%s140_s0] sm:$0xff]   ;;  %v100_v4 = vld [vmem:[%s140_s0 + $0x8] sm:$0xff]  }
   0x2   :  { %v72_v1 = vld [vmem:[%s141_s1] ss:$0 sm:$0xff]  ;;  %v84_v2 = vunpack.c.l.bf16 %v83_v0  ;;  %v85_v3 = vunpack.c.h.bf16 %v83_v0  ;;  %v88_v6 = vunpack.c.l.bf16 %v100_v4  ;;  %v89_v7 = vunpack.c.h.bf16 %v100_v4 }
   0x3   :  { %v73_v5 = vld [vmem:[%s142_s2] ss:$0 sm:$0xff] }
   0x4   :  { %v29_v8 = vmul.f32 %v84_v2, %v72_v1  ;;  %v30_v9 = vmul.f32 %v85_v3, %v72_v1  ;;  %v31_v10 = vmul.f32 %v88_v6, %v72_v1  ;;  %v32_v11 = vmul.f32 %v89_v7, %v72_v1 }
   0x6   :  { %v40_v12 = vadd.f32 %v73_v5, %v29_v8  ;;  %v41_v13 = vadd.f32 %v73_v5, %v30_v9  ;;  %v42_v14 = vadd.f32 %v73_v5, %v31_v10  ;;  %v43_v15 = vadd.f32 %v73_v5, %v32_v11 }
   0x8   :  { %v44_v16 = vmax.f32 %v40_v12, 0.0  ;;  %v45_v17 = vmax.f32 %v41_v13, 0.0  ;;  %v46_v18 = vmax.f32 %v42_v14, 0.0  ;;  %v47_v19 = vmax.f32 %v43_v15, 0.0 }
   0xa   :  { %v93_v20 = vpack.c.bf16 %v45_v17, %v44_v16  ;;  %v98_v21 = vpack.c.bf16 %v47_v19, %v46_v18 }
   0xc   :  { %94 = vst [vmem:[%s143_s3] sm:$0xff] %v93_v20   ;;  %101 = vst [vmem:[%s143_s3 + $0x8] sm:$0xff] %v98_v21  }

// kernel: densenet121_forward.152
= control target key start
LH: loop header
LB: loop body
LE: loop exit
PB: predicated region body
PF: predicated region fallthrough
CT: control target
= control target key end

     0   :  { %v44_v23 = vlaneseq  ;;  %s822_s3 = inlined_call_operand.vmem [shape: bf16[512,128], index: 3, kind: input, shape index: {}]   ;;  %s823_s0 = inlined_call_operand.vmem [shape: bf16[32,512], index: 0, kind: input, shape index: {}]   ;;  %s824_s1 = inlined_call_operand.vmem [shape: f32[1,512], index: 1, kind: input, shape index: {}]   ;;  %s825_s2 = inlined_call_operand.vmem [shape: f32[1,512], index: 2, kind: input, shape index: {}]   ;;  %s826_s4 = inlined_call_operand.vmem [shape: bf16[32,128], index: 4, kind: output, shape index: {}]  }
   0x1   :  { %v627_v0 = vld [vmem:[%s822_s3 + $0x40] sm:$0xff]   ;;  %v631_v4 = vld [vmem:[%s822_s3 + $0x48] sm:$0xff]   ;;  %v635_v8 = vld [vmem:[%s822_s3 + $0x50] sm:$0xff]  }
   0x2   :  { %v628_v1 = vld [vmem:[%s822_s3 + $0xc0] sm:$0xff]   ;;  %571 = vmatprep.subr.bf16.mxu0 %v627_v0  ;;  %v632_v5 = vld [vmem:[%s822_s3 + $0xc8] sm:$0xff]   ;;  %v636_v9 = vld [vmem:[%s822_s3 + $0xd0] sm:$0xff]   ;;  %v45_v28 = vshrl.u32 %v44_v23, 7 }
   0x3   :  { %v629_v2 = vld [vmem:[%s822_s3] sm:$0xff]   ;;  %599 = vmatprep.subr.bf16.mxu1 %v628_v1  ;;  %v633_v6 = vld [vmem:[%s822_s3 + $0x8] sm:$0xff]   ;;  %v637_v10 = vld [vmem:[%s822_s3 + $0x10] sm:$0xff]  }
   0x4   :  { %v630_v3 = vld [vmem:[%s822_s3 + $0x80] sm:$0xff]   ;;  %572 = vmatpush3.bf16.msra.mxu0 %v629_v2  ;;  %v634_v7 = vld [vmem:[%s822_s3 + $0x88] sm:$0xff]   ;;  %v638_v11 = vld [vmem:[%s822_s3 + $0x90] sm:$0xff]   ;;  %v50_v33 = vsub.s32 1, %v45_v28  ;;  %v58_v35 = vsub.s32 3, %v45_v28  ;;  %v46_v39 = vsub.s32 0, %v45_v28 }
   0x5   :  { %600 = vmatpush3.bf16.msra.mxu1 %v630_v3  ;;  %573 = vmatprep.subr.bf16.mxu0 %v631_v4  ;;  %v639_v12 = vld [vmem:[%s822_s3 + $0x58] sm:$0xff]   ;;  %v643_v16 = vld [vmem:[%s822_s3 + $0x60] sm:$0xff]   ;;  %v647_v20 = vld [vmem:[%s822_s3 + $0x68] sm:$0xff]   ;;  %v54_v40 = vsub.s32 2, %v45_v28 }
   0x6   :  { %601 = vmatprep.subr.bf16.mxu1 %v632_v5  ;;  %v640_v13 = vld [vmem:[%s822_s3 + $0xd8] sm:$0xff]   ;;  %v644_v17 = vld [vmem:[%s822_s3 + $0xe0] sm:$0xff]   ;;  %v648_v21 = vld [vmem:[%s822_s3 + $0xe8] sm:$0xff]  }
   0x7   :  { %v641_v14 = vld [vmem:[%s822_s3 + $0x18] sm:$0xff]   ;;  %v645_v18 = vld [vmem:[%s822_s3 + $0x20] sm:$0xff]   ;;  %v649_v22 = vld [vmem:[%s822_s3 + $0x28] sm:$0xff]  }
   0x8   :  { %574 = vmatpush3.bf16.msra.mxu0 %v633_v6  ;;  %v642_v15 = vld [vmem:[%s822_s3 + $0x98] sm:$0xff]   ;;  %v646_v19 = vld [vmem:[%s822_s3 + $0xa0] sm:$0xff]   ;;  %v650_v24 = vld [vmem:[%s822_s3 + $0xa8] sm:$0xff]  }
   0x9   :  { %602 = vmatpush3.bf16.msra.mxu1 %v634_v7  ;;  %575 = vmatprep.subr.bf16.mxu0 %v635_v8  ;;  %v651_v25 = vld [vmem:[%s822_s3 + $0x70] sm:$0xff]   ;;  %v655_v30 = vld [vmem:[%s822_s3 + $0x78] sm:$0xff]   ;;  %v18_v36 = vld [vmem:[%s823_s0] sm:$0xff] }
   0xa   :  { %603 = vmatprep.subr.bf16.mxu1 %v636_v9  ;;  %v652_v26 = vld [vmem:[%s822_s3 + $0xf0] sm:$0xff]   ;;  %v656_v31 = vld [vmem:[%s822_s3 + $0xf8] sm:$0xff]   ;;  %v42_v38 = vld [vmem:[%s824_s1] sm:$0xf]  ;;  %v26_v41 = vunpack.c.l.bf16 %v18_v36  ;;  %v27_v42 = vunpack.c.h.bf16 %v18_v36 }
   0xb   :  { %v653_v27 = vld [vmem:[%s822_s3 + $0x30] sm:$0xff]   ;;  %v657_v32 = vld [vmem:[%s822_s3 + $0x38] sm:$0xff]   ;;  %v80_v45 = vld [vmem:[%s825_s2] sm:$0xf]  ;;  %v51_v48 = vrot.slane %v42_v38, %v50_v33  ;;  %v59_v54 = vrot.slane %v42_v38, %v58_v35  ;;  %v47_v58 = vrot.slane %v42_v38, %v46_v39  ;;  %v55_v62 = vrot.slane %v42_v38, %v54_v40 }
   0xc   :  { %576 = vmatpush3.bf16.msra.mxu0 %v637_v10  ;;  %v654_v29 = vld [vmem:[%s822_s3 + $0xb0] sm:$0xff]   ;;  %v658_v34 = vld [vmem:[%s822_s3 + $0xb8] sm:$0xff]   ;;  %v19_v46 = vld [vmem:[%s823_s0 + $0x8] sm:$0xff]  ;;  %v89_v49 = vrot.slane %v80_v45, %v50_v33  ;;  %v97_v55 = vrot.slane %v80_v45, %v58_v35  ;;  %v85_v59 = vrot.slane %v80_v45, %v46_v39  ;;  %v798_v63 = vrot.slane %v80_v45, %v54_v40 }
   0xd   :  { %604 = vmatpush3.bf16.msra.mxu1 %v638_v11  ;;  %577 = vmatprep.subr.bf16.mxu0 %v639_v12  ;;  %v20_v37 = vld [vmem:[%s823_s0 + $0x10] sm:$0xff]  ;;  %v21_v47 = vld [vmem:[%s823_s0 + $0x18] sm:$0xff]  ;;  %v28_v50 = vunpack.c.l.bf16 %v19_v46  ;;  %v29_v51 = vunpack.c.h.bf16 %v19_v46  ;;  %v65_v56 = vmul.f32 %v51_v48, %v27_v42  ;;  %v64_v2 = vmul.f32 %v47_v58, %v26_v41  ;;  %v22_v8 = vld [vmem:[%s823_s0 + $0x20] sm:$0xff] }
   0xe   :  { %605 = vmatprep.subr.bf16.mxu1 %v640_v13  ;;  %v30_v43 = vunpack.c.l.bf16 %v20_v37  ;;  %v31_v44 = vunpack.c.h.bf16 %v20_v37  ;;  %v32_v52 = vunpack.c.l.bf16 %v21_v47  ;;  %v33_v53 = vunpack.c.h.bf16 %v21_v47  ;;  %v24_v13 = vld [vmem:[%s823_s0 + $0x30] sm:$0xff] }
   0xf   :  { %v67_v60 = vmul.f32 %v59_v54, %v29_v51  ;;  %v103_v0 = vadd.f32 %v89_v49, %v65_v56  ;;  %v66_v6 = vmul.f32 %v55_v62, %v28_v50  ;;  %v102_v11 = vadd.f32 %v85_v59, %v64_v2 }
  0x10   :  { %578 = vmatpush3.bf16.msra.mxu0 %v641_v14  ;;  %v69_v57 = vmul.f32 %v51_v48, %v31_v44  ;;  %v71_v61 = vmul.f32 %v59_v54, %v33_v53  ;;  %v68_v3 = vmul.f32 %v47_v58, %v30_v43  ;;  %v70_v7 = vmul.f32 %v55_v62, %v32_v52 }
  0x11   :  { %606 = vmatpush3.bf16.msra.mxu1 %v642_v15  ;;  %579 = vmatprep.subr.bf16.mxu0 %v643_v16  ;;  %v105_v4 = vadd.f32 %v97_v55, %v67_v60  ;;  %v119_v9 = vmax.f32 %v103_v0, 0.0  ;;  %v104_v16 = vadd.f32 %v798_v63, %v66_v6  ;;  %v35_v23 = vunpack.c.h.bf16 %v22_v8 }
  0x12   :  { %607 = vmatprep.subr.bf16.mxu1 %v644_v17  ;;  %v107_v1 = vadd.f32 %v89_v49, %v69_v57  ;;  %v109_v5 = vadd.f32 %v97_v55, %v71_v61  ;;  %v106_v12 = vadd.f32 %v85_v59, %v68_v3  ;;  %v108_v17 = vadd.f32 %v798_v63, %v70_v7 }
  0x13   :  { %v121_v14 = vmax.f32 %v105_v4, 0.0  ;;  %v38_v35 = vunpack.c.l.bf16 %v24_v13 }
  0x14   :  { %580 = vmatpush3.bf16.msra.mxu0 %v645_v18  ;;  %v123_v10 = vmax.f32 %v107_v1, 0.0  ;;  %v125_v15 = vmax.f32 %v109_v5, 0.0  ;;  %v23_v18 = vld [vmem:[%s823_s0 + $0x28] sm:$0xff] }
  0x15   :  { %608 = vmatpush3.bf16.msra.mxu1 %v646_v19  ;;  %581 = vmatprep.subr.bf16.mxu0 %v647_v20  ;;  %v25_v19 = vld [vmem:[%s823_s0 + $0x38] sm:$0xff]  ;;  %v36_v39 = vunpack.c.l.bf16 %v23_v18  ;;  %v76_v42 = vmul.f32 %v47_v58, %v38_v35 }
  0x16   :  { %609 = vmatprep.subr.bf16.mxu1 %v648_v21  ;;  %v135_v20 = vpack.c.bf16 %v123_v10, %v119_v9  ;;  %v118_v21 = vmax.f32 %v102_v11, 0.0  ;;  %v40_v43 = vunpack.c.l.bf16 %v25_v19 }
  0x17   :  { %v74_v47 = vmul.f32 %v55_v62, %v36_v39  ;;  %v114_v52 = vadd.f32 %v85_v59, %v76_v42 }
  0x18   :  { %582 = vmatpush3.bf16.msra.mxu0 %v649_v22  ;;  %v122_v22 = vmax.f32 %v106_v12, 0.0  ;;  %430 = vmatprep.mubr.bf16.mxu0 %v135_v20 }
  0x19   :  { %610 = vmatpush3.bf16.msra.mxu1 %v650_v24  ;;  %583 = vmatprep.subr.bf16.mxu0 %v651_v25  ;;  %v137_v24 = vpack.c.bf16 %v125_v15, %v121_v14  ;;  %v120_v25 = vmax.f32 %v104_v16, 0.0  ;;  %v112_v57 = vadd.f32 %v798_v63, %v74_v47  ;;  %v130_v61 = vmax.f32 %v114_v52, 0.0 }
  0x1a   :  { %611 = vmatprep.subr.bf16.mxu1 %v652_v26  ;;  %v124_v26 = vmax.f32 %v108_v17, 0.0  ;;  %v134_v28 = vpack.c.bf16 %v122_v22, %v118_v21 }
  0x1b   :  { %479 = vmatprep.mubr.bf16.mxu1 %v137_v24 }
  0x1c   :  { %584 = vmatpush3.bf16.msra.mxu0 %v653_v27  ;;  %v39_v27 = vunpack.c.h.bf16 %v24_v13 }
  0x1d   :  { %612 = vmatpush3.bf16.msra.mxu1 %v654_v29  ;;  %585 = vmatprep.subr.bf16.mxu0 %v655_v30  ;;  %v73_v29 = vmul.f32 %v51_v48, %v35_v23  ;;  %v37_v30 = vunpack.c.h.bf16 %v23_v18 }
  0x1e   :  { %613 = vmatprep.subr.bf16.mxu1 %v656_v31  ;;  %v41_v31 = vunpack.c.h.bf16 %v25_v19  ;;  %v77_v33 = vmul.f32 %v51_v48, %v39_v27  ;;  %v78_v48 = vmul.f32 %v55_v62, %v40_v43 }
  0x1f   :  { %v111_v36 = vadd.f32 %v89_v49, %v73_v29  ;;  %v75_v37 = vmul.f32 %v59_v54, %v37_v30 }
  0x20   :  { %586 = vmatpush3.bf16.msra.mxu0 %v657_v32  ;;  %v136_v32 = vpack.c.bf16 %v124_v26, %v120_v25  ;;  %v79_v38 = vmul.f32 %v59_v54, %v41_v31  ;;  %v115_v40 = vadd.f32 %v89_v49, %v77_v33  ;;  %v116_v49 = vadd.f32 %v798_v63, %v78_v48 }
  0x21   :  { %614 = vmatpush3.bf16.msra.mxu1 %v658_v34  ;;  %v34_v34 = vunpack.c.l.bf16 %v22_v8  ;;  %v127_v44 = vmax.f32 %v111_v36, 0.0  ;;  %v113_v45 = vadd.f32 %v97_v55, %v75_v37 }
  0x22   :  { %v117_v46 = vadd.f32 %v97_v55, %v79_v38  ;;  %v131_v50 = vmax.f32 %v115_v40, 0.0  ;;  %v132_v2 = vmax.f32 %v116_v49, 0.0 }
  0x23   :  { %431 = vmatmul.mubr.bf16.vlgmr.msra.gmra.mrb[0].mxu0 %v134_v28  ;;  %v72_v41 = vmul.f32 %v47_v58, %v34_v34  ;;  %v129_v53 = vmax.f32 %v113_v45, 0.0  ;;  %v128_v58 = vmax.f32 %v112_v57, 0.0 }
  0x24   :  { %480 = vmatmul.mubr.bf16.vlgmr.msra.gmra.mrb[0].mxu1 %v136_v32  ;;  %v133_v56 = vmax.f32 %v117_v46, 0.0  ;;  %v139_v60 = vpack.c.bf16 %v131_v50, %v127_v44 }
  0x25   :  { %v110_v51 = vadd.f32 %v85_v59, %v72_v41  ;;  %v140_v55 = vpack.c.bf16 %v132_v2, %v128_v58 }
  0x26   :  { %v141_v0 = vpack.c.bf16 %v133_v56, %v129_v53  ;;  %438 = vmatprep.mubr.bf16.mxu0 %v139_v60 }
  0x27   :  { %v126_v54 = vmax.f32 %v110_v51, 0.0 }
  0x28   :  { %487 = vmatprep.mubr.bf16.mxu1 %v141_v0 }
  0x29   :  { %v138_v1 = vpack.c.bf16 %v130_v61, %v126_v54 }
  0x2b   :  { %439 = vmatmul.mubr.bf16.gmra.mrb[4].mxu0 %v138_v1 }
  0x2c   :  { %488 = vmatmul.mubr.bf16.gmra.mrb[4].mxu1 %v140_v55 }
  0xf6   :  { %v587_v59 = vpop.f32.mrb[0].mxu0 }
  0xf7   :  { %v615_v62 = vpop.f32.mrb[0].mxu1  ;;  %v588_v3 = vpop.f32.mrb[1].mxu0 }
  0xf8   :  { %v589_v4 = vadd.f32 %v588_v3, %v587_v59  ;;  %v616_v5 = vpop.f32.mrb[1].mxu1  ;;  %v590_v6 = vpop.f32.mrb[2].mxu0 }
  0xf9   :  { %v617_v7 = vadd.f32 %v616_v5, %v615_v62  ;;  %v618_v8 = vpop.f32.mrb[2].mxu1  ;;  %v591_v9 = vpop.f32.mrb[3].mxu0 }
  0xfa   :  { %v592_v10 = vadd.f32 %v591_v9, %v590_v6  ;;  %v619_v63 = vpop.f32.mrb[3].mxu1 }
  0xfb   :  { %v482_v11 = vadd.f32 %v617_v7, %v589_v4  ;;  %v620_v12 = vadd.f32 %v619_v63, %v618_v8 }
  0xfd   :  { %v485_v13 = vadd.f32 %v620_v12, %v592_v10 }
  0xfe   :  { %v593_v15 = vpop.f32.mrb[4].mxu0 }
  0xff   :  { %v563_v14 = vpack.c.bf16 %v485_v13, %v482_v11  ;;  %v594_v16 = vpop.f32.mrb[5].mxu0  ;;  %v621_v17 = vpop.f32.mrb[4].mxu1 }
 0x100   :  { %v595_v18 = vadd.f32 %v594_v16, %v593_v15  ;;  %v596_v19 = vpop.f32.mrb[6].mxu0  ;;  %v622_v20 = vpop.f32.mrb[5].mxu1 }
 0x101   :  { %564 = vst [vmem:[%s826_s4] sm:$0xff] %v563_v14   ;;  %v597_v21 = vpop.f32.mrb[7].mxu0  ;;  %v623_v22 = vadd.f32 %v622_v20, %v621_v17  ;;  %v624_v23 = vpop.f32.mrb[6].mxu1 }
 0x102   :  { %v598_v24 = vadd.f32 %v597_v21, %v596_v19  ;;  %v625_v25 = vpop.f32.mrb[7].mxu1 }
 0x103   :  { %v490_v26 = vadd.f32 %v623_v22, %v595_v18  ;;  %v626_v27 = vadd.f32 %v625_v25, %v624_v23 }
 0x105   :  { %v493_v28 = vadd.f32 %v626_v27, %v598_v24 }
 0x107   :  { %v568_v29 = vpack.c.bf16 %v493_v28, %v490_v26 }
 0x109   :  { %570 = vst [vmem:[%s826_s4 + $0x8] sm:$0xff] %v568_v29  }

// kernel: densenet121_forward.154
= control target key start
LH: loop header
LB: loop body
LE: loop exit
PB: predicated region body
PF: predicated region fallthrough
CT: control target
= control target key end

     0   :  { %s1609_s1 = inlined_call_operand.vmem [shape: bf16[1152,128], index: 1, kind: input, shape index: {}]   ;;  %s1610_s0 = inlined_call_operand.vmem [shape: bf16[32,1152], index: 0, kind: input, shape index: {}]   ;;  %s1611_s2 = inlined_call_operand.vmem [shape: bf16[32,128], index: 2, kind: output, shape index: {}]  }
   0x1   :  { %v1220_v0 = vld [vmem:[%s1609_s1 + $0x40] sm:$0xff]   ;;  %v1224_v4 = vld [vmem:[%s1609_s1 + $0x48] sm:$0xff]   ;;  %v1228_v8 = vld [vmem:[%s1609_s1 + $0x50] sm:$0xff]  }
   0x2   :  { %v1221_v1 = vld [vmem:[%s1609_s1 + $0xc0] sm:$0xff]   ;;  %1078 = vmatprep.subr.bf16.mxu0 %v1220_v0  ;;  %v1225_v5 = vld [vmem:[%s1609_s1 + $0xc8] sm:$0xff]   ;;  %v1229_v9 = vld [vmem:[%s1609_s1 + $0xd0] sm:$0xff]  }
   0x3   :  { %v1222_v2 = vld [vmem:[%s1609_s1] sm:$0xff]   ;;  %1106 = vmatprep.subr.bf16.mxu1 %v1221_v1  ;;  %v1226_v6 = vld [vmem:[%s1609_s1 + $0x8] sm:$0xff]   ;;  %v1230_v10 = vld [vmem:[%s1609_s1 + $0x10] sm:$0xff]  }
   0x4   :  { %v1223_v3 = vld [vmem:[%s1609_s1 + $0x80] sm:$0xff]   ;;  %1079 = vmatpush3.bf16.msra.mxu0 %v1222_v2  ;;  %v1227_v7 = vld [vmem:[%s1609_s1 + $0x88] sm:$0xff]   ;;  %v1231_v11 = vld [vmem:[%s1609_s1 + $0x90] sm:$0xff]  }
   0x5   :  { %1107 = vmatpush3.bf16.msra.mxu1 %v1223_v3  ;;  %1080 = vmatprep.subr.bf16.mxu0 %v1224_v4  ;;  %v1232_v12 = vld [vmem:[%s1609_s1 + $0x58] sm:$0xff]   ;;  %v1236_v16 = vld [vmem:[%s1609_s1 + $0x60] sm:$0xff]   ;;  %v1240_v20 = vld [vmem:[%s1609_s1 + $0x68] sm:$0xff]  }
   0x6   :  { %1108 = vmatprep.subr.bf16.mxu1 %v1225_v5  ;;  %v1233_v13 = vld [vmem:[%s1609_s1 + $0xd8] sm:$0xff]   ;;  %v1237_v17 = vld [vmem:[%s1609_s1 + $0xe0] sm:$0xff]   ;;  %v1241_v21 = vld [vmem:[%s1609_s1 + $0xe8] sm:$0xff]  }
   0x7   :  { %v1234_v14 = vld [vmem:[%s1609_s1 + $0x18] sm:$0xff]   ;;  %v1238_v18 = vld [vmem:[%s1609_s1 + $0x20] sm:$0xff]   ;;  %v1242_v22 = vld [vmem:[%s1609_s1 + $0x28] sm:$0xff]  }
   0x8   :  { %1081 = vmatpush3.bf16.msra.mxu0 %v1226_v6  ;;  %v1235_v15 = vld [vmem:[%s1609_s1 + $0x98] sm:$0xff]   ;;  %v1239_v19 = vld [vmem:[%s1609_s1 + $0xa0] sm:$0xff]   ;;  %v1243_v23 = vld [vmem:[%s1609_s1 + $0xa8] sm:$0xff]  }
   0x9   :  { %1109 = vmatpush3.bf16.msra.mxu1 %v1227_v7  ;;  %1082 = vmatprep.subr.bf16.mxu0 %v1228_v8  ;;  %v1244_v24 = vld [vmem:[%s1609_s1 + $0x70] sm:$0xff]   ;;  %v1248_v28 = vld [vmem:[%s1609_s1 + $0x78] sm:$0xff]   ;;  %v1252_v32 = vld [vmem:[%s1610_s0] ss:$36 sps:$4 sm:$0xff]  }
   0xa   :  { %1110 = vmatprep.subr.bf16.mxu1 %v1229_v9  ;;  %v1245_v25 = vld [vmem:[%s1609_s1 + $0xf0] sm:$0xff]   ;;  %v1249_v29 = vld [vmem:[%s1609_s1 + $0xf8] sm:$0xff]   ;;  %v1254_v33 = vld [vmem:[%s1610_s0 + $0x4] ss:$36 sps:$4 sm:$0xff]  }
   0xb   :  { %v1246_v26 = vld [vmem:[%s1609_s1 + $0x30] sm:$0xff]   ;;  %v1250_v30 = vld [vmem:[%s1609_s1 + $0x38] sm:$0xff]   ;;  %v1255_v34 = vld [vmem:[%s1610_s0 + $0x8] ss:$36 sps:$4 sm:$0xff]   ;;  %732 = vmatprep.mubr.bf16.mxu0 %v1254_v33 }
   0xc   :  { %1083 = vmatpush3.bf16.msra.mxu0 %v1230_v10  ;;  %v1247_v27 = vld [vmem:[%s1609_s1 + $0xb0] sm:$0xff]   ;;  %v1251_v31 = vld [vmem:[%s1609_s1 + $0xb8] sm:$0xff]   ;;  %v1258_v36 = vld [vmem:[%s1609_s1 + $0x140] sm:$0xff]  }
   0xd   :  { %1111 = vmatpush3.bf16.msra.mxu1 %v1231_v11  ;;  %1084 = vmatprep.subr.bf16.mxu0 %v1232_v12  ;;  %v1257_v35 = vld [vmem:[%s1610_s0 + $0xc] ss:$36 sps:$4 sm:$0xff]   ;;  %v1259_v37 = vld [vmem:[%s1609_s1 + $0x100] sm:$0xff]   ;;  %v1270_v48 = vld [vmem:[%s1609_s1 + $0x158] sm:$0xff]  }
   0xe   :  { %1112 = vmatprep.subr.bf16.mxu1 %v1233_v13  ;;  %781 = vmatprep.mubr.bf16.mxu1 %v1257_v35  ;;  %v1260_v38 = vld [vmem:[%s1609_s1 + $0x1c0] sm:$0xff]   ;;  %v1262_v40 = vld [vmem:[%s1609_s1 + $0x148] sm:$0xff]   ;;  %v1266_v44 = vld [vmem:[%s1609_s1 + $0x150] sm:$0xff]  }
   0xf   :  { %v1261_v39 = vld [vmem:[%s1609_s1 + $0x180] sm:$0xff]   ;;  %v1263_v41 = vld [vmem:[%s1609_s1 + $0x108] sm:$0xff]   ;;  %v1267_v45 = vld [vmem:[%s1609_s1 + $0x110] sm:$0xff]  }
  0x10   :  { %1085 = vmatpush3.bf16.msra.mxu0 %v1234_v14  ;;  %v1264_v42 = vld [vmem:[%s1609_s1 + $0x1c8] sm:$0xff]   ;;  %v1268_v46 = vld [vmem:[%s1609_s1 + $0x1d0] sm:$0xff]   ;;  %v1271_v49 = vld [vmem:[%s1609_s1 + $0x118] sm:$0xff]  }
  0x11   :  { %1113 = vmatpush3.bf16.msra.mxu1 %v1235_v15  ;;  %1086 = vmatprep.subr.bf16.mxu0 %v1236_v16  ;;  %v1265_v43 = vld [vmem:[%s1609_s1 + $0x188] sm:$0xff]   ;;  %v1269_v47 = vld [vmem:[%s1609_s1 + $0x190] sm:$0xff]   ;;  %v1272_v50 = vld [vmem:[%s1609_s1 + $0x1d8] sm:$0xff]  }
  0x12   :  { %1114 = vmatprep.subr.bf16.mxu1 %v1237_v17  ;;  %v1273_v51 = vld [vmem:[%s1609_s1 + $0x198] sm:$0xff]   ;;  %v1274_v52 = vld [vmem:[%s1609_s1 + $0x160] sm:$0xff]   ;;  %v1278_v56 = vld [vmem:[%s1609_s1 + $0x168] sm:$0xff]  }
  0x13   :  { %v1275_v53 = vld [vmem:[%s1609_s1 + $0x120] sm:$0xff]   ;;  %v1279_v57 = vld [vmem:[%s1610_s0 + $0x4c] ss:$36 sps:$4 sm:$0xff]   ;;  %v1281_v58 = vld [vmem:[%s1610_s0 + $0x54] ss:$36 sps:$4 sm:$0xff]  }
  0x14   :  { %1087 = vmatpush3.bf16.msra.mxu0 %v1238_v18  ;;  %v1276_v54 = vld [vmem:[%s1609_s1 + $0x1e0] sm:$0xff]   ;;  %v1283_v59 = vld [vmem:[%s1609_s1 + $0x128] sm:$0xff]   ;;  %v1285_v61 = vld [vmem:[%s1610_s0 + $0x50] ss:$36 sps:$4 sm:$0xff]  }
  0x15   :  { %1115 = vmatpush3.bf16.msra.mxu1 %v1239_v19  ;;  %1088 = vmatprep.subr.bf16.mxu0 %v1240_v20  ;;  %v1277_v55 = vld [vmem:[%s1609_s1 + $0x1a0] sm:$0xff]   ;;  %v1284_v60 = vld [vmem:[%s1610_s0 + $0x48] ss:$36 sps:$4 sm:$0xff]   ;;  %v1288_v0 = vld [vmem:[%s1609_s1 + $0x170] sm:$0xff]  }
  0x16   :  { %1116 = vmatprep.subr.bf16.mxu1 %v1241_v21  ;;  %v1286_v62 = vld [vmem:[%s1609_s1 + $0x1e8] sm:$0xff]   ;;  %v1289_v1 = vld [vmem:[%s1609_s1 + $0x130] sm:$0xff]   ;;  %v1292_v4 = vld [vmem:[%s1609_s1 + $0x178] sm:$0xff]  }
  0x17   :  { %v1287_v63 = vld [vmem:[%s1609_s1 + $0x1a8] sm:$0xff]   ;;  %v1290_v2 = vld [vmem:[%s1609_s1 + $0x1f0] sm:$0xff]   ;;  %v1293_v5 = vld [vmem:[%s1609_s1 + $0x138] sm:$0xff]  }
  0x18   :  { %1089 = vmatpush3.bf16.msra.mxu0 %v1242_v22  ;;  %v1291_v3 = vld [vmem:[%s1609_s1 + $0x1b0] sm:$0xff]   ;;  %v1294_v6 = vld [vmem:[%s1609_s1 + $0x1f8] sm:$0xff]   ;;  %v1299_v10 = vld [vmem:[%s1609_s1 + $0x200] sm:$0xff]  }
  0x19   :  { %1117 = vmatpush3.bf16.msra.mxu1 %v1243_v23  ;;  %1090 = vmatprep.subr.bf16.mxu0 %v1244_v24  ;;  %v1295_v7 = vld [vmem:[%s1610_s0 + $0x10] ss:$36 sps:$4 sm:$0xff]   ;;  %v1298_v9 = vld [vmem:[%s1609_s1 + $0x1b8] sm:$0xff]   ;;  %v1303_v13 = vld [vmem:[%s1609_s1 + $0x208] sm:$0xff]  }
  0x1a   :  { %1118 = vmatprep.subr.bf16.mxu1 %v1245_v25  ;;  %v1297_v8 = vld [vmem:[%s1610_s0 + $0x14] ss:$36 sps:$4 sm:$0xff]   ;;  %v1302_v12 = vld [vmem:[%s1610_s0 + $0x1c] ss:$36 sps:$4 sm:$0xff]   ;;  %v1308_v17 = vld [vmem:[%s1610_s0 + $0x64] ss:$36 sps:$4 sm:$0xff]  }
  0x1b   :  { %v1300_v11 = vld [vmem:[%s1610_s0 + $0x18] ss:$36 sps:$4 sm:$0xff]   ;;  %v1307_v16 = vld [vmem:[%s1609_s1 + $0x210] sm:$0xff]   ;;  %v1310_v18 = vld [vmem:[%s1610_s0 + $0x60] ss:$36 sps:$4 sm:$0xff]  }
  0x1c   :  { %1091 = vmatpush3.bf16.msra.mxu0 %v1246_v26  ;;  %v1304_v14 = vld [vmem:[%s1610_s0 + $0x5c] ss:$36 sps:$4 sm:$0xff]   ;;  %v1313_v22 = vld [vmem:[%s1609_s1 + $0x228] sm:$0xff]   ;;  %v1314_v23 = vld [vmem:[%s1609_s1 + $0x230] sm:$0xff]  }
  0x1d   :  { %1119 = vmatpush3.bf16.msra.mxu1 %v1247_v27  ;;  %1092 = vmatprep.subr.bf16.mxu0 %v1248_v28  ;;  %v1306_v15 = vld [vmem:[%s1610_s0 + $0x58] ss:$36 sps:$4 sm:$0xff]   ;;  %v1312_v20 = vld [vmem:[%s1609_s1 + $0x220] sm:$0xff]   ;;  %v1317_v25 = vld [vmem:[%s1610_s0 + $0x68] ss:$36 sps:$4 sm:$0xff]  }
  0x1e   :  { %1120 = vmatprep.subr.bf16.mxu1 %v1249_v29  ;;  %v1311_v19 = vld [vmem:[%s1609_s1 + $0x218] sm:$0xff]   ;;  %v1316_v21 = vld [vmem:[%s1610_s0 + $0x20] ss:$36 sps:$4 sm:$0xff]  }
  0x1f   :  { %v1315_v24 = vld [vmem:[%s1609_s1 + $0x238] sm:$0xff]  }
  0x20   :  { %1093 = vmatpush3.bf16.msra.mxu0 %v1250_v30 }
  0x21   :  { %1121 = vmatpush3.bf16.msra.mxu1 %v1251_v31  ;;  %1134 = vmatprep.subr.bf16.mxu0 %v1258_v36 }
  0x22   :  { %1162 = vmatprep.subr.bf16.mxu1 %v1260_v38 }
  0x23   :  { %733 = vmatmul.mubr.bf16.vlgmr.msra.gmra.mrb[0].mxu0 %v1252_v32 }
  0x24   :  { %782 = vmatmul.mubr.bf16.vlgmr.msra.gmra.mrb[0].mxu1 %v1255_v34  ;;  %1135 = vmatpush3.bf16.msra.mxu0 %v1259_v37 }
  0x25   :  { %1163 = vmatpush3.bf16.msra.mxu1 %v1261_v39  ;;  %1136 = vmatprep.subr.bf16.mxu0 %v1262_v40 }
  0x26   :  { %1164 = vmatprep.subr.bf16.mxu1 %v1264_v42  ;;  %740 = vmatprep.mubr.bf16.mxu0 %v1279_v57 }
  0x27   :  { %789 = vmatprep.mubr.bf16.mxu1 %v1281_v58 }
  0x28   :  { %1137 = vmatpush3.bf16.msra.mxu0 %v1263_v41 }
  0x29   :  { %1165 = vmatpush3.bf16.msra.mxu1 %v1265_v43  ;;  %1138 = vmatprep.subr.bf16.mxu0 %v1266_v44 }
  0x2a   :  { %1166 = vmatprep.subr.bf16.mxu1 %v1268_v46 }
  0x2b   :  { %741 = vmatmul.mubr.bf16.gmra.mrb[4].mxu0 %v1284_v60 }
  0x2c   :  { %1139 = vmatpush3.bf16.msra.mxu0 %v1267_v45  ;;  %790 = vmatmul.mubr.bf16.gmra.mrb[4].mxu1 %v1285_v61 }
  0x2d   :  { %1167 = vmatpush3.bf16.msra.mxu1 %v1269_v47  ;;  %1140 = vmatprep.subr.bf16.mxu0 %v1270_v48 }
  0x2e   :  { %1168 = vmatprep.subr.bf16.mxu1 %v1272_v50  ;;  %830 = vmatprep.mubr.bf16.mxu0 %v1297_v8 }
  0x2f   :  { %879 = vmatprep.mubr.bf16.mxu1 %v1302_v12 }
  0x30   :  { %1141 = vmatpush3.bf16.msra.mxu0 %v1271_v49 }
  0x31   :  { %1169 = vmatpush3.bf16.msra.mxu1 %v1273_v51  ;;  %1142 = vmatprep.subr.bf16.mxu0 %v1274_v52 }
  0x32   :  { %1170 = vmatprep.subr.bf16.mxu1 %v1276_v54 }
  0x34   :  { %1143 = vmatpush3.bf16.msra.mxu0 %v1275_v53 }
  0x35   :  { %1171 = vmatpush3.bf16.msra.mxu1 %v1277_v55  ;;  %1144 = vmatprep.subr.bf16.mxu0 %v1278_v56 }
  0x36   :  { %1172 = vmatprep.subr.bf16.mxu1 %v1286_v62 }
  0x38   :  { %1145 = vmatpush3.bf16.msra.mxu0 %v1283_v59 }
  0x39   :  { %1173 = vmatpush3.bf16.msra.mxu1 %v1287_v63  ;;  %1146 = vmatprep.subr.bf16.mxu0 %v1288_v0 }
  0x3a   :  { %1174 = vmatprep.subr.bf16.mxu1 %v1290_v2 }
  0x3c   :  { %1147 = vmatpush3.bf16.msra.mxu0 %v1289_v1 }
  0x3d   :  { %1175 = vmatpush3.bf16.msra.mxu1 %v1291_v3  ;;  %1148 = vmatprep.subr.bf16.mxu0 %v1292_v4 }
  0x3e   :  { %1176 = vmatprep.subr.bf16.mxu1 %v1294_v6 }
  0x40   :  { %1149 = vmatpush3.bf16.msra.mxu0 %v1293_v5 }
  0x41   :  { %1177 = vmatpush3.bf16.msra.mxu1 %v1298_v9  ;;  %1200 = vmatprep.subr.bf16.mxu0 %v1299_v10 }
  0x43   :  { %831 = vmatmul.mubr.bf16.vlgmr.msra.gmra.mrb[8].mxu0 %v1295_v7 }
  0x44   :  { %1201 = vmatpush3.bf16.msra.mxu0 %v1299_v10  ;;  %880 = vmatmul.mubr.bf16.vlgmr.msra.gmra.mrb[8].mxu1 %v1300_v11 }
  0x45   :  { %1202 = vmatprep.subr.bf16.mxu0 %v1303_v13  ;;  %838 = vmatprep.mubr.bf16.mxu0 %v1304_v14 }
  0x46   :  { %887 = vmatprep.mubr.bf16.mxu1 %v1308_v17 }
  0x48   :  { %1203 = vmatpush3.bf16.msra.mxu0 %v1303_v13 }
  0x49   :  { %1204 = vmatprep.subr.bf16.mxu0 %v1307_v16 }
  0x4b   :  { %839 = vmatmul.mubr.bf16.gmra.mrb[12].mxu0 %v1306_v15 }
  0x4c   :  { %1205 = vmatpush3.bf16.msra.mxu0 %v1307_v16  ;;  %888 = vmatmul.mubr.bf16.gmra.mrb[12].mxu1 %v1310_v18 }
  0x4d   :  { %1206 = vmatprep.subr.bf16.mxu0 %v1311_v19  ;;  %1216 = vmatprep.mubr.bf16.mxu0 %v1316_v21 }
  0x50   :  { %1207 = vmatpush3.bf16.msra.mxu0 %v1311_v19 }
  0x51   :  { %1208 = vmatprep.subr.bf16.mxu0 %v1312_v20 }
  0x54   :  { %1209 = vmatpush3.bf16.msra.mxu0 %v1312_v20 }
  0x55   :  { %1210 = vmatprep.subr.bf16.mxu0 %v1313_v22 }
  0x58   :  { %1211 = vmatpush3.bf16.msra.mxu0 %v1313_v22 }
  0x59   :  { %1212 = vmatprep.subr.bf16.mxu0 %v1314_v23 }
  0x5c   :  { %1213 = vmatpush3.bf16.msra.mxu0 %v1314_v23 }
  0x5d   :  { %1214 = vmatprep.subr.bf16.mxu0 %v1315_v24 }
  0x60   :  { %1215 = vmatpush3.bf16.msra.mxu0 %v1315_v24 }
  0x63   :  { %1217 = vmatmul.mubr.bf16.vlgmr.msra.gmra.mrb[16].mxu0 %v1317_v25 }
  0xf6   :  { %v1094_v26 = vpop.f32.mrb[0].mxu0 }
  0xf7   :  { %v1122_v27 = vpop.f32.mrb[0].mxu1  ;;  %v1095_v28 = vpop.f32.mrb[1].mxu0 }
  0xf8   :  { %v1096_v29 = vadd.f32 %v1095_v28, %v1094_v26  ;;  %v1123_v30 = vpop.f32.mrb[1].mxu1  ;;  %v1097_v31 = vpop.f32.mrb[2].mxu0 }
  0xf9   :  { %v1124_v32 = vadd.f32 %v1123_v30, %v1122_v27  ;;  %v1125_v33 = vpop.f32.mrb[2].mxu1  ;;  %v1098_v34 = vpop.f32.mrb[3].mxu0 }
  0xfa   :  { %v1099_v35 = vadd.f32 %v1098_v34, %v1097_v31  ;;  %v1126_v36 = vpop.f32.mrb[3].mxu1 }
  0xfb   :  { %v784_v37 = vadd.f32 %v1124_v32, %v1096_v29  ;;  %v1127_v38 = vadd.f32 %v1126_v36, %v1125_v33 }
  0xfd   :  { %v787_v39 = vadd.f32 %v1127_v38, %v1099_v35 }
  0xfe   :  { %v1100_v40 = vpop.f32.mrb[4].mxu0 }
  0xff   :  { %v1128_v41 = vpop.f32.mrb[4].mxu1  ;;  %v1101_v42 = vpop.f32.mrb[5].mxu0 }
 0x100   :  { %v1129_v43 = vpop.f32.mrb[5].mxu1  ;;  %v1102_v44 = vadd.f32 %v1101_v42, %v1100_v40  ;;  %v1103_v46 = vpop.f32.mrb[6].mxu0 }
 0x101   :  { %v1130_v45 = vadd.f32 %v1129_v43, %v1128_v41  ;;  %v1131_v47 = vpop.f32.mrb[6].mxu1  ;;  %v1104_v48 = vpop.f32.mrb[7].mxu0 }
 0x102   :  { %v1132_v49 = vpop.f32.mrb[7].mxu1  ;;  %v1105_v51 = vadd.f32 %v1104_v48, %v1103_v46 }
 0x103   :  { %v792_v50 = vadd.f32 %v1130_v45, %v1102_v44  ;;  %v1133_v52 = vadd.f32 %v1132_v49, %v1131_v47 }
 0x105   :  { %v795_v53 = vadd.f32 %v1133_v52, %v1105_v51 }
 0x116   :  { %v1150_v54 = vpop.f32.mrb[8].mxu0 }
 0x117   :  { %v1151_v55 = vpop.f32.mrb[9].mxu0  ;;  %v1178_v58 = vpop.f32.mrb[8].mxu1 }
 0x118   :  { %v1152_v56 = vadd.f32 %v1151_v55, %v1150_v54  ;;  %v1153_v57 = vpop.f32.mrb[10].mxu0  ;;  %v1179_v62 = vpop.f32.mrb[9].mxu1 }
 0x119   :  { %v1154_v59 = vpop.f32.mrb[11].mxu0  ;;  %v1180_v63 = vadd.f32 %v1179_v62, %v1178_v58  ;;  %v1181_v0 = vpop.f32.mrb[10].mxu1 }
 0x11a   :  { %v833_v60 = vadd.f32 %v1152_v56, %v784_v37  ;;  %v1155_v61 = vadd.f32 %v1154_v59, %v1153_v57  ;;  %v1182_v2 = vpop.f32.mrb[11].mxu1 }
 0x11b   :  { %v1183_v3 = vadd.f32 %v1182_v2, %v1181_v0 }
 0x11c   :  { %v836_v1 = vadd.f32 %v1155_v61, %v787_v39  ;;  %v882_v4 = vadd.f32 %v1180_v63, %v833_v60 }
 0x11e   :  { %v1156_v5 = vpop.f32.mrb[12].mxu0  ;;  %v885_v7 = vadd.f32 %v1183_v3, %v836_v1 }
 0x11f   :  { %v1157_v6 = vpop.f32.mrb[13].mxu0  ;;  %v1184_v10 = vpop.f32.mrb[12].mxu1 }
 0x120   :  { %v1158_v8 = vadd.f32 %v1157_v6, %v1156_v5  ;;  %v1159_v9 = vpop.f32.mrb[14].mxu0  ;;  %v1185_v14 = vpop.f32.mrb[13].mxu1 }
 0x121   :  { %v1160_v11 = vpop.f32.mrb[15].mxu0  ;;  %v1186_v15 = vadd.f32 %v1185_v14, %v1184_v10  ;;  %v1187_v16 = vpop.f32.mrb[14].mxu1 }
 0x122   :  { %v841_v12 = vadd.f32 %v1158_v8, %v792_v50  ;;  %v1161_v13 = vadd.f32 %v1160_v11, %v1159_v9  ;;  %v1188_v18 = vpop.f32.mrb[15].mxu1 }
 0x123   :  { %v1189_v19 = vadd.f32 %v1188_v18, %v1187_v16 }
 0x124   :  { %v844_v17 = vadd.f32 %v1161_v13, %v795_v53  ;;  %v890_v20 = vadd.f32 %v1186_v15, %v841_v12 }
 0x126   :  { %v893_v21 = vadd.f32 %v1189_v19, %v844_v17 }
 0x136   :  { %v1218_v22 = vpop.f32.mrb[16].mxu0 }
 0x137   :  { %v939_v23 = vadd.f32 %v1218_v22, %v890_v20  ;;  %v930_v24 = vpop.f32.mrb[17].mxu0 }
 0x138   :  { %v931_v25 = vadd.f32 %v930_v24, %v882_v4  ;;  %v1219_v26 = vpop.f32.mrb[18].mxu0 }
 0x139   :  { %v942_v27 = vadd.f32 %v1219_v26, %v893_v21  ;;  %v933_v28 = vpop.f32.mrb[19].mxu0 }
 0x13a   :  { %v934_v29 = vadd.f32 %v933_v28, %v885_v7 }
 0x13b   :  { %v1075_v30 = vpack.c.bf16 %v942_v27, %v939_v23 }
 0x13c   :  { %v1070_v31 = vpack.c.bf16 %v934_v29, %v931_v25 }
 0x13d   :  { %1077 = vst [vmem:[%s1611_s2 + $0x8] sm:$0xff] %v1075_v30  }
 0x13e   :  { %1071 = vst [vmem:[%s1611_s2] sm:$0xff] %v1070_v31  }

// kernel: densenet121_forward.157
= control target key start
LH: loop header
LB: loop body
LE: loop exit
PB: predicated region body
PF: predicated region fallthrough
CT: control target
= control target key end

     0   :  { %7 = vsyncpa [#allocation3], 0  ;;  %s1360_s9 = smov [#allocation2]   ;;  %s1612_s0 = inlined_call_operand.hbm [shape: bf16[32,1152], index: 0, kind: input, shape index: {}]   ;;  %s1613_s1 = inlined_call_operand.vmem [shape: bf16[1152,128], index: 1, kind: input, shape index: {}]   ;;  %s1614_s2 = inlined_call_operand.vmem [shape: bf16[32,128], index: 2, kind: output, shape index: {}]  }
   0x1   :  { %s13_s10 = sshll.u32 %s1360_s9, 4  ;;  %s1336_s13 = scalar_lea.hbm %s1612_s0, 2304  ;;  %s14_s10 = int_to_ptr.vmem [resolvable:$true] %s13_s10 }
   0x2   :  { %p1337_p0 = scmp.ne.s32.totalorder %s1612_s0, %s1336_s13  ;;  %p1340_p1 = scmp.lt.u32.totalorder %s1336_s13, %s1612_s0 }
   0x4   :  { %p1342_p2 = pnand %p1340_p1, %p1337_p0 }
   0x6   :  { %1345 = shalt.err (!%p1342_p2)
}
   0x7   :  { %s1346_s18 = scalar_lea.vmem %s14_s10, 2304  ;;  %p1351_p4 = scmp.lt.s32.totalorder %s14_s10, %s14_s10 }
   0x8   :  { %p1347_p3 = scmp.ne.s32.totalorder %s14_s10, %s1346_s18  ;;  %p1352_p5 = scmp.lt.s32.totalorder %s1346_s18, %s1346_s18 }
   0xa   :  { %p1353_p6 = por %p1352_p5, %p1351_p4 }
   0xc   :  { %p1354_p7 = pnand %p1353_p6, %p1347_p3 }
   0xe   :  { %1357 = shalt.err (!%p1354_p7)
}
   0xf   :  { %s1361_s19 = smov 576   ;;  %s1362_s20 = smov 36  }
  0x10   :  { %19 = dma.hbm_to_vmem [thread:$0]  %s1612_s0, 2304, %s14_s10, [#allocation3], %s1361_s19, %s1361_s19, %s1362_s20  }
  0x11   :  { %1358 = dma.done.wait [#allocation3], 2304  }
  0x12   :  { %1359 = vsyncadd [#allocation3], 4294964992  ;;  %v1238_v0 = vld [vmem:[%s1613_s1 + $0x40] sm:$0xff]   ;;  %v1242_v4 = vld [vmem:[%s1613_s1 + $0x48] sm:$0xff]  }
  0x13   :  { %v1239_v1 = vld [vmem:[%s1613_s1 + $0xc0] sm:$0xff]   ;;  %1093 = vmatprep.subr.bf16.mxu0 %v1238_v0  ;;  %v1243_v5 = vld [vmem:[%s1613_s1 + $0xc8] sm:$0xff]   ;;  %v1246_v8 = vld [vmem:[%s1613_s1 + $0x50] sm:$0xff]  }
  0x14   :  { %v1240_v2 = vld [vmem:[%s1613_s1] sm:$0xff]   ;;  %1121 = vmatprep.subr.bf16.mxu1 %v1239_v1  ;;  %v1244_v6 = vld [vmem:[%s1613_s1 + $0x8] sm:$0xff]   ;;  %v1247_v9 = vld [vmem:[%s1613_s1 + $0xd0] sm:$0xff]  }
  0x15   :  { %v1241_v3 = vld [vmem:[%s1613_s1 + $0x80] sm:$0xff]   ;;  %1094 = vmatpush3.bf16.msra.mxu0 %v1240_v2  ;;  %v1245_v7 = vld [vmem:[%s1613_s1 + $0x88] sm:$0xff]   ;;  %v1248_v10 = vld [vmem:[%s1613_s1 + $0x10] sm:$0xff]  }
  0x16   :  { %1122 = vmatpush3.bf16.msra.mxu1 %v1241_v3  ;;  %1095 = vmatprep.subr.bf16.mxu0 %v1242_v4  ;;  %v1249_v11 = vld [vmem:[%s1613_s1 + $0x90] sm:$0xff]   ;;  %v1250_v12 = vld [vmem:[%s1613_s1 + $0x58] sm:$0xff]   ;;  %v1254_v16 = vld [vmem:[%s1613_s1 + $0x60] sm:$0xff]  }
  0x17   :  { %1123 = vmatprep.subr.bf16.mxu1 %v1243_v5  ;;  %v1251_v13 = vld [vmem:[%s1613_s1 + $0xd8] sm:$0xff]   ;;  %v1255_v17 = vld [vmem:[%s1613_s1 + $0xe0] sm:$0xff]   ;;  %v1258_v20 = vld [vmem:[%s1613_s1 + $0x68] sm:$0xff]  }
  0x18   :  { %v1252_v14 = vld [vmem:[%s1613_s1 + $0x18] sm:$0xff]   ;;  %v1256_v18 = vld [vmem:[%s1613_s1 + $0x20] sm:$0xff]   ;;  %v1259_v21 = vld [vmem:[%s1613_s1 + $0xe8] sm:$0xff]  }
  0x19   :  { %1096 = vmatpush3.bf16.msra.mxu0 %v1244_v6  ;;  %v1253_v15 = vld [vmem:[%s1613_s1 + $0x98] sm:$0xff]   ;;  %v1257_v19 = vld [vmem:[%s1613_s1 + $0xa0] sm:$0xff]   ;;  %v1260_v22 = vld [vmem:[%s1613_s1 + $0x28] sm:$0xff]  }
  0x1a   :  { %1124 = vmatpush3.bf16.msra.mxu1 %v1245_v7  ;;  %1097 = vmatprep.subr.bf16.mxu0 %v1246_v8  ;;  %v1261_v23 = vld [vmem:[%s1613_s1 + $0xa8] sm:$0xff]   ;;  %v1262_v24 = vld [vmem:[%s1613_s1 + $0x70] sm:$0xff]   ;;  %v1266_v28 = vld [vmem:[%s1613_s1 + $0x78] sm:$0xff]  }
  0x1b   :  { %1125 = vmatprep.subr.bf16.mxu1 %v1247_v9  ;;  %v1263_v25 = vld [vmem:[%s1613_s1 + $0xf0] sm:$0xff]   ;;  %v1267_v29 = vld [vmem:[%s1613_s1 + $0xf8] sm:$0xff]   ;;  %v1270_v32 = vld [vmem:[#allocation2] ss:$36 sps:$4 sm:$0xff]  }
  0x1c   :  { %v1264_v26 = vld [vmem:[%s1613_s1 + $0x30] sm:$0xff]   ;;  %v1268_v30 = vld [vmem:[%s1613_s1 + $0x38] sm:$0xff]   ;;  %v1272_v33 = vld [vmem:[#allocation2 + $0x4] ss:$36 sps:$4 sm:$0xff]  }
  0x1d   :  { %1098 = vmatpush3.bf16.msra.mxu0 %v1248_v10  ;;  %v1265_v27 = vld [vmem:[%s1613_s1 + $0xb0] sm:$0xff]   ;;  %v1269_v31 = vld [vmem:[%s1613_s1 + $0xb8] sm:$0xff]   ;;  %v1273_v34 = vld [vmem:[#allocation2 + $0x8] ss:$36 sps:$4 sm:$0xff]   ;;  %746 = vmatprep.mubr.bf16.mxu0 %v1272_v33 }
  0x1e   :  { %1126 = vmatpush3.bf16.msra.mxu1 %v1249_v11  ;;  %1099 = vmatprep.subr.bf16.mxu0 %v1250_v12  ;;  %v1275_v35 = vld [vmem:[#allocation2 + $0xc] ss:$36 sps:$4 sm:$0xff]   ;;  %v1276_v36 = vld [vmem:[%s1613_s1 + $0x140] sm:$0xff]   ;;  %v1288_v48 = vld [vmem:[%s1613_s1 + $0x158] sm:$0xff]  }
  0x1f   :  { %1127 = vmatprep.subr.bf16.mxu1 %v1251_v13  ;;  %795 = vmatprep.mubr.bf16.mxu1 %v1275_v35  ;;  %v1277_v37 = vld [vmem:[%s1613_s1 + $0x100] sm:$0xff]   ;;  %v1280_v40 = vld [vmem:[%s1613_s1 + $0x148] sm:$0xff]   ;;  %v1284_v44 = vld [vmem:[%s1613_s1 + $0x150] sm:$0xff]  }
  0x20   :  { %v1278_v38 = vld [vmem:[%s1613_s1 + $0x1c0] sm:$0xff]   ;;  %v1281_v41 = vld [vmem:[%s1613_s1 + $0x108] sm:$0xff]   ;;  %v1285_v45 = vld [vmem:[%s1613_s1 + $0x110] sm:$0xff]  }
  0x21   :  { %1100 = vmatpush3.bf16.msra.mxu0 %v1252_v14  ;;  %v1279_v39 = vld [vmem:[%s1613_s1 + $0x180] sm:$0xff]   ;;  %v1282_v42 = vld [vmem:[%s1613_s1 + $0x1c8] sm:$0xff]   ;;  %v1286_v46 = vld [vmem:[%s1613_s1 + $0x1d0] sm:$0xff]  }
  0x22   :  { %1128 = vmatpush3.bf16.msra.mxu1 %v1253_v15  ;;  %1101 = vmatprep.subr.bf16.mxu0 %v1254_v16  ;;  %v1283_v43 = vld [vmem:[%s1613_s1 + $0x188] sm:$0xff]   ;;  %v1287_v47 = vld [vmem:[%s1613_s1 + $0x190] sm:$0xff]   ;;  %v1289_v49 = vld [vmem:[%s1613_s1 + $0x118] sm:$0xff]  }
  0x23   :  { %1129 = vmatprep.subr.bf16.mxu1 %v1255_v17  ;;  %v1290_v50 = vld [vmem:[%s1613_s1 + $0x1d8] sm:$0xff]   ;;  %v1292_v52 = vld [vmem:[%s1613_s1 + $0x160] sm:$0xff]   ;;  %v1296_v56 = vld [vmem:[%s1613_s1 + $0x168] sm:$0xff]  }
  0x24   :  { %v1291_v51 = vld [vmem:[%s1613_s1 + $0x198] sm:$0xff]   ;;  %v1293_v53 = vld [vmem:[%s1613_s1 + $0x120] sm:$0xff]   ;;  %v1297_v57 = vld [vmem:[#allocation2 + $0x4c] ss:$36 sps:$4 sm:$0xff]  }
  0x25   :  { %1102 = vmatpush3.bf16.msra.mxu0 %v1256_v18  ;;  %v1294_v54 = vld [vmem:[%s1613_s1 + $0x1e0] sm:$0xff]   ;;  %v1299_v58 = vld [vmem:[#allocation2 + $0x54] ss:$36 sps:$4 sm:$0xff]   ;;  %v1301_v59 = vld [vmem:[%s1613_s1 + $0x128] sm:$0xff]  }
  0x26   :  { %1130 = vmatpush3.bf16.msra.mxu1 %v1257_v19  ;;  %1103 = vmatprep.subr.bf16.mxu0 %v1258_v20  ;;  %v1295_v55 = vld [vmem:[%s1613_s1 + $0x1a0] sm:$0xff]   ;;  %v1302_v60 = vld [vmem:[#allocation2 + $0x48] ss:$36 sps:$4 sm:$0xff]   ;;  %v1303_v61 = vld [vmem:[#allocation2 + $0x50] ss:$36 sps:$4 sm:$0xff]  }
  0x27   :  { %1131 = vmatprep.subr.bf16.mxu1 %v1259_v21  ;;  %v1304_v62 = vld [vmem:[%s1613_s1 + $0x1e8] sm:$0xff]   ;;  %v1306_v0 = vld [vmem:[%s1613_s1 + $0x170] sm:$0xff]   ;;  %v1310_v4 = vld [vmem:[%s1613_s1 + $0x178] sm:$0xff]  }
  0x28   :  { %v1305_v63 = vld [vmem:[%s1613_s1 + $0x1a8] sm:$0xff]   ;;  %v1307_v1 = vld [vmem:[%s1613_s1 + $0x130] sm:$0xff]   ;;  %v1311_v5 = vld [vmem:[%s1613_s1 + $0x138] sm:$0xff]  }
  0x29   :  { %1104 = vmatpush3.bf16.msra.mxu0 %v1260_v22  ;;  %v1308_v2 = vld [vmem:[%s1613_s1 + $0x1f0] sm:$0xff]   ;;  %v1312_v6 = vld [vmem:[%s1613_s1 + $0x1f8] sm:$0xff]   ;;  %v1317_v10 = vld [vmem:[%s1613_s1 + $0x200] sm:$0xff]  }
  0x2a   :  { %1132 = vmatpush3.bf16.msra.mxu1 %v1261_v23  ;;  %1105 = vmatprep.subr.bf16.mxu0 %v1262_v24  ;;  %v1309_v3 = vld [vmem:[%s1613_s1 + $0x1b0] sm:$0xff]   ;;  %v1316_v9 = vld [vmem:[%s1613_s1 + $0x1b8] sm:$0xff]   ;;  %v1321_v13 = vld [vmem:[%s1613_s1 + $0x208] sm:$0xff]  }
  0x2b   :  { %1133 = vmatprep.subr.bf16.mxu1 %v1263_v25  ;;  %v1313_v7 = vld [vmem:[#allocation2 + $0x10] ss:$36 sps:$4 sm:$0xff]   ;;  %v1318_v11 = vld [vmem:[#allocation2 + $0x18] ss:$36 sps:$4 sm:$0xff]   ;;  %v1326_v17 = vld [vmem:[#allocation2 + $0x64] ss:$36 sps:$4 sm:$0xff]  }
  0x2c   :  { %v1315_v8 = vld [vmem:[#allocation2 + $0x14] ss:$36 sps:$4 sm:$0xff]   ;;  %v1320_v12 = vld [vmem:[#allocation2 + $0x1c] ss:$36 sps:$4 sm:$0xff]   ;;  %v1331_v22 = vld [vmem:[%s1613_s1 + $0x228] sm:$0xff]  }
  0x2d   :  { %1106 = vmatpush3.bf16.msra.mxu0 %v1264_v26  ;;  %v1322_v14 = vld [vmem:[#allocation2 + $0x5c] ss:$36 sps:$4 sm:$0xff]   ;;  %v1325_v16 = vld [vmem:[%s1613_s1 + $0x210] sm:$0xff]   ;;  %v1335_v25 = vld [vmem:[#allocation2 + $0x68] ss:$36 sps:$4 sm:$0xff]  }
  0x2e   :  { %1134 = vmatpush3.bf16.msra.mxu1 %v1265_v27  ;;  %1107 = vmatprep.subr.bf16.mxu0 %v1266_v28  ;;  %v1324_v15 = vld [vmem:[#allocation2 + $0x58] ss:$36 sps:$4 sm:$0xff]   ;;  %v1328_v18 = vld [vmem:[#allocation2 + $0x60] ss:$36 sps:$4 sm:$0xff]   ;;  %v1332_v23 = vld [vmem:[%s1613_s1 + $0x230] sm:$0xff]  }
  0x2f   :  { %1135 = vmatprep.subr.bf16.mxu1 %v1267_v29  ;;  %v1329_v19 = vld [vmem:[%s1613_s1 + $0x218] sm:$0xff]   ;;  %v1330_v20 = vld [vmem:[%s1613_s1 + $0x220] sm:$0xff]  }
  0x30   :  { %v1334_v21 = vld [vmem:[#allocation2 + $0x20] ss:$36 sps:$4 sm:$0xff]   ;;  %v1333_v24 = vld [vmem:[%s1613_s1 + $0x238] sm:$0xff]  }
  0x31   :  { %1108 = vmatpush3.bf16.msra.mxu0 %v1268_v30 }
  0x32   :  { %1136 = vmatpush3.bf16.msra.mxu1 %v1269_v31  ;;  %1149 = vmatprep.subr.bf16.mxu0 %v1276_v36 }
  0x33   :  { %1177 = vmatprep.subr.bf16.mxu1 %v1278_v38 }
  0x34   :  { %747 = vmatmul.mubr.bf16.vlgmr.msra.gmra.mrb[0].mxu0 %v1270_v32 }
  0x35   :  { %796 = vmatmul.mubr.bf16.vlgmr.msra.gmra.mrb[0].mxu1 %v1273_v34  ;;  %1150 = vmatpush3.bf16.msra.mxu0 %v1277_v37 }
  0x36   :  { %1178 = vmatpush3.bf16.msra.mxu1 %v1279_v39  ;;  %1151 = vmatprep.subr.bf16.mxu0 %v1280_v40 }
  0x37   :  { %1179 = vmatprep.subr.bf16.mxu1 %v1282_v42  ;;  %754 = vmatprep.mubr.bf16.mxu0 %v1297_v57 }
  0x38   :  { %803 = vmatprep.mubr.bf16.mxu1 %v1299_v58 }
  0x39   :  { %1152 = vmatpush3.bf16.msra.mxu0 %v1281_v41 }
  0x3a   :  { %1180 = vmatpush3.bf16.msra.mxu1 %v1283_v43  ;;  %1153 = vmatprep.subr.bf16.mxu0 %v1284_v44 }
  0x3b   :  { %1181 = vmatprep.subr.bf16.mxu1 %v1286_v46 }
  0x3c   :  { %755 = vmatmul.mubr.bf16.gmra.mrb[4].mxu0 %v1302_v60 }
  0x3d   :  { %1154 = vmatpush3.bf16.msra.mxu0 %v1285_v45  ;;  %804 = vmatmul.mubr.bf16.gmra.mrb[4].mxu1 %v1303_v61 }
  0x3e   :  { %1182 = vmatpush3.bf16.msra.mxu1 %v1287_v47  ;;  %1155 = vmatprep.subr.bf16.mxu0 %v1288_v48 }
  0x3f   :  { %1183 = vmatprep.subr.bf16.mxu1 %v1290_v50  ;;  %844 = vmatprep.mubr.bf16.mxu0 %v1315_v8 }
  0x40   :  { %893 = vmatprep.mubr.bf16.mxu1 %v1320_v12 }
  0x41   :  { %1156 = vmatpush3.bf16.msra.mxu0 %v1289_v49 }
  0x42   :  { %1184 = vmatpush3.bf16.msra.mxu1 %v1291_v51  ;;  %1157 = vmatprep.subr.bf16.mxu0 %v1292_v52 }
  0x43   :  { %1185 = vmatprep.subr.bf16.mxu1 %v1294_v54 }
  0x45   :  { %1158 = vmatpush3.bf16.msra.mxu0 %v1293_v53 }
  0x46   :  { %1186 = vmatpush3.bf16.msra.mxu1 %v1295_v55  ;;  %1159 = vmatprep.subr.bf16.mxu0 %v1296_v56 }
  0x47   :  { %1187 = vmatprep.subr.bf16.mxu1 %v1304_v62 }
  0x49   :  { %1160 = vmatpush3.bf16.msra.mxu0 %v1301_v59 }
  0x4a   :  { %1188 = vmatpush3.bf16.msra.mxu1 %v1305_v63  ;;  %1161 = vmatprep.subr.bf16.mxu0 %v1306_v0 }
  0x4b   :  { %1189 = vmatprep.subr.bf16.mxu1 %v1308_v2 }
  0x4d   :  { %1162 = vmatpush3.bf16.msra.mxu0 %v1307_v1 }
  0x4e   :  { %1190 = vmatpush3.bf16.msra.mxu1 %v1309_v3  ;;  %1163 = vmatprep.subr.bf16.mxu0 %v1310_v4 }
  0x4f   :  { %1191 = vmatprep.subr.bf16.mxu1 %v1312_v6 }
  0x51   :  { %1164 = vmatpush3.bf16.msra.mxu0 %v1311_v5 }
  0x52   :  { %1192 = vmatpush3.bf16.msra.mxu1 %v1316_v9  ;;  %1215 = vmatprep.subr.bf16.mxu0 %v1317_v10 }
  0x54   :  { %845 = vmatmul.mubr.bf16.vlgmr.msra.gmra.mrb[8].mxu0 %v1313_v7 }
  0x55   :  { %1216 = vmatpush3.bf16.msra.mxu0 %v1317_v10  ;;  %894 = vmatmul.mubr.bf16.vlgmr.msra.gmra.mrb[8].mxu1 %v1318_v11 }
  0x56   :  { %1217 = vmatprep.subr.bf16.mxu0 %v1321_v13  ;;  %852 = vmatprep.mubr.bf16.mxu0 %v1322_v14 }
  0x57   :  { %901 = vmatprep.mubr.bf16.mxu1 %v1326_v17 }
  0x59   :  { %1218 = vmatpush3.bf16.msra.mxu0 %v1321_v13 }
  0x5a   :  { %1219 = vmatprep.subr.bf16.mxu0 %v1325_v16 }
  0x5c   :  { %853 = vmatmul.mubr.bf16.gmra.mrb[12].mxu0 %v1324_v15 }
  0x5d   :  { %1220 = vmatpush3.bf16.msra.mxu0 %v1325_v16  ;;  %902 = vmatmul.mubr.bf16.gmra.mrb[12].mxu1 %v1328_v18 }
  0x5e   :  { %1221 = vmatprep.subr.bf16.mxu0 %v1329_v19  ;;  %1231 = vmatprep.mubr.bf16.mxu0 %v1334_v21 }
  0x61   :  { %1222 = vmatpush3.bf16.msra.mxu0 %v1329_v19 }
  0x62   :  { %1223 = vmatprep.subr.bf16.mxu0 %v1330_v20 }
  0x65   :  { %1224 = vmatpush3.bf16.msra.mxu0 %v1330_v20 }
  0x66   :  { %1225 = vmatprep.subr.bf16.mxu0 %v1331_v22 }
  0x69   :  { %1226 = vmatpush3.bf16.msra.mxu0 %v1331_v22 }
  0x6a   :  { %1227 = vmatprep.subr.bf16.mxu0 %v1332_v23 }
  0x6d   :  { %1228 = vmatpush3.bf16.msra.mxu0 %v1332_v23 }
  0x6e   :  { %1229 = vmatprep.subr.bf16.mxu0 %v1333_v24 }
  0x71   :  { %1230 = vmatpush3.bf16.msra.mxu0 %v1333_v24 }
  0x74   :  { %1232 = vmatmul.mubr.bf16.vlgmr.msra.gmra.mrb[16].mxu0 %v1335_v25 }
 0x107   :  { %v1109_v26 = vpop.f32.mrb[0].mxu0 }
 0x108   :  { %v1137_v27 = vpop.f32.mrb[0].mxu1  ;;  %v1110_v28 = vpop.f32.mrb[1].mxu0 }
 0x109   :  { %v1111_v29 = vadd.f32 %v1110_v28, %v1109_v26  ;;  %v1138_v30 = vpop.f32.mrb[1].mxu1  ;;  %v1112_v31 = vpop.f32.mrb[2].mxu0 }
 0x10a   :  { %v1139_v32 = vadd.f32 %v1138_v30, %v1137_v27  ;;  %v1140_v33 = vpop.f32.mrb[2].mxu1  ;;  %v1113_v34 = vpop.f32.mrb[3].mxu0 }
 0x10b   :  { %v1114_v35 = vadd.f32 %v1113_v34, %v1112_v31  ;;  %v1141_v36 = vpop.f32.mrb[3].mxu1 }
 0x10c   :  { %v798_v37 = vadd.f32 %v1139_v32, %v1111_v29  ;;  %v1142_v38 = vadd.f32 %v1141_v36, %v1140_v33 }
 0x10e   :  { %v801_v39 = vadd.f32 %v1142_v38, %v1114_v35 }
 0x10f   :  { %v1115_v40 = vpop.f32.mrb[4].mxu0 }
 0x110   :  { %v1143_v41 = vpop.f32.mrb[4].mxu1  ;;  %v1116_v42 = vpop.f32.mrb[5].mxu0 }
 0x111   :  { %v1144_v43 = vpop.f32.mrb[5].mxu1  ;;  %v1117_v44 = vadd.f32 %v1116_v42, %v1115_v40  ;;  %v1118_v46 = vpop.f32.mrb[6].mxu0 }
 0x112   :  { %v1145_v45 = vadd.f32 %v1144_v43, %v1143_v41  ;;  %v1146_v47 = vpop.f32.mrb[6].mxu1  ;;  %v1119_v48 = vpop.f32.mrb[7].mxu0 }
 0x113   :  { %v1147_v49 = vpop.f32.mrb[7].mxu1  ;;  %v1120_v51 = vadd.f32 %v1119_v48, %v1118_v46 }
 0x114   :  { %v806_v50 = vadd.f32 %v1145_v45, %v1117_v44  ;;  %v1148_v52 = vadd.f32 %v1147_v49, %v1146_v47 }
 0x116   :  { %v809_v53 = vadd.f32 %v1148_v52, %v1120_v51 }
 0x127   :  { %v1165_v54 = vpop.f32.mrb[8].mxu0 }
 0x128   :  { %v1166_v55 = vpop.f32.mrb[9].mxu0  ;;  %v1193_v58 = vpop.f32.mrb[8].mxu1 }
 0x129   :  { %v1167_v56 = vadd.f32 %v1166_v55, %v1165_v54  ;;  %v1168_v57 = vpop.f32.mrb[10].mxu0  ;;  %v1194_v62 = vpop.f32.mrb[9].mxu1 }
 0x12a   :  { %v1169_v59 = vpop.f32.mrb[11].mxu0  ;;  %v1195_v63 = vadd.f32 %v1194_v62, %v1193_v58  ;;  %v1196_v0 = vpop.f32.mrb[10].mxu1 }
 0x12b   :  { %v847_v60 = vadd.f32 %v1167_v56, %v798_v37  ;;  %v1170_v61 = vadd.f32 %v1169_v59, %v1168_v57  ;;  %v1197_v2 = vpop.f32.mrb[11].mxu1 }
 0x12c   :  { %v1198_v3 = vadd.f32 %v1197_v2, %v1196_v0 }
 0x12d   :  { %v850_v1 = vadd.f32 %v1170_v61, %v801_v39  ;;  %v896_v4 = vadd.f32 %v1195_v63, %v847_v60 }
 0x12f   :  { %v1171_v5 = vpop.f32.mrb[12].mxu0  ;;  %v899_v7 = vadd.f32 %v1198_v3, %v850_v1 }
 0x130   :  { %v1172_v6 = vpop.f32.mrb[13].mxu0  ;;  %v1199_v10 = vpop.f32.mrb[12].mxu1 }
 0x131   :  { %v1173_v8 = vadd.f32 %v1172_v6, %v1171_v5  ;;  %v1174_v9 = vpop.f32.mrb[14].mxu0  ;;  %v1200_v14 = vpop.f32.mrb[13].mxu1 }
 0x132   :  { %v1175_v11 = vpop.f32.mrb[15].mxu0  ;;  %v1201_v15 = vadd.f32 %v1200_v14, %v1199_v10  ;;  %v1202_v16 = vpop.f32.mrb[14].mxu1 }
 0x133   :  { %v855_v12 = vadd.f32 %v1173_v8, %v806_v50  ;;  %v1176_v13 = vadd.f32 %v1175_v11, %v1174_v9  ;;  %v1203_v18 = vpop.f32.mrb[15].mxu1 }
 0x134   :  { %v1204_v19 = vadd.f32 %v1203_v18, %v1202_v16 }
 0x135   :  { %v858_v17 = vadd.f32 %v1176_v13, %v809_v53  ;;  %v904_v20 = vadd.f32 %v1201_v15, %v855_v12 }
 0x137   :  { %v907_v21 = vadd.f32 %v1204_v19, %v858_v17 }
 0x147   :  { %v1233_v22 = vpop.f32.mrb[16].mxu0 }
 0x148   :  { %v953_v23 = vadd.f32 %v1233_v22, %v904_v20  ;;  %v944_v24 = vpop.f32.mrb[17].mxu0 }
 0x149   :  { %v945_v25 = vadd.f32 %v944_v24, %v896_v4  ;;  %v1234_v26 = vpop.f32.mrb[18].mxu0 }
 0x14a   :  { %v956_v27 = vadd.f32 %v1234_v26, %v907_v21  ;;  %v947_v28 = vpop.f32.mrb[19].mxu0 }
 0x14b   :  { %v948_v29 = vadd.f32 %v947_v28, %v899_v7 }
 0x14c   :  { %v1090_v30 = vpack.c.bf16 %v956_v27, %v953_v23 }
 0x14d   :  { %v1085_v31 = vpack.c.bf16 %v948_v29, %v945_v25 }
 0x14e   :  { %1092 = vst [vmem:[%s1614_s2 + $0x8] sm:$0xff] %v1090_v30  }
 0x14f   :  { %1086 = vst [vmem:[%s1614_s2] sm:$0xff] %v1085_v31  }
 0x150   :  { %983 = vsyncpa [#allocation3], 1 }

// kernel: densenet121_forward.188
= control target key start
LH: loop header
LB: loop body
LE: loop exit
PB: predicated region body
PF: predicated region fallthrough
CT: control target
= control target key end

     0   :  { %v43_v37 = vlaneseq  ;;  %s1154_s3 = inlined_call_operand.vmem [shape: bf16[512,256], index: 3, kind: input, shape index: {}]   ;;  %s1155_s0 = inlined_call_operand.vmem [shape: bf16[32,512], index: 0, kind: input, shape index: {}]   ;;  %s1156_s1 = inlined_call_operand.vmem [shape: f32[1,512], index: 1, kind: input, shape index: {}]   ;;  %s1157_s2 = inlined_call_operand.vmem [shape: f32[1,512], index: 2, kind: input, shape index: {}]   ;;  %s1158_s4 = inlined_call_operand.vmem [shape: bf16[32,256], index: 4, kind: output, shape index: {}]  }
   0x1   :  { %v743_v0 = vld [vmem:[%s1154_s3 + $0x4] ss:$8 sps:$4 sm:$0xff]   ;;  %v747_v2 = vld [vmem:[%s1154_s3] ss:$8 sps:$4 sm:$0xff]   ;;  %v749_v4 = vld [vmem:[%s1154_s3 + $0x14] ss:$8 sps:$4 sm:$0xff]  }
   0x2   :  { %v745_v1 = vld [vmem:[%s1154_s3 + $0x104] ss:$8 sps:$4 sm:$0xff]   ;;  %525 = vmatprep.subr.bf16.mxu1 %v743_v0  ;;  %v748_v3 = vld [vmem:[%s1154_s3 + $0x100] ss:$8 sps:$4 sm:$0xff]   ;;  %v751_v5 = vld [vmem:[%s1154_s3 + $0x114] ss:$8 sps:$4 sm:$0xff]  }
   0x3   :  { %578 = vmatprep.subr.bf16.mxu0 %v745_v1  ;;  %526 = vmatpush1.bf16.msra.mxu1 %v747_v2  ;;  %v753_v6 = vld [vmem:[%s1154_s3 + $0x10] ss:$8 sps:$4 sm:$0xff]   ;;  %v755_v8 = vld [vmem:[%s1154_s3 + $0x24] ss:$8 sps:$4 sm:$0xff]   ;;  %v759_v10 = vld [vmem:[%s1154_s3 + $0x20] ss:$8 sps:$4 sm:$0xff]  }
   0x4   :  { %579 = vmatpush1.bf16.msra.mxu0 %v748_v3  ;;  %527 = vmatprep.subr.bf16.mxu1 %v749_v4  ;;  %v754_v7 = vld [vmem:[%s1154_s3 + $0x110] ss:$8 sps:$4 sm:$0xff]   ;;  %v757_v9 = vld [vmem:[%s1154_s3 + $0x124] ss:$8 sps:$4 sm:$0xff]   ;;  %v760_v11 = vld [vmem:[%s1154_s3 + $0x120] ss:$8 sps:$4 sm:$0xff]  }
   0x5   :  { %580 = vmatprep.subr.bf16.mxu0 %v751_v5  ;;  %v761_v12 = vld [vmem:[%s1154_s3 + $0x34] ss:$8 sps:$4 sm:$0xff]   ;;  %v765_v14 = vld [vmem:[%s1154_s3 + $0x30] ss:$8 sps:$4 sm:$0xff]   ;;  %v767_v16 = vld [vmem:[%s1154_s3 + $0x44] ss:$8 sps:$4 sm:$0xff]  }
   0x6   :  { %v763_v13 = vld [vmem:[%s1154_s3 + $0x134] ss:$8 sps:$4 sm:$0xff]   ;;  %v766_v15 = vld [vmem:[%s1154_s3 + $0x130] ss:$8 sps:$4 sm:$0xff]   ;;  %v769_v17 = vld [vmem:[%s1154_s3 + $0x144] ss:$8 sps:$4 sm:$0xff]  }
   0x7   :  { %528 = vmatpush1.bf16.msra.mxu1 %v753_v6  ;;  %v771_v18 = vld [vmem:[%s1154_s3 + $0x40] ss:$8 sps:$4 sm:$0xff]   ;;  %v773_v20 = vld [vmem:[%s1154_s3 + $0x54] ss:$8 sps:$4 sm:$0xff]   ;;  %v777_v22 = vld [vmem:[%s1154_s3 + $0x50] ss:$8 sps:$4 sm:$0xff]  }
   0x8   :  { %581 = vmatpush1.bf16.msra.mxu0 %v754_v7  ;;  %529 = vmatprep.subr.bf16.mxu1 %v755_v8  ;;  %v772_v19 = vld [vmem:[%s1154_s3 + $0x140] ss:$8 sps:$4 sm:$0xff]   ;;  %v775_v21 = vld [vmem:[%s1154_s3 + $0x154] ss:$8 sps:$4 sm:$0xff]   ;;  %v778_v23 = vld [vmem:[%s1154_s3 + $0x150] ss:$8 sps:$4 sm:$0xff]  }
   0x9   :  { %582 = vmatprep.subr.bf16.mxu0 %v757_v9  ;;  %v779_v24 = vld [vmem:[%s1154_s3 + $0x64] ss:$8 sps:$4 sm:$0xff]   ;;  %v783_v26 = vld [vmem:[%s1154_s3 + $0x60] ss:$8 sps:$4 sm:$0xff]   ;;  %v785_v28 = vld [vmem:[%s1154_s3 + $0x74] ss:$8 sps:$4 sm:$0xff]  }
   0xa   :  { %v781_v25 = vld [vmem:[%s1154_s3 + $0x164] ss:$8 sps:$4 sm:$0xff]   ;;  %v784_v27 = vld [vmem:[%s1154_s3 + $0x160] ss:$8 sps:$4 sm:$0xff]   ;;  %v787_v29 = vld [vmem:[%s1154_s3 + $0x174] ss:$8 sps:$4 sm:$0xff]  }
   0xb   :  { %530 = vmatpush1.bf16.msra.mxu1 %v759_v10  ;;  %v789_v30 = vld [vmem:[%s1154_s3 + $0x70] ss:$8 sps:$4 sm:$0xff]   ;;  %v791_v32 = vld [vmem:[%s1154_s3 + $0x84] ss:$8 sps:$4 sm:$0xff]   ;;  %v795_v34 = vld [vmem:[%s1154_s3 + $0x80] ss:$8 sps:$4 sm:$0xff]  }
   0xc   :  { %583 = vmatpush1.bf16.msra.mxu0 %v760_v11  ;;  %531 = vmatprep.subr.bf16.mxu1 %v761_v12  ;;  %v790_v31 = vld [vmem:[%s1154_s3 + $0x170] ss:$8 sps:$4 sm:$0xff]   ;;  %v793_v33 = vld [vmem:[%s1154_s3 + $0x184] ss:$8 sps:$4 sm:$0xff]   ;;  %v796_v35 = vld [vmem:[%s1154_s3 + $0x180] ss:$8 sps:$4 sm:$0xff]  }
   0xd   :  { %584 = vmatprep.subr.bf16.mxu0 %v763_v13  ;;  %v797_v36 = vld [vmem:[%s1154_s3 + $0x94] ss:$8 sps:$4 sm:$0xff]   ;;  %v801_v39 = vld [vmem:[%s1154_s3 + $0x90] ss:$8 sps:$4 sm:$0xff]   ;;  %v803_v41 = vld [vmem:[%s1154_s3 + $0xa4] ss:$8 sps:$4 sm:$0xff]  }
   0xe   :  { %v799_v38 = vld [vmem:[%s1154_s3 + $0x194] ss:$8 sps:$4 sm:$0xff]   ;;  %v802_v40 = vld [vmem:[%s1154_s3 + $0x190] ss:$8 sps:$4 sm:$0xff]   ;;  %v44_v42 = vshrl.u32 %v43_v37, 7  ;;  %v17_v50 = vld [vmem:[%s1155_s0] sm:$0xff] }
   0xf   :  { %532 = vmatpush1.bf16.msra.mxu1 %v765_v14  ;;  %v805_v43 = vld [vmem:[%s1154_s3 + $0x1a4] ss:$8 sps:$4 sm:$0xff]   ;;  %v807_v44 = vld [vmem:[%s1154_s3 + $0xa0] ss:$8 sps:$4 sm:$0xff]   ;;  %v809_v46 = vld [vmem:[%s1154_s3 + $0xb4] ss:$8 sps:$4 sm:$0xff]   ;;  %v25_v54 = vunpack.c.l.bf16 %v17_v50  ;;  %v26_v55 = vunpack.c.h.bf16 %v17_v50 }
  0x10   :  { %585 = vmatpush1.bf16.msra.mxu0 %v766_v15  ;;  %533 = vmatprep.subr.bf16.mxu1 %v767_v16  ;;  %v808_v45 = vld [vmem:[%s1154_s3 + $0x1a0] ss:$8 sps:$4 sm:$0xff]   ;;  %v49_v47 = vsub.s32 1, %v44_v42  ;;  %v811_v48 = vld [vmem:[%s1154_s3 + $0x1b4] ss:$8 sps:$4 sm:$0xff]   ;;  %v57_v51 = vsub.s32 3, %v44_v42 }
  0x11   :  { %586 = vmatprep.subr.bf16.mxu0 %v769_v17  ;;  %v813_v49 = vld [vmem:[%s1154_s3 + $0xb0] ss:$8 sps:$4 sm:$0xff]   ;;  %v45_v52 = vsub.s32 0, %v44_v42  ;;  %v41_v56 = vld [vmem:[%s1156_s1] sm:$0xf]  ;;  %v53_v58 = vsub.s32 2, %v44_v42 }
  0x12   :  { %v19_v53 = vld [vmem:[%s1155_s0 + $0x10] sm:$0xff]  ;;  %v79_v57 = vld [vmem:[%s1157_s2] sm:$0xf]  ;;  %v1020_v62 = vrot.slane %v41_v56, %v49_v47  ;;  %v18_v0 = vld [vmem:[%s1155_s0 + $0x8] sm:$0xff]  ;;  %v1043_v11 = vrot.slane %v41_v56, %v57_v51 }
  0x13   :  { %534 = vmatpush1.bf16.msra.mxu1 %v771_v18  ;;  %v814_v59 = vld [vmem:[%s1154_s3 + $0x1b0] ss:$8 sps:$4 sm:$0xff]   ;;  %v29_v60 = vunpack.c.l.bf16 %v19_v53  ;;  %v30_v61 = vunpack.c.h.bf16 %v19_v53  ;;  %v1022_v63 = vrot.slane %v79_v57, %v49_v47  ;;  %v815_v2 = vld [vmem:[%s1154_s3 + $0xc4] ss:$8 sps:$4 sm:$0xff]   ;;  %v27_v4 = vunpack.c.l.bf16 %v18_v0  ;;  %v819_v18 = vld [vmem:[%s1154_s3 + $0xc0] ss:$8 sps:$4 sm:$0xff]  }
  0x14   :  { %587 = vmatpush1.bf16.msra.mxu0 %v772_v19  ;;  %535 = vmatprep.subr.bf16.mxu1 %v773_v20  ;;  %v20_v1 = vld [vmem:[%s1155_s0 + $0x18] sm:$0xff]  ;;  %v817_v3 = vld [vmem:[%s1154_s3 + $0x1c4] ss:$8 sps:$4 sm:$0xff]   ;;  %v28_v5 = vunpack.c.h.bf16 %v18_v0  ;;  %v64_v9 = vmul.f32 %v1020_v62, %v26_v55  ;;  %v1045_v12 = vrot.slane %v79_v57, %v57_v51  ;;  %v1050_v13 = vld [vmem:[%s1155_s0 + $0x30] sm:$0xff]  ;;  %v1052_v14 = vrot.slane %v41_v56, %v45_v52 }
  0x15   :  { %588 = vmatprep.subr.bf16.mxu0 %v775_v21  ;;  %v31_v6 = vunpack.c.l.bf16 %v20_v1  ;;  %v32_v7 = vunpack.c.h.bf16 %v20_v1  ;;  %v1039_v8 = vld [vmem:[%s1155_s0 + $0x20] sm:$0xff]  ;;  %v68_v10 = vmul.f32 %v1020_v62, %v30_v61  ;;  %v1054_v15 = vrot.slane %v79_v57, %v45_v52  ;;  %v22_v37 = vld [vmem:[%s1155_s0 + $0x28] sm:$0xff]  ;;  %v833_v61 = vld [vmem:[%s1154_s3 + $0xf4] ss:$8 sps:$4 sm:$0xff]  }
  0x16   :  { %v1056_v16 = vrot.slane %v41_v56, %v53_v58  ;;  %v1058_v17 = vrot.slane %v79_v57, %v53_v58  ;;  %v820_v19 = vld [vmem:[%s1154_s3 + $0x1c0] ss:$8 sps:$4 sm:$0xff]   ;;  %v102_v20 = vadd.f32 %v1022_v63, %v64_v9  ;;  %v36_v51 = vunpack.c.h.bf16 %v22_v37 }
  0x17   :  { %536 = vmatpush1.bf16.msra.mxu1 %v777_v22  ;;  %v106_v21 = vadd.f32 %v1022_v63, %v68_v10  ;;  %v66_v22 = vmul.f32 %v1043_v11, %v28_v5  ;;  %v831_v55 = vld [vmem:[%s1154_s3 + $0xe0] ss:$8 sps:$4 sm:$0xff]  }
  0x18   :  { %589 = vmatpush1.bf16.msra.mxu0 %v778_v23  ;;  %537 = vmatprep.subr.bf16.mxu1 %v779_v24  ;;  %v34_v23 = vunpack.c.h.bf16 %v1039_v8  ;;  %v821_v24 = vld [vmem:[%s1154_s3 + $0xd4] ss:$8 sps:$4 sm:$0xff]   ;;  %v832_v56 = vld [vmem:[%s1154_s3 + $0x1e0] ss:$8 sps:$4 sm:$0xff]  }
  0x19   :  { %590 = vmatprep.subr.bf16.mxu0 %v781_v25  ;;  %v823_v25 = vld [vmem:[%s1154_s3 + $0x1d4] ss:$8 sps:$4 sm:$0xff]  }
  0x1a   :  { %v72_v42 = vmul.f32 %v1020_v62, %v34_v23 }
  0x1b   :  { %538 = vmatpush1.bf16.msra.mxu1 %v783_v26  ;;  %v70_v26 = vmul.f32 %v1043_v11, %v32_v7  ;;  %v837_v7 = vld [vmem:[%s1154_s3 + $0xf0] ss:$8 sps:$4 sm:$0xff]  }
  0x1c   :  { %591 = vmatpush1.bf16.msra.mxu0 %v784_v27  ;;  %539 = vmatprep.subr.bf16.mxu1 %v785_v28  ;;  %v63_v27 = vmul.f32 %v1052_v14, %v25_v54  ;;  %v67_v28 = vmul.f32 %v1052_v14, %v29_v60  ;;  %v110_v57 = vadd.f32 %v1022_v63, %v72_v42  ;;  %v33_v60 = vunpack.c.l.bf16 %v1039_v8 }
  0x1d   :  { %592 = vmatprep.subr.bf16.mxu0 %v787_v29  ;;  %v38_v29 = vunpack.c.h.bf16 %v1050_v13 }
  0x1e   :  { %v105_v47 = vadd.f32 %v1054_v15, %v67_v28  ;;  %v71_v9 = vmul.f32 %v1052_v14, %v33_v60 }
  0x1f   :  { %540 = vmatpush1.bf16.msra.mxu1 %v789_v30  ;;  %v118_v30 = vmax.f32 %v102_v20, 0.0  ;;  %v76_v50 = vmul.f32 %v1020_v62, %v38_v29  ;;  %v835_v62 = vld [vmem:[%s1154_s3 + $0x1f4] ss:$8 sps:$4 sm:$0xff]  }
  0x20   :  { %593 = vmatpush1.bf16.msra.mxu0 %v790_v31  ;;  %541 = vmatprep.subr.bf16.mxu1 %v791_v32  ;;  %v122_v31 = vmax.f32 %v106_v21, 0.0  ;;  %v104_v32 = vadd.f32 %v1045_v12, %v66_v22  ;;  %v121_v0 = vmax.f32 %v105_v47, 0.0 }
  0x21   :  { %594 = vmatprep.subr.bf16.mxu0 %v793_v33  ;;  %v65_v33 = vmul.f32 %v1056_v16, %v27_v4  ;;  %v114_v58 = vadd.f32 %v1022_v63, %v76_v50  ;;  %v35_v63 = vunpack.c.l.bf16 %v22_v37 }
  0x23   :  { %542 = vmatpush1.bf16.msra.mxu1 %v795_v34  ;;  %v108_v34 = vadd.f32 %v1045_v12, %v70_v26 }
  0x24   :  { %595 = vmatpush1.bf16.msra.mxu0 %v796_v35  ;;  %543 = vmatprep.subr.bf16.mxu1 %v797_v36  ;;  %v101_v35 = vadd.f32 %v1054_v15, %v63_v27  ;;  %v69_v36 = vmul.f32 %v1056_v16, %v31_v6 }
  0x25   :  { %596 = vmatprep.subr.bf16.mxu0 %v799_v38  ;;  %v825_v38 = vld [vmem:[%s1154_s3 + $0xd0] ss:$8 sps:$4 sm:$0xff]  }
  0x26   :  { %v117_v53 = vmax.f32 %v101_v35, 0.0 }
  0x27   :  { %544 = vmatpush1.bf16.msra.mxu1 %v801_v39  ;;  %v826_v39 = vld [vmem:[%s1154_s3 + $0x1d0] ss:$8 sps:$4 sm:$0xff]  }
  0x28   :  { %597 = vmatpush1.bf16.msra.mxu0 %v802_v40  ;;  %545 = vmatprep.subr.bf16.mxu1 %v803_v41  ;;  %v134_v40 = vpack.c.bf16 %v122_v31, %v118_v30  ;;  %v120_v41 = vmax.f32 %v104_v32, 0.0  ;;  %v133_v22 = vpack.c.bf16 %v121_v0, %v117_v53 }
  0x29   :  { %598 = vmatprep.subr.bf16.mxu0 %v805_v43  ;;  %v24_v43 = vld [vmem:[%s1155_s0 + $0x38] sm:$0xff] }
  0x2a   :  { %557 = vmatprep.mubr.bf16.mxu1 %v134_v40  ;;  %v40_v54 = vunpack.c.h.bf16 %v24_v43  ;;  %v39_v6 = vunpack.c.l.bf16 %v24_v43 }
  0x2b   :  { %546 = vmatpush1.bf16.msra.mxu1 %v807_v44  ;;  %v827_v44 = vld [vmem:[%s1154_s3 + $0xe4] ss:$8 sps:$4 sm:$0xff]  }
  0x2c   :  { %599 = vmatpush1.bf16.msra.mxu0 %v808_v45  ;;  %547 = vmatprep.subr.bf16.mxu1 %v809_v46  ;;  %v829_v45 = vld [vmem:[%s1154_s3 + $0x1e4] ss:$8 sps:$4 sm:$0xff]   ;;  %v124_v46 = vmax.f32 %v108_v34, 0.0  ;;  %v78_v1 = vmul.f32 %v1043_v11, %v40_v54  ;;  %v77_v21 = vmul.f32 %v1056_v16, %v39_v6 }
  0x2d   :  { %600 = vmatprep.subr.bf16.mxu0 %v811_v48  ;;  %v103_v48 = vadd.f32 %v1058_v17, %v65_v33 }
  0x2e   :  { %v136_v52 = vpack.c.bf16 %v124_v46, %v120_v41  ;;  %v116_v8 = vadd.f32 %v1045_v12, %v78_v1  ;;  %v115_v26 = vadd.f32 %v1058_v17, %v77_v21 }
  0x2f   :  { %548 = vmatpush1.bf16.msra.mxu1 %v813_v49  ;;  %v107_v49 = vadd.f32 %v1058_v17, %v69_v36 }
  0x30   :  { %601 = vmatpush1.bf16.msra.mxu0 %v814_v59  ;;  %549 = vmatprep.subr.bf16.mxu1 %v815_v2  ;;  %v74_v59 = vmul.f32 %v1043_v11, %v36_v51  ;;  %v37_v2 = vunpack.c.l.bf16 %v1050_v13  ;;  %v73_v11 = vmul.f32 %v1056_v16, %v35_v63  ;;  %v838_v13 = vld [vmem:[%s1154_s3 + $0x1f0] ss:$8 sps:$4 sm:$0xff]   ;;  %v131_v31 = vmax.f32 %v115_v26, 0.0 }
  0x31   :  { %602 = vmatprep.subr.bf16.mxu0 %v817_v3  ;;  %610 = vmatprep.mubr.bf16.mxu0 %v136_v52  ;;  %v119_v3 = vmax.f32 %v103_v48, 0.0  ;;  %v123_v4 = vmax.f32 %v107_v49, 0.0 }
  0x32   :  { %v112_v5 = vadd.f32 %v1045_v12, %v74_v59  ;;  %v75_v10 = vmul.f32 %v1052_v14, %v37_v2  ;;  %v132_v12 = vmax.f32 %v116_v8, 0.0  ;;  %v109_v14 = vadd.f32 %v1054_v15, %v71_v9 }
  0x33   :  { %550 = vmatpush1.bf16.msra.mxu1 %v819_v18  ;;  %v126_v18 = vmax.f32 %v110_v57, 0.0  ;;  %v135_v23 = vpack.c.bf16 %v123_v4, %v119_v3 }
  0x34   :  { %603 = vmatpush1.bf16.msra.mxu0 %v820_v19  ;;  %551 = vmatprep.subr.bf16.mxu1 %v821_v24  ;;  %v130_v19 = vmax.f32 %v114_v58, 0.0  ;;  %v128_v20 = vmax.f32 %v112_v5, 0.0  ;;  %v113_v24 = vadd.f32 %v1054_v15, %v75_v10  ;;  %v125_v16 = vmax.f32 %v109_v14, 0.0 }
  0x35   :  { %604 = vmatprep.subr.bf16.mxu0 %v823_v25  ;;  %v111_v25 = vadd.f32 %v1058_v17, %v73_v11 }
  0x36   :  { %v138_v27 = vpack.c.bf16 %v130_v19, %v126_v18  ;;  %v140_v28 = vpack.c.bf16 %v132_v12, %v128_v20  ;;  %v129_v29 = vmax.f32 %v113_v24, 0.0 }
  0x37   :  { %552 = vmatpush1.bf16.msra.mxu1 %v825_v38  ;;  %v127_v30 = vmax.f32 %v111_v25, 0.0 }
  0x38   :  { %605 = vmatpush1.bf16.msra.mxu0 %v826_v39  ;;  %553 = vmatprep.subr.bf16.mxu1 %v827_v44  ;;  %v137_v32 = vpack.c.bf16 %v129_v29, %v125_v16 }
  0x39   :  { %606 = vmatprep.subr.bf16.mxu0 %v829_v45  ;;  %v139_v33 = vpack.c.bf16 %v131_v31, %v127_v30 }
  0x3b   :  { %554 = vmatpush1.bf16.msra.mxu1 %v831_v55 }
  0x3c   :  { %607 = vmatpush1.bf16.msra.mxu0 %v832_v56  ;;  %555 = vmatprep.subr.bf16.mxu1 %v833_v61 }
  0x3d   :  { %608 = vmatprep.subr.bf16.mxu0 %v835_v62 }
  0x3f   :  { %556 = vmatpush1.bf16.msra.mxu1 %v837_v7 }
  0x40   :  { %609 = vmatpush1.bf16.msra.mxu0 %v838_v13 }
  0x42   :  { %558 = vmatmul.mubr.bf16.vlgmr.msra.gmra.mrb[0].mxu1 %v133_v22 }
  0x43   :  { %611 = vmatmul.mubr.bf16.vlgmr.msra.gmra.mrb[0].mxu0 %v135_v23  ;;  %567 = vmatprep.mubr.bf16.mxu1 %v138_v27 }
  0x44   :  { %620 = vmatprep.mubr.bf16.mxu0 %v140_v28 }
  0x4a   :  { %568 = vmatmul.mubr.bf16.gmra.mrb[4].mxu1 %v137_v32 }
  0x4b   :  { %621 = vmatmul.mubr.bf16.gmra.mrb[4].mxu0 %v139_v33 }
 0x115   :  { %v559_v15 = vpop.f32.mrb[0].mxu1 }
 0x116   :  { %v612_v34 = vpop.f32.mrb[0].mxu0  ;;  %v561_v17 = vpop.f32.mrb[1].mxu1 }
 0x117   :  { %v613_v35 = vadd.f32 %v612_v34, %v559_v15  ;;  %v614_v36 = vpop.f32.mrb[1].mxu0  ;;  %v563_v38 = vpop.f32.mrb[2].mxu1 }
 0x118   :  { %v615_v37 = vadd.f32 %v614_v36, %v561_v17  ;;  %v616_v39 = vpop.f32.mrb[2].mxu0  ;;  %v565_v41 = vpop.f32.mrb[3].mxu1 }
 0x119   :  { %v617_v40 = vadd.f32 %v616_v39, %v563_v38  ;;  %v618_v42 = vpop.f32.mrb[3].mxu0 }
 0x11a   :  { %v731_v43 = vpack.c.bf16 %v615_v37, %v613_v35  ;;  %v619_v44 = vadd.f32 %v618_v42, %v565_v41 }
 0x11c   :  { %655 = vst [vmem:[%s1158_s4] sm:$0xff] %v731_v43  ;;  %v732_v45 = vpack.c.bf16 %v619_v44, %v617_v40 }
 0x11d   :  { %v569_v46 = vpop.f32.mrb[4].mxu1 }
 0x11e   :  { %656 = vst [vmem:[%s1158_s4 + $0x8] sm:$0xff] %v732_v45  ;;  %v622_v47 = vpop.f32.mrb[4].mxu0  ;;  %v571_v49 = vpop.f32.mrb[5].mxu1 }
 0x11f   :  { %v623_v48 = vadd.f32 %v622_v47, %v569_v46  ;;  %v624_v50 = vpop.f32.mrb[5].mxu0  ;;  %v573_v52 = vpop.f32.mrb[6].mxu1 }
 0x120   :  { %v625_v51 = vadd.f32 %v624_v50, %v571_v49  ;;  %v626_v53 = vpop.f32.mrb[6].mxu0  ;;  %v575_v55 = vpop.f32.mrb[7].mxu1 }
 0x121   :  { %v627_v54 = vadd.f32 %v626_v53, %v573_v52  ;;  %v628_v56 = vpop.f32.mrb[7].mxu0 }
 0x122   :  { %v733_v57 = vpack.c.bf16 %v625_v51, %v623_v48  ;;  %v629_v58 = vadd.f32 %v628_v56, %v575_v55 }
 0x124   :  { %657 = vst [vmem:[%s1158_s4 + $0x10] sm:$0xff] %v733_v57  ;;  %v734_v59 = vpack.c.bf16 %v629_v58, %v627_v54 }
 0x126   :  { %658 = vst [vmem:[%s1158_s4 + $0x18] sm:$0xff] %v734_v59 }

// kernel: densenet121_forward.190
= control target key start
LH: loop header
LB: loop body
LE: loop exit
PB: predicated region body
PF: predicated region fallthrough
CT: control target
= control target key end

     0   :  { %s99_s0 = inlined_call_operand.vmem [shape: bf16[16,128], index: 0, kind: input, shape index: {}]   ;;  %s100_s1 = inlined_call_operand.vmem [shape: f32[1,128], index: 1, kind: input, shape index: {}]   ;;  %s101_s2 = inlined_call_operand.vmem [shape: f32[1,128], index: 2, kind: input, shape index: {}]   ;;  %s102_s3 = inlined_call_operand.vmem [shape: bf16[16,128], index: 3, kind: output, shape index: {}]  }
   0x1   :  { %v59_v0 = vld [vmem:[%s99_s0] sm:$0xff]  }
   0x2   :  { %v52_v1 = vld [vmem:[%s100_s1] ss:$0 sm:$0xff]  ;;  %v60_v2 = vunpack.c.l.bf16 %v59_v0  ;;  %v61_v3 = vunpack.c.h.bf16 %v59_v0 }
   0x3   :  { %v53_v4 = vld [vmem:[%s101_s2] ss:$0 sm:$0xff] }
   0x4   :  { %v25_v5 = vmul.f32 %v60_v2, %v52_v1  ;;  %v26_v6 = vmul.f32 %v61_v3, %v52_v1 }
   0x6   :  { %v34_v7 = vadd.f32 %v53_v4, %v25_v5  ;;  %v35_v8 = vadd.f32 %v53_v4, %v26_v6 }
   0x8   :  { %v36_v9 = vmax.f32 %v34_v7, 0.0  ;;  %v37_v10 = vmax.f32 %v35_v8, 0.0 }
   0xa   :  { %v65_v11 = vpack.c.bf16 %v37_v10, %v36_v9 }
   0xc   :  { %66 = vst [vmem:[%s102_s3] sm:$0xff] %v65_v11  }

// kernel: densenet121_forward.189
= control target key start
LH: loop header
LB: loop body
LE: loop exit
PB: predicated region body
PF: predicated region fallthrough
CT: control target
= control target key end

     0   :  { %v44_v23 = vlaneseq  ;;  %s1377_s3 = inlined_call_operand.vmem [shape: bf16[1024,128], index: 3, kind: input, shape index: {}]   ;;  %s1378_s0 = inlined_call_operand.vmem [shape: bf16[16,1024], index: 0, kind: input, shape index: {}]   ;;  %s1379_s1 = inlined_call_operand.vmem [shape: f32[1,1024], index: 1, kind: input, shape index: {}]   ;;  %s1380_s2 = inlined_call_operand.vmem [shape: f32[1,1024], index: 2, kind: input, shape index: {}]   ;;  %s1381_s4 = inlined_call_operand.vmem [shape: bf16[16,128], index: 4, kind: output, shape index: {}]  }
   0x1   :  { %v1033_v0 = vld [vmem:[%s1377_s3 + $0x40] sm:$0xff]   ;;  %v1037_v4 = vld [vmem:[%s1377_s3 + $0x48] sm:$0xff]   ;;  %v1041_v8 = vld [vmem:[%s1377_s3 + $0x50] sm:$0xff]  }
   0x2   :  { %v1034_v1 = vld [vmem:[%s1377_s3 + $0xc0] sm:$0xff]   ;;  %945 = vmatprep.subr.bf16.mxu0 %v1033_v0  ;;  %v1038_v5 = vld [vmem:[%s1377_s3 + $0xc8] sm:$0xff]   ;;  %v1042_v9 = vld [vmem:[%s1377_s3 + $0xd0] sm:$0xff]   ;;  %v1203_v28 = vshrl.u32 %v44_v23, 7 }
   0x3   :  { %v1035_v2 = vld [vmem:[%s1377_s3] sm:$0xff]   ;;  %967 = vmatprep.subr.bf16.mxu1 %v1034_v1  ;;  %v1039_v6 = vld [vmem:[%s1377_s3 + $0x8] sm:$0xff]   ;;  %v1043_v10 = vld [vmem:[%s1377_s3 + $0x10] sm:$0xff]  }
   0x4   :  { %v1036_v3 = vld [vmem:[%s1377_s3 + $0x80] sm:$0xff]   ;;  %946 = vmatpush3.bf16.msra.mxu0 %v1035_v2  ;;  %v1040_v7 = vld [vmem:[%s1377_s3 + $0x88] sm:$0xff]   ;;  %v1044_v11 = vld [vmem:[%s1377_s3 + $0x90] sm:$0xff]   ;;  %v50_v33 = vsub.s32 1, %v1203_v28  ;;  %v58_v35 = vsub.s32 3, %v1203_v28  ;;  %v46_v39 = vsub.s32 0, %v1203_v28 }
   0x5   :  { %968 = vmatpush3.bf16.msra.mxu1 %v1036_v3  ;;  %947 = vmatprep.subr.bf16.mxu0 %v1037_v4  ;;  %v1045_v12 = vld [vmem:[%s1377_s3 + $0x58] sm:$0xff]   ;;  %v1049_v16 = vld [vmem:[%s1377_s3 + $0x60] sm:$0xff]   ;;  %v1053_v20 = vld [vmem:[%s1377_s3 + $0x68] sm:$0xff]   ;;  %v54_v40 = vsub.s32 2, %v1203_v28 }
   0x6   :  { %969 = vmatprep.subr.bf16.mxu1 %v1038_v5  ;;  %v1046_v13 = vld [vmem:[%s1377_s3 + $0xd8] sm:$0xff]   ;;  %v1050_v17 = vld [vmem:[%s1377_s3 + $0xe0] sm:$0xff]   ;;  %v1054_v21 = vld [vmem:[%s1377_s3 + $0xe8] sm:$0xff]  }
   0x7   :  { %v1047_v14 = vld [vmem:[%s1377_s3 + $0x18] sm:$0xff]   ;;  %v1051_v18 = vld [vmem:[%s1377_s3 + $0x20] sm:$0xff]   ;;  %v1055_v22 = vld [vmem:[%s1377_s3 + $0x28] sm:$0xff]  }
   0x8   :  { %948 = vmatpush3.bf16.msra.mxu0 %v1039_v6  ;;  %v1048_v15 = vld [vmem:[%s1377_s3 + $0x98] sm:$0xff]   ;;  %v1052_v19 = vld [vmem:[%s1377_s3 + $0xa0] sm:$0xff]   ;;  %v1056_v24 = vld [vmem:[%s1377_s3 + $0xa8] sm:$0xff]  }
   0x9   :  { %970 = vmatpush3.bf16.msra.mxu1 %v1040_v7  ;;  %949 = vmatprep.subr.bf16.mxu0 %v1041_v8  ;;  %v1057_v25 = vld [vmem:[%s1377_s3 + $0x70] sm:$0xff]   ;;  %v1061_v30 = vld [vmem:[%s1377_s3 + $0x78] sm:$0xff]   ;;  %v18_v36 = vld [vmem:[%s1378_s0] sm:$0xff] }
   0xa   :  { %971 = vmatprep.subr.bf16.mxu1 %v1042_v9  ;;  %v1058_v26 = vld [vmem:[%s1377_s3 + $0xf0] sm:$0xff]   ;;  %v1062_v31 = vld [vmem:[%s1377_s3 + $0xf8] sm:$0xff]   ;;  %v22_v37 = vld [vmem:[%s1378_s0 + $0x20] sm:$0xff]  ;;  %v26_v41 = vunpack.c.l.bf16 %v18_v36  ;;  %v27_v42 = vunpack.c.h.bf16 %v18_v36 }
   0xb   :  { %v1059_v27 = vld [vmem:[%s1377_s3 + $0x30] sm:$0xff]   ;;  %v1063_v32 = vld [vmem:[%s1377_s3 + $0x38] sm:$0xff]   ;;  %v1231_v38 = vld [vmem:[%s1379_s1] sm:$0xff]  ;;  %v34_v43 = vunpack.c.l.bf16 %v22_v37  ;;  %v35_v44 = vunpack.c.h.bf16 %v22_v37 }
   0xc   :  { %950 = vmatpush3.bf16.msra.mxu0 %v1043_v10  ;;  %v1060_v29 = vld [vmem:[%s1377_s3 + $0xb0] sm:$0xff]   ;;  %v1064_v34 = vld [vmem:[%s1377_s3 + $0xb8] sm:$0xff]   ;;  %v1238_v45 = vld [vmem:[%s1380_s2] sm:$0xff]  ;;  %v51_v48 = vrot.slane %v1231_v38, %v50_v33  ;;  %v59_v55 = vrot.slane %v1231_v38, %v58_v35  ;;  %v47_v60 = vrot.slane %v1231_v38, %v46_v39  ;;  %v55_v0 = vrot.slane %v1231_v38, %v54_v40 }
   0xd   :  { %972 = vmatpush3.bf16.msra.mxu1 %v1044_v11  ;;  %951 = vmatprep.subr.bf16.mxu0 %v1045_v12  ;;  %v19_v46 = vld [vmem:[%s1378_s0 + $0x8] sm:$0xff]  ;;  %v109_v49 = vrot.slane %v1238_v45, %v50_v33  ;;  %v1065_v52 = vld [vmem:[%s1377_s3 + $0x140] sm:$0xff]   ;;  %v117_v56 = vrot.slane %v1238_v45, %v58_v35  ;;  %v105_v61 = vrot.slane %v1238_v45, %v46_v39  ;;  %v1073_v33 = vld [vmem:[%s1377_s3 + $0x150] sm:$0xff]  }
   0xe   :  { %973 = vmatprep.subr.bf16.mxu1 %v1046_v13  ;;  %v23_v47 = vld [vmem:[%s1378_s0 + $0x28] sm:$0xff]  ;;  %v28_v50 = vunpack.c.l.bf16 %v19_v46  ;;  %v29_v51 = vunpack.c.h.bf16 %v19_v46  ;;  %v1066_v57 = vld [vmem:[%s1377_s3 + $0x1c0] sm:$0xff]   ;;  %v85_v58 = vmul.f32 %v51_v48, %v27_v42  ;;  %v93_v59 = vmul.f32 %v51_v48, %v35_v44  ;;  %v1075_v35 = vld [vmem:[%s1377_s3 + $0x110] sm:$0xff]  }
   0xf   :  { %v36_v53 = vunpack.c.l.bf16 %v23_v47  ;;  %v37_v54 = vunpack.c.h.bf16 %v23_v47  ;;  %v113_v1 = vrot.slane %v1238_v45, %v54_v40  ;;  %v84_v4 = vmul.f32 %v47_v60, %v26_v41  ;;  %v1076_v36 = vld [vmem:[%s1377_s3 + $0x190] sm:$0xff]   ;;  %v1077_v37 = vld [vmem:[%s1377_s3 + $0x158] sm:$0xff]   ;;  %v1081_v42 = vld [vmem:[%s1377_s3 + $0x160] sm:$0xff]  }
  0x10   :  { %952 = vmatpush3.bf16.msra.mxu0 %v1047_v14  ;;  %v87_v62 = vmul.f32 %v59_v55, %v29_v51  ;;  %v143_v2 = vadd.f32 %v109_v49, %v85_v58  ;;  %v151_v3 = vadd.f32 %v109_v49, %v93_v59  ;;  %v92_v5 = vmul.f32 %v47_v60, %v34_v43  ;;  %v1078_v39 = vld [vmem:[%s1377_s3 + $0x1d8] sm:$0xff]   ;;  %v1082_v43 = vld [vmem:[%s1377_s3 + $0x1e0] sm:$0xff]   ;;  %v1085_v48 = vld [vmem:[%s1377_s3 + $0x168] sm:$0xff]  }
  0x11   :  { %974 = vmatpush3.bf16.msra.mxu1 %v1048_v15  ;;  %953 = vmatprep.subr.bf16.mxu0 %v1049_v16  ;;  %v95_v63 = vmul.f32 %v59_v55, %v37_v54  ;;  %v86_v8 = vmul.f32 %v55_v0, %v28_v50  ;;  %v94_v9 = vmul.f32 %v55_v0, %v36_v53  ;;  %v1079_v40 = vld [vmem:[%s1377_s3 + $0x118] sm:$0xff]   ;;  %v1083_v44 = vld [vmem:[%s1377_s3 + $0x120] sm:$0xff]   ;;  %v66_v47 = vsub.s32 5, %v1203_v28  ;;  %v1086_v50 = vld [vmem:[%s1377_s3 + $0x1e8] sm:$0xff]  }
  0x12   :  { %975 = vmatprep.subr.bf16.mxu1 %v1050_v17  ;;  %v145_v6 = vadd.f32 %v117_v56, %v87_v62  ;;  %v159_v10 = vmax.f32 %v143_v2, 0.0  ;;  %v167_v11 = vmax.f32 %v151_v3, 0.0  ;;  %v142_v12 = vadd.f32 %v105_v61, %v84_v4  ;;  %v1080_v41 = vld [vmem:[%s1377_s3 + $0x198] sm:$0xff]   ;;  %v1084_v46 = vld [vmem:[%s1377_s3 + $0x1a0] sm:$0xff]   ;;  %v1088_v54 = vld [vmem:[%s1377_s3 + $0x1a8] sm:$0xff]  }
  0x13   :  { %v153_v7 = vadd.f32 %v117_v56, %v95_v63  ;;  %v150_v13 = vadd.f32 %v105_v61, %v92_v5  ;;  %v144_v16 = vadd.f32 %v113_v1, %v86_v8  ;;  %v152_v17 = vadd.f32 %v113_v1, %v94_v9  ;;  %v1089_v55 = vld [vmem:[%s1377_s3 + $0x170] sm:$0xff]   ;;  %v21_v3 = vld [vmem:[%s1378_s0 + $0x18] sm:$0xff] }
  0x14   :  { %954 = vmatpush3.bf16.msra.mxu0 %v1051_v18  ;;  %v161_v14 = vmax.f32 %v145_v6, 0.0  ;;  %v1067_v18 = vld [vmem:[%s1377_s3 + $0x100] sm:$0xff]   ;;  %v74_v49 = vsub.s32 7, %v1203_v28  ;;  %v62_v51 = vsub.s32 4, %v1203_v28  ;;  %v70_v53 = vsub.s32 6, %v1203_v28  ;;  %v1090_v56 = vld [vmem:[%s1377_s3 + $0x1f0] sm:$0xff]  }
  0x15   :  { %976 = vmatpush3.bf16.msra.mxu1 %v1052_v19  ;;  %955 = vmatprep.subr.bf16.mxu0 %v1053_v20  ;;  %v169_v15 = vmax.f32 %v153_v7, 0.0  ;;  %v175_v19 = vpack.c.bf16 %v167_v11, %v159_v10  ;;  %v158_v20 = vmax.f32 %v142_v12, 0.0  ;;  %v160_v23 = vmax.f32 %v144_v16, 0.0  ;;  %v1091_v58 = vld [vmem:[%s1377_s3 + $0x130] sm:$0xff]   ;;  %v25_v4 = vld [vmem:[%s1378_s0 + $0x38] sm:$0xff] }
  0x16   :  { %977 = vmatprep.subr.bf16.mxu1 %v1054_v21  ;;  %v166_v21 = vmax.f32 %v150_v13, 0.0  ;;  %v63_v28 = vrot.slane %v1231_v38, %v62_v51  ;;  %v20_v59 = vld [vmem:[%s1378_s0 + $0x10] sm:$0xff]  ;;  %v125_v60 = vrot.slane %v1238_v45, %v66_v47  ;;  %v75_v61 = vrot.slane %v1231_v38, %v74_v49  ;;  %v1093_v7 = vld [vmem:[%s1377_s3 + $0x178] sm:$0xff]  }
  0x17   :  { %726 = vmatprep.mubr.bf16.mxu0 %v175_v19  ;;  %v133_v62 = vrot.slane %v1238_v45, %v74_v49  ;;  %v71_v63 = vrot.slane %v1231_v38, %v70_v53  ;;  %v24_v0 = vld [vmem:[%s1378_s0 + $0x30] sm:$0xff]  ;;  %v30_v1 = vunpack.c.l.bf16 %v20_v59  ;;  %v31_v2 = vunpack.c.h.bf16 %v20_v59  ;;  %v1094_v12 = vld [vmem:[%s1377_s3 + $0x1f8] sm:$0xff]  }
  0x18   :  { %956 = vmatpush3.bf16.msra.mxu0 %v1055_v22  ;;  %v177_v22 = vpack.c.bf16 %v169_v15, %v161_v14  ;;  %v121_v5 = vrot.slane %v1238_v45, %v62_v51  ;;  %v129_v6 = vrot.slane %v1238_v45, %v70_v53  ;;  %v38_v8 = vunpack.c.l.bf16 %v24_v0 }
  0x19   :  { %978 = vmatpush3.bf16.msra.mxu1 %v1056_v24  ;;  %957 = vmatprep.subr.bf16.mxu0 %v1057_v25  ;;  %v168_v24 = vmax.f32 %v152_v17, 0.0  ;;  %v1068_v25 = vld [vmem:[%s1377_s3 + $0x180] sm:$0xff]   ;;  %v39_v9 = vunpack.c.h.bf16 %v24_v0  ;;  %v32_v10 = vunpack.c.l.bf16 %v21_v3  ;;  %v33_v11 = vunpack.c.h.bf16 %v21_v3 }
  0x1a   :  { %979 = vmatprep.subr.bf16.mxu1 %v1058_v26  ;;  %v1069_v26 = vld [vmem:[%s1377_s3 + $0x148] sm:$0xff]   ;;  %767 = vmatprep.mubr.bf16.mxu1 %v177_v22  ;;  %v40_v13 = vunpack.c.l.bf16 %v25_v4  ;;  %v41_v14 = vunpack.c.h.bf16 %v25_v4  ;;  %v88_v15 = vmul.f32 %v63_v28, %v30_v1 }
  0x1b   :  { %v91_v17 = vmul.f32 %v75_v61, %v33_v11  ;;  %v90_v19 = vmul.f32 %v71_v63, %v32_v10 }
  0x1c   :  { %958 = vmatpush3.bf16.msra.mxu0 %v1059_v27  ;;  %v174_v27 = vpack.c.bf16 %v166_v21, %v158_v20  ;;  %v1095_v20 = vld [vmem:[%s1377_s3 + $0x138] sm:$0xff]   ;;  %v99_v22 = vmul.f32 %v75_v61, %v41_v14 }
  0x1d   :  { %980 = vmatpush3.bf16.msra.mxu1 %v1060_v29  ;;  %959 = vmatprep.subr.bf16.mxu0 %v1061_v30  ;;  %v176_v29 = vpack.c.bf16 %v168_v24, %v160_v23  ;;  %v1070_v30 = vld [vmem:[%s1377_s3 + $0x1c8] sm:$0xff]   ;;  %v146_v23 = vadd.f32 %v121_v5, %v88_v15  ;;  %v98_v24 = vmul.f32 %v71_v63, %v40_v13 }
  0x1e   :  { %981 = vmatprep.subr.bf16.mxu1 %v1062_v31  ;;  %v1071_v31 = vld [vmem:[%s1377_s3 + $0x108] sm:$0xff]  }
  0x20   :  { %960 = vmatpush3.bf16.msra.mxu0 %v1063_v32  ;;  %v1072_v32 = vld [vmem:[%s1377_s3 + $0x188] sm:$0xff]  }
  0x21   :  { %982 = vmatpush3.bf16.msra.mxu1 %v1064_v34  ;;  %989 = vmatprep.subr.bf16.mxu0 %v1065_v52  ;;  %v1074_v34 = vld [vmem:[%s1377_s3 + $0x1d0] sm:$0xff]   ;;  %v1087_v52 = vld [vmem:[%s1377_s3 + $0x128] sm:$0xff]  }
  0x22   :  { %1011 = vmatprep.subr.bf16.mxu1 %v1066_v57  ;;  %v67_v57 = vrot.slane %v1231_v38, %v66_v47  ;;  %v1092_v38 = vld [vmem:[%s1377_s3 + $0x1b0] sm:$0xff]  }
  0x23   :  { %727 = vmatmul.mubr.bf16.vlgmr.msra.gmra.mrb[0].mxu0 %v174_v27  ;;  %v149_v27 = vadd.f32 %v133_v62, %v91_v17 }
  0x24   :  { %768 = vmatmul.mubr.bf16.vlgmr.msra.gmra.mrb[0].mxu1 %v176_v29  ;;  %990 = vmatpush3.bf16.msra.mxu0 %v1067_v18  ;;  %v89_v45 = vmul.f32 %v67_v57, %v31_v2  ;;  %v97_v16 = vmul.f32 %v67_v57, %v39_v9  ;;  %v96_v18 = vmul.f32 %v63_v28, %v38_v8 }
  0x25   :  { %1012 = vmatpush3.bf16.msra.mxu1 %v1068_v25  ;;  %991 = vmatprep.subr.bf16.mxu0 %v1069_v26  ;;  %v1096_v25 = vld [vmem:[%s1377_s3 + $0x1b8] sm:$0xff]  }
  0x26   :  { %1013 = vmatprep.subr.bf16.mxu1 %v1070_v30  ;;  %v147_v21 = vadd.f32 %v125_v60, %v89_v45  ;;  %v155_v26 = vadd.f32 %v125_v60, %v97_v16  ;;  %v154_v29 = vadd.f32 %v121_v5, %v96_v18 }
  0x28   :  { %992 = vmatpush3.bf16.msra.mxu0 %v1071_v31  ;;  %v163_v30 = vmax.f32 %v147_v21, 0.0  ;;  %v157_v31 = vadd.f32 %v133_v62, %v99_v22 }
  0x29   :  { %1014 = vmatpush3.bf16.msra.mxu1 %v1072_v32  ;;  %993 = vmatprep.subr.bf16.mxu0 %v1073_v33  ;;  %v162_v32 = vmax.f32 %v146_v23, 0.0  ;;  %v148_v33 = vadd.f32 %v129_v6, %v90_v19 }
  0x2a   :  { %1015 = vmatprep.subr.bf16.mxu1 %v1074_v34  ;;  %v171_v34 = vmax.f32 %v155_v26, 0.0 }
  0x2c   :  { %994 = vmatpush3.bf16.msra.mxu0 %v1075_v35  ;;  %v165_v35 = vmax.f32 %v149_v27, 0.0 }
  0x2d   :  { %1016 = vmatpush3.bf16.msra.mxu1 %v1076_v36  ;;  %995 = vmatprep.subr.bf16.mxu0 %v1077_v37  ;;  %v170_v36 = vmax.f32 %v154_v29, 0.0  ;;  %v156_v37 = vadd.f32 %v129_v6, %v98_v24 }
  0x2e   :  { %1017 = vmatprep.subr.bf16.mxu1 %v1078_v39  ;;  %v173_v39 = vmax.f32 %v157_v31, 0.0 }
  0x30   :  { %996 = vmatpush3.bf16.msra.mxu0 %v1079_v40  ;;  %v164_v40 = vmax.f32 %v148_v33, 0.0 }
  0x31   :  { %1018 = vmatpush3.bf16.msra.mxu1 %v1080_v41  ;;  %997 = vmatprep.subr.bf16.mxu0 %v1081_v42  ;;  %v179_v41 = vpack.c.bf16 %v171_v34, %v163_v30  ;;  %v178_v42 = vpack.c.bf16 %v170_v36, %v162_v32 }
  0x32   :  { %1019 = vmatprep.subr.bf16.mxu1 %v1082_v43  ;;  %v172_v43 = vmax.f32 %v156_v37, 0.0 }
  0x33   :  { %808 = vmatprep.mubr.bf16.mxu0 %v179_v41 }
  0x34   :  { %998 = vmatpush3.bf16.msra.mxu0 %v1083_v44  ;;  %v181_v44 = vpack.c.bf16 %v173_v39, %v165_v35 }
  0x35   :  { %1020 = vmatpush3.bf16.msra.mxu1 %v1084_v46  ;;  %999 = vmatprep.subr.bf16.mxu0 %v1085_v48  ;;  %v180_v46 = vpack.c.bf16 %v172_v43, %v164_v40 }
  0x36   :  { %1021 = vmatprep.subr.bf16.mxu1 %v1086_v50  ;;  %849 = vmatprep.mubr.bf16.mxu1 %v181_v44 }
  0x38   :  { %1000 = vmatpush3.bf16.msra.mxu0 %v1087_v52 }
  0x39   :  { %1022 = vmatpush3.bf16.msra.mxu1 %v1088_v54  ;;  %1001 = vmatprep.subr.bf16.mxu0 %v1089_v55 }
  0x3a   :  { %1023 = vmatprep.subr.bf16.mxu1 %v1090_v56 }
  0x3c   :  { %1002 = vmatpush3.bf16.msra.mxu0 %v1091_v58 }
  0x3d   :  { %1024 = vmatpush3.bf16.msra.mxu1 %v1092_v38  ;;  %1003 = vmatprep.subr.bf16.mxu0 %v1093_v7 }
  0x3e   :  { %1025 = vmatprep.subr.bf16.mxu1 %v1094_v12 }
  0x40   :  { %1004 = vmatpush3.bf16.msra.mxu0 %v1095_v20 }
  0x41   :  { %1026 = vmatpush3.bf16.msra.mxu1 %v1096_v25 }
  0x43   :  { %809 = vmatmul.mubr.bf16.vlgmr.msra.gmra.mrb[4].mxu0 %v178_v42 }
  0x44   :  { %850 = vmatmul.mubr.bf16.vlgmr.msra.gmra.mrb[4].mxu1 %v180_v46 }
  0xf6   :  { %v961_v47 = vpop.f32.mrb[0].mxu0 }
  0xf7   :  { %v983_v48 = vpop.f32.mrb[0].mxu1  ;;  %v962_v49 = vpop.f32.mrb[1].mxu0 }
  0xf8   :  { %v963_v50 = vadd.f32 %v962_v49, %v961_v47  ;;  %v984_v51 = vpop.f32.mrb[1].mxu1  ;;  %v964_v52 = vpop.f32.mrb[2].mxu0 }
  0xf9   :  { %v985_v53 = vadd.f32 %v984_v51, %v983_v48  ;;  %v986_v54 = vpop.f32.mrb[2].mxu1  ;;  %v965_v55 = vpop.f32.mrb[3].mxu0 }
  0xfa   :  { %v966_v56 = vadd.f32 %v965_v55, %v964_v52  ;;  %v987_v57 = vpop.f32.mrb[3].mxu1 }
  0xfb   :  { %v770_v28 = vadd.f32 %v985_v53, %v963_v50  ;;  %v988_v58 = vadd.f32 %v987_v57, %v986_v54 }
  0xfd   :  { %v773_v59 = vadd.f32 %v988_v58, %v966_v56 }
 0x116   :  { %v1005_v60 = vpop.f32.mrb[4].mxu0 }
 0x117   :  { %v1027_v61 = vpop.f32.mrb[4].mxu1  ;;  %v1006_v62 = vpop.f32.mrb[5].mxu0 }
 0x118   :  { %v1007_v63 = vadd.f32 %v1006_v62, %v1005_v60  ;;  %v1028_v0 = vpop.f32.mrb[5].mxu1  ;;  %v1008_v1 = vpop.f32.mrb[6].mxu0 }
 0x119   :  { %v1029_v2 = vadd.f32 %v1028_v0, %v1027_v61  ;;  %v1030_v3 = vpop.f32.mrb[6].mxu1  ;;  %v1009_v4 = vpop.f32.mrb[7].mxu0 }
 0x11a   :  { %v811_v5 = vadd.f32 %v1007_v63, %v770_v28  ;;  %v1010_v6 = vadd.f32 %v1009_v4, %v1008_v1  ;;  %v1031_v38 = vpop.f32.mrb[7].mxu1 }
 0x11b   :  { %v1032_v7 = vadd.f32 %v1031_v38, %v1030_v3 }
 0x11c   :  { %v852_v8 = vadd.f32 %v1029_v2, %v811_v5  ;;  %v814_v9 = vadd.f32 %v1010_v6, %v773_v59 }
 0x11e   :  { %v855_v10 = vadd.f32 %v1032_v7, %v814_v9 }
 0x120   :  { %v943_v11 = vpack.c.bf16 %v855_v10, %v852_v8 }
 0x122   :  { %944 = vst [vmem:[%s1381_s4] sm:$0xff] %v943_v11  }

// kernel: densenet121_forward.191
= control target key start
LH: loop header
LB: loop body
LE: loop exit
PB: predicated region body
PF: predicated region fallthrough
CT: control target
= control target key end

     0   :  { %vm1158_vm0 = vmmov 0   ;;  %s1420_s1 = inlined_call_operand.vmem [shape: bf16[1152,128], index: 1, kind: input, shape index: {}]   ;;  %s1421_s0 = inlined_call_operand.vmem [shape: bf16[16,1152], index: 0, kind: input, shape index: {}]   ;;  %s1422_s2 = inlined_call_operand.vmem [shape: bf16[16,128], index: 2, kind: output, shape index: {}]  }
   0x1   :  { %v1072_v0 = vld [vmem:[%s1420_s1 + $0x40] sm:$0xff]   ;;  %v1076_v4 = vld [vmem:[%s1420_s1 + $0x48] sm:$0xff]   ;;  %v1080_v8 = vld [vmem:[%s1420_s1 + $0x50] sm:$0xff]  }
   0x2   :  { %v1073_v1 = vld [vmem:[%s1420_s1 + $0xc0] sm:$0xff]   ;;  %953 = vmatprep.subr.bf16.mxu0 %v1072_v0  ;;  %v1077_v5 = vld [vmem:[%s1420_s1 + $0xc8] sm:$0xff]   ;;  %v1081_v9 = vld [vmem:[%s1420_s1 + $0xd0] sm:$0xff]  }
   0x3   :  { %v1074_v2 = vld [vmem:[%s1420_s1] sm:$0xff]   ;;  %975 = vmatprep.subr.bf16.mxu1 %v1073_v1  ;;  %v1078_v6 = vld [vmem:[%s1420_s1 + $0x8] sm:$0xff]   ;;  %v1082_v10 = vld [vmem:[%s1420_s1 + $0x10] sm:$0xff]  }
   0x4   :  { %v1075_v3 = vld [vmem:[%s1420_s1 + $0x80] sm:$0xff]   ;;  %954 = vmatpush3.bf16.msra.mxu0 %v1074_v2  ;;  %v1079_v7 = vld [vmem:[%s1420_s1 + $0x88] sm:$0xff]   ;;  %v1083_v11 = vld [vmem:[%s1420_s1 + $0x90] sm:$0xff]  }
   0x5   :  { %976 = vmatpush3.bf16.msra.mxu1 %v1075_v3  ;;  %955 = vmatprep.subr.bf16.mxu0 %v1076_v4  ;;  %v1084_v12 = vld [vmem:[%s1420_s1 + $0x58] sm:$0xff]   ;;  %v1088_v16 = vld [vmem:[%s1420_s1 + $0x60] sm:$0xff]   ;;  %v1092_v20 = vld [vmem:[%s1420_s1 + $0x68] sm:$0xff]  }
   0x6   :  { %977 = vmatprep.subr.bf16.mxu1 %v1077_v5  ;;  %v1085_v13 = vld [vmem:[%s1420_s1 + $0xd8] sm:$0xff]   ;;  %v1089_v17 = vld [vmem:[%s1420_s1 + $0xe0] sm:$0xff]   ;;  %v1093_v21 = vld [vmem:[%s1420_s1 + $0xe8] sm:$0xff]  }
   0x7   :  { %v1086_v14 = vld [vmem:[%s1420_s1 + $0x18] sm:$0xff]   ;;  %v1090_v18 = vld [vmem:[%s1420_s1 + $0x20] sm:$0xff]   ;;  %v1094_v22 = vld [vmem:[%s1420_s1 + $0x28] sm:$0xff]  }
   0x8   :  { %956 = vmatpush3.bf16.msra.mxu0 %v1078_v6  ;;  %v1087_v15 = vld [vmem:[%s1420_s1 + $0x98] sm:$0xff]   ;;  %v1091_v19 = vld [vmem:[%s1420_s1 + $0xa0] sm:$0xff]   ;;  %v1095_v23 = vld [vmem:[%s1420_s1 + $0xa8] sm:$0xff]   ;;  %v1157_v6 = vmov 0.0  }
   0x9   :  { %978 = vmatpush3.bf16.msra.mxu1 %v1079_v7  ;;  %957 = vmatprep.subr.bf16.mxu0 %v1080_v8  ;;  %v1096_v24 = vld [vmem:[%s1420_s1 + $0x70] sm:$0xff]   ;;  %v1100_v28 = vld [vmem:[%s1420_s1 + $0x78] sm:$0xff]   ;;  %v1104_v32 = vld [vmem:[%s1421_s0] ss:$36 sps:$4 sm:$0xff]  }
   0xa   :  { %979 = vmatprep.subr.bf16.mxu1 %v1081_v9  ;;  %v1097_v25 = vld [vmem:[%s1420_s1 + $0xf0] sm:$0xff]   ;;  %v1101_v29 = vld [vmem:[%s1420_s1 + $0xf8] sm:$0xff]   ;;  %v1106_v33 = vld [vmem:[%s1421_s0 + $0x4] ss:$36 sps:$4 sm:$0xff]  }
   0xb   :  { %v1098_v26 = vld [vmem:[%s1420_s1 + $0x30] sm:$0xff]   ;;  %v1102_v30 = vld [vmem:[%s1420_s1 + $0x38] sm:$0xff]   ;;  %v1107_v34 = vld [vmem:[%s1421_s0 + $0x8] ss:$36 sps:$4 sm:$0xff]   ;;  %676 = vmatprep.mubr.bf16.mxu0 %v1106_v33 }
   0xc   :  { %958 = vmatpush3.bf16.msra.mxu0 %v1082_v10  ;;  %v1099_v27 = vld [vmem:[%s1420_s1 + $0xb0] sm:$0xff]   ;;  %v1103_v31 = vld [vmem:[%s1420_s1 + $0xb8] sm:$0xff]   ;;  %v1110_v36 = vld [vmem:[%s1420_s1 + $0x140] sm:$0xff]  }
   0xd   :  { %980 = vmatpush3.bf16.msra.mxu1 %v1083_v11  ;;  %959 = vmatprep.subr.bf16.mxu0 %v1084_v12  ;;  %v1109_v35 = vld [vmem:[%s1421_s0 + $0xc] ss:$36 sps:$4 sm:$0xff]   ;;  %v1111_v37 = vld [vmem:[%s1420_s1 + $0x100] sm:$0xff]   ;;  %v1122_v48 = vld [vmem:[%s1420_s1 + $0x158] sm:$0xff]  }
   0xe   :  { %981 = vmatprep.subr.bf16.mxu1 %v1085_v13  ;;  %717 = vmatprep.mubr.bf16.mxu1 %v1109_v35  ;;  %v1112_v38 = vld [vmem:[%s1420_s1 + $0x1c0] sm:$0xff]   ;;  %v1114_v40 = vld [vmem:[%s1420_s1 + $0x148] sm:$0xff]   ;;  %v1118_v44 = vld [vmem:[%s1420_s1 + $0x150] sm:$0xff]  }
   0xf   :  { %v1113_v39 = vld [vmem:[%s1420_s1 + $0x180] sm:$0xff]   ;;  %v1115_v41 = vld [vmem:[%s1420_s1 + $0x108] sm:$0xff]   ;;  %v1119_v45 = vld [vmem:[%s1420_s1 + $0x110] sm:$0xff]  }
  0x10   :  { %960 = vmatpush3.bf16.msra.mxu0 %v1086_v14  ;;  %v1116_v42 = vld [vmem:[%s1420_s1 + $0x1c8] sm:$0xff]   ;;  %v1120_v46 = vld [vmem:[%s1420_s1 + $0x1d0] sm:$0xff]   ;;  %v1123_v49 = vld [vmem:[%s1420_s1 + $0x118] sm:$0xff]  }
  0x11   :  { %982 = vmatpush3.bf16.msra.mxu1 %v1087_v15  ;;  %961 = vmatprep.subr.bf16.mxu0 %v1088_v16  ;;  %v1117_v43 = vld [vmem:[%s1420_s1 + $0x188] sm:$0xff]   ;;  %v1121_v47 = vld [vmem:[%s1420_s1 + $0x190] sm:$0xff]   ;;  %v1124_v50 = vld [vmem:[%s1420_s1 + $0x1d8] sm:$0xff]  }
  0x12   :  { %983 = vmatprep.subr.bf16.mxu1 %v1089_v17  ;;  %v1125_v51 = vld [vmem:[%s1420_s1 + $0x198] sm:$0xff]   ;;  %v1126_v52 = vld [vmem:[%s1420_s1 + $0x160] sm:$0xff]   ;;  %v1130_v56 = vld [vmem:[%s1420_s1 + $0x168] sm:$0xff]  }
  0x13   :  { %v1127_v53 = vld [vmem:[%s1420_s1 + $0x120] sm:$0xff]   ;;  %v1131_v57 = vld [vmem:[%s1420_s1 + $0x128] sm:$0xff]   ;;  %v1134_v60 = vld [vmem:[%s1420_s1 + $0x170] sm:$0xff]  }
  0x14   :  { %962 = vmatpush3.bf16.msra.mxu0 %v1090_v18  ;;  %v1128_v54 = vld [vmem:[%s1420_s1 + $0x1e0] sm:$0xff]   ;;  %v1132_v58 = vld [vmem:[%s1420_s1 + $0x1e8] sm:$0xff]   ;;  %v1135_v61 = vld [vmem:[%s1420_s1 + $0x130] sm:$0xff]  }
  0x15   :  { %984 = vmatpush3.bf16.msra.mxu1 %v1091_v19  ;;  %963 = vmatprep.subr.bf16.mxu0 %v1092_v20  ;;  %v1129_v55 = vld [vmem:[%s1420_s1 + $0x1a0] sm:$0xff]   ;;  %v1133_v59 = vld [vmem:[%s1420_s1 + $0x1a8] sm:$0xff]   ;;  %v1136_v62 = vld [vmem:[%s1420_s1 + $0x1f0] sm:$0xff]  }
  0x16   :  { %985 = vmatprep.subr.bf16.mxu1 %v1093_v21  ;;  %v1137_v63 = vld [vmem:[%s1420_s1 + $0x1b0] sm:$0xff]   ;;  %v1138_v0 = vld [vmem:[%s1420_s1 + $0x178] sm:$0xff]   ;;  %v1148_v9 = vld [vmem:[%s1420_s1 + $0x200] sm:$0xff]  }
  0x17   :  { %v1139_v1 = vld [vmem:[%s1420_s1 + $0x138] sm:$0xff]   ;;  %v1141_v3 = vld [vmem:[%s1421_s0 + $0x10] ss:$36 sps:$4 sm:$0xff]   ;;  %v1149_v10 = vld [vmem:[%s1420_s1 + $0x208] sm:$0xff]  }
  0x18   :  { %964 = vmatpush3.bf16.msra.mxu0 %v1094_v22  ;;  %v1140_v2 = vld [vmem:[%s1420_s1 + $0x1f8] sm:$0xff]   ;;  %v1150_v11 = vld [vmem:[%s1420_s1 + $0x210] sm:$0xff]   ;;  %v1152_v13 = vld [vmem:[%s1420_s1 + $0x220] sm:$0xff]  }
  0x19   :  { %986 = vmatpush3.bf16.msra.mxu1 %v1095_v23  ;;  %965 = vmatprep.subr.bf16.mxu0 %v1096_v24  ;;  %v1143_v4 = vld [vmem:[%s1421_s0 + $0x14] ss:$36 sps:$4 sm:$0xff]   ;;  %v1147_v8 = vld [vmem:[%s1421_s0 + $0x1c] ss:$36 sps:$4 sm:$0xff]   ;;  %v1153_v14 = vld [vmem:[%s1420_s1 + $0x228] sm:$0xff]  }
  0x1a   :  { %987 = vmatprep.subr.bf16.mxu1 %v1097_v25  ;;  %v1144_v5 = vld [vmem:[%s1420_s1 + $0x1b8] sm:$0xff]   ;;  %v1154_v15 = vld [vmem:[%s1420_s1 + $0x230] sm:$0xff]   ;;  %v1156_v17 = vld [vmem:[%s1421_s0 + $0x20] ss:$36 sps:$4 sm:$0xff]  }
  0x1b   :  { %v1145_v7 = vld [vmem:[%s1421_s0 + $0x18] ss:$36 sps:$4 sm:$0xff]  }
  0x1c   :  { %966 = vmatpush3.bf16.msra.mxu0 %v1098_v26  ;;  %v1151_v12 = vld [vmem:[%s1420_s1 + $0x218] sm:$0xff]  }
  0x1d   :  { %988 = vmatpush3.bf16.msra.mxu1 %v1099_v27  ;;  %967 = vmatprep.subr.bf16.mxu0 %v1100_v28  ;;  %v1155_v16 = vld [vmem:[%s1420_s1 + $0x238] sm:$0xff]  }
  0x1e   :  { %989 = vmatprep.subr.bf16.mxu1 %v1101_v29 }
  0x20   :  { %968 = vmatpush3.bf16.msra.mxu0 %v1102_v30 }
  0x21   :  { %990 = vmatpush3.bf16.msra.mxu1 %v1103_v31  ;;  %997 = vmatprep.subr.bf16.mxu0 %v1110_v36 }
  0x22   :  { %1019 = vmatprep.subr.bf16.mxu1 %v1112_v38 }
  0x23   :  { %677 = vmatmul.mubr.bf16.vlgmr.msra.gmra.mrb[0].mxu0 %v1104_v32 }
  0x24   :  { %718 = vmatmul.mubr.bf16.vlgmr.msra.gmra.mrb[0].mxu1 %v1107_v34  ;;  %998 = vmatpush3.bf16.msra.mxu0 %v1111_v37 }
  0x25   :  { %1020 = vmatpush3.bf16.msra.mxu1 %v1113_v39  ;;  %999 = vmatprep.subr.bf16.mxu0 %v1114_v40 }
  0x26   :  { %1021 = vmatprep.subr.bf16.mxu1 %v1116_v42  ;;  %758 = vmatprep.mubr.bf16.mxu0 %v1143_v4 }
  0x27   :  { %799 = vmatprep.mubr.bf16.mxu1 %v1147_v8 }
  0x28   :  { %1000 = vmatpush3.bf16.msra.mxu0 %v1115_v41 }
  0x29   :  { %1022 = vmatpush3.bf16.msra.mxu1 %v1117_v43  ;;  %1001 = vmatprep.subr.bf16.mxu0 %v1118_v44 }
  0x2a   :  { %1023 = vmatprep.subr.bf16.mxu1 %v1120_v46 }
  0x2c   :  { %1002 = vmatpush3.bf16.msra.mxu0 %v1119_v45 }
  0x2d   :  { %1024 = vmatpush3.bf16.msra.mxu1 %v1121_v47  ;;  %1003 = vmatprep.subr.bf16.mxu0 %v1122_v48 }
  0x2e   :  { %1025 = vmatprep.subr.bf16.mxu1 %v1124_v50 }
  0x30   :  { %1004 = vmatpush3.bf16.msra.mxu0 %v1123_v49 }
  0x31   :  { %1026 = vmatpush3.bf16.msra.mxu1 %v1125_v51  ;;  %1005 = vmatprep.subr.bf16.mxu0 %v1126_v52 }
  0x32   :  { %1027 = vmatprep.subr.bf16.mxu1 %v1128_v54 }
  0x34   :  { %1006 = vmatpush3.bf16.msra.mxu0 %v1127_v53 }
  0x35   :  { %1028 = vmatpush3.bf16.msra.mxu1 %v1129_v55  ;;  %1007 = vmatprep.subr.bf16.mxu0 %v1130_v56 }
  0x36   :  { %1029 = vmatprep.subr.bf16.mxu1 %v1132_v58 }
  0x38   :  { %1008 = vmatpush3.bf16.msra.mxu0 %v1131_v57 }
  0x39   :  { %1030 = vmatpush3.bf16.msra.mxu1 %v1133_v59  ;;  %1009 = vmatprep.subr.bf16.mxu0 %v1134_v60 }
  0x3a   :  { %1031 = vmatprep.subr.bf16.mxu1 %v1136_v62 }
  0x3c   :  { %1010 = vmatpush3.bf16.msra.mxu0 %v1135_v61 }
  0x3d   :  { %1032 = vmatpush3.bf16.msra.mxu1 %v1137_v63  ;;  %1011 = vmatprep.subr.bf16.mxu0 %v1138_v0 }
  0x3e   :  { %1033 = vmatprep.subr.bf16.mxu1 %v1140_v2 }
  0x40   :  { %1012 = vmatpush3.bf16.msra.mxu0 %v1139_v1 }
  0x41   :  { %1050 = vmatprep.subr.bf16.mxu0 %v1157_v6  ;;  %1034 = vmatpush3.bf16.msra.mxu1 %v1144_v5 }
  0x43   :  { %759 = vmatmul.mubr.bf16.vlgmr.msra.gmra.mrb[4].mxu0 %v1141_v3 }
  0x44   :  { %1066 = vmatprep.mubr.msk.bf16.mxu0 %vm1158_vm0, %v1157_v6  ;;  %1051 = vmatpush3.bf16.msra.mxu0 %v1148_v9 }
  0x45   :  { %800 = vmatmul.mubr.bf16.vlgmr.msra.gmra.mrb[4].mxu1 %v1145_v7  ;;  %1052 = vmatprep.subr.bf16.mxu0 %v1157_v6 }
  0x48   :  { %1053 = vmatpush3.bf16.msra.mxu0 %v1149_v10 }
  0x49   :  { %1054 = vmatprep.subr.bf16.mxu0 %v1157_v6 }
  0x4c   :  { %1055 = vmatpush3.bf16.msra.mxu0 %v1150_v11 }
  0x4d   :  { %1056 = vmatprep.subr.bf16.mxu0 %v1157_v6 }
  0x50   :  { %1057 = vmatpush3.bf16.msra.mxu0 %v1151_v12 }
  0x51   :  { %1058 = vmatprep.subr.bf16.mxu0 %v1157_v6 }
  0x54   :  { %1059 = vmatpush3.bf16.msra.mxu0 %v1152_v13 }
  0x55   :  { %1060 = vmatprep.subr.bf16.mxu0 %v1157_v6 }
  0x58   :  { %1061 = vmatpush3.bf16.msra.mxu0 %v1153_v14 }
  0x59   :  { %1062 = vmatprep.subr.bf16.mxu0 %v1157_v6 }
  0x5c   :  { %1063 = vmatpush3.bf16.msra.mxu0 %v1154_v15 }
  0x5d   :  { %1064 = vmatprep.subr.bf16.mxu0 %v1157_v6 }
  0x60   :  { %1065 = vmatpush3.bf16.msra.mxu0 %v1155_v16 }
  0x63   :  { %1067 = vmatmul.mubr.bf16.vlgmr.msra.gmra.mrb[8].mxu0 %v1156_v17 }
  0xf6   :  { %v969_v18 = vpop.f32.mrb[0].mxu0 }
  0xf7   :  { %v991_v19 = vpop.f32.mrb[0].mxu1  ;;  %v970_v20 = vpop.f32.mrb[1].mxu0 }
  0xf8   :  { %v971_v21 = vadd.f32 %v970_v20, %v969_v18  ;;  %v992_v22 = vpop.f32.mrb[1].mxu1  ;;  %v972_v23 = vpop.f32.mrb[2].mxu0 }
  0xf9   :  { %v993_v24 = vadd.f32 %v992_v22, %v991_v19  ;;  %v994_v25 = vpop.f32.mrb[2].mxu1  ;;  %v973_v26 = vpop.f32.mrb[3].mxu0 }
  0xfa   :  { %v974_v27 = vadd.f32 %v973_v26, %v972_v23  ;;  %v995_v28 = vpop.f32.mrb[3].mxu1 }
  0xfb   :  { %v720_v29 = vadd.f32 %v993_v24, %v971_v21  ;;  %v996_v30 = vadd.f32 %v995_v28, %v994_v25 }
  0xfd   :  { %v723_v31 = vadd.f32 %v996_v30, %v974_v27 }
 0x116   :  { %v1013_v32 = vpop.f32.mrb[4].mxu0 }
 0x117   :  { %v1014_v33 = vpop.f32.mrb[5].mxu0 }
 0x118   :  { %v1015_v34 = vadd.f32 %v1014_v33, %v1013_v32  ;;  %v1016_v35 = vpop.f32.mrb[6].mxu0  ;;  %v1035_v36 = vpop.f32.mrb[4].mxu1 }
 0x119   :  { %v1017_v37 = vpop.f32.mrb[7].mxu0  ;;  %v1036_v40 = vpop.f32.mrb[5].mxu1 }
 0x11a   :  { %v761_v38 = vadd.f32 %v1015_v34, %v720_v29  ;;  %v1018_v39 = vadd.f32 %v1017_v37, %v1016_v35  ;;  %v1037_v41 = vadd.f32 %v1036_v40, %v1035_v36  ;;  %v1038_v42 = vpop.f32.mrb[6].mxu1 }
 0x11b   :  { %v1039_v44 = vpop.f32.mrb[7].mxu1 }
 0x11c   :  { %v764_v43 = vadd.f32 %v1018_v39, %v723_v31  ;;  %v1040_v45 = vadd.f32 %v1039_v44, %v1038_v42  ;;  %v802_v46 = vadd.f32 %v1037_v41, %v761_v38 }
 0x11e   :  { %v805_v47 = vadd.f32 %v1040_v45, %v764_v43 }
 0x136   :  { %v842_v48 = vpop.f32.mrb[8].mxu0 }
 0x137   :  { %v843_v49 = vadd.f32 %v842_v48, %v802_v46  ;;  %v1068_v50 = vpop.f32.mrb[9].mxu0 }
 0x138   :  { %v845_v51 = vpop.f32.mrb[10].mxu0 }
 0x139   :  { %v846_v52 = vadd.f32 %v845_v51, %v805_v47  ;;  %v1069_v53 = vpop.f32.mrb[11].mxu0 }
 0x13b   :  { %v951_v54 = vpack.c.bf16 %v846_v52, %v843_v49 }
 0x13d   :  { %952 = vst [vmem:[%s1422_s2] sm:$0xff] %v951_v54  }

// kernel: densenet121_forward.261
= control target key start
LH: loop header
LB: loop body
LE: loop exit
PB: predicated region body
PF: predicated region fallthrough
CT: control target
= control target key end

     0   :  { %s2486_s15 = smov 0   ;;  %s2488_s16 = smov 0   ;;  %s3064_s0 = inlined_call_operand.vmem [shape: bf16[16,1024], index: 0, kind: input, shape index: {}]   ;;  %s3065_s1 = inlined_call_operand.vmem [shape: f32[1,1024], index: 1, kind: input, shape index: {}]   ;;  %s3066_s2 = inlined_call_operand.vmem [shape: f32[1,1024], index: 2, kind: input, shape index: {}]   ;;  %s3067_s3 = inlined_call_operand.vmem [shape: bf16[1024,512], index: 3, kind: input, shape index: {}]   ;;  %s3068_s4 = inlined_call_operand.vmem [shape: bf16[16,512], index: 4, kind: output, shape index: {}]  }
   0x1   :  { %s2490_s17 = smov 0   ;;  %s2492_s18 = smov 0  }
   0x2   :  { %s2494_s19 = smov 0  }
   0x3 LB: > { %s23_s20 = sadd.s32 1, %s2455_s18  ;;  %s2027_s21 = sadd.s32 4294967295, %s2459_s19   ;;  %s2459_s19 = sphi %s2494_s19, %s14_s19   ;;  %s2455_s18 = sphi %s2492_s18, %s3073_s18   ;;  %s2451_s17 = sphi %s2490_s17, %s3072_s17   ;;  %s2447_s16 = sphi %s2488_s16, %s3071_s16   ;;  %s2443_s15 = sphi %s2486_s15, %s3070_s15  }
   0x4   : > { %p24_p0 = scmp.ge.s32.totalorder %s23_s20, 2  ;;  %p108_p1 = scmp.ne.s32.totalorder %s2447_s16, %s2443_s15 }
   0x5   : > { %p109_p2 = scmp.eq.s32.totalorder %s2459_s19, 0  ;;  %p140_p4 = scmp.eq.s32.totalorder %s2027_s21, 1 }
   0x6   : > { %s3075_s20 = smov (%p24_p0, %s23_s20), 0  ;;  %s101_s23 = sadd.s32 1, %s2447_s16 }
   0x7   : > { %p110_p3 = por %p109_p2, %p108_p1  ;;  %s98_s22 = ssub.s32 %s2455_s18, %s3075_s20 }
   0x8   : > { %p99_p5 = scmp.eq.s32.totalorder %s98_s22, 0  ;;  %p2521_p6 = por %p140_p4, %p108_p1 }
   0x9   : > { %p2031_p7 = scmp.ge.s32.totalorder %s2459_s19, 2 }
   0xa   : > { %s2526_s25 = scalar_select %p99_p5, %s2447_s16, %s101_s23  }
   0xb   : > { %178 = sbr.rel (%p2031_p7) target bundleno = 86 (0x56), region = 28 }
  0x12   : > { %181 = sbr.rel (!%p110_p3) target bundleno = 86 (0x56), region = 32  ;;  %s183_s26 = sand.u32 (%p110_p3), 1, %s2447_s16  }
  0x13   : > { %s2173_s27 = sshll.u32 (%p110_p3), %s2455_s18, 3  ;;  %s2032_s28 = sshll.u32 (%p110_p3), %s183_s26, 10 }
  0x14   : > { %s2534_s5 = scalar_lea.vmem (%p110_p3), %s3067_s3, %s2173_s27  ;;  %s2539_s6 = scalar_lea.vmem (%p110_p3), [#allocation2], %s2032_s28 }
  0x15   : > { %v470_v0 = vld [vmem:[%s2534_s5] sm:$0xff] (%p110_p3)  ;;  %v472_v1 = vld [vmem:[%s2534_s5 + $0x10] sm:$0xff] (%p110_p3) }
  0x16   : > { %v474_v2 = vld [vmem:[%s2534_s5 + $0x20] sm:$0xff] (%p110_p3)  ;;  %471 = vst [vmem:[%s2539_s6] sm:$0xff] (%p110_p3), %v470_v0  ;;  %473 = vst [vmem:[%s2539_s6 + $0x8] sm:$0xff] (%p110_p3), %v472_v1  ;;  %v476_v3 = vld [vmem:[%s2534_s5 + $0x30] sm:$0xff] (%p110_p3) }
  0x17   : > { %475 = vst [vmem:[%s2539_s6 + $0x10] sm:$0xff] (%p110_p3), %v474_v2  ;;  %v478_v4 = vld [vmem:[%s2534_s5 + $0x40] sm:$0xff] (%p110_p3)  ;;  %v480_v5 = vld [vmem:[%s2534_s5 + $0x50] sm:$0xff] (%p110_p3)  ;;  %477 = vst [vmem:[%s2539_s6 + $0x18] sm:$0xff] (%p110_p3), %v476_v3 }
  0x18   : > { %479 = vst [vmem:[%s2539_s6 + $0x20] sm:$0xff] (%p110_p3), %v478_v4  ;;  %481 = vst [vmem:[%s2539_s6 + $0x28] sm:$0xff] (%p110_p3), %v480_v5  ;;  %v482_v6 = vld [vmem:[%s2534_s5 + $0x60] sm:$0xff] (%p110_p3)  ;;  %v484_v7 = vld [vmem:[%s2534_s5 + $0x70] sm:$0xff] (%p110_p3) }
  0x19   : > { %v486_v8 = vld [vmem:[%s2534_s5 + $0x80] sm:$0xff]  ;;  %483 = vst [vmem:[%s2539_s6 + $0x30] sm:$0xff] %v482_v6  ;;  %485 = vst [vmem:[%s2539_s6 + $0x38] sm:$0xff] %v484_v7  ;;  %v488_v9 = vld [vmem:[%s2534_s5 + $0x90] sm:$0xff] }
  0x1a   : > { %487 = vst [vmem:[%s2539_s6 + $0x40] sm:$0xff] %v486_v8  ;;  %v490_v10 = vld [vmem:[%s2534_s5 + $0xa0] sm:$0xff]  ;;  %v492_v11 = vld [vmem:[%s2534_s5 + $0xb0] sm:$0xff]  ;;  %489 = vst [vmem:[%s2539_s6 + $0x48] sm:$0xff] %v488_v9 }
  0x1b   : > { %491 = vst [vmem:[%s2539_s6 + $0x50] sm:$0xff] %v490_v10  ;;  %493 = vst [vmem:[%s2539_s6 + $0x58] sm:$0xff] %v492_v11  ;;  %v494_v12 = vld [vmem:[%s2534_s5 + $0xc0] sm:$0xff]  ;;  %v496_v13 = vld [vmem:[%s2534_s5 + $0xd0] sm:$0xff] }
  0x1c   : > { %v498_v14 = vld [vmem:[%s2534_s5 + $0xe0] sm:$0xff]  ;;  %495 = vst [vmem:[%s2539_s6 + $0x60] sm:$0xff] %v494_v12  ;;  %497 = vst [vmem:[%s2539_s6 + $0x68] sm:$0xff] %v496_v13  ;;  %v500_v15 = vld [vmem:[%s2534_s5 + $0xf0] sm:$0xff] }
  0x1d   : > { %499 = vst [vmem:[%s2539_s6 + $0x70] sm:$0xff] %v498_v14  ;;  %v502_v16 = vld [vmem:[%s2534_s5 + $0x100] sm:$0xff]  ;;  %v504_v17 = vld [vmem:[%s2534_s5 + $0x110] sm:$0xff]  ;;  %501 = vst [vmem:[%s2539_s6 + $0x78] sm:$0xff] %v500_v15 }
  0x1e   : > { %503 = vst [vmem:[%s2539_s6 + $0x80] sm:$0xff] %v502_v16  ;;  %505 = vst [vmem:[%s2539_s6 + $0x88] sm:$0xff] %v504_v17  ;;  %v506_v18 = vld [vmem:[%s2534_s5 + $0x120] sm:$0xff]  ;;  %v508_v19 = vld [vmem:[%s2534_s5 + $0x130] sm:$0xff] }
  0x1f   : > { %v510_v20 = vld [vmem:[%s2534_s5 + $0x140] sm:$0xff]  ;;  %507 = vst [vmem:[%s2539_s6 + $0x90] sm:$0xff] %v506_v18  ;;  %509 = vst [vmem:[%s2539_s6 + $0x98] sm:$0xff] %v508_v19  ;;  %v512_v21 = vld [vmem:[%s2534_s5 + $0x150] sm:$0xff] }
  0x20   : > { %511 = vst [vmem:[%s2539_s6 + $0xa0] sm:$0xff] %v510_v20  ;;  %v514_v22 = vld [vmem:[%s2534_s5 + $0x160] sm:$0xff]  ;;  %v516_v23 = vld [vmem:[%s2534_s5 + $0x170] sm:$0xff]  ;;  %513 = vst [vmem:[%s2539_s6 + $0xa8] sm:$0xff] %v512_v21 }
  0x21   : > { %515 = vst [vmem:[%s2539_s6 + $0xb0] sm:$0xff] %v514_v22  ;;  %517 = vst [vmem:[%s2539_s6 + $0xb8] sm:$0xff] %v516_v23  ;;  %v518_v24 = vld [vmem:[%s2534_s5 + $0x180] sm:$0xff]  ;;  %v520_v25 = vld [vmem:[%s2534_s5 + $0x190] sm:$0xff] }
  0x22   : > { %v522_v26 = vld [vmem:[%s2534_s5 + $0x1a0] sm:$0xff]  ;;  %519 = vst [vmem:[%s2539_s6 + $0xc0] sm:$0xff] %v518_v24  ;;  %521 = vst [vmem:[%s2539_s6 + $0xc8] sm:$0xff] %v520_v25  ;;  %v524_v27 = vld [vmem:[%s2534_s5 + $0x1b0] sm:$0xff] }
  0x23   : > { %523 = vst [vmem:[%s2539_s6 + $0xd0] sm:$0xff] %v522_v26  ;;  %v526_v28 = vld [vmem:[%s2534_s5 + $0x1c0] sm:$0xff]  ;;  %v528_v29 = vld [vmem:[%s2534_s5 + $0x1d0] sm:$0xff]  ;;  %525 = vst [vmem:[%s2539_s6 + $0xd8] sm:$0xff] %v524_v27 }
  0x24   : > { %527 = vst [vmem:[%s2539_s6 + $0xe0] sm:$0xff] %v526_v28  ;;  %529 = vst [vmem:[%s2539_s6 + $0xe8] sm:$0xff] %v528_v29  ;;  %v530_v30 = vld [vmem:[%s2534_s5 + $0x1e0] sm:$0xff]  ;;  %v532_v31 = vld [vmem:[%s2534_s5 + $0x1f0] sm:$0xff] }
  0x25   : > { %v534_v32 = vld [vmem:[%s2534_s5 + $0x200] sm:$0xff]  ;;  %531 = vst [vmem:[%s2539_s6 + $0xf0] sm:$0xff] %v530_v30  ;;  %533 = vst [vmem:[%s2539_s6 + $0xf8] sm:$0xff] %v532_v31  ;;  %v536_v33 = vld [vmem:[%s2534_s5 + $0x210] sm:$0xff] }
  0x26   : > { %535 = vst [vmem:[%s2539_s6 + $0x100] sm:$0xff] %v534_v32  ;;  %v538_v34 = vld [vmem:[%s2534_s5 + $0x220] sm:$0xff]  ;;  %v540_v35 = vld [vmem:[%s2534_s5 + $0x230] sm:$0xff]  ;;  %537 = vst [vmem:[%s2539_s6 + $0x108] sm:$0xff] %v536_v33 }
  0x27   : > { %539 = vst [vmem:[%s2539_s6 + $0x110] sm:$0xff] %v538_v34  ;;  %541 = vst [vmem:[%s2539_s6 + $0x118] sm:$0xff] %v540_v35  ;;  %v542_v36 = vld [vmem:[%s2534_s5 + $0x240] sm:$0xff]  ;;  %v544_v37 = vld [vmem:[%s2534_s5 + $0x250] sm:$0xff] }
  0x28   : > { %v546_v38 = vld [vmem:[%s2534_s5 + $0x260] sm:$0xff]  ;;  %543 = vst [vmem:[%s2539_s6 + $0x120] sm:$0xff] %v542_v36  ;;  %545 = vst [vmem:[%s2539_s6 + $0x128] sm:$0xff] %v544_v37  ;;  %v548_v39 = vld [vmem:[%s2534_s5 + $0x270] sm:$0xff] }
  0x29   : > { %547 = vst [vmem:[%s2539_s6 + $0x130] sm:$0xff] %v546_v38  ;;  %v550_v40 = vld [vmem:[%s2534_s5 + $0x280] sm:$0xff]  ;;  %v552_v41 = vld [vmem:[%s2534_s5 + $0x290] sm:$0xff]  ;;  %549 = vst [vmem:[%s2539_s6 + $0x138] sm:$0xff] %v548_v39 }
  0x2a   : > { %551 = vst [vmem:[%s2539_s6 + $0x140] sm:$0xff] %v550_v40  ;;  %553 = vst [vmem:[%s2539_s6 + $0x148] sm:$0xff] %v552_v41  ;;  %v554_v42 = vld [vmem:[%s2534_s5 + $0x2a0] sm:$0xff]  ;;  %v556_v43 = vld [vmem:[%s2534_s5 + $0x2b0] sm:$0xff] }
  0x2b   : > { %v558_v44 = vld [vmem:[%s2534_s5 + $0x2c0] sm:$0xff]  ;;  %555 = vst [vmem:[%s2539_s6 + $0x150] sm:$0xff] %v554_v42  ;;  %557 = vst [vmem:[%s2539_s6 + $0x158] sm:$0xff] %v556_v43  ;;  %v560_v45 = vld [vmem:[%s2534_s5 + $0x2d0] sm:$0xff] }
  0x2c   : > { %559 = vst [vmem:[%s2539_s6 + $0x160] sm:$0xff] %v558_v44  ;;  %v562_v46 = vld [vmem:[%s2534_s5 + $0x2e0] sm:$0xff]  ;;  %v564_v47 = vld [vmem:[%s2534_s5 + $0x2f0] sm:$0xff]  ;;  %561 = vst [vmem:[%s2539_s6 + $0x168] sm:$0xff] %v560_v45 }
  0x2d   : > { %563 = vst [vmem:[%s2539_s6 + $0x170] sm:$0xff] %v562_v46  ;;  %565 = vst [vmem:[%s2539_s6 + $0x178] sm:$0xff] %v564_v47  ;;  %v566_v48 = vld [vmem:[%s2534_s5 + $0x300] sm:$0xff]  ;;  %v568_v49 = vld [vmem:[%s2534_s5 + $0x310] sm:$0xff] }
  0x2e   : > { %v570_v50 = vld [vmem:[%s2534_s5 + $0x320] sm:$0xff]  ;;  %567 = vst [vmem:[%s2539_s6 + $0x180] sm:$0xff] %v566_v48  ;;  %569 = vst [vmem:[%s2539_s6 + $0x188] sm:$0xff] %v568_v49  ;;  %v572_v51 = vld [vmem:[%s2534_s5 + $0x330] sm:$0xff] }
  0x2f   : > { %571 = vst [vmem:[%s2539_s6 + $0x190] sm:$0xff] %v570_v50  ;;  %v574_v52 = vld [vmem:[%s2534_s5 + $0x340] sm:$0xff]  ;;  %v576_v53 = vld [vmem:[%s2534_s5 + $0x350] sm:$0xff]  ;;  %573 = vst [vmem:[%s2539_s6 + $0x198] sm:$0xff] %v572_v51 }
  0x30   : > { %575 = vst [vmem:[%s2539_s6 + $0x1a0] sm:$0xff] %v574_v52  ;;  %577 = vst [vmem:[%s2539_s6 + $0x1a8] sm:$0xff] %v576_v53  ;;  %v578_v54 = vld [vmem:[%s2534_s5 + $0x360] sm:$0xff]  ;;  %v580_v55 = vld [vmem:[%s2534_s5 + $0x370] sm:$0xff] }
  0x31   : > { %v582_v56 = vld [vmem:[%s2534_s5 + $0x380] sm:$0xff]  ;;  %579 = vst [vmem:[%s2539_s6 + $0x1b0] sm:$0xff] %v578_v54  ;;  %581 = vst [vmem:[%s2539_s6 + $0x1b8] sm:$0xff] %v580_v55  ;;  %v584_v57 = vld [vmem:[%s2534_s5 + $0x390] sm:$0xff] }
  0x32   : > { %583 = vst [vmem:[%s2539_s6 + $0x1c0] sm:$0xff] %v582_v56  ;;  %v586_v58 = vld [vmem:[%s2534_s5 + $0x3a0] sm:$0xff]  ;;  %v588_v59 = vld [vmem:[%s2534_s5 + $0x3b0] sm:$0xff]  ;;  %585 = vst [vmem:[%s2539_s6 + $0x1c8] sm:$0xff] %v584_v57 }
  0x33   : > { %587 = vst [vmem:[%s2539_s6 + $0x1d0] sm:$0xff] %v586_v58  ;;  %589 = vst [vmem:[%s2539_s6 + $0x1d8] sm:$0xff] %v588_v59  ;;  %v590_v60 = vld [vmem:[%s2534_s5 + $0x3c0] sm:$0xff]  ;;  %v592_v61 = vld [vmem:[%s2534_s5 + $0x3d0] sm:$0xff] }
  0x34   : > { %v594_v62 = vld [vmem:[%s2534_s5 + $0x3e0] sm:$0xff]  ;;  %591 = vst [vmem:[%s2539_s6 + $0x1e0] sm:$0xff] %v590_v60  ;;  %593 = vst [vmem:[%s2539_s6 + $0x1e8] sm:$0xff] %v592_v61  ;;  %v596_v63 = vld [vmem:[%s2534_s5 + $0x3f0] sm:$0xff] }
  0x35   : > { %595 = vst [vmem:[%s2539_s6 + $0x1f0] sm:$0xff] %v594_v62  ;;  %v598_v0 = vld [vmem:[%s2534_s5 + $0x400] sm:$0xff]  ;;  %v600_v1 = vld [vmem:[%s2534_s5 + $0x410] sm:$0xff]  ;;  %597 = vst [vmem:[%s2539_s6 + $0x1f8] sm:$0xff] %v596_v63 }
  0x36   : > { %599 = vst [vmem:[%s2539_s6 + $0x200] sm:$0xff] %v598_v0  ;;  %601 = vst [vmem:[%s2539_s6 + $0x208] sm:$0xff] %v600_v1  ;;  %v602_v2 = vld [vmem:[%s2534_s5 + $0x420] sm:$0xff]  ;;  %v604_v3 = vld [vmem:[%s2534_s5 + $0x430] sm:$0xff] }
  0x37   : > { %v606_v4 = vld [vmem:[%s2534_s5 + $0x440] sm:$0xff]  ;;  %603 = vst [vmem:[%s2539_s6 + $0x210] sm:$0xff] %v602_v2  ;;  %605 = vst [vmem:[%s2539_s6 + $0x218] sm:$0xff] %v604_v3  ;;  %v608_v5 = vld [vmem:[%s2534_s5 + $0x450] sm:$0xff] }
  0x38   : > { %607 = vst [vmem:[%s2539_s6 + $0x220] sm:$0xff] %v606_v4  ;;  %v610_v6 = vld [vmem:[%s2534_s5 + $0x460] sm:$0xff]  ;;  %v612_v7 = vld [vmem:[%s2534_s5 + $0x470] sm:$0xff]  ;;  %609 = vst [vmem:[%s2539_s6 + $0x228] sm:$0xff] %v608_v5 }
  0x39   : > { %611 = vst [vmem:[%s2539_s6 + $0x230] sm:$0xff] %v610_v6  ;;  %613 = vst [vmem:[%s2539_s6 + $0x238] sm:$0xff] %v612_v7  ;;  %v614_v8 = vld [vmem:[%s2534_s5 + $0x480] sm:$0xff]  ;;  %v616_v9 = vld [vmem:[%s2534_s5 + $0x490] sm:$0xff] }
  0x3a   : > { %v618_v10 = vld [vmem:[%s2534_s5 + $0x4a0] sm:$0xff]  ;;  %615 = vst [vmem:[%s2539_s6 + $0x240] sm:$0xff] %v614_v8  ;;  %617 = vst [vmem:[%s2539_s6 + $0x248] sm:$0xff] %v616_v9  ;;  %v620_v11 = vld [vmem:[%s2534_s5 + $0x4b0] sm:$0xff] }
  0x3b   : > { %619 = vst [vmem:[%s2539_s6 + $0x250] sm:$0xff] %v618_v10  ;;  %v622_v12 = vld [vmem:[%s2534_s5 + $0x4c0] sm:$0xff]  ;;  %v624_v13 = vld [vmem:[%s2534_s5 + $0x4d0] sm:$0xff]  ;;  %621 = vst [vmem:[%s2539_s6 + $0x258] sm:$0xff] %v620_v11 }
  0x3c   : > { %623 = vst [vmem:[%s2539_s6 + $0x260] sm:$0xff] %v622_v12  ;;  %625 = vst [vmem:[%s2539_s6 + $0x268] sm:$0xff] %v624_v13  ;;  %v626_v14 = vld [vmem:[%s2534_s5 + $0x4e0] sm:$0xff]  ;;  %v628_v15 = vld [vmem:[%s2534_s5 + $0x4f0] sm:$0xff] }
  0x3d   : > { %v630_v16 = vld [vmem:[%s2534_s5 + $0x500] sm:$0xff]  ;;  %627 = vst [vmem:[%s2539_s6 + $0x270] sm:$0xff] %v626_v14  ;;  %629 = vst [vmem:[%s2539_s6 + $0x278] sm:$0xff] %v628_v15  ;;  %v632_v17 = vld [vmem:[%s2534_s5 + $0x510] sm:$0xff] }
  0x3e   : > { %631 = vst [vmem:[%s2539_s6 + $0x280] sm:$0xff] %v630_v16  ;;  %v634_v18 = vld [vmem:[%s2534_s5 + $0x520] sm:$0xff]  ;;  %v636_v19 = vld [vmem:[%s2534_s5 + $0x530] sm:$0xff]  ;;  %633 = vst [vmem:[%s2539_s6 + $0x288] sm:$0xff] %v632_v17 }
  0x3f   : > { %635 = vst [vmem:[%s2539_s6 + $0x290] sm:$0xff] %v634_v18  ;;  %637 = vst [vmem:[%s2539_s6 + $0x298] sm:$0xff] %v636_v19  ;;  %v638_v20 = vld [vmem:[%s2534_s5 + $0x540] sm:$0xff]  ;;  %v640_v21 = vld [vmem:[%s2534_s5 + $0x550] sm:$0xff] }
  0x40   : > { %v642_v22 = vld [vmem:[%s2534_s5 + $0x560] sm:$0xff]  ;;  %639 = vst [vmem:[%s2539_s6 + $0x2a0] sm:$0xff] %v638_v20  ;;  %641 = vst [vmem:[%s2539_s6 + $0x2a8] sm:$0xff] %v640_v21  ;;  %v644_v23 = vld [vmem:[%s2534_s5 + $0x570] sm:$0xff] }
  0x41   : > { %643 = vst [vmem:[%s2539_s6 + $0x2b0] sm:$0xff] %v642_v22  ;;  %v646_v24 = vld [vmem:[%s2534_s5 + $0x580] sm:$0xff]  ;;  %v648_v25 = vld [vmem:[%s2534_s5 + $0x590] sm:$0xff]  ;;  %645 = vst [vmem:[%s2539_s6 + $0x2b8] sm:$0xff] %v644_v23 }
  0x42   : > { %647 = vst [vmem:[%s2539_s6 + $0x2c0] sm:$0xff] %v646_v24  ;;  %649 = vst [vmem:[%s2539_s6 + $0x2c8] sm:$0xff] %v648_v25  ;;  %v650_v26 = vld [vmem:[%s2534_s5 + $0x5a0] sm:$0xff]  ;;  %v652_v27 = vld [vmem:[%s2534_s5 + $0x5b0] sm:$0xff] }
  0x43   : > { %v654_v28 = vld [vmem:[%s2534_s5 + $0x5c0] sm:$0xff]  ;;  %651 = vst [vmem:[%s2539_s6 + $0x2d0] sm:$0xff] %v650_v26  ;;  %653 = vst [vmem:[%s2539_s6 + $0x2d8] sm:$0xff] %v652_v27  ;;  %v656_v29 = vld [vmem:[%s2534_s5 + $0x5d0] sm:$0xff] }
  0x44   : > { %655 = vst [vmem:[%s2539_s6 + $0x2e0] sm:$0xff] %v654_v28  ;;  %v658_v30 = vld [vmem:[%s2534_s5 + $0x5e0] sm:$0xff]  ;;  %v660_v31 = vld [vmem:[%s2534_s5 + $0x5f0] sm:$0xff]  ;;  %657 = vst [vmem:[%s2539_s6 + $0x2e8] sm:$0xff] %v656_v29 }
  0x45   : > { %659 = vst [vmem:[%s2539_s6 + $0x2f0] sm:$0xff] %v658_v30  ;;  %661 = vst [vmem:[%s2539_s6 + $0x2f8] sm:$0xff] %v660_v31  ;;  %v662_v32 = vld [vmem:[%s2534_s5 + $0x600] sm:$0xff]  ;;  %v664_v33 = vld [vmem:[%s2534_s5 + $0x610] sm:$0xff] }
  0x46   : > { %v666_v34 = vld [vmem:[%s2534_s5 + $0x620] sm:$0xff]  ;;  %663 = vst [vmem:[%s2539_s6 + $0x300] sm:$0xff] %v662_v32  ;;  %665 = vst [vmem:[%s2539_s6 + $0x308] sm:$0xff] %v664_v33  ;;  %v668_v35 = vld [vmem:[%s2534_s5 + $0x630] sm:$0xff] }
  0x47   : > { %667 = vst [vmem:[%s2539_s6 + $0x310] sm:$0xff] %v666_v34  ;;  %v670_v36 = vld [vmem:[%s2534_s5 + $0x640] sm:$0xff]  ;;  %v672_v37 = vld [vmem:[%s2534_s5 + $0x650] sm:$0xff]  ;;  %669 = vst [vmem:[%s2539_s6 + $0x318] sm:$0xff] %v668_v35 }
  0x48   : > { %671 = vst [vmem:[%s2539_s6 + $0x320] sm:$0xff] %v670_v36  ;;  %673 = vst [vmem:[%s2539_s6 + $0x328] sm:$0xff] %v672_v37  ;;  %v674_v38 = vld [vmem:[%s2534_s5 + $0x660] sm:$0xff]  ;;  %v676_v39 = vld [vmem:[%s2534_s5 + $0x670] sm:$0xff] }
  0x49   : > { %v678_v40 = vld [vmem:[%s2534_s5 + $0x680] sm:$0xff]  ;;  %675 = vst [vmem:[%s2539_s6 + $0x330] sm:$0xff] %v674_v38  ;;  %677 = vst [vmem:[%s2539_s6 + $0x338] sm:$0xff] %v676_v39  ;;  %v680_v41 = vld [vmem:[%s2534_s5 + $0x690] sm:$0xff] }
  0x4a   : > { %679 = vst [vmem:[%s2539_s6 + $0x340] sm:$0xff] %v678_v40  ;;  %v682_v42 = vld [vmem:[%s2534_s5 + $0x6a0] sm:$0xff]  ;;  %v684_v43 = vld [vmem:[%s2534_s5 + $0x6b0] sm:$0xff]  ;;  %681 = vst [vmem:[%s2539_s6 + $0x348] sm:$0xff] %v680_v41 }
  0x4b   : > { %683 = vst [vmem:[%s2539_s6 + $0x350] sm:$0xff] %v682_v42  ;;  %685 = vst [vmem:[%s2539_s6 + $0x358] sm:$0xff] %v684_v43  ;;  %v686_v44 = vld [vmem:[%s2534_s5 + $0x6c0] sm:$0xff]  ;;  %v688_v45 = vld [vmem:[%s2534_s5 + $0x6d0] sm:$0xff] }
  0x4c   : > { %v690_v46 = vld [vmem:[%s2534_s5 + $0x6e0] sm:$0xff]  ;;  %687 = vst [vmem:[%s2539_s6 + $0x360] sm:$0xff] %v686_v44  ;;  %689 = vst [vmem:[%s2539_s6 + $0x368] sm:$0xff] %v688_v45  ;;  %v692_v47 = vld [vmem:[%s2534_s5 + $0x6f0] sm:$0xff] }
  0x4d   : > { %691 = vst [vmem:[%s2539_s6 + $0x370] sm:$0xff] %v690_v46  ;;  %v694_v48 = vld [vmem:[%s2534_s5 + $0x700] sm:$0xff]  ;;  %v696_v49 = vld [vmem:[%s2534_s5 + $0x710] sm:$0xff]  ;;  %693 = vst [vmem:[%s2539_s6 + $0x378] sm:$0xff] %v692_v47 }
  0x4e   : > { %695 = vst [vmem:[%s2539_s6 + $0x380] sm:$0xff] %v694_v48  ;;  %697 = vst [vmem:[%s2539_s6 + $0x388] sm:$0xff] %v696_v49  ;;  %v698_v50 = vld [vmem:[%s2534_s5 + $0x720] sm:$0xff]  ;;  %v700_v51 = vld [vmem:[%s2534_s5 + $0x730] sm:$0xff] }
  0x4f   : > { %v702_v52 = vld [vmem:[%s2534_s5 + $0x740] sm:$0xff]  ;;  %699 = vst [vmem:[%s2539_s6 + $0x390] sm:$0xff] %v698_v50  ;;  %701 = vst [vmem:[%s2539_s6 + $0x398] sm:$0xff] %v700_v51  ;;  %v704_v53 = vld [vmem:[%s2534_s5 + $0x750] sm:$0xff] }
  0x50   : > { %703 = vst [vmem:[%s2539_s6 + $0x3a0] sm:$0xff] %v702_v52  ;;  %v706_v54 = vld [vmem:[%s2534_s5 + $0x760] sm:$0xff]  ;;  %v708_v55 = vld [vmem:[%s2534_s5 + $0x770] sm:$0xff]  ;;  %705 = vst [vmem:[%s2539_s6 + $0x3a8] sm:$0xff] %v704_v53 }
  0x51   : > { %707 = vst [vmem:[%s2539_s6 + $0x3b0] sm:$0xff] %v706_v54  ;;  %709 = vst [vmem:[%s2539_s6 + $0x3b8] sm:$0xff] %v708_v55  ;;  %v710_v56 = vld [vmem:[%s2534_s5 + $0x780] sm:$0xff]  ;;  %v712_v57 = vld [vmem:[%s2534_s5 + $0x790] sm:$0xff] }
  0x52   : > { %v714_v58 = vld [vmem:[%s2534_s5 + $0x7a0] sm:$0xff]  ;;  %711 = vst [vmem:[%s2539_s6 + $0x3c0] sm:$0xff] %v710_v56  ;;  %713 = vst [vmem:[%s2539_s6 + $0x3c8] sm:$0xff] %v712_v57  ;;  %v716_v59 = vld [vmem:[%s2534_s5 + $0x7b0] sm:$0xff] }
  0x53   : > { %715 = vst [vmem:[%s2539_s6 + $0x3d0] sm:$0xff] %v714_v58  ;;  %v718_v60 = vld [vmem:[%s2534_s5 + $0x7c0] sm:$0xff]  ;;  %v720_v61 = vld [vmem:[%s2534_s5 + $0x7d0] sm:$0xff]  ;;  %717 = vst [vmem:[%s2539_s6 + $0x3d8] sm:$0xff] %v716_v59 }
  0x54   : > { %719 = vst [vmem:[%s2539_s6 + $0x3e0] sm:$0xff] %v718_v60  ;;  %721 = vst [vmem:[%s2539_s6 + $0x3e8] sm:$0xff] %v720_v61  ;;  %v722_v62 = vld [vmem:[%s2534_s5 + $0x7e0] sm:$0xff]  ;;  %v724_v63 = vld [vmem:[%s2534_s5 + $0x7f0] sm:$0xff] }
  0x55   : > { %723 = vst [vmem:[%s2539_s6 + $0x3f0] sm:$0xff] %v722_v62  ;;  %725 = vst [vmem:[%s2539_s6 + $0x3f8] sm:$0xff] %v724_v63 }
  0x56 PF: > { %p2035_p8 = scmp.ge.s32.totalorder %s2459_s19, 1  ;;  %p730_p9 = scmp.lt.s32.totalorder %s2459_s19, 3 }
  0x58   : > { %p731_p10 = pnand %p2035_p8, %p730_p9 }
  0x59   : > { %s737_s7 = sand.u32 (!%p731_p10), 1, %s2443_s15   ;;  %v2800_v0 = vld [vmem:[%s3064_s0] sm:$0xff] (!%p731_p10)  ;;  %v803_v2 = vlaneseq (!%p731_p10)  ;;  %v2812_v3 = vld [vmem:[%s3064_s0 + $0x10] sm:$0xff] (!%p731_p10)  ;;  %v780_v43 = vld [vmem:[%s3064_s0 + $0x18] sm:$0xff] (!%p731_p10) }
  0x5a   : > { %734 = sbr.rel (%p731_p10) target bundleno = 451 (0x1c3), region = 70  ;;  %v2805_v1 = vld [vmem:[%s3064_s0 + $0x20] sm:$0xff] (!%p731_p10)  ;;  %s2036_s12 = sshll.u32 (!%p731_p10), %s737_s7, 10  ;;  %v2817_v4 = vld [vmem:[%s3064_s0 + $0x30] sm:$0xff] (!%p731_p10)  ;;  %v786_v9 = vunpack.c.h.bf16 (!%p731_p10), %v2800_v0  ;;  %v790_v13 = vunpack.c.h.bf16 (!%p731_p10), %v2812_v3  ;;  %v2864_v47 = vld [vmem:[%s3064_s0 + $0x8] sm:$0xff] (!%p731_p10)  ;;  %v792_v53 = vunpack.c.h.bf16 (!%p731_p10), %v780_v43  ;;  %v791_v63 = vunpack.c.l.bf16 (!%p731_p10), %v780_v43 }
  0x5b   : > { %v2822_v5 = vld [vmem:[%s3065_s1] sm:$0xff] (!%p731_p10)  ;;  %v2824_v6 = vshrl.u32 (!%p731_p10), %v803_v2, 7  ;;  %s2831_s29 = scalar_lea.vmem (!%p731_p10), [#allocation2], %s2036_s12  ;;  %v794_v10 = vunpack.c.h.bf16 (!%p731_p10), %v2805_v1  ;;  %v798_v14 = vunpack.c.h.bf16 (!%p731_p10), %v2817_v4  ;;  %v2872_v52 = vld [vmem:[%s3064_s0 + $0x28] sm:$0xff] (!%p731_p10)  ;;  %v787_v58 = vunpack.c.l.bf16 (!%p731_p10), %v2864_v47  ;;  %s2037_s13 = sshll.u32 (!%p731_p10), %s737_s7, 4 }
  0x5c   : > { %v2829_v7 = vld [vmem:[%s3066_s2] sm:$0xff] (!%p731_p10)  ;;  %v2235_v18 = vld [vmem:[%s2831_s29 + $0x14] ss:$8 sps:$4 sm:$0xff] (!%p731_p10)   ;;  %v2239_v24 = vld [vmem:[%s2831_s29 + $0x10] ss:$8 sps:$4 sm:$0xff] (!%p731_p10)   ;;  %v795_v62 = vunpack.c.l.bf16 (!%p731_p10), %v2872_v52  ;;  %s766_s14 = scalar_lea.vmem (!%p731_p10), [#allocation3], %s2037_s13 }
  0x5d   : > { %v2229_v8 = vld [vmem:[%s2831_s29 + $0x4] ss:$8 sps:$4 sm:$0xff] (!%p731_p10)   ;;  %v809_v12 = vsub.s32 (!%p731_p10), 1, %v2824_v6  ;;  %v825_v15 = vsub.s32 (!%p731_p10), 5, %v2824_v6  ;;  %v2233_v16 = vld [vmem:[%s2831_s29] ss:$8 sps:$4 sm:$0xff] (!%p731_p10)  }
  0x5e   : > { %v2231_v11 = vld [vmem:[%s2831_s29 + $0x204] ss:$8 sps:$4 sm:$0xff] (!%p731_p10)   ;;  %1709 = vmatprep.subr.bf16.mxu1 (!%p731_p10), %v2229_v8  ;;  %v2234_v17 = vld [vmem:[%s2831_s29 + $0x200] ss:$8 sps:$4 sm:$0xff] (!%p731_p10)   ;;  %v2237_v23 = vld [vmem:[%s2831_s29 + $0x214] ss:$8 sps:$4 sm:$0xff] (!%p731_p10)  }
  0x5f   : > { %1795 = vmatprep.subr.bf16.mxu0 (!%p731_p10), %v2231_v11  ;;  %v810_v19 = vrot.slane (!%p731_p10), %v2822_v5, %v809_v12  ;;  %v868_v20 = vrot.slane (!%p731_p10), %v2829_v7, %v809_v12  ;;  %v826_v21 = vrot.slane (!%p731_p10), %v2822_v5, %v825_v15  ;;  %v884_v22 = vrot.slane (!%p731_p10), %v2829_v7, %v825_v15  ;;  %v2240_v25 = vld [vmem:[%s2831_s29 + $0x210] ss:$8 sps:$4 sm:$0xff] (!%p731_p10)   ;;  %v2241_v30 = vld [vmem:[%s2831_s29 + $0x24] ss:$8 sps:$4 sm:$0xff] (!%p731_p10)   ;;  %v2245_v32 = vld [vmem:[%s2831_s29 + $0x20] ss:$8 sps:$4 sm:$0xff] (!%p731_p10)  }
  0x60   : > { %1710 = vmatpush1.bf16.msra.mxu1 (!%p731_p10), %v2233_v16  ;;  %1796 = vmatpush1.bf16.msra.mxu0 (!%p731_p10), %v2234_v17  ;;  %v2243_v31 = vld [vmem:[%s2831_s29 + $0x224] ss:$8 sps:$4 sm:$0xff] (!%p731_p10)   ;;  %v2246_v33 = vld [vmem:[%s2831_s29 + $0x220] ss:$8 sps:$4 sm:$0xff] (!%p731_p10)   ;;  %v2247_v38 = vld [vmem:[%s2831_s29 + $0x34] ss:$8 sps:$4 sm:$0xff] (!%p731_p10)  }
  0x61   : > { %1711 = vmatprep.subr.bf16.mxu1 %v2235_v18  ;;  %v844_v26 = vmul.f32 %v810_v19, %v786_v9  ;;  %v852_v27 = vmul.f32 %v810_v19, %v794_v10  ;;  %v848_v28 = vmul.f32 %v826_v21, %v790_v13  ;;  %v856_v29 = vmul.f32 %v826_v21, %v798_v14  ;;  %v2249_v39 = vld [vmem:[%s2831_s29 + $0x234] ss:$8 sps:$4 sm:$0xff]   ;;  %v2251_v44 = vld [vmem:[%s2831_s29 + $0x30] ss:$8 sps:$4 sm:$0xff]   ;;  %v2253_v49 = vld [vmem:[%s2831_s29 + $0x44] ss:$8 sps:$4 sm:$0xff]  }
  0x62   : > { %1797 = vmatprep.subr.bf16.mxu0 %v2237_v23  ;;  %v2252_v48 = vld [vmem:[%s2831_s29 + $0x230] ss:$8 sps:$4 sm:$0xff]   ;;  %v2255_v50 = vld [vmem:[%s2831_s29 + $0x244] ss:$8 sps:$4 sm:$0xff]   ;;  %v833_v54 = vsub.s32 7, %v2824_v6  ;;  %v813_v2 = vsub.s32 2, %v2824_v6 }
  0x63   : > { %v902_v34 = vadd.f32 %v868_v20, %v844_v26  ;;  %v910_v35 = vadd.f32 %v868_v20, %v852_v27  ;;  %v906_v36 = vadd.f32 %v884_v22, %v848_v28  ;;  %v914_v37 = vadd.f32 %v884_v22, %v856_v29  ;;  %v2257_v55 = vld [vmem:[%s2831_s29 + $0x40] ss:$8 sps:$4 sm:$0xff]   ;;  %v2259_v57 = vld [vmem:[%s2831_s29 + $0x54] ss:$8 sps:$4 sm:$0xff]   ;;  %v2263_v10 = vld [vmem:[%s2831_s29 + $0x50] ss:$8 sps:$4 sm:$0xff]  }
  0x64   : > { %1712 = vmatpush1.bf16.msra.mxu1 %v2239_v24  ;;  %1798 = vmatpush1.bf16.msra.mxu0 %v2240_v25  ;;  %v2258_v56 = vld [vmem:[%s2831_s29 + $0x240] ss:$8 sps:$4 sm:$0xff]   ;;  %v2880_v59 = vrot.slane %v2822_v5, %v833_v54  ;;  %v2883_v60 = vrot.slane %v2829_v7, %v833_v54  ;;  %v2261_v61 = vld [vmem:[%s2831_s29 + $0x254] ss:$8 sps:$4 sm:$0xff]   ;;  %v829_v8 = vsub.s32 6, %v2824_v6  ;;  %v814_v11 = vrot.slane %v2822_v5, %v813_v2  ;;  %s2176_s15 = sshll.u32 (%p2521_p6), %s2451_s17, 3 }
  0x65   : > { %1713 = vmatprep.subr.bf16.mxu1 %v2241_v30  ;;  %1799 = vmatprep.subr.bf16.mxu0 %v2243_v31  ;;  %v918_v40 = vmax.f32 %v902_v34, 0.0  ;;  %v926_v41 = vmax.f32 %v910_v35, 0.0  ;;  %v922_v42 = vmax.f32 %v906_v36, 0.0  ;;  %v930_v46 = vmax.f32 %v914_v37, 0.0  ;;  %v2264_v15 = vld [vmem:[%s2831_s29 + $0x250] ss:$8 sps:$4 sm:$0xff]   ;;  %s1907_s22 = scalar_lea.vmem (%p2521_p6), %s3068_s4, %s2176_s15 }
  0x66   : > { %v850_v9 = vmul.f32 %v2880_v59, %v792_v53  ;;  %v872_v12 = vrot.slane %v2829_v7, %v813_v2  ;;  %v2894_v13 = vrot.slane %v2822_v5, %v829_v8  ;;  %v2897_v14 = vrot.slane %v2829_v7, %v829_v8  ;;  %v2265_v16 = vld [vmem:[%s2831_s29 + $0x64] ss:$8 sps:$4 sm:$0xff]   ;;  %v2269_v22 = vld [vmem:[%s2831_s29 + $0x60] ss:$8 sps:$4 sm:$0xff]   ;;  %v2271_v27 = vld [vmem:[%s2831_s29 + $0x74] ss:$8 sps:$4 sm:$0xff]  }
  0x67   : > { %v934_v45 = vpack.c.bf16 %v926_v41, %v918_v40  ;;  %v938_v51 = vpack.c.bf16 %v930_v46, %v922_v42  ;;  %v2267_v18 = vld [vmem:[%s2831_s29 + $0x264] ss:$8 sps:$4 sm:$0xff]   ;;  %v845_v19 = vmul.f32 %v814_v11, %v787_v58  ;;  %v853_v20 = vmul.f32 %v814_v11, %v795_v62  ;;  %v2270_v23 = vld [vmem:[%s2831_s29 + $0x260] ss:$8 sps:$4 sm:$0xff]   ;;  %v2273_v28 = vld [vmem:[%s2831_s29 + $0x274] ss:$8 sps:$4 sm:$0xff]  }
  0x68   : > { %1714 = vmatpush1.bf16.msra.mxu1 %v2245_v32  ;;  %1800 = vmatpush1.bf16.msra.mxu0 %v2246_v33  ;;  %v2902_v17 = vadd.f32 %v2883_v60, %v850_v9  ;;  %v849_v21 = vmul.f32 %v2894_v13, %v791_v63  ;;  %v2275_v31 = vld [vmem:[%s2831_s29 + $0x70] ss:$8 sps:$4 sm:$0xff]   ;;  %v2277_v34 = vld [vmem:[%s2831_s29 + $0x84] ss:$8 sps:$4 sm:$0xff]   ;;  %v2281_v36 = vld [vmem:[%s2831_s29 + $0x80] ss:$8 sps:$4 sm:$0xff]   ;;  %v797_v9 = vunpack.c.l.bf16 %v2817_v4  ;;  %v796_v4 = vunpack.c.h.bf16 %v2872_v52 }
  0x69   : > { %1715 = vmatprep.subr.bf16.mxu1 %v2247_v38  ;;  %1801 = vmatprep.subr.bf16.mxu0 %v2249_v39  ;;  %v903_v24 = vadd.f32 %v872_v12, %v845_v19  ;;  %v911_v25 = vadd.f32 %v872_v12, %v853_v20  ;;  %v2276_v33 = vld [vmem:[%s2831_s29 + $0x270] ss:$8 sps:$4 sm:$0xff]   ;;  %v2279_v35 = vld [vmem:[%s2831_s29 + $0x284] ss:$8 sps:$4 sm:$0xff]   ;;  %v2282_v37 = vld [vmem:[%s2831_s29 + $0x280] ss:$8 sps:$4 sm:$0xff]  }
  0x6a   : > { %1741 = vmatprep.mubr.bf16.mxu1 %v934_v45  ;;  %1827 = vmatprep.mubr.bf16.mxu0 %v938_v51  ;;  %v2909_v26 = vadd.f32 %v2897_v14, %v849_v21  ;;  %v2283_v38 = vld [vmem:[%s2831_s29 + $0x94] ss:$8 sps:$4 sm:$0xff]   ;;  %v2287_v40 = vld [vmem:[%s2831_s29 + $0x90] ss:$8 sps:$4 sm:$0xff]   ;;  %v2289_v42 = vld [vmem:[%s2831_s29 + $0xa4] ss:$8 sps:$4 sm:$0xff]  }
  0x6b   : > { %v919_v29 = vmax.f32 %v903_v24, 0.0  ;;  %v927_v30 = vmax.f32 %v911_v25, 0.0  ;;  %v2285_v39 = vld [vmem:[%s2831_s29 + $0x294] ss:$8 sps:$4 sm:$0xff]   ;;  %v2288_v41 = vld [vmem:[%s2831_s29 + $0x290] ss:$8 sps:$4 sm:$0xff]  }
  0x6c   : > { %1716 = vmatpush1.bf16.msra.mxu1 %v2251_v44  ;;  %1802 = vmatpush1.bf16.msra.mxu0 %v2252_v48  ;;  %v2291_v43 = vld [vmem:[%s2831_s29 + $0x2a4] ss:$8 sps:$4 sm:$0xff]   ;;  %v2293_v44 = vld [vmem:[%s2831_s29 + $0xa0] ss:$8 sps:$4 sm:$0xff]   ;;  %v2295_v46 = vld [vmem:[%s2831_s29 + $0xb4] ss:$8 sps:$4 sm:$0xff]  }
  0x6d   : > { %1717 = vmatprep.subr.bf16.mxu1 %v2253_v49  ;;  %1803 = vmatprep.subr.bf16.mxu0 %v2255_v50  ;;  %v2914_v32 = vpack.c.bf16 %v927_v30, %v919_v29  ;;  %v2294_v45 = vld [vmem:[%s2831_s29 + $0x2a0] ss:$8 sps:$4 sm:$0xff]   ;;  %v2297_v48 = vld [vmem:[%s2831_s29 + $0x2b4] ss:$8 sps:$4 sm:$0xff]   ;;  %v805_v49 = vsub.s32 0, %v2824_v6  ;;  %v821_v50 = vsub.s32 4, %v2824_v6 }
  0x6e   : > { %v2299_v51 = vld [vmem:[%s2831_s29 + $0xb0] ss:$8 sps:$4 sm:$0xff]   ;;  %v2301_v54 = vld [vmem:[%s2831_s29 + $0xc4] ss:$8 sps:$4 sm:$0xff]   ;;  %v817_v63 = vsub.s32 3, %v2824_v6  ;;  %v788_v6 = vunpack.c.h.bf16 %v2864_v47 }
  0x6f   : > { %v2300_v53 = vld [vmem:[%s2831_s29 + $0x2b0] ss:$8 sps:$4 sm:$0xff]   ;;  %v806_v58 = vrot.slane %v2822_v5, %v805_v49  ;;  %v822_v62 = vrot.slane %v2822_v5, %v821_v50  ;;  %v2305_v2 = vld [vmem:[%s2831_s29 + $0xc0] ss:$8 sps:$4 sm:$0xff]   ;;  %v864_v11 = vrot.slane %v2829_v7, %v805_v49  ;;  %v2313_v21 = vld [vmem:[%s2831_s29 + $0xe4] ss:$8 sps:$4 sm:$0xff]  }
  0x70   : > { %1718 = vmatpush1.bf16.msra.mxu1 %v2257_v55  ;;  %1804 = vmatpush1.bf16.msra.mxu0 %v2258_v56  ;;  %v2303_v55 = vld [vmem:[%s2831_s29 + $0x2c4] ss:$8 sps:$4 sm:$0xff]   ;;  %v785_v56 = vunpack.c.l.bf16 %v2800_v0  ;;  %v2306_v8 = vld [vmem:[%s2831_s29 + $0x2c0] ss:$8 sps:$4 sm:$0xff]   ;;  %v2309_v0 = vld [vmem:[%s2831_s29 + $0x2d4] ss:$8 sps:$4 sm:$0xff]  }
  0x71   : > { %1719 = vmatprep.subr.bf16.mxu1 %v2259_v57  ;;  %1805 = vmatprep.subr.bf16.mxu0 %v2261_v61  ;;  %v793_v57 = vunpack.c.l.bf16 %v2805_v1  ;;  %v789_v61 = vunpack.c.l.bf16 %v2812_v3  ;;  %v2312_v19 = vld [vmem:[%s2831_s29 + $0x2d0] ss:$8 sps:$4 sm:$0xff]   ;;  %v855_v20 = vmul.f32 %v822_v62, %v797_v9  ;;  %v2315_v47 = vld [vmem:[%s2831_s29 + $0x2e4] ss:$8 sps:$4 sm:$0xff]   ;;  %v2319_v30 = vld [vmem:[%s2831_s29 + $0xf4] ss:$8 sps:$4 sm:$0xff]  }
  0x72   : > { %v843_v1 = vmul.f32 %v806_v58, %v785_v56  ;;  %v2333_v49 = vld [vmem:[%s2831_s29 + $0x114] ss:$8 sps:$4 sm:$0xff]   ;;  %v2342_v56 = vld [vmem:[%s2831_s29 + $0x324] ss:$8 sps:$4 sm:$0xff]  }
  0x73   : > { %v851_v3 = vmul.f32 %v806_v58, %v793_v57  ;;  %v847_v12 = vmul.f32 %v822_v62, %v789_v61  ;;  %v2337_v57 = vld [vmem:[%s2831_s29 + $0x120] ss:$8 sps:$4 sm:$0xff]   ;;  %v2345_v61 = vld [vmem:[%s2831_s29 + $0x134] ss:$8 sps:$4 sm:$0xff]   ;;  %v2354_v9 = vld [vmem:[%s2831_s29 + $0x344] ss:$8 sps:$4 sm:$0xff]  }
  0x74   : > { %1720 = vmatpush1.bf16.msra.mxu1 %v2263_v10  ;;  %1806 = vmatpush1.bf16.msra.mxu0 %v2264_v15  ;;  %v2307_v10 = vld [vmem:[%s2831_s29 + $0xd4] ss:$8 sps:$4 sm:$0xff]   ;;  %v880_v15 = vrot.slane %v2829_v7, %v821_v50  ;;  %v2340_v58 = vld [vmem:[%s2831_s29 + $0x320] ss:$8 sps:$4 sm:$0xff]  }
  0x75   : > { %1721 = vmatprep.subr.bf16.mxu1 %v2265_v16  ;;  %1807 = vmatprep.subr.bf16.mxu0 %v2267_v18  ;;  %v818_v16 = vrot.slane %v2822_v5, %v817_v63  ;;  %v2311_v18 = vld [vmem:[%s2831_s29 + $0xd0] ss:$8 sps:$4 sm:$0xff]   ;;  %v876_v5 = vrot.slane %v2829_v7, %v817_v63  ;;  %v2336_v50 = vld [vmem:[%s2831_s29 + $0x314] ss:$8 sps:$4 sm:$0xff]  }
  0x76   : > { %v905_v24 = vadd.f32 %v880_v15, %v847_v12  ;;  %v913_v29 = vadd.f32 %v880_v15, %v855_v20  ;;  %v2323_v7 = vld [vmem:[%s2831_s29 + $0xf0] ss:$8 sps:$4 sm:$0xff]   ;;  %v2348_v62 = vld [vmem:[%s2831_s29 + $0x334] ss:$8 sps:$4 sm:$0xff]   ;;  %v2363_v12 = vld [vmem:[%s2831_s29 + $0x164] ss:$8 sps:$4 sm:$0xff]  }
  0x77   : > { %v846_v25 = vmul.f32 %v818_v16, %v788_v6  ;;  %v854_v52 = vmul.f32 %v818_v16, %v796_v4  ;;  %v2343_v63 = vld [vmem:[%s2831_s29 + $0x130] ss:$8 sps:$4 sm:$0xff]   ;;  %v2366_v15 = vld [vmem:[%s2831_s29 + $0x364] ss:$8 sps:$4 sm:$0xff]   ;;  %v2364_v20 = vld [vmem:[%s2831_s29 + $0x360] ss:$8 sps:$4 sm:$0xff]  }
  0x78   : > { %1722 = vmatpush1.bf16.msra.mxu1 %v2269_v22  ;;  %1808 = vmatpush1.bf16.msra.mxu0 %v2270_v23  ;;  %v901_v22 = vadd.f32 %v864_v11, %v843_v1  ;;  %v909_v23 = vadd.f32 %v864_v11, %v851_v3  ;;  %v2357_v1 = vld [vmem:[%s2831_s29 + $0x154] ss:$8 sps:$4 sm:$0xff]   ;;  %v2355_v11 = vld [vmem:[%s2831_s29 + $0x150] ss:$8 sps:$4 sm:$0xff]  }
  0x79   : > { %1723 = vmatprep.subr.bf16.mxu1 %v2271_v27  ;;  %1809 = vmatprep.subr.bf16.mxu0 %v2273_v28  ;;  %v2317_v27 = vld [vmem:[%s2831_s29 + $0xe0] ss:$8 sps:$4 sm:$0xff]   ;;  %v2360_v3 = vld [vmem:[%s2831_s29 + $0x354] ss:$8 sps:$4 sm:$0xff]   ;;  %v2358_v6 = vld [vmem:[%s2831_s29 + $0x350] ss:$8 sps:$4 sm:$0xff]  }
  0x7a   : > { %v2318_v28 = vld [vmem:[%s2831_s29 + $0x2e0] ss:$8 sps:$4 sm:$0xff]   ;;  %v784_v4 = vld [vmem:[%s3064_s0 + $0x38] sm:$0xff] }
  0x7b   : > { %v799_v16 = vunpack.c.l.bf16 %v784_v4 }
  0x7c   : > { %1724 = vmatpush1.bf16.msra.mxu1 %v2275_v31  ;;  %1810 = vmatpush1.bf16.msra.mxu0 %v2276_v33  ;;  %v2321_v31 = vld [vmem:[%s2831_s29 + $0x2f4] ss:$8 sps:$4 sm:$0xff]   ;;  %v917_v33 = vmax.f32 %v901_v22, 0.0 }
  0x7d   : > { %1725 = vmatprep.subr.bf16.mxu1 %v2277_v34  ;;  %1811 = vmatprep.subr.bf16.mxu0 %v2279_v35  ;;  %v925_v34 = vmax.f32 %v909_v23, 0.0  ;;  %v921_v35 = vmax.f32 %v905_v24, 0.0  ;;  %v2369_v22 = vld [vmem:[%s2831_s29 + $0x174] ss:$8 sps:$4 sm:$0xff]  }
  0x7e   : > { %v2372_v23 = vld [vmem:[%s2831_s29 + $0x374] ss:$8 sps:$4 sm:$0xff]  }
  0x80   : > { %1726 = vmatpush1.bf16.msra.mxu1 %v2281_v36  ;;  %1812 = vmatpush1.bf16.msra.mxu0 %v2282_v37  ;;  %v904_v36 = vadd.f32 %v876_v5, %v846_v25  ;;  %v912_v37 = vadd.f32 %v876_v5, %v854_v52  ;;  %v924_v25 = vmax.f32 %v2902_v17, 0.0  ;;  %v923_v5 = vmax.f32 %v2909_v26, 0.0  ;;  %v2378_v17 = vld [vmem:[%s2831_s29 + $0x384] ss:$8 sps:$4 sm:$0xff]   ;;  %v2373_v26 = vld [vmem:[%s2831_s29 + $0x180] ss:$8 sps:$4 sm:$0xff]  }
  0x81   : > { %1727 = vmatprep.subr.bf16.mxu1 %v2283_v38  ;;  %1813 = vmatprep.subr.bf16.mxu0 %v2285_v39  ;;  %v2324_v38 = vld [vmem:[%s2831_s29 + $0x2f0] ss:$8 sps:$4 sm:$0xff]   ;;  %v929_v39 = vmax.f32 %v913_v29, 0.0 }
  0x84   : > { %1728 = vmatpush1.bf16.msra.mxu1 %v2287_v40  ;;  %1814 = vmatpush1.bf16.msra.mxu0 %v2288_v41  ;;  %v2327_v40 = vld [vmem:[%s2831_s29 + $0x104] ss:$8 sps:$4 sm:$0xff]  }
  0x85   : > { %1729 = vmatprep.subr.bf16.mxu1 %v2289_v42  ;;  %1815 = vmatprep.subr.bf16.mxu0 %v2291_v43  ;;  %v2330_v41 = vld [vmem:[%s2831_s29 + $0x304] ss:$8 sps:$4 sm:$0xff]   ;;  %v920_v42 = vmax.f32 %v904_v36, 0.0  ;;  %v928_v43 = vmax.f32 %v912_v37, 0.0 }
  0x86   : > { %v2387_v36 = vld [vmem:[%s2831_s29 + $0x1a4] ss:$8 sps:$4 sm:$0xff]  }
  0x87   : > { %v2390_v37 = vld [vmem:[%s2831_s29 + $0x3a4] ss:$8 sps:$4 sm:$0xff]  }
  0x88   : > { %1730 = vmatpush1.bf16.msra.mxu1 %v2293_v44  ;;  %1816 = vmatpush1.bf16.msra.mxu0 %v2294_v45  ;;  %v2325_v44 = vld [vmem:[%s2831_s29 + $0x100] ss:$8 sps:$4 sm:$0xff]  }
  0x89   : > { %1731 = vmatprep.subr.bf16.mxu1 %v2295_v46  ;;  %1817 = vmatprep.subr.bf16.mxu0 %v2297_v48  ;;  %v2328_v45 = vld [vmem:[%s2831_s29 + $0x300] ss:$8 sps:$4 sm:$0xff]   ;;  %v933_v46 = vpack.c.bf16 %v925_v34, %v917_v33  ;;  %v937_v48 = vpack.c.bf16 %v929_v39, %v921_v35  ;;  %v2384_v33 = vld [vmem:[%s2831_s29 + $0x394] ss:$8 sps:$4 sm:$0xff]   ;;  %v2379_v34 = vld [vmem:[%s2831_s29 + $0x190] ss:$8 sps:$4 sm:$0xff]  }
  0x8a   : > { %v2382_v35 = vld [vmem:[%s2831_s29 + $0x390] ss:$8 sps:$4 sm:$0xff]   ;;  %v2393_v39 = vld [vmem:[%s2831_s29 + $0x1b4] ss:$8 sps:$4 sm:$0xff]  }
  0x8c   : > { %1732 = vmatpush1.bf16.msra.mxu1 %v2299_v51  ;;  %1818 = vmatpush1.bf16.msra.mxu0 %v2300_v53  ;;  %v936_v51 = vpack.c.bf16 %v928_v43, %v920_v42  ;;  %v2331_v53 = vld [vmem:[%s2831_s29 + $0x110] ss:$8 sps:$4 sm:$0xff]   ;;  %v2399_v43 = vld [vmem:[%s2831_s29 + $0x1c4] ss:$8 sps:$4 sm:$0xff]  }
  0x8d   : > { %1733 = vmatprep.subr.bf16.mxu1 %v2301_v54  ;;  %1819 = vmatprep.subr.bf16.mxu0 %v2303_v55  ;;  %v2334_v54 = vld [vmem:[%s2831_s29 + $0x310] ss:$8 sps:$4 sm:$0xff]   ;;  %v2339_v55 = vld [vmem:[%s2831_s29 + $0x124] ss:$8 sps:$4 sm:$0xff]  }
  0x8e   : > { %v2394_v42 = vld [vmem:[%s2831_s29 + $0x3b0] ss:$8 sps:$4 sm:$0xff]  }
  0x90   : > { %1734 = vmatpush1.bf16.msra.mxu1 %v2305_v2  ;;  %1820 = vmatpush1.bf16.msra.mxu0 %v2306_v8  ;;  %v2346_v2 = vld [vmem:[%s2831_s29 + $0x330] ss:$8 sps:$4 sm:$0xff]   ;;  %v2351_v8 = vld [vmem:[%s2831_s29 + $0x144] ss:$8 sps:$4 sm:$0xff]  }
  0x91   : > { %1735 = vmatprep.subr.bf16.mxu1 %v2307_v10  ;;  %1821 = vmatprep.subr.bf16.mxu0 %v2309_v0  ;;  %v2349_v10 = vld [vmem:[%s2831_s29 + $0x140] ss:$8 sps:$4 sm:$0xff]  }
  0x92   : > { %v2352_v0 = vld [vmem:[%s2831_s29 + $0x340] ss:$8 sps:$4 sm:$0xff]  }
  0x94   : > { %1736 = vmatpush1.bf16.msra.mxu1 %v2311_v18  ;;  %1822 = vmatpush1.bf16.msra.mxu0 %v2312_v19  ;;  %v800_v18 = vunpack.c.h.bf16 %v784_v4  ;;  %v2361_v19 = vld [vmem:[%s2831_s29 + $0x160] ss:$8 sps:$4 sm:$0xff]  }
  0x95   : > { %1737 = vmatprep.subr.bf16.mxu1 %v2313_v21  ;;  %1823 = vmatprep.subr.bf16.mxu0 %v2315_v47  ;;  %v857_v47 = vmul.f32 %v2894_v13, %v799_v16  ;;  %v2370_v13 = vld [vmem:[%s2831_s29 + $0x370] ss:$8 sps:$4 sm:$0xff]  }
  0x96   : > { %v858_v21 = vmul.f32 %v2880_v59, %v800_v18  ;;  %v2367_v59 = vld [vmem:[%s2831_s29 + $0x170] ss:$8 sps:$4 sm:$0xff]  }
  0x97   : > { %v915_v52 = vadd.f32 %v2897_v14, %v857_v47 }
  0x98   : > { %1738 = vmatpush1.bf16.msra.mxu1 %v2317_v27  ;;  %1824 = vmatpush1.bf16.msra.mxu0 %v2318_v28  ;;  %v916_v24 = vadd.f32 %v2883_v60, %v858_v21  ;;  %v2375_v60 = vld [vmem:[%s2831_s29 + $0x184] ss:$8 sps:$4 sm:$0xff]  }
  0x99   : > { %1739 = vmatprep.subr.bf16.mxu1 %v2319_v30  ;;  %1825 = vmatprep.subr.bf16.mxu0 %v2321_v31  ;;  %v931_v28 = vmax.f32 %v915_v52, 0.0  ;;  %v2376_v30 = vld [vmem:[%s2831_s29 + $0x380] ss:$8 sps:$4 sm:$0xff]   ;;  %v2381_v31 = vld [vmem:[%s2831_s29 + $0x194] ss:$8 sps:$4 sm:$0xff]  }
  0x9a   : > { %v932_v27 = vmax.f32 %v916_v24, 0.0 }
  0x9b   : > { %v3007_v14 = vpack.c.bf16 %v931_v28, %v923_v5 }
  0x9c   : > { %1740 = vmatpush1.bf16.msra.mxu1 %v2323_v7  ;;  %1826 = vmatpush1.bf16.msra.mxu0 %v2324_v38  ;;  %v940_v29 = vpack.c.bf16 %v932_v27, %v924_v25  ;;  %v2385_v7 = vld [vmem:[%s2831_s29 + $0x1a0] ss:$8 sps:$4 sm:$0xff]  }
  0x9d   : > { %1752 = vmatprep.subr.bf16.mxu1 %v2327_v40  ;;  %1838 = vmatprep.subr.bf16.mxu0 %v2330_v41  ;;  %v2388_v38 = vld [vmem:[%s2831_s29 + $0x3a0] ss:$8 sps:$4 sm:$0xff]   ;;  %v2396_v40 = vld [vmem:[%s2831_s29 + $0x3b4] ss:$8 sps:$4 sm:$0xff]   ;;  %v2391_v41 = vld [vmem:[%s2831_s29 + $0x1b0] ss:$8 sps:$4 sm:$0xff]  }
  0x9f   : > { %1742 = vmatmul.mubr.bf16.vlgmr.msra.gmra.mrb[0].mxu1 %v933_v46  ;;  %1828 = vmatmul.mubr.bf16.vlgmr.msra.gmra.mrb[0].mxu0 %v937_v48  ;;  %v2400_v46 = vld [vmem:[%s2831_s29 + $0x3c0] ss:$8 sps:$4 sm:$0xff]   ;;  %v2405_v48 = vld [vmem:[%s2831_s29 + $0x1d4] ss:$8 sps:$4 sm:$0xff]  }
  0xa0   : > { %1753 = vmatpush1.bf16.msra.mxu1 %v2325_v44  ;;  %1839 = vmatpush1.bf16.msra.mxu0 %v2328_v45  ;;  %v2402_v44 = vld [vmem:[%s2831_s29 + $0x3c4] ss:$8 sps:$4 sm:$0xff]   ;;  %v2397_v45 = vld [vmem:[%s2831_s29 + $0x1c0] ss:$8 sps:$4 sm:$0xff]  }
  0xa1   : > { %1754 = vmatprep.subr.bf16.mxu1 %v2333_v49  ;;  %1840 = vmatprep.subr.bf16.mxu0 %v2336_v50  ;;  %v2408_v49 = vld [vmem:[%s2831_s29 + $0x3d4] ss:$8 sps:$4 sm:$0xff]   ;;  %v2403_v50 = vld [vmem:[%s2831_s29 + $0x1d0] ss:$8 sps:$4 sm:$0xff]  }
  0xa2   : > { %1784 = vmatprep.mubr.bf16.mxu1 %v936_v51  ;;  %1870 = vmatprep.mubr.bf16.mxu0 %v940_v29  ;;  %v2406_v51 = vld [vmem:[%s2831_s29 + $0x3d0] ss:$8 sps:$4 sm:$0xff]  }
  0xa4   : > { %1755 = vmatpush1.bf16.msra.mxu1 %v2331_v53  ;;  %1841 = vmatpush1.bf16.msra.mxu0 %v2334_v54  ;;  %v2411_v53 = vld [vmem:[%s2831_s29 + $0x1e4] ss:$8 sps:$4 sm:$0xff]  }
  0xa5   : > { %1756 = vmatprep.subr.bf16.mxu1 %v2339_v55  ;;  %1842 = vmatprep.subr.bf16.mxu0 %v2342_v56  ;;  %v2414_v54 = vld [vmem:[%s2831_s29 + $0x3e4] ss:$8 sps:$4 sm:$0xff]   ;;  %v2409_v55 = vld [vmem:[%s2831_s29 + $0x1e0] ss:$8 sps:$4 sm:$0xff]  }
  0xa6   : > { %v2412_v56 = vld [vmem:[%s2831_s29 + $0x3e0] ss:$8 sps:$4 sm:$0xff]  }
  0xa8   : > { %1757 = vmatpush1.bf16.msra.mxu1 %v2337_v57  ;;  %1843 = vmatpush1.bf16.msra.mxu0 %v2340_v58  ;;  %v2417_v57 = vld [vmem:[%s2831_s29 + $0x1f4] ss:$8 sps:$4 sm:$0xff]  }
  0xa9   : > { %1758 = vmatprep.subr.bf16.mxu1 %v2345_v61  ;;  %1844 = vmatprep.subr.bf16.mxu0 %v2348_v62  ;;  %v2420_v58 = vld [vmem:[%s2831_s29 + $0x3f4] ss:$8 sps:$4 sm:$0xff]   ;;  %v2415_v61 = vld [vmem:[%s2831_s29 + $0x1f0] ss:$8 sps:$4 sm:$0xff]  }
  0xaa   : > { %v2418_v62 = vld [vmem:[%s2831_s29 + $0x3f0] ss:$8 sps:$4 sm:$0xff]  }
  0xac   : > { %1759 = vmatpush1.bf16.msra.mxu1 %v2343_v63  ;;  %1845 = vmatpush1.bf16.msra.mxu0 %v2346_v2 }
  0xad   : > { %1760 = vmatprep.subr.bf16.mxu1 %v2351_v8  ;;  %1846 = vmatprep.subr.bf16.mxu0 %v2354_v9 }
  0xb0   : > { %1761 = vmatpush1.bf16.msra.mxu1 %v2349_v10  ;;  %1847 = vmatpush1.bf16.msra.mxu0 %v2352_v0 }
  0xb1   : > { %1762 = vmatprep.subr.bf16.mxu1 %v2357_v1  ;;  %1848 = vmatprep.subr.bf16.mxu0 %v2360_v3 }
  0xb4   : > { %1763 = vmatpush1.bf16.msra.mxu1 %v2355_v11  ;;  %1849 = vmatpush1.bf16.msra.mxu0 %v2358_v6 }
  0xb5   : > { %1764 = vmatprep.subr.bf16.mxu1 %v2363_v12  ;;  %1850 = vmatprep.subr.bf16.mxu0 %v2366_v15 }
  0xb8   : > { %1765 = vmatpush1.bf16.msra.mxu1 %v2361_v19  ;;  %1851 = vmatpush1.bf16.msra.mxu0 %v2364_v20 }
  0xb9   : > { %1766 = vmatprep.subr.bf16.mxu1 %v2369_v22  ;;  %1852 = vmatprep.subr.bf16.mxu0 %v2372_v23 }
  0xbc   : > { %1767 = vmatpush1.bf16.msra.mxu1 %v2367_v59  ;;  %1853 = vmatpush1.bf16.msra.mxu0 %v2370_v13 }
  0xbd   : > { %1768 = vmatprep.subr.bf16.mxu1 %v2375_v60  ;;  %1854 = vmatprep.subr.bf16.mxu0 %v2378_v17 }
  0xc0   : > { %1769 = vmatpush1.bf16.msra.mxu1 %v2373_v26  ;;  %1855 = vmatpush1.bf16.msra.mxu0 %v2376_v30 }
  0xc1   : > { %1770 = vmatprep.subr.bf16.mxu1 %v2381_v31  ;;  %1856 = vmatprep.subr.bf16.mxu0 %v2384_v33 }
  0xc4   : > { %1771 = vmatpush1.bf16.msra.mxu1 %v2379_v34  ;;  %1857 = vmatpush1.bf16.msra.mxu0 %v2382_v35 }
  0xc5   : > { %1772 = vmatprep.subr.bf16.mxu1 %v2387_v36  ;;  %1858 = vmatprep.subr.bf16.mxu0 %v2390_v37 }
  0xc8   : > { %1773 = vmatpush1.bf16.msra.mxu1 %v2385_v7  ;;  %1859 = vmatpush1.bf16.msra.mxu0 %v2388_v38 }
  0xc9   : > { %1774 = vmatprep.subr.bf16.mxu1 %v2393_v39  ;;  %1860 = vmatprep.subr.bf16.mxu0 %v2396_v40 }
  0xcc   : > { %1775 = vmatpush1.bf16.msra.mxu1 %v2391_v41  ;;  %1861 = vmatpush1.bf16.msra.mxu0 %v2394_v42 }
  0xcd   : > { %1776 = vmatprep.subr.bf16.mxu1 %v2399_v43  ;;  %1862 = vmatprep.subr.bf16.mxu0 %v2402_v44 }
  0xd0   : > { %1777 = vmatpush1.bf16.msra.mxu1 %v2397_v45  ;;  %1863 = vmatpush1.bf16.msra.mxu0 %v2400_v46 }
  0xd1   : > { %1778 = vmatprep.subr.bf16.mxu1 %v2405_v48  ;;  %1864 = vmatprep.subr.bf16.mxu0 %v2408_v49 }
  0xd4   : > { %1779 = vmatpush1.bf16.msra.mxu1 %v2403_v50  ;;  %1865 = vmatpush1.bf16.msra.mxu0 %v2406_v51 }
  0xd5   : > { %1780 = vmatprep.subr.bf16.mxu1 %v2411_v53  ;;  %1866 = vmatprep.subr.bf16.mxu0 %v2414_v54 }
  0xd8   : > { %1781 = vmatpush1.bf16.msra.mxu1 %v2409_v55  ;;  %1867 = vmatpush1.bf16.msra.mxu0 %v2412_v56 }
  0xd9   : > { %1782 = vmatprep.subr.bf16.mxu1 %v2417_v57  ;;  %1868 = vmatprep.subr.bf16.mxu0 %v2420_v58 }
  0xdc   : > { %1783 = vmatpush1.bf16.msra.mxu1 %v2415_v61  ;;  %1869 = vmatpush1.bf16.msra.mxu0 %v2418_v62 }
  0xdf   : > { %1785 = vmatmul.mubr.bf16.vlgmr.msra.gmra.mrb[0].mxu1 %v2914_v32  ;;  %1871 = vmatmul.mubr.bf16.vlgmr.msra.gmra.mrb[0].mxu0 %v3007_v14 }
 0x1b2   : > { %v1786_v63 = vpop.f32.mrb[0].mxu1  ;;  %v1872_v2 = vpop.f32.mrb[0].mxu0 }
 0x1b3   : > { %v2177_v8 = vadd.f32 %v1872_v2, %v1786_v63  ;;  %v1788_v9 = vpop.f32.mrb[1].mxu1  ;;  %v1874_v10 = vpop.f32.mrb[1].mxu0 }
 0x1b4   : > { %v2178_v0 = vadd.f32 %v1874_v10, %v1788_v9  ;;  %v1790_v1 = vpop.f32.mrb[2].mxu1  ;;  %v1876_v3 = vpop.f32.mrb[2].mxu0  ;;  %1901 = sbr.rel (!%p2521_p6) target bundleno = 451 (0x1c3), region = 78 }
 0x1b5   : > { %v2179_v11 = vadd.f32 %v1876_v3, %v1790_v1  ;;  %v1792_v6 = vpop.f32.mrb[3].mxu1  ;;  %v1878_v12 = vpop.f32.mrb[3].mxu0 }
 0x1b6   : > { %v2174_v15 = vpack.c.bf16 %v2178_v0, %v2177_v8  ;;  %v2180_v4 = vadd.f32 %v1878_v12, %v1792_v6 }
 0x1b8   : > { %1893 = vst [vmem:[%s766_s14] sm:$0xff] %v2174_v15  ;;  %v2175_v32 = vpack.c.bf16 %v2180_v4, %v2179_v11 }
 0x1ba   : > { %1894 = vst [vmem:[%s766_s14 + $0x8] sm:$0xff] %v2175_v32 }
 0x1bf   : > { %v1937_v16 = vld [vmem:[%s766_s14] sm:$0xff] }
 0x1c0   : > { %1938 = vst [vmem:[%s1907_s22] sm:$0xff] %v1937_v16 }
 0x1c1   : > { %v1939_v18 = vld [vmem:[%s766_s14 + $0x8] sm:$0xff] }
 0x1c2   : > { %1940 = vst [vmem:[%s1907_s22 + $0x10] sm:$0xff] %v1939_v18 }
 0x1c3 PF: > { %s14_s19 = sadd.s32 1, %s2459_s19   ;;  %s3070_s15 = smov %s2447_s16 }
 0x1c4   : > { %p11_p11 = scmp.ge.s32.totalorder %s14_s19, 4   ;;  %s3071_s16 = smov %s2526_s25 }
 0x1c5   : > { %s3072_s17 = smov %s2455_s18  ;;  %s3073_s18 = smov %s3075_s20 }
 0x1c6   :  { %13 = sbr.rel (!%p11_p11) target bundleno = 3 (0x3), region = 150 }

</bundles_post_ra>
